<compile_context>
chip_gen: v6e
topology: v6e:2x2x1
jax: 0.10.0
libtpu: 0.0.40
codegen_flags: <defaults>
</compile_context>

<pallas_src>
import functools

import jax
import jax.numpy as jnp
from jax.experimental import pallas as pl
from jax.experimental.pallas import tpu as pltpu

INPUT_SIZE = 32 * 32 * 3   # 3072
HIDDEN_SIZE = 256
NUM_CLASSES = 10
OUT_PAD = 128              # lane-dense padded logits width (multiple of 128)
MIN_TILE = 256             # smallest MXU-friendly batch tile


def _mlp_kernel(x_ref, w1_ref, b1_ref, w2_ref, b2_ref, o_ref):
    # x_ref:  (TB, 3072)      w1_ref: (3072, 256)   b1_ref: (1, 256)
    # w2_ref: (256, OUT_PAD)  b2_ref: (1, OUT_PAD)  o_ref:  (TB, OUT_PAD)
    x = x_ref[...]
    # fc1: x @ W1 (MXU, f32 accumulation regardless of operand dtype) + b1.
    h = jnp.dot(x, w1_ref[...], preferred_element_type=jnp.float32)
    h = h + b1_ref[...]                    # broadcast (1, 256) over rows (VPU)
    h = jnp.maximum(h, 0.0)                # ReLU (VPU, free under MXU/DMA path)
    # fc2: h @ W2 + b2 -- output lane-padded to 128 so the store is unmasked.
    h = h.astype(w2_ref.dtype)
    o = jnp.dot(h, w2_ref[...], preferred_element_type=jnp.float32)
    o_ref[...] = (o + b2_ref[...]).astype(o_ref.dtype)


def _round_up(n, m):
    return ((n + m - 1) // m) * m


@functools.partial(jax.jit, static_argnames=("batch_tile", "use_bf16"))
def fully_connected_nn(x, w1, b1, w2, b2, *, batch_tile=1024, use_bf16=True):
    """Forward pass of FullyConnectedNN: fc2(relu(fc1(flatten(x))))."""
    B = x.shape[0]
    x2d = x.reshape(B, -1)                 # torch's x.view(...): free bitcast reshape
    assert x2d.shape[1] == INPUT_SIZE
    # Sublane packing: bf16 packs 16 rows per vreg tile, f32 packs 8.
    assert batch_tile % (16 if use_bf16 else 8) == 0

    # Clamp the tile so (a) tiny batches don't allocate oversized VMEM buffers
    # and (b) large batches keep >= ~4 grid steps to feed both v7x TensorCores.
    batch_tile = max(MIN_TILE, min(batch_tile, _round_up(pl.cdiv(B, 4), MIN_TILE)))

    operand_dtype = jnp.bfloat16 if use_bf16 else jnp.float32
    # These casts/pads are fused into the pallas_call operands via
    # allow_input_fusion, so x does not take an extra HBM round trip.
    x2d = x2d.astype(operand_dtype)
    w1c = w1.astype(operand_dtype)
    w2p = jnp.pad(w2.astype(operand_dtype), ((0, 0), (0, OUT_PAD - NUM_CLASSES)))
    b1c = b1.astype(jnp.float32)           # biases added after f32 accumulation
    b2p = jnp.pad(b2.astype(jnp.float32), ((0, 0), (0, OUT_PAD - NUM_CLASSES)))

    # No batch padding: cdiv grid + clipped boundary block.  Rows past B in the
    # final input block never mix into valid rows (the matmul is row-wise) and
    # their output rows are clipped on store.
    grid = (pl.cdiv(B, batch_tile),)

    in_itemsize = jnp.dtype(operand_dtype).itemsize
    cost = pl.CostEstimate(
        flops=2 * B * INPUT_SIZE * HIDDEN_SIZE + 2 * B * HIDDEN_SIZE * OUT_PAD,
        transcendentals=0,
        bytes_accessed=(B * INPUT_SIZE * in_itemsize              # x stream (dominant)
                        + INPUT_SIZE * HIDDEN_SIZE * in_itemsize  # W1 (resident)
                        + HIDDEN_SIZE * OUT_PAD * in_itemsize     # W2 (padded, resident)
                        + (HIDDEN_SIZE + OUT_PAD) * 4             # biases (f32)
                        + B * OUT_PAD * 4),                       # f32 logits out
    )

    out = pl.pallas_call(
        _mlp_kernel,
        out_shape=jax.ShapeDtypeStruct((B, OUT_PAD), jnp.float32),
        grid_spec=pltpu.PrefetchScalarGridSpec(
            num_scalar_prefetch=0,
            grid=grid,
            in_specs=[
                # x: streamed per batch tile (double-buffered by Pallas).
                pl.BlockSpec((batch_tile, INPUT_SIZE), lambda i: (i, 0)),
                # Weights/biases: constant index_map -> fetched once, resident
                # across the whole grid (no per-step weight traffic).
                pl.BlockSpec((INPUT_SIZE, HIDDEN_SIZE), lambda i: (0, 0)),
                pl.BlockSpec((1, HIDDEN_SIZE), lambda i: (0, 0)),
                pl.BlockSpec((HIDDEN_SIZE, OUT_PAD), lambda i: (0, 0)),
                pl.BlockSpec((1, OUT_PAD), lambda i: (0, 0)),
            ],
            out_specs=pl.BlockSpec((batch_tile, OUT_PAD), lambda i: (i, 0)),
        ),
        compiler_params=pltpu.CompilerParams(
            dimension_semantics=("parallel",),   # batch tiles shard over cores
            # Covers a 2048-row bf16 / 1024-row f32 x tile double-buffered plus
            # resident weights on every generation; < v7x's 64 MiB physical VMEM.
            vmem_limit_bytes=48 * 1024 * 1024,
            # Fuse the wrapper-side reshape/astype/pad producers into the
            # pallas_call operands instead of materializing HBM copies.
            allow_input_fusion=[True, True, True, True, True],
        ),
        cost_estimate=cost,
    )(x2d, w1c, b1c, w2p, b2p)

    # Strip the lane padding on the class dimension.
    return out[:, :NUM_CLASSES]


def _reference(x, w1, b1, w2, b2):
    x2d = x.reshape(x.shape[0], -1)
    h = jnp.maximum(x2d @ w1 + b1, 0.0)
    return h @ w2 + b2


if __name__ == "__main__":
    key = jax.random.PRNGKey(0)
    kx, k1, k2, k3, k4 = jax.random.split(key, 5)

    B = 8   # small demo batch: exercises the clipped boundary-block path
    # NCHW input like the PyTorch module expects (CIFAR-like 3x32x32).
    x = jax.random.normal(kx, (B, 3, 32, 32), dtype=jnp.float32)

    # Deterministic nn.Linear-style uniform +/- 1/sqrt(fan_in) init, stored
    # transposed relative to PyTorch's (out, in) convention.
    bound1 = 1.0 / jnp.sqrt(jnp.float32(INPUT_SIZE))
    bound2 = 1.0 / jnp.sqrt(jnp.float32(HIDDEN_SIZE))
    w1 = jax.random.uniform(k1, (INPUT_SIZE, HIDDEN_SIZE), jnp.float32,
                            -bound1, bound1)
    b1 = jax.random.uniform(k2, (1, HIDDEN_SIZE), jnp.float32, -bound1, bound1)
    w2 = jax.random.uniform(k3, (HIDDEN_SIZE, NUM_CLASSES), jnp.float32,
                            -bound2, bound2)
    b2 = jax.random.uniform(k4, (1, NUM_CLASSES), jnp.float32, -bound2, bound2)

    # Production default path: bf16 operands, f32 MXU accumulation, f32 biases.
    out = fully_connected_nn(x, w1, b1, w2, b2)
    out = jax.block_until_ready(out)

    ref = _reference(x, w1, b1, w2, b2)
    assert out.shape == (B, NUM_CLASSES)
    # bf16 operands => relaxed tolerance vs. the f32 reference (expected
    # operand-rounding loss, not a bug; the f32 path use_bf16=False matches to 1e-4).
    assert jnp.allclose(out, ref, atol=5e-2, rtol=5e-2), (
        float(jnp.max(jnp.abs(out - ref))))

    print("KERNEL_OK")
</pallas_src>

<mosaic_0001>
module attributes {stable_mosaic.version = 11 : i64} {
  func.func @_mlp_kernel(%arg0: i32, %arg1: memref<256x3072xbf16, #tpu.memory_space<vmem>>, %arg2: memref<3072x256xbf16, #tpu.memory_space<vmem>>, %arg3: memref<1x256xf32, #tpu.memory_space<vmem>>, %arg4: memref<256x128xbf16, #tpu.memory_space<vmem>>, %arg5: memref<1x128xf32, #tpu.memory_space<vmem>>, %arg6: memref<256x128xf32, #tpu.memory_space<vmem>>) attributes {dimension_semantics = [#tpu.dimension_semantics<parallel>], iteration_bounds = array<i64: 1>, scalar_prefetch = 0 : i64, scratch_operands = 0 : i64, tpu.core_type = #tpu.core_type<tc>, window_params = [{transform_indices = @transform_0, window_bounds = array<i64: 256, 3072>}, {pipeline_mode = #tpu.pipeline_mode<synchronous>, transform_indices = @transform_1, window_bounds = array<i64: 3072, 256>}, {pipeline_mode = #tpu.pipeline_mode<synchronous>, transform_indices = @transform_2, window_bounds = array<i64: 1, 256>}, {pipeline_mode = #tpu.pipeline_mode<synchronous>, transform_indices = @transform_3, window_bounds = array<i64: 256, 128>}, {pipeline_mode = #tpu.pipeline_mode<synchronous>, transform_indices = @transform_4, window_bounds = array<i64: 1, 128>}, {transform_indices = @transform_5, window_bounds = array<i64: 256, 128>}]} {
    %c0 = arith.constant 0 : index
    %c0_0 = arith.constant 0 : index
    %0 = vector.load %arg1[%c0, %c0_0] : memref<256x3072xbf16, #tpu.memory_space<vmem>>, vector<256x3072xbf16>
    %c0_1 = arith.constant 0 : index
    %c0_2 = arith.constant 0 : index
    %1 = vector.load %arg2[%c0_1, %c0_2] : memref<3072x256xbf16, #tpu.memory_space<vmem>>, vector<3072x256xbf16>
    %cst = arith.constant dense<0.000000e+00> : vector<256x256xf32>
    %2 = tpu.matmul %0, %1, %cst {dimension_numbers = #tpu.dot_dimension_numbers<[1], [0], [0], [1], [0, 0, 1, 1], [], []>} : vector<256x3072xbf16>, vector<3072x256xbf16>, vector<256x256xf32> -> vector<256x256xf32>
    %c0_3 = arith.constant 0 : index
    %c0_4 = arith.constant 0 : index
    %3 = vector.load %arg3[%c0_3, %c0_4] : memref<1x256xf32, #tpu.memory_space<vmem>>, vector<1x256xf32>
    %4 = vector.broadcast %3 : vector<1x256xf32> to vector<256x256xf32>
    %5 = arith.addf %2, %4 : vector<256x256xf32>
    %cst_5 = arith.constant 0.000000e+00 : f32
    %6 = vector.broadcast %cst_5 : f32 to vector<256x256xf32>
    %7 = arith.maximumf %5, %6 : vector<256x256xf32>
    %8 = arith.truncf %7 : vector<256x256xf32> to vector<256x256xbf16>
    %c0_6 = arith.constant 0 : index
    %c0_7 = arith.constant 0 : index
    %9 = vector.load %arg4[%c0_6, %c0_7] : memref<256x128xbf16, #tpu.memory_space<vmem>>, vector<256x128xbf16>
    %cst_8 = arith.constant dense<0.000000e+00> : vector<256x128xf32>
    %10 = tpu.matmul %8, %9, %cst_8 {dimension_numbers = #tpu.dot_dimension_numbers<[1], [0], [0], [1], [0, 0, 1, 1], [], []>} : vector<256x256xbf16>, vector<256x128xbf16>, vector<256x128xf32> -> vector<256x128xf32>
    %c0_9 = arith.constant 0 : index
    %c0_10 = arith.constant 0 : index
    %11 = vector.load %arg5[%c0_9, %c0_10] : memref<1x128xf32, #tpu.memory_space<vmem>>, vector<1x128xf32>
    %12 = vector.broadcast %11 : vector<1x128xf32> to vector<256x128xf32>
    %13 = arith.addf %10, %12 : vector<256x128xf32>
    %c0_11 = arith.constant 0 : index
    %c0_12 = arith.constant 0 : index
    %14 = vector.load %arg6[%c0_11, %c0_12] : memref<256x128xf32, #tpu.memory_space<vmem>>, vector<256x128xf32>
    tpu.vector_store %arg6[%c0_11, %c0_12], %13 {strides = array<i32>} : memref<256x128xf32, #tpu.memory_space<vmem>>, vector<256x128xf32>,
    return
  }
  func.func @transform_0(%arg0: i32) -> (i32, i32) {
    %c0_i32 = arith.constant 0 : i32
    %c0_i32_0 = arith.constant 0 : i32
    return %arg0, %c0_i32 : i32, i32
  }
  func.func @transform_1(%arg0: i32) -> (i32, i32) {
    %c0_i32 = arith.constant 0 : i32
    %c0_i32_0 = arith.constant 0 : i32
    %c0_i32_1 = arith.constant 0 : i32
    return %c0_i32, %c0_i32_0 : i32, i32
  }
  func.func @transform_2(%arg0: i32) -> (i32, i32) {
    %c0_i32 = arith.constant 0 : i32
    %c0_i32_0 = arith.constant 0 : i32
    %c0_i32_1 = arith.constant 0 : i32
    return %c0_i32, %c0_i32_0 : i32, i32
  }
  func.func @transform_3(%arg0: i32) -> (i32, i32) {
    %c0_i32 = arith.constant 0 : i32
    %c0_i32_0 = arith.constant 0 : i32
    %c0_i32_1 = arith.constant 0 : i32
    return %c0_i32, %c0_i32_0 : i32, i32
  }
  func.func @transform_4(%arg0: i32) -> (i32, i32) {
    %c0_i32 = arith.constant 0 : i32
    %c0_i32_0 = arith.constant 0 : i32
    %c0_i32_1 = arith.constant 0 : i32
    return %c0_i32, %c0_i32_0 : i32, i32
  }
  func.func @transform_5(%arg0: i32) -> (i32, i32) {
    %c0_i32 = arith.constant 0 : i32
    %c0_i32_0 = arith.constant 0 : i32
    return %arg0, %c0_i32 : i32, i32
  }
}

</mosaic_0001>

<bundles_post_ra>
// kernel: fully_connected_nn.2
= control target key start
LH: loop header
LB: loop body
LE: loop exit
PB: predicated region body
PF: predicated region fallthrough
CT: control target
= control target key end

     0   :  { %s23037_s0 = inlined_call_operand.vmem [shape: bf16[8,3072], index: 0, kind: input, shape index: {}]   ;;  %s23038_s1 = inlined_call_operand.hbm [shape: f32[1,256], index: 1, kind: input, shape index: {}]   ;;  %s23039_s2 = inlined_call_operand.hbm [shape: f32[3072,256], index: 2, kind: input, shape index: {}]   ;;  %s23040_s3 = inlined_call_operand.vmem [shape: bf16[256,10], index: 3, kind: input, shape index: {}]   ;;  %s23041_s4 = inlined_call_operand.<no memory space> [shape: bf16[], index: 4, kind: input, shape index: {}]   ;;  %s23042_s5 = inlined_call_operand.hbm [shape: f32[1,10], index: 5, kind: input, shape index: {}]   ;;  %s23043_s6 = inlined_call_operand.<no memory space> [shape: f32[], index: 6, kind: input, shape index: {}]   ;;  %s23044_s7 = inlined_call_operand.hbm [shape: f32[8,128], index: 7, kind: output, shape index: {}]  }
   0x1   :  { %v12_v0 = vstv %s23041_s4 }
   0x2   :  { %v19301_v2 = vunpack.i.l.bf16 %v12_v0 }
   0x4   :  { %23051 = vst [vmem:[#allocation25_spill] sm:$0xff] %v19301_v2 }
   0x5   :  { %18 = vsyncpa [#allocation13], 0 }
   0x6   :  { %19 = vsyncpa [#allocation16], 0 }
   0x7   :  { %20 = vsyncpa [#allocation14], 0  ;;  %s19246_s28 = smov [#allocation15]   ;;  %s19247_s30 = smov [#allocation12]  }
   0x8   :  { %s41_s29 = sshll.u32 %s19246_s28, 4  ;;  %s28_s8 = sshll.u32 %s19247_s30, 4  ;;  %s42_s29 = int_to_ptr.vmem [resolvable:$true] %s41_s29  ;;  %s29_s8 = int_to_ptr.vmem [resolvable:$true] %s28_s8 }
   0x9   :  { %s19168_s9 = scalar_lea.vmem %s42_s29, 32  ;;  %p19173_p1 = scmp.lt.s32.totalorder %s42_s29, %s42_s29 }
   0xa   :  { %p19169_p0 = scmp.ne.s32.totalorder %s42_s29, %s19168_s9  ;;  %p19174_p2 = scmp.lt.s32.totalorder %s19168_s9, %s19168_s9 }
   0xc   :  { %p19175_p3 = por %p19174_p2, %p19173_p1 }
   0xe   :  { %p19176_p4 = pnand %p19175_p3, %p19169_p0 }
  0x10   :  { %19179 = shalt.err (!%p19176_p4)
}
  0x11   :  { %44 = dma.hbm_to_vmem [thread:$0]  %s23038_s1, 32, %s42_s29, [#allocation16]  }
  0x12   :  { %s19188_s11 = scalar_lea.vmem %s29_s8, 98304  ;;  %p19193_p6 = scmp.lt.s32.totalorder %s29_s8, %s29_s8 }
  0x13   :  { %p19189_p5 = scmp.ne.s32.totalorder %s29_s8, %s19188_s11  ;;  %p19194_p7 = scmp.lt.s32.totalorder %s19188_s11, %s19188_s11 }
  0x15   :  { %p19195_p8 = por %p19194_p7, %p19193_p6 }
  0x17   :  { %p19196_p9 = pnand %p19195_p8, %p19189_p5 }
  0x19   :  { %19199 = shalt.err (!%p19196_p9)
}
  0x1a   :  { %s19248_s12 = smov 256   ;;  %s19249_s13 = smov 16  }
  0x1b   :  { %34 = dma.hbm_to_vmem [thread:$0]  %s23039_s2, 98304, %s29_s8, [#allocation13], %s19248_s12, %s19248_s12, %s19249_s13  }
  0x1c   :  { %s19250_s16 = smov [#allocation17]  }
  0x1d   :  { %s53_s17 = sshll.u32 %s19250_s16, 4  ;;  %s54_s17 = int_to_ptr.vmem [resolvable:$true] %s53_s17 }
  0x1e   :  { %s19208_s18 = scalar_lea.vmem %s54_s17, 16  ;;  %s19212_s19 = scalar_lea.vmem %s54_s17, 32 }
  0x1f   :  { %p19209_p10 = scmp.ne.s32.totalorder %s54_s17, %s19208_s18  ;;  %p19213_p11 = scmp.lt.s32.totalorder %s54_s17, %s54_s17 }
  0x20   :  { %p19214_p12 = scmp.lt.s32.totalorder %s19212_s19, %s19208_s18 }
  0x22   :  { %p19215_p13 = por %p19214_p12, %p19213_p11 }
  0x24   :  { %p19216_p0 = pnand %p19215_p13, %p19209_p10 }
  0x26   :  { %19219 = shalt.err (!%p19216_p0)
}
  0x27   :  { %56 = dma.hbm_to_vmem [thread:$0]  %s23042_s5, 16, %s54_s17, [#allocation16]  }
  0x28   :  { %19240 = dma.done.wait [#allocation13], 98304  }
  0x29   :  { %19241 = vsyncadd [#allocation13], 4294868992 }
  0x2a   :  { %19242 = dma.done.wait [#allocation16], 48  }
  0x2b   :  { %19243 = vsyncadd [#allocation16], 4294967248  ;;  %v355_v3 = vld [vmem:[#allocation12 + $0xe8] sm:$0xff]  ;;  %v375_v4 = vld [vmem:[#allocation12 + $0xf8] sm:$0xff] }
  0x2c   :  { %v345_v5 = vld [vmem:[#allocation12 + $0xe0] sm:$0xff]  ;;  %v18622_v6 = vpack.c.bf16 %v375_v4, %v355_v3  ;;  %v365_v7 = vld [vmem:[#allocation12 + $0xf0] sm:$0xff]  ;;  %v315_v8 = vld [vmem:[#allocation12 + $0xc8] sm:$0xff] }
  0x2d   :  { %v335_v9 = vld [vmem:[#allocation12 + $0xd8] sm:$0xff]  ;;  %v18621_v10 = vpack.c.bf16 %v365_v7, %v345_v5  ;;  %v305_v12 = vld [vmem:[#allocation12 + $0xc0] sm:$0xff]  ;;  %v325_v13 = vld [vmem:[#allocation12 + $0xd0] sm:$0xff] }
  0x2e   :  { %v18620_v11 = vpack.c.bf16 %v335_v9, %v315_v8  ;;  %v275_v14 = vld [vmem:[#allocation12 + $0xa8] sm:$0xff]  ;;  %19103 = vmatprep.subr.bf16.mxu1 %v18622_v6  ;;  %13113 = vmatprep.subr.bf16.mxu0 %v18622_v6  ;;  %v295_v15 = vld [vmem:[#allocation12 + $0xb8] sm:$0xff]  ;;  %v18619_v16 = vpack.c.bf16 %v325_v13, %v305_v12  ;;  %v265_v18 = vld [vmem:[#allocation12 + $0xa0] sm:$0xff] }
  0x2f   :  { %19119 = vmatpush1.bf16.msra.mxu1 %v18621_v10  ;;  %13114 = vmatpush1.bf16.msra.mxu0 %v18621_v10  ;;  %v18618_v17 = vpack.c.bf16 %v295_v15, %v275_v14  ;;  %v285_v19 = vld [vmem:[#allocation12 + $0xb0] sm:$0xff]  ;;  %v235_v20 = vld [vmem:[#allocation12 + $0x88] sm:$0xff]  ;;  %v255_v21 = vld [vmem:[#allocation12 + $0x98] sm:$0xff] }
  0x30   :  { %19104 = vmatprep.subr.bf16.mxu1 %v18620_v11  ;;  %13115 = vmatprep.subr.bf16.mxu0 %v18620_v11  ;;  %v18617_v22 = vpack.c.bf16 %v285_v19, %v265_v18  ;;  %v18616_v23 = vpack.c.bf16 %v255_v21, %v235_v20  ;;  %v225_v24 = vld [vmem:[#allocation12 + $0x80] sm:$0xff]  ;;  %v245_v25 = vld [vmem:[#allocation12 + $0x90] sm:$0xff]  ;;  %v195_v26 = vld [vmem:[#allocation12 + $0x68] sm:$0xff] }
  0x31   :  { %v215_v27 = vld [vmem:[#allocation12 + $0x78] sm:$0xff]  ;;  %v18615_v28 = vpack.c.bf16 %v245_v25, %v225_v24  ;;  %v185_v30 = vld [vmem:[#allocation12 + $0x60] sm:$0xff]  ;;  %v205_v31 = vld [vmem:[#allocation12 + $0x70] sm:$0xff] }
  0x32   :  { %v18614_v29 = vpack.c.bf16 %v215_v27, %v195_v26  ;;  %v155_v32 = vld [vmem:[#allocation12 + $0x48] sm:$0xff]  ;;  %v175_v33 = vld [vmem:[#allocation12 + $0x58] sm:$0xff]  ;;  %v18613_v34 = vpack.c.bf16 %v205_v31, %v185_v30  ;;  %v145_v36 = vld [vmem:[#allocation12 + $0x40] sm:$0xff] }
  0x33   :  { %19120 = vmatpush1.bf16.msra.mxu1 %v18619_v16  ;;  %13116 = vmatpush1.bf16.msra.mxu0 %v18619_v16  ;;  %v18612_v35 = vpack.c.bf16 %v175_v33, %v155_v32  ;;  %v165_v37 = vld [vmem:[#allocation12 + $0x50] sm:$0xff]  ;;  %v115_v38 = vld [vmem:[#allocation12 + $0x28] sm:$0xff]  ;;  %v135_v39 = vld [vmem:[#allocation12 + $0x38] sm:$0xff] }
  0x34   :  { %19105 = vmatprep.subr.bf16.mxu1 %v18618_v17  ;;  %13117 = vmatprep.subr.bf16.mxu0 %v18618_v17  ;;  %v18611_v40 = vpack.c.bf16 %v165_v37, %v145_v36  ;;  %v105_v41 = vld [vmem:[#allocation12 + $0x20] sm:$0xff]  ;;  %v18610_v42 = vpack.c.bf16 %v135_v39, %v115_v38  ;;  %v125_v43 = vld [vmem:[#allocation12 + $0x30] sm:$0xff]  ;;  %v19315_v44 = vld [vmem:[%s23037_s0 + $0x600] sm:$0xff] }
  0x35   :  { %v19320_v45 = vld [vmem:[%s23037_s0 + $0x660] sm:$0xff]  ;;  %v75_v46 = vld [vmem:[#allocation12 + $0x8] sm:$0xff]  ;;  %v18609_v51 = vpack.c.bf16 %v125_v43, %v105_v41  ;;  %v66_v54 = vld [vmem:[#allocation12] sm:$0xff] }
  0x36   :  { %v95_v47 = vld [vmem:[#allocation12 + $0x18] sm:$0xff]  ;;  %v16095_v48 = vcombine.high %v19315_v44, %v19320_v45  ;;  %v85_v55 = vld [vmem:[#allocation12 + $0x10] sm:$0xff]  ;;  %v675_v56 = vld [vmem:[#allocation12 + $0x1e8] sm:$0xff] }
  0x37   :  { %19121 = vmatpush1.bf16.msra.mxu1 %v18617_v22  ;;  %13118 = vmatpush1.bf16.msra.mxu0 %v18617_v22  ;;  %v19327_v49 = vld [vmem:[%s23037_s0] sm:$0xff]  ;;  %v18608_v53 = vpack.c.bf16 %v95_v47, %v75_v46  ;;  %v18607_v58 = vpack.c.bf16 %v85_v55, %v66_v54  ;;  %v665_v60 = vld [vmem:[#allocation12 + $0x1e0] sm:$0xff]  ;;  %v685_v61 = vld [vmem:[#allocation12 + $0x1f0] sm:$0xff] }
  0x38   :  { %19106 = vmatprep.subr.bf16.mxu1 %v18616_v23  ;;  %13119 = vmatprep.subr.bf16.mxu0 %v18616_v23  ;;  %v19332_v50 = vld [vmem:[%s23037_s0 + $0x60] sm:$0xff]  ;;  %v635_v62 = vld [vmem:[#allocation12 + $0x1c8] sm:$0xff]  ;;  %v18637_v0 = vpack.c.bf16 %v685_v61, %v665_v60  ;;  %v625_v4 = vld [vmem:[#allocation12 + $0x1c0] sm:$0xff] }
  0x39   :  { %v15903_v52 = vcombine.high %v19327_v49, %v19332_v50  ;;  %v695_v57 = vld [vmem:[#allocation12 + $0x1f8] sm:$0xff]  ;;  %13225 = vmatprep.mubr.bf16.mxu1 %v16095_v48  ;;  %v645_v5 = vld [vmem:[#allocation12 + $0x1d0] sm:$0xff]  ;;  %v595_v6 = vld [vmem:[#allocation12 + $0x1a8] sm:$0xff] }
  0x3a   :  { %v18638_v59 = vpack.c.bf16 %v695_v57, %v675_v56  ;;  %v655_v63 = vld [vmem:[#allocation12 + $0x1d8] sm:$0xff]  ;;  %v18635_v8 = vpack.c.bf16 %v645_v5, %v625_v4  ;;  %v585_v10 = vld [vmem:[#allocation12 + $0x1a0] sm:$0xff]  ;;  %v605_v11 = vld [vmem:[#allocation12 + $0x1b0] sm:$0xff] }
  0x3b   :  { %19122 = vmatpush1.bf16.msra.mxu1 %v18615_v28  ;;  %13120 = vmatpush1.bf16.msra.mxu0 %v18615_v28  ;;  %v18636_v3 = vpack.c.bf16 %v655_v63, %v635_v62  ;;  %v615_v7 = vld [vmem:[#allocation12 + $0x1b8] sm:$0xff]  ;;  %v555_v12 = vld [vmem:[#allocation12 + $0x188] sm:$0xff]  ;;  %v18633_v14 = vpack.c.bf16 %v605_v11, %v585_v10  ;;  %v545_v16 = vld [vmem:[#allocation12 + $0x180] sm:$0xff]  ;;  %v16094_v62 = vcombine.low %v19315_v44, %v19320_v45 }
  0x3c   :  { %19107 = vmatprep.subr.bf16.mxu1 %v18614_v29  ;;  %13121 = vmatprep.subr.bf16.mxu0 %v18614_v29  ;;  %v18634_v9 = vpack.c.bf16 %v615_v7, %v595_v6  ;;  %v575_v13 = vld [vmem:[#allocation12 + $0x198] sm:$0xff]  ;;  %v565_v17 = vld [vmem:[#allocation12 + $0x190] sm:$0xff]  ;;  %v515_v18 = vld [vmem:[#allocation12 + $0x168] sm:$0xff]  ;;  %v15902_v63 = vcombine.low %v19327_v49, %v19332_v50 }
  0x3d   :  { %13145 = vmatprep.mubr.bf16.mxu0 %v15903_v52  ;;  %v18632_v15 = vpack.c.bf16 %v575_v13, %v555_v12  ;;  %v535_v19 = vld [vmem:[#allocation12 + $0x178] sm:$0xff]  ;;  %v18631_v20 = vpack.c.bf16 %v565_v17, %v545_v16  ;;  %v505_v22 = vld [vmem:[#allocation12 + $0x160] sm:$0xff]  ;;  %v525_v23 = vld [vmem:[#allocation12 + $0x170] sm:$0xff] }
  0x3e   :  { %v18630_v21 = vpack.c.bf16 %v535_v19, %v515_v18  ;;  %v475_v24 = vld [vmem:[#allocation12 + $0x148] sm:$0xff]  ;;  %v495_v25 = vld [vmem:[#allocation12 + $0x158] sm:$0xff]  ;;  %v18629_v26 = vpack.c.bf16 %v525_v23, %v505_v22  ;;  %v465_v28 = vld [vmem:[#allocation12 + $0x140] sm:$0xff] }
  0x3f   :  { %19123 = vmatpush1.bf16.msra.mxu1 %v18613_v34  ;;  %13122 = vmatpush1.bf16.msra.mxu0 %v18613_v34  ;;  %v18628_v27 = vpack.c.bf16 %v495_v25, %v475_v24  ;;  %v485_v29 = vld [vmem:[#allocation12 + $0x150] sm:$0xff]  ;;  %v435_v30 = vld [vmem:[#allocation12 + $0x128] sm:$0xff]  ;;  %v455_v31 = vld [vmem:[#allocation12 + $0x138] sm:$0xff] }
  0x40   :  { %19108 = vmatprep.subr.bf16.mxu1 %v18612_v35  ;;  %13123 = vmatprep.subr.bf16.mxu0 %v18612_v35  ;;  %v18627_v32 = vpack.c.bf16 %v485_v29, %v465_v28  ;;  %v18626_v33 = vpack.c.bf16 %v455_v31, %v435_v30  ;;  %v425_v34 = vld [vmem:[#allocation12 + $0x120] sm:$0xff]  ;;  %v445_v35 = vld [vmem:[#allocation12 + $0x130] sm:$0xff]  ;;  %v395_v36 = vld [vmem:[#allocation12 + $0x108] sm:$0xff] }
  0x41   :  { %v415_v37 = vld [vmem:[#allocation12 + $0x118] sm:$0xff]  ;;  %v18625_v38 = vpack.c.bf16 %v445_v35, %v425_v34  ;;  %v405_v41 = vld [vmem:[#allocation12 + $0x110] sm:$0xff]  ;;  %v1635_v46 = vld [vmem:[#allocation12 + $0x4e8] sm:$0xff] }
  0x42   :  { %v18624_v39 = vpack.c.bf16 %v415_v37, %v395_v36  ;;  %v1015_v43 = vld [vmem:[#allocation12 + $0x2f8] sm:$0xff]  ;;  %v1005_v52 = vld [vmem:[#allocation12 + $0x2f0] sm:$0xff]  ;;  %v955_v57 = vld [vmem:[#allocation12 + $0x2c8] sm:$0xff] }
  0x43   :  { %19124 = vmatpush1.bf16.msra.mxu1 %v18611_v40  ;;  %13124 = vmatpush1.bf16.msra.mxu0 %v18611_v40  ;;  %v385_v40 = vld [vmem:[#allocation12 + $0x100] sm:$0xff]  ;;  %v1655_v47 = vld [vmem:[#allocation12 + $0x4f8] sm:$0xff]  ;;  %v1645_v56 = vld [vmem:[#allocation12 + $0x4f0] sm:$0xff] }
  0x44   :  { %19109 = vmatprep.subr.bf16.mxu1 %v18610_v42  ;;  %13125 = vmatprep.subr.bf16.mxu0 %v18610_v42  ;;  %v995_v42 = vld [vmem:[#allocation12 + $0x2e8] sm:$0xff]  ;;  %v18623_v48 = vpack.c.bf16 %v405_v41, %v385_v40  ;;  %v18686_v55 = vpack.c.bf16 %v1655_v47, %v1635_v46  ;;  %v1615_v60 = vld [vmem:[#allocation12 + $0x4d8] sm:$0xff]  ;;  %v945_v49 = vld [vmem:[#allocation12 + $0x2c0] sm:$0xff] }
  0x45   :  { %v18654_v54 = vpack.c.bf16 %v1015_v43, %v995_v42  ;;  %v19339_v61 = vld [vmem:[%s23037_s0 + $0x6c0] sm:$0xff]  ;;  %v965_v50 = vld [vmem:[#allocation12 + $0x2d0] sm:$0xff]  ;;  %v1585_v7 = vld [vmem:[#allocation12 + $0x4c0] sm:$0xff] }
  0x46   :  { %v19358_v4 = vld [vmem:[%s23037_s0 + $0x120] sm:$0xff]  ;;  %v1555_v13 = vld [vmem:[#allocation12 + $0x4a8] sm:$0xff]  ;;  %v905_v17 = vld [vmem:[#allocation12 + $0x2a0] sm:$0xff] }
  0x47   :  { %19125 = vmatpush1.bf16.msra.mxu1 %v18609_v51  ;;  %13126 = vmatpush1.bf16.msra.mxu0 %v18609_v51  ;;  %v985_v51 = vld [vmem:[#allocation12 + $0x2e0] sm:$0xff]  ;;  %v935_v11 = vld [vmem:[#allocation12 + $0x2b8] sm:$0xff]  ;;  %v925_v18 = vld [vmem:[#allocation12 + $0x2b0] sm:$0xff] }
  0x48   :  { %19110 = vmatprep.subr.bf16.mxu1 %v18608_v53  ;;  %13127 = vmatprep.subr.bf16.mxu0 %v18608_v53  ;;  %v1625_v53 = vld [vmem:[#allocation12 + $0x4e0] sm:$0xff]  ;;  %v18653_v44 = vpack.c.bf16 %v1005_v52, %v985_v51  ;;  %v1565_v22 = vld [vmem:[#allocation12 + $0x4b0] sm:$0xff]  ;;  %v875_v23 = vld [vmem:[#allocation12 + $0x288] sm:$0xff] }
  0x49   :  { %v18685_v45 = vpack.c.bf16 %v1645_v56, %v1625_v53  ;;  %v1545_v19 = vld [vmem:[#allocation12 + $0x4a0] sm:$0xff]  ;;  %v895_v24 = vld [vmem:[#allocation12 + $0x298] sm:$0xff]  ;;  %v1515_v25 = vld [vmem:[#allocation12 + $0x488] sm:$0xff] }
  0x4a   :  { %v19376_v30 = vld [vmem:[%s23037_s0 + $0x7e0] sm:$0xff]  ;;  %v18681_v34 = vpack.c.bf16 %v1565_v22, %v1545_v19  ;;  %v865_v35 = vld [vmem:[#allocation12 + $0x280] sm:$0xff]  ;;  %v885_v36 = vld [vmem:[#allocation12 + $0x290] sm:$0xff]  ;;  %v18648_v37 = vpack.c.bf16 %v895_v24, %v875_v23 }
  0x4b   :  { %19126 = vmatpush1.bf16.msra.mxu1 %v18607_v58  ;;  %13128 = vmatpush1.bf16.msra.mxu0 %v18607_v58  ;;  %v975_v58 = vld [vmem:[#allocation12 + $0x2d8] sm:$0xff]  ;;  %v1525_v40 = vld [vmem:[#allocation12 + $0x490] sm:$0xff]  ;;  %v835_v41 = vld [vmem:[#allocation12 + $0x268] sm:$0xff]  ;;  %v18647_v51 = vpack.c.bf16 %v885_v36, %v865_v35 }
  0x4c   :  { %19111 = vmatprep.subr.bf16.mxu1 %v18638_v59  ;;  %13129 = vmatprep.subr.bf16.mxu0 %v18638_v59  ;;  %v1595_v59 = vld [vmem:[#allocation12 + $0x4c8] sm:$0xff]  ;;  %v18652_v5 = vpack.c.bf16 %v975_v58, %v955_v57  ;;  %v19381_v31 = vld [vmem:[%s23037_s0 + $0x180] sm:$0xff]  ;;  %v825_v53 = vld [vmem:[#allocation12 + $0x260] sm:$0xff] }
  0x4d   :  { %v18684_v6 = vpack.c.bf16 %v1615_v60, %v1595_v59  ;;  %v855_v43 = vld [vmem:[#allocation12 + $0x278] sm:$0xff]  ;;  %v1475_v47 = vld [vmem:[#allocation12 + $0x468] sm:$0xff]  ;;  %v1485_v58 = vld [vmem:[#allocation12 + $0x470] sm:$0xff] }
  0x4e   :  { %v18646_v56 = vpack.c.bf16 %v855_v43, %v835_v41  ;;  %v795_v59 = vld [vmem:[#allocation12 + $0x248] sm:$0xff]  ;;  %v815_v60 = vld [vmem:[#allocation12 + $0x258] sm:$0xff]  ;;  %v745_v19 = vld [vmem:[#allocation12 + $0x220] sm:$0xff] }
  0x4f   :  { %19127 = vmatpush2.bf16.msra.mxu1 %v18637_v0  ;;  %13130 = vmatpush2.bf16.msra.mxu0 %v18637_v0  ;;  %v19348_v0 = vld [vmem:[%s23037_s0 + $0x720] sm:$0xff]  ;;  %v1405_v24 = vld [vmem:[#allocation12 + $0x430] sm:$0xff]  ;;  %v1345_v41 = vld [vmem:[#allocation12 + $0x400] sm:$0xff] }
  0x50   :  { %19112 = vmatprep.subr.bf16.mxu1 %v18636_v3  ;;  %13131 = vmatprep.subr.bf16.mxu0 %v18636_v3  ;;  %v19353_v3 = vld [vmem:[%s23037_s0 + $0xc0] sm:$0xff]  ;;  %v16119_v10 = vcombine.high %v19339_v61, %v19348_v0  ;;  %v16118_v28 = vcombine.low %v19339_v61, %v19348_v0  ;;  %v1435_v61 = vld [vmem:[#allocation12 + $0x448] sm:$0xff]  ;;  %v3845_v1 = vld [vmem:[#allocation12 + $0xbd0] sm:$0xff] }
  0x51   :  { %v15927_v12 = vcombine.high %v19353_v3, %v19358_v4  ;;  %v15926_v29 = vcombine.low %v19353_v3, %v19358_v4  ;;  %v19404_v4 = vld [vmem:[%s23037_s0 + $0x8a0] sm:$0xff]  ;;  %v1315_v43 = vld [vmem:[#allocation12 + $0x3e8] sm:$0xff] }
  0x53   :  { %19128 = vmatpush2.bf16.msra.mxu1 %v18635_v8  ;;  %13132 = vmatpush2.bf16.msra.mxu0 %v18635_v8  ;;  %v1605_v8 = vld [vmem:[#allocation12 + $0x4d0] sm:$0xff] }
  0x54   :  { %19113 = vmatprep.subr.bf16.mxu1 %v18634_v9  ;;  %13133 = vmatprep.subr.bf16.mxu0 %v18634_v9  ;;  %v915_v9 = vld [vmem:[#allocation12 + $0x2a8] sm:$0xff]  ;;  %v18683_v16 = vpack.c.bf16 %v1605_v8, %v1585_v7  ;;  %v18644_v7 = vpack.c.bf16 %v815_v60, %v795_v59  ;;  %v1965_v60 = vld [vmem:[#allocation12 + $0x5f0] sm:$0xff] }
  0x57   :  { %19129 = vmatpush2.bf16.msra.mxu1 %v18633_v14  ;;  %13134 = vmatpush2.bf16.msra.mxu0 %v18633_v14  ;;  %v1575_v14 = vld [vmem:[#allocation12 + $0x4b8] sm:$0xff] }
  0x58   :  { %19114 = vmatprep.subr.bf16.mxu1 %v18632_v15  ;;  %13135 = vmatprep.subr.bf16.mxu0 %v18632_v15  ;;  %v18651_v15 = vpack.c.bf16 %v965_v50, %v945_v49 }
  0x5b   :  { %19130 = vmatpush2.bf16.msra.mxu1 %v18631_v20  ;;  %13136 = vmatpush2.bf16.msra.mxu0 %v18631_v20  ;;  %v18650_v20 = vpack.c.bf16 %v935_v11, %v915_v9  ;;  %v1425_v9 = vld [vmem:[#allocation12 + $0x440] sm:$0xff]  ;;  %v755_v11 = vld [vmem:[#allocation12 + $0x228] sm:$0xff] }
  0x5c   :  { %19115 = vmatprep.subr.bf16.mxu1 %v18630_v21  ;;  %13137 = vmatprep.subr.bf16.mxu0 %v18630_v21  ;;  %v18682_v21 = vpack.c.bf16 %v1575_v14, %v1555_v13  ;;  %v775_v13 = vld [vmem:[#allocation12 + $0x238] sm:$0xff] }
  0x5d   :  { %v18642_v22 = vpack.c.bf16 %v775_v13, %v755_v11  ;;  %v1905_v11 = vld [vmem:[#allocation12 + $0x5c0] sm:$0xff]  ;;  %v1235_v13 = vld [vmem:[#allocation12 + $0x3a8] sm:$0xff] }
  0x5f   :  { %19131 = vmatpush2.bf16.msra.mxu1 %v18629_v26  ;;  %13138 = vmatpush2.bf16.msra.mxu0 %v18629_v26  ;;  %v1535_v26 = vld [vmem:[#allocation12 + $0x498] sm:$0xff] }
  0x60   :  { %19116 = vmatprep.subr.bf16.mxu1 %v18628_v27  ;;  %13139 = vmatprep.subr.bf16.mxu0 %v18628_v27  ;;  %v19367_v27 = vld [vmem:[%s23037_s0 + $0x780] sm:$0xff] }
  0x61   :  { %v16143_v42 = vcombine.high %v19367_v27, %v19376_v30  ;;  %v16142_v0 = vcombine.low %v19367_v27, %v19376_v30  ;;  %v1355_v27 = vld [vmem:[#allocation12 + $0x408] sm:$0xff] }
  0x63   :  { %19132 = vmatpush2.bf16.msra.mxu1 %v18627_v32  ;;  %13140 = vmatpush2.bf16.msra.mxu0 %v18627_v32  ;;  %v19386_v32 = vld [vmem:[%s23037_s0 + $0x1e0] sm:$0xff] }
  0x64   :  { %19117 = vmatprep.subr.bf16.mxu1 %v18626_v33  ;;  %13141 = vmatprep.subr.bf16.mxu0 %v18626_v33  ;;  %v18649_v33 = vpack.c.bf16 %v925_v18, %v905_v17  ;;  %v15951_v46 = vcombine.high %v19381_v31, %v19386_v32  ;;  %v15950_v3 = vcombine.low %v19381_v31, %v19386_v32  ;;  %v19432_v32 = vld [vmem:[%s23037_s0 + $0x960] sm:$0xff] }
  0x67   :  { %19133 = vmatpush2.bf16.msra.mxu1 %v18625_v38  ;;  %13142 = vmatpush2.bf16.msra.mxu0 %v18625_v38  ;;  %v18680_v38 = vpack.c.bf16 %v1535_v26, %v1515_v25  ;;  %v715_v25 = vld [vmem:[#allocation12 + $0x208] sm:$0xff]  ;;  %v735_v26 = vld [vmem:[#allocation12 + $0x218] sm:$0xff] }
  0x68   :  { %19118 = vmatprep.subr.bf16.mxu1 %v18624_v39  ;;  %13143 = vmatprep.subr.bf16.mxu0 %v18624_v39  ;;  %v1505_v39 = vld [vmem:[#allocation12 + $0x480] sm:$0xff] }
  0x69   :  { %v18679_v52 = vpack.c.bf16 %v1525_v40, %v1505_v39  ;;  %v18640_v39 = vpack.c.bf16 %v735_v26, %v715_v25  ;;  %v1885_v26 = vld [vmem:[#allocation12 + $0x5b0] sm:$0xff] }
  0x6b   :  { %19134 = vmatpush2.bf16.msra.mxu1 %v18623_v48  ;;  %13144 = vmatpush2.bf16.msra.mxu0 %v18623_v48  ;;  %v1495_v48 = vld [vmem:[#allocation12 + $0x478] sm:$0xff] }
  0x6c   :  { %13306 = vmatprep.subr.bf16.mxu1 %v18654_v54  ;;  %13499 = vmatprep.subr.bf16.mxu0 %v18686_v55  ;;  %v845_v54 = vld [vmem:[#allocation12 + $0x270] sm:$0xff]  ;;  %v1465_v55 = vld [vmem:[#allocation12 + $0x460] sm:$0xff]  ;;  %v18678_v57 = vpack.c.bf16 %v1495_v48, %v1475_v47  ;;  %v1335_v47 = vld [vmem:[#allocation12 + $0x3f8] sm:$0xff] }
  0x6d   :  { %v18645_v49 = vpack.c.bf16 %v845_v54, %v825_v53  ;;  %v18677_v50 = vpack.c.bf16 %v1485_v58, %v1465_v55  ;;  %v1305_v55 = vld [vmem:[#allocation12 + $0x3e0] sm:$0xff]  ;;  %v18670_v58 = vpack.c.bf16 %v1335_v47, %v1315_v43  ;;  %v1155_v47 = vld [vmem:[#allocation12 + $0x368] sm:$0xff] }
  0x6e   :  { %13226 = vmatmul.mubr.bf16.vlgmr.msra.gmra.mxu1 %v16094_v62  ;;  %13146 = vmatmul.mubr.bf16.vlgmr.msra.gmra.mxu0 %v15902_v63  ;;  %v1455_v62 = vld [vmem:[#allocation12 + $0x458] sm:$0xff]  ;;  %v1825_v43 = vld [vmem:[#allocation12 + $0x580] sm:$0xff] }
  0x6f   :  { %13307 = vmatpush1.bf16.msra.mxu1 %v18653_v44  ;;  %13500 = vmatpush1.bf16.msra.mxu0 %v18685_v45  ;;  %v19395_v63 = vld [vmem:[%s23037_s0 + $0x840] sm:$0xff]  ;;  %v18676_v8 = vpack.c.bf16 %v1455_v62, %v1435_v61  ;;  %v1275_v61 = vld [vmem:[#allocation12 + $0x3c8] sm:$0xff] }
  0x70   :  { %13308 = vmatprep.subr.bf16.mxu1 %v18652_v5  ;;  %13501 = vmatprep.subr.bf16.mxu0 %v18684_v6  ;;  %v19409_v44 = vld [vmem:[%s23037_s0 + $0x240] sm:$0xff]  ;;  %v785_v5 = vld [vmem:[#allocation12 + $0x240] sm:$0xff]  ;;  %v805_v6 = vld [vmem:[#allocation12 + $0x250] sm:$0xff]  ;;  %v16166_v30 = vcombine.low %v19395_v63, %v19404_v4 }
  0x71   :  { %13235 = vmatprep.mubr.bf16.mxu1 %v16119_v10  ;;  %13155 = vmatprep.mubr.bf16.mxu0 %v15927_v12  ;;  %v19414_v45 = vld [vmem:[%s23037_s0 + $0x2a0] sm:$0xff]  ;;  %v1445_v10 = vld [vmem:[#allocation12 + $0x450] sm:$0xff]  ;;  %v16167_v12 = vcombine.high %v19395_v63, %v19404_v4  ;;  %v18643_v17 = vpack.c.bf16 %v805_v6, %v785_v5  ;;  %v1915_v63 = vld [vmem:[#allocation12 + $0x5c8] sm:$0xff] }
  0x72   :  { %v15975_v14 = vcombine.high %v19409_v44, %v19414_v45  ;;  %v18675_v18 = vpack.c.bf16 %v1445_v10, %v1425_v9  ;;  %v15974_v31 = vcombine.low %v19409_v44, %v19414_v45  ;;  %v1295_v62 = vld [vmem:[#allocation12 + $0x3d8] sm:$0xff] }
  0x73   :  { %13309 = vmatpush1.bf16.msra.mxu1 %v18651_v15  ;;  %13502 = vmatpush1.bf16.msra.mxu0 %v18683_v16  ;;  %v1395_v15 = vld [vmem:[#allocation12 + $0x428] sm:$0xff]  ;;  %v1415_v16 = vld [vmem:[#allocation12 + $0x438] sm:$0xff]  ;;  %v18668_v9 = vpack.c.bf16 %v1295_v62, %v1275_v61  ;;  %v1805_v62 = vld [vmem:[#allocation12 + $0x570] sm:$0xff] }
  0x74   :  { %13310 = vmatprep.subr.bf16.mxu1 %v18650_v20  ;;  %13503 = vmatprep.subr.bf16.mxu0 %v18682_v21  ;;  %v765_v20 = vld [vmem:[#allocation12 + $0x230] sm:$0xff]  ;;  %v1385_v21 = vld [vmem:[#allocation12 + $0x420] sm:$0xff]  ;;  %v18674_v23 = vpack.c.bf16 %v1415_v16, %v1395_v15  ;;  %v19460_v45 = vld [vmem:[%s23037_s0 + $0xa20] sm:$0xff] }
  0x75   :  { %v18641_v35 = vpack.c.bf16 %v765_v20, %v745_v19  ;;  %v18673_v36 = vpack.c.bf16 %v1405_v24, %v1385_v21  ;;  %v1255_v15 = vld [vmem:[#allocation12 + $0x3b8] sm:$0xff]  ;;  %v1225_v21 = vld [vmem:[#allocation12 + $0x3a0] sm:$0xff] }
  0x76   :  { %13236 = vmatmul.mubr.bf16.gmra.mxu1 %v16118_v28  ;;  %13156 = vmatmul.mubr.bf16.gmra.mxu0 %v15926_v29  ;;  %v1375_v28 = vld [vmem:[#allocation12 + $0x418] sm:$0xff]  ;;  %v18666_v24 = vpack.c.bf16 %v1255_v15, %v1235_v13  ;;  %v1745_v13 = vld [vmem:[#allocation12 + $0x540] sm:$0xff]  ;;  %v1075_v15 = vld [vmem:[#allocation12 + $0x328] sm:$0xff] }
  0x77   :  { %13311 = vmatpush1.bf16.msra.mxu1 %v18649_v33  ;;  %13504 = vmatpush1.bf16.msra.mxu0 %v18681_v34  ;;  %v19423_v29 = vld [vmem:[%s23037_s0 + $0x900] sm:$0xff]  ;;  %v18672_v40 = vpack.c.bf16 %v1375_v28, %v1355_v27  ;;  %v1195_v27 = vld [vmem:[#allocation12 + $0x388] sm:$0xff] }
  0x78   :  { %13312 = vmatprep.subr.bf16.mxu1 %v18648_v37  ;;  %13505 = vmatprep.subr.bf16.mxu0 %v18680_v38  ;;  %v19437_v33 = vld [vmem:[%s23037_s0 + $0x300] sm:$0xff]  ;;  %v705_v37 = vld [vmem:[#allocation12 + $0x200] sm:$0xff]  ;;  %v725_v38 = vld [vmem:[#allocation12 + $0x210] sm:$0xff]  ;;  %v16190_v4 = vcombine.low %v19423_v29, %v19432_v32 }
  0x79   :  { %13245 = vmatprep.mubr.bf16.mxu1 %v16143_v42  ;;  %13165 = vmatprep.mubr.bf16.mxu0 %v15951_v46  ;;  %v19442_v34 = vld [vmem:[%s23037_s0 + $0x360] sm:$0xff]  ;;  %v1365_v42 = vld [vmem:[#allocation12 + $0x410] sm:$0xff]  ;;  %v16191_v46 = vcombine.high %v19423_v29, %v19432_v32  ;;  %v18639_v53 = vpack.c.bf16 %v725_v38, %v705_v37  ;;  %v1835_v29 = vld [vmem:[#allocation12 + $0x588] sm:$0xff] }
  0x7a   :  { %v15999_v48 = vcombine.high %v19437_v33, %v19442_v34  ;;  %v18671_v54 = vpack.c.bf16 %v1365_v42, %v1345_v41  ;;  %v15998_v44 = vcombine.low %v19437_v33, %v19442_v34  ;;  %v1215_v28 = vld [vmem:[#allocation12 + $0x398] sm:$0xff] }
  0x7b   :  { %13313 = vmatpush1.bf16.msra.mxu1 %v18647_v51  ;;  %13506 = vmatpush1.bf16.msra.mxu0 %v18679_v52  ;;  %v1955_v51 = vld [vmem:[#allocation12 + $0x5e8] sm:$0xff]  ;;  %v1975_v52 = vld [vmem:[#allocation12 + $0x5f8] sm:$0xff]  ;;  %v18664_v41 = vpack.c.bf16 %v1215_v28, %v1195_v27  ;;  %v1725_v28 = vld [vmem:[#allocation12 + $0x530] sm:$0xff] }
  0x7c   :  { %13314 = vmatprep.subr.bf16.mxu1 %v18646_v56  ;;  %13507 = vmatprep.subr.bf16.mxu0 %v18678_v57  ;;  %v1325_v56 = vld [vmem:[#allocation12 + $0x3f0] sm:$0xff]  ;;  %v1945_v57 = vld [vmem:[#allocation12 + $0x5e0] sm:$0xff]  ;;  %v18702_v59 = vpack.c.bf16 %v1975_v52, %v1955_v51  ;;  %v19488_v34 = vld [vmem:[%s23037_s0 + $0xae0] sm:$0xff] }
  0x7d   :  { %v18669_v5 = vpack.c.bf16 %v1325_v56, %v1305_v55  ;;  %v18701_v6 = vpack.c.bf16 %v1965_v60, %v1945_v57  ;;  %v1175_v51 = vld [vmem:[#allocation12 + $0x378] sm:$0xff]  ;;  %v1145_v57 = vld [vmem:[#allocation12 + $0x360] sm:$0xff] }
  0x7e   :  { %13246 = vmatmul.mubr.bf16.gmra.mxu1 %v16142_v0  ;;  %13166 = vmatmul.mubr.bf16.gmra.mxu0 %v15950_v3  ;;  %v1935_v0 = vld [vmem:[#allocation12 + $0x5d8] sm:$0xff]  ;;  %v18662_v60 = vpack.c.bf16 %v1175_v51, %v1155_v47  ;;  %v1665_v47 = vld [vmem:[#allocation12 + $0x500] sm:$0xff]  ;;  %v2275_v51 = vld [vmem:[#allocation12 + $0x6e8] sm:$0xff] }
  0x7f   :  { %13315 = vmatpush1.bf16.msra.mxu1 %v18645_v49  ;;  %13508 = vmatpush1.bf16.msra.mxu0 %v18677_v50  ;;  %v19451_v3 = vld [vmem:[%s23037_s0 + $0x9c0] sm:$0xff]  ;;  %v18700_v10 = vpack.c.bf16 %v1935_v0, %v1915_v63  ;;  %v1115_v63 = vld [vmem:[#allocation12 + $0x348] sm:$0xff] }
  0x80   :  { %13316 = vmatprep.subr.bf16.mxu1 %v18644_v7  ;;  %13509 = vmatprep.subr.bf16.mxu0 %v18676_v8  ;;  %v19465_v49 = vld [vmem:[%s23037_s0 + $0x3c0] sm:$0xff]  ;;  %v1265_v7 = vld [vmem:[#allocation12 + $0x3c0] sm:$0xff]  ;;  %v1285_v8 = vld [vmem:[#allocation12 + $0x3d0] sm:$0xff]  ;;  %v16214_v32 = vcombine.low %v19451_v3, %v19460_v45 }
  0x81   :  { %13255 = vmatprep.mubr.bf16.mxu1 %v16167_v12  ;;  %13175 = vmatprep.mubr.bf16.mxu0 %v15975_v14  ;;  %v19470_v50 = vld [vmem:[%s23037_s0 + $0x420] sm:$0xff]  ;;  %v1925_v12 = vld [vmem:[#allocation12 + $0x5d0] sm:$0xff]  ;;  %v16215_v14 = vcombine.high %v19451_v3, %v19460_v45  ;;  %v18667_v19 = vpack.c.bf16 %v1285_v8, %v1265_v7  ;;  %v1755_v3 = vld [vmem:[#allocation12 + $0x548] sm:$0xff] }
  0x82   :  { %v16023_v16 = vcombine.high %v19465_v49, %v19470_v50  ;;  %v18699_v20 = vpack.c.bf16 %v1925_v12, %v1905_v11  ;;  %v16022_v33 = vcombine.low %v19465_v49, %v19470_v50  ;;  %v1135_v0 = vld [vmem:[#allocation12 + $0x358] sm:$0xff] }
  0x83   :  { %13317 = vmatpush1.bf16.msra.mxu1 %v18643_v17  ;;  %13510 = vmatpush1.bf16.msra.mxu0 %v18675_v18  ;;  %v1875_v17 = vld [vmem:[#allocation12 + $0x5a8] sm:$0xff]  ;;  %v1895_v18 = vld [vmem:[#allocation12 + $0x5b8] sm:$0xff]  ;;  %v18660_v11 = vpack.c.bf16 %v1135_v0, %v1115_v63  ;;  %v19559_v63 = vld [vmem:[%s23037_s0 + $0x128] sm:$0xff] }
  0x84   :  { %13318 = vmatprep.subr.bf16.mxu1 %v18642_v22  ;;  %13511 = vmatprep.subr.bf16.mxu0 %v18674_v23  ;;  %v1245_v22 = vld [vmem:[#allocation12 + $0x3b0] sm:$0xff]  ;;  %v1865_v23 = vld [vmem:[#allocation12 + $0x5a0] sm:$0xff]  ;;  %v18698_v25 = vpack.c.bf16 %v1895_v18, %v1875_v17  ;;  %v19516_v50 = vld [vmem:[%s23037_s0 + $0xba0] sm:$0xff] }
  0x85   :  { %v18665_v37 = vpack.c.bf16 %v1245_v22, %v1225_v21  ;;  %v18697_v38 = vpack.c.bf16 %v1885_v26, %v1865_v23  ;;  %v1095_v17 = vld [vmem:[#allocation12 + $0x338] sm:$0xff]  ;;  %v1065_v23 = vld [vmem:[#allocation12 + $0x320] sm:$0xff]  ;;  %v2235_v0 = vld [vmem:[#allocation12 + $0x6c8] sm:$0xff] }
  0x86   :  { %13256 = vmatmul.mubr.bf16.gmra.mxu1 %v16166_v30  ;;  %13176 = vmatmul.mubr.bf16.gmra.mxu0 %v15974_v31  ;;  %v1855_v30 = vld [vmem:[#allocation12 + $0x598] sm:$0xff]  ;;  %v18658_v26 = vpack.c.bf16 %v1095_v17, %v1075_v15  ;;  %v2195_v15 = vld [vmem:[#allocation12 + $0x6a8] sm:$0xff] }
  0x87   :  { %13319 = vmatpush1.bf16.msra.mxu1 %v18641_v35  ;;  %13512 = vmatpush1.bf16.msra.mxu0 %v18673_v36  ;;  %v19479_v31 = vld [vmem:[%s23037_s0 + $0xa80] sm:$0xff]  ;;  %v18696_v42 = vpack.c.bf16 %v1855_v30, %v1835_v29  ;;  %v1035_v29 = vld [vmem:[#allocation12 + $0x308] sm:$0xff] }
  0x88   :  { %13320 = vmatprep.subr.bf16.mxu1 %v18640_v39  ;;  %13513 = vmatprep.subr.bf16.mxu0 %v18672_v40  ;;  %v19493_v35 = vld [vmem:[%s23037_s0 + $0x480] sm:$0xff]  ;;  %v1185_v39 = vld [vmem:[#allocation12 + $0x380] sm:$0xff]  ;;  %v1205_v40 = vld [vmem:[#allocation12 + $0x390] sm:$0xff]  ;;  %v16238_v45 = vcombine.low %v19479_v31, %v19488_v34 }
  0x89   :  { %13265 = vmatprep.mubr.bf16.mxu1 %v16191_v46  ;;  %13185 = vmatprep.mubr.bf16.mxu0 %v15999_v48  ;;  %v19498_v36 = vld [vmem:[%s23037_s0 + $0x4e0] sm:$0xff]  ;;  %v1845_v46 = vld [vmem:[#allocation12 + $0x590] sm:$0xff]  ;;  %v16239_v48 = vcombine.high %v19479_v31, %v19488_v34  ;;  %v18663_v55 = vpack.c.bf16 %v1205_v40, %v1185_v39  ;;  %v1675_v31 = vld [vmem:[#allocation12 + $0x508] sm:$0xff] }
  0x8a   :  { %v16047_v52 = vcombine.high %v19493_v35, %v19498_v36  ;;  %v18695_v56 = vpack.c.bf16 %v1845_v46, %v1825_v43  ;;  %v16046_v49 = vcombine.low %v19493_v35, %v19498_v36  ;;  %v1055_v30 = vld [vmem:[#allocation12 + $0x318] sm:$0xff]  ;;  %v8506_v36 = vld [vmem:[%s23037_s0 + $0x68] sm:$0xff] }
  0x8b   :  { %13321 = vmatpush1.bf16.msra.mxu1 %v18639_v53  ;;  %13514 = vmatpush1.bf16.msra.mxu0 %v18671_v54  ;;  %v1795_v53 = vld [vmem:[#allocation12 + $0x568] sm:$0xff]  ;;  %v1815_v54 = vld [vmem:[#allocation12 + $0x578] sm:$0xff]  ;;  %v18656_v43 = vpack.c.bf16 %v1055_v30, %v1035_v29 }
  0x8c   :  { %13322 = vmatprep.subr.bf16.mxu1 %v18670_v58  ;;  %13515 = vmatprep.subr.bf16.mxu0 %v18702_v59  ;;  %v1165_v58 = vld [vmem:[#allocation12 + $0x370] sm:$0xff]  ;;  %v1785_v59 = vld [vmem:[#allocation12 + $0x560] sm:$0xff]  ;;  %v18694_v61 = vpack.c.bf16 %v1815_v54, %v1795_v53  ;;  %v2295_v53 = vld [vmem:[#allocation12 + $0x6f8] sm:$0xff] }
  0x8d   :  { %v18661_v7 = vpack.c.bf16 %v1165_v58, %v1145_v57  ;;  %v18693_v8 = vpack.c.bf16 %v1805_v62, %v1785_v59  ;;  %v2265_v59 = vld [vmem:[#allocation12 + $0x6e0] sm:$0xff]  ;;  %v2155_v29 = vld [vmem:[#allocation12 + $0x688] sm:$0xff] }
  0x8e   :  { %13266 = vmatmul.mubr.bf16.gmra.mxu1 %v16190_v4  ;;  %13186 = vmatmul.mubr.bf16.gmra.mxu0 %v15998_v44  ;;  %v1775_v4 = vld [vmem:[#allocation12 + $0x558] sm:$0xff]  ;;  %v19554_v62 = vld [vmem:[%s23037_s0 + $0xc8] sm:$0xff] }
  0x8f   :  { %13323 = vmatpush2.bf16.msra.mxu1 %v18669_v5  ;;  %13516 = vmatpush2.bf16.msra.mxu0 %v18701_v6  ;;  %v19507_v44 = vld [vmem:[%s23037_s0 + $0xb40] sm:$0xff]  ;;  %v18692_v12 = vpack.c.bf16 %v1775_v4, %v1755_v3 }
  0x90   :  { %13324 = vmatprep.subr.bf16.mxu1 %v18668_v9  ;;  %13517 = vmatprep.subr.bf16.mxu0 %v18700_v10  ;;  %v19521_v5 = vld [vmem:[%s23037_s0 + $0x540] sm:$0xff]  ;;  %v1105_v9 = vld [vmem:[#allocation12 + $0x340] sm:$0xff]  ;;  %v1125_v10 = vld [vmem:[#allocation12 + $0x350] sm:$0xff]  ;;  %v16262_v34 = vcombine.low %v19507_v44, %v19516_v50 }
  0x91   :  { %13275 = vmatprep.mubr.bf16.mxu1 %v16215_v14  ;;  %13195 = vmatprep.mubr.bf16.mxu0 %v16023_v16  ;;  %v19526_v6 = vld [vmem:[%s23037_s0 + $0x5a0] sm:$0xff]  ;;  %v1765_v14 = vld [vmem:[#allocation12 + $0x550] sm:$0xff]  ;;  %v16263_v16 = vcombine.high %v19507_v44, %v19516_v50  ;;  %v18659_v21 = vpack.c.bf16 %v1125_v10, %v1105_v9  ;;  %v19564_v44 = vld [vmem:[%s23037_s0 + $0xd0] sm:$0xff] }
  0x92   :  { %v16071_v18 = vcombine.high %v19521_v5, %v19526_v6  ;;  %v18691_v22 = vpack.c.bf16 %v1765_v14, %v1745_v13  ;;  %v16070_v35 = vcombine.low %v19521_v5, %v19526_v6  ;;  %v2255_v4 = vld [vmem:[#allocation12 + $0x6d8] sm:$0xff]  ;;  %v2905_v5 = vld [vmem:[#allocation12 + $0x8e0] sm:$0xff]  ;;  %v2925_v6 = vld [vmem:[#allocation12 + $0x8f0] sm:$0xff] }
  0x93   :  { %13325 = vmatpush2.bf16.msra.mxu1 %v18667_v19  ;;  %13518 = vmatpush2.bf16.msra.mxu0 %v18699_v20  ;;  %v1715_v19 = vld [vmem:[#allocation12 + $0x528] sm:$0xff]  ;;  %v1735_v20 = vld [vmem:[#allocation12 + $0x538] sm:$0xff]  ;;  %v2225_v13 = vld [vmem:[#allocation12 + $0x6c0] sm:$0xff]  ;;  %v18749_v17 = vpack.c.bf16 %v2925_v6, %v2905_v5 }
  0x94   :  { %13326 = vmatprep.subr.bf16.mxu1 %v18666_v24  ;;  %13519 = vmatprep.subr.bf16.mxu0 %v18698_v25  ;;  %v1085_v24 = vld [vmem:[#allocation12 + $0x330] sm:$0xff]  ;;  %v1705_v25 = vld [vmem:[#allocation12 + $0x520] sm:$0xff]  ;;  %v18690_v27 = vpack.c.bf16 %v1735_v20, %v1715_v19  ;;  %v2875_v9 = vld [vmem:[#allocation12 + $0x8c8] sm:$0xff] }
  0x95   :  { %v18657_v39 = vpack.c.bf16 %v1085_v24, %v1065_v23  ;;  %v18689_v40 = vpack.c.bf16 %v1725_v28, %v1705_v25  ;;  %v2895_v10 = vld [vmem:[#allocation12 + $0x8d8] sm:$0xff]  ;;  %v2245_v14 = vld [vmem:[#allocation12 + $0x6d0] sm:$0xff]  ;;  %v2865_v19 = vld [vmem:[#allocation12 + $0x8c0] sm:$0xff] }
  0x96   :  { %13276 = vmatmul.mubr.bf16.gmra.mxu1 %v16214_v32  ;;  %13196 = vmatmul.mubr.bf16.gmra.mxu0 %v16022_v33  ;;  %v1695_v32 = vld [vmem:[#allocation12 + $0x518] sm:$0xff]  ;;  %v19535_v33 = vld [vmem:[%s23037_s0 + $0x8] sm:$0xff]  ;;  %v2885_v20 = vld [vmem:[#allocation12 + $0x8d0] sm:$0xff] }
  0x97   :  { %13327 = vmatpush2.bf16.msra.mxu1 %v18665_v37  ;;  %13520 = vmatpush2.bf16.msra.mxu0 %v18697_v38  ;;  %v8495_v37 = vld [vmem:[%s23037_s0 + $0x10] sm:$0xff]  ;;  %v18688_v46 = vpack.c.bf16 %v1695_v32, %v1675_v31  ;;  %v19584_v23 = vld [vmem:[%s23037_s0 + $0x1e8] sm:$0xff]  ;;  %v2205_v28 = vld [vmem:[#allocation12 + $0x6b0] sm:$0xff]  ;;  %v18747_v30 = vpack.c.bf16 %v2885_v20, %v2865_v19 }
  0x98   :  { %13328 = vmatprep.subr.bf16.mxu1 %v18664_v41  ;;  %13521 = vmatprep.subr.bf16.mxu0 %v18696_v42  ;;  %v8507_v38 = vld [vmem:[%s23037_s0 + $0x70] sm:$0xff]  ;;  %v1025_v41 = vld [vmem:[#allocation12 + $0x300] sm:$0xff]  ;;  %v1045_v42 = vld [vmem:[#allocation12 + $0x310] sm:$0xff] }
  0x99   :  { %13285 = vmatprep.mubr.bf16.mxu1 %v16239_v48  ;;  %13205 = vmatprep.mubr.bf16.mxu0 %v16047_v52  ;;  %v1685_v48 = vld [vmem:[#allocation12 + $0x510] sm:$0xff]  ;;  %v15905_v52 = vcombine.high %v19535_v33, %v8506_v36  ;;  %v15907_v54 = vcombine.high %v8495_v37, %v8507_v38  ;;  %v18655_v57 = vpack.c.bf16 %v1045_v42, %v1025_v41  ;;  %v19589_v24 = vld [vmem:[%s23037_s0 + $0x190] sm:$0xff]  ;;  %v2855_v32 = vld [vmem:[#allocation12 + $0x8b8] sm:$0xff] }
  0x9a   :  { %v18687_v58 = vpack.c.bf16 %v1685_v48, %v1665_v47  ;;  %v15906_v50 = vcombine.low %v8495_v37, %v8507_v38  ;;  %v2835_v31 = vld [vmem:[#allocation12 + $0x8a8] sm:$0xff]  ;;  %v2845_v37 = vld [vmem:[#allocation12 + $0x8b0] sm:$0xff]  ;;  %v2815_v41 = vld [vmem:[#allocation12 + $0x898] sm:$0xff] }
  0x9b   :  { %13329 = vmatpush2.bf16.msra.mxu1 %v18663_v55  ;;  %13522 = vmatpush2.bf16.msra.mxu0 %v18695_v56  ;;  %v2915_v55 = vld [vmem:[#allocation12 + $0x8e8] sm:$0xff]  ;;  %v2935_v56 = vld [vmem:[#allocation12 + $0x8f8] sm:$0xff]  ;;  %v2145_v47 = vld [vmem:[#allocation12 + $0x680] sm:$0xff] }
  0x9c   :  { %13330 = vmatprep.subr.bf16.mxu1 %v18662_v60  ;;  %13523 = vmatprep.subr.bf16.mxu0 %v18694_v61  ;;  %v2285_v60 = vld [vmem:[#allocation12 + $0x6f0] sm:$0xff]  ;;  %v18718_v61 = vpack.c.bf16 %v2295_v53, %v2275_v51  ;;  %v18750_v3 = vpack.c.bf16 %v2935_v56, %v2915_v55  ;;  %v2115_v51 = vld [vmem:[#allocation12 + $0x668] sm:$0xff]  ;;  %v2135_v53 = vld [vmem:[#allocation12 + $0x678] sm:$0xff] }
  0x9d   :  { %v2165_v48 = vld [vmem:[#allocation12 + $0x690] sm:$0xff]  ;;  %v2785_v55 = vld [vmem:[#allocation12 + $0x880] sm:$0xff]  ;;  %v2095_v5 = vld [vmem:[#allocation12 + $0x658] sm:$0xff] }
  0x9e   :  { %13286 = vmatmul.mubr.bf16.gmra.mxu1 %v16238_v45  ;;  %13206 = vmatmul.mubr.bf16.gmra.mxu0 %v16046_v49  ;;  %v19569_v45 = vld [vmem:[%s23037_s0 + $0x130] sm:$0xff]  ;;  %v15904_v49 = vcombine.low %v19535_v33, %v8506_v36  ;;  %v15928_v33 = vcombine.low %v19554_v62, %v19559_v63  ;;  %v2825_v36 = vld [vmem:[#allocation12 + $0x8a0] sm:$0xff]  ;;  %v2805_v56 = vld [vmem:[#allocation12 + $0x890] sm:$0xff] }
  0x9f   :  { %13331 = vmatpush2.bf16.msra.mxu1 %v18661_v7  ;;  %13524 = vmatpush2.bf16.msra.mxu0 %v18693_v8  ;;  %v18717_v7 = vpack.c.bf16 %v2285_v60, %v2265_v59  ;;  %v15929_v8 = vcombine.high %v19554_v62, %v19559_v63  ;;  %v19617_v59 = vld [vmem:[%s23037_s0 + $0x250] sm:$0xff]  ;;  %v2105_v62 = vld [vmem:[#allocation12 + $0x660] sm:$0xff]  ;;  %v2125_v63 = vld [vmem:[#allocation12 + $0x670] sm:$0xff] }
  0xa0   :  { %13332 = vmatprep.subr.bf16.mxu1 %v18660_v11  ;;  %13525 = vmatprep.subr.bf16.mxu0 %v18692_v12  ;;  %v18716_v11 = vpack.c.bf16 %v2255_v4, %v2235_v0  ;;  %v15931_v12 = vcombine.high %v19564_v44, %v19569_v45  ;;  %v19622_v60 = vld [vmem:[%s23037_s0 + $0x2b0] sm:$0xff]  ;;  %v18710_v0 = vpack.c.bf16 %v2135_v53, %v2115_v51  ;;  %v2745_v6 = vld [vmem:[#allocation12 + $0x860] sm:$0xff]  ;;  %v2055_v19 = vld [vmem:[#allocation12 + $0x638] sm:$0xff] }
  0xa1   :  { %13295 = vmatprep.mubr.bf16.mxu1 %v16263_v16  ;;  %13215 = vmatprep.mubr.bf16.mxu0 %v16071_v18  ;;  %v2215_v16 = vld [vmem:[#allocation12 + $0x6b8] sm:$0xff]  ;;  %v18748_v18 = vpack.c.bf16 %v2895_v10, %v2875_v9  ;;  %v18743_v4 = vpack.c.bf16 %v2805_v56, %v2785_v55  ;;  %v15979_v9 = vcombine.high %v19617_v59, %v19622_v60  ;;  %v2715_v10 = vld [vmem:[#allocation12 + $0x848] sm:$0xff]  ;;  %v1985_v51 = vld [vmem:[#allocation12 + $0x600] sm:$0xff] }
  0xa2   :  { %v18714_v25 = vpack.c.bf16 %v2215_v16, %v2195_v15  ;;  %v2065_v15 = vld [vmem:[#allocation12 + $0x640] sm:$0xff]  ;;  %v2085_v16 = vld [vmem:[#allocation12 + $0x650] sm:$0xff]  ;;  %v2595_v53 = vld [vmem:[#allocation12 + $0x7e8] sm:$0xff] }
  0xa3   :  { %13333 = vmatpush2.bf16.msra.mxu1 %v18659_v21  ;;  %13526 = vmatpush2.bf16.msra.mxu0 %v18691_v22  ;;  %v18715_v21 = vpack.c.bf16 %v2245_v14, %v2225_v13  ;;  %v19579_v22 = vld [vmem:[%s23037_s0 + $0x188] sm:$0xff]  ;;  %v2615_v55 = vld [vmem:[#allocation12 + $0x7f8] sm:$0xff] }
  0xa4   :  { %13334 = vmatprep.subr.bf16.mxu1 %v18658_v26  ;;  %13527 = vmatprep.subr.bf16.mxu0 %v18690_v27  ;;  %v19594_v26 = vld [vmem:[%s23037_s0 + $0x1f0] sm:$0xff]  ;;  %v2185_v27 = vld [vmem:[#allocation12 + $0x6a0] sm:$0xff]  ;;  %v15953_v38 = vcombine.high %v19579_v22, %v19584_v23 }
  0xa5   :  { %v18713_v42 = vpack.c.bf16 %v2205_v28, %v2185_v27  ;;  %v18707_v27 = vpack.c.bf16 %v2085_v16, %v2065_v15  ;;  %v2025_v28 = vld [vmem:[#allocation12 + $0x620] sm:$0xff] }
  0xa6   :  { %13296 = vmatmul.mubr.bf16.gmra.mxu1 %v16262_v34  ;;  %13216 = vmatmul.mubr.bf16.gmra.mxu0 %v16070_v35  ;;  %v15930_v34 = vcombine.low %v19564_v44, %v19569_v45  ;;  %v2175_v35 = vld [vmem:[#allocation12 + $0x698] sm:$0xff]  ;;  %v2755_v44 = vld [vmem:[#allocation12 + $0x868] sm:$0xff] }
  0xa7   :  { %13335 = vmatpush2.bf16.msra.mxu1 %v18657_v39  ;;  %13528 = vmatpush2.bf16.msra.mxu0 %v18689_v40  ;;  %v15955_v39 = vcombine.high %v19589_v24, %v19594_v26  ;;  %v2795_v40 = vld [vmem:[#allocation12 + $0x888] sm:$0xff]  ;;  %v2775_v45 = vld [vmem:[#allocation12 + $0x878] sm:$0xff] }
  0xa8   :  { %13336 = vmatprep.subr.bf16.mxu1 %v18656_v43  ;;  %13529 = vmatprep.subr.bf16.mxu0 %v18688_v46  ;;  %v18746_v43 = vpack.c.bf16 %v2855_v32, %v2835_v31  ;;  %v18712_v46 = vpack.c.bf16 %v2175_v35, %v2155_v29  ;;  %v18742_v13 = vpack.c.bf16 %v2775_v45, %v2755_v44  ;;  %v2045_v29 = vld [vmem:[#allocation12 + $0x630] sm:$0xff]  ;;  %v1995_v31 = vld [vmem:[#allocation12 + $0x608] sm:$0xff] }
  0xa9   :  { %13338 = vmatprep.mubr.bf16.mxu1 %v15905_v52  ;;  %13531 = vmatprep.mubr.bf16.mxu0 %v15907_v54  ;;  %v18745_v52 = vpack.c.bf16 %v2845_v37, %v2825_v36  ;;  %v18744_v54 = vpack.c.bf16 %v2815_v41, %v2795_v40  ;;  %v15978_v36 = vcombine.low %v19617_v59, %v19622_v60  ;;  %v2015_v37 = vld [vmem:[#allocation12 + $0x618] sm:$0xff]  ;;  %v19663_v59 = vld [vmem:[%s23037_s0 + $0x3c8] sm:$0xff]  ;;  %v2555_v44 = vld [vmem:[#allocation12 + $0x7c8] sm:$0xff] }
  0xaa   :  { %v19668_v60 = vld [vmem:[%s23037_s0 + $0x428] sm:$0xff] }
  0xab   :  { %13337 = vmatpush2.bf16.msra.mxu1 %v18655_v57  ;;  %13530 = vmatpush2.bf16.msra.mxu0 %v18687_v58  ;;  %v19607_v57 = vld [vmem:[%s23037_s0 + $0x248] sm:$0xff] }
  0xac   :  { %13692 = vmatprep.subr.bf16.mxu1 %v18718_v61  ;;  %13885 = vmatprep.subr.bf16.mxu0 %v18750_v3  ;;  %v19612_v58 = vld [vmem:[%s23037_s0 + $0x2a8] sm:$0xff]  ;;  %v18711_v61 = vpack.c.bf16 %v2165_v48, %v2145_v47  ;;  %v2075_v3 = vld [vmem:[#allocation12 + $0x648] sm:$0xff]  ;;  %v18704_v48 = vpack.c.bf16 %v2015_v37, %v1995_v31  ;;  %v2525_v31 = vld [vmem:[#allocation12 + $0x7b0] sm:$0xff]  ;;  %v16024_v37 = vcombine.low %v19663_v59, %v19668_v60 }
  0xad   :  { %v18708_v14 = vpack.c.bf16 %v2095_v5, %v2075_v3  ;;  %v15976_v35 = vcombine.low %v19607_v57, %v19612_v58  ;;  %v2605_v3 = vld [vmem:[#allocation12 + $0x7f0] sm:$0xff] }
  0xae   :  { %13339 = vmatmul.mubr.bf16.vlgmr.msra.gmra.mxu1 %v15904_v49  ;;  %13532 = vmatmul.mubr.bf16.vlgmr.msra.gmra.mxu0 %v15906_v50  ;;  %v15952_v49 = vcombine.low %v19579_v22, %v19584_v23  ;;  %v15954_v50 = vcombine.low %v19589_v24, %v19594_v26  ;;  %v2725_v22 = vld [vmem:[#allocation12 + $0x850] sm:$0xff]  ;;  %v19635_v23 = vld [vmem:[%s23037_s0 + $0x308] sm:$0xff]  ;;  %v19650_v26 = vld [vmem:[%s23037_s0 + $0x370] sm:$0xff] }
  0xaf   :  { %13693 = vmatpush1.bf16.msra.mxu1 %v18717_v7  ;;  %13348 = vmatprep.mubr.bf16.mxu1 %v15929_v8  ;;  %v2765_v7 = vld [vmem:[#allocation12 + $0x870] sm:$0xff]  ;;  %v15977_v8 = vcombine.high %v19607_v57, %v19612_v58  ;;  %v19640_v24 = vld [vmem:[%s23037_s0 + $0x368] sm:$0xff] }
  0xb0   :  { %13694 = vmatprep.subr.bf16.mxu1 %v18716_v11  ;;  %13541 = vmatprep.mubr.bf16.mxu0 %v15931_v12  ;;  %v2735_v11 = vld [vmem:[#allocation12 + $0x858] sm:$0xff]  ;;  %v18709_v12 = vpack.c.bf16 %v2125_v63, %v2105_v62  ;;  %v16001_v40 = vcombine.high %v19635_v23, %v19640_v24  ;;  %v2625_v57 = vld [vmem:[#allocation12 + $0x800] sm:$0xff]  ;;  %v2645_v58 = vld [vmem:[#allocation12 + $0x810] sm:$0xff]  ;;  %v16000_v5 = vcombine.low %v19635_v23, %v19640_v24 }
  0xb1   :  { %13886 = vmatpush1.bf16.msra.mxu0 %v18749_v17  ;;  %v2035_v17 = vld [vmem:[#allocation12 + $0x628] sm:$0xff]  ;;  %v18740_v20 = vpack.c.bf16 %v2735_v11, %v2715_v10  ;;  %v18735_v45 = vpack.c.bf16 %v2645_v58, %v2625_v57  ;;  %v16025_v10 = vcombine.high %v19663_v59, %v19668_v60  ;;  %v3185_v23 = vld [vmem:[#allocation12 + $0x9c0] sm:$0xff]  ;;  %v3205_v24 = vld [vmem:[#allocation12 + $0x9d0] sm:$0xff] }
  0xb2   :  { %13887 = vmatprep.subr.bf16.mxu0 %v18748_v18  ;;  %v18741_v18 = vpack.c.bf16 %v2765_v7, %v2745_v6  ;;  %v19678_v62 = vld [vmem:[%s23037_s0 + $0x430] sm:$0xff]  ;;  %v2575_v7 = vld [vmem:[#allocation12 + $0x7d8] sm:$0xff]  ;;  %v3105_v59 = vld [vmem:[#allocation12 + $0x980] sm:$0xff] }
  0xb3   :  { %13695 = vmatpush1.bf16.msra.mxu1 %v18715_v21  ;;  %v2705_v21 = vld [vmem:[#allocation12 + $0x840] sm:$0xff]  ;;  %v18732_v16 = vpack.c.bf16 %v2575_v7, %v2555_v44  ;;  %v2455_v57 = vld [vmem:[#allocation12 + $0x778] sm:$0xff]  ;;  %v3125_v60 = vld [vmem:[#allocation12 + $0x990] sm:$0xff] }
  0xb4   :  { %13696 = vmatprep.subr.bf16.mxu1 %v18714_v25  ;;  %v19645_v25 = vld [vmem:[%s23037_s0 + $0x310] sm:$0xff]  ;;  %v18739_v32 = vpack.c.bf16 %v2725_v22, %v2705_v21  ;;  %v2535_v21 = vld [vmem:[#allocation12 + $0x7b8] sm:$0xff]  ;;  %v2445_v44 = vld [vmem:[#allocation12 + $0x770] sm:$0xff] }
  0xb5   :  { %13888 = vmatpush1.bf16.msra.mxu0 %v18747_v30  ;;  %v18706_v30 = vpack.c.bf16 %v2055_v19, %v2035_v17  ;;  %v16003_v41 = vcombine.high %v19645_v25, %v19650_v26  ;;  %v16002_v6 = vcombine.low %v19645_v25, %v19650_v26  ;;  %v2545_v17 = vld [vmem:[#allocation12 + $0x7c0] sm:$0xff]  ;;  %v2515_v19 = vld [vmem:[#allocation12 + $0x7a8] sm:$0xff] }
  0xb6   :  { %13349 = vmatmul.mubr.bf16.gmra.mxu1 %v15928_v33  ;;  %13542 = vmatmul.mubr.bf16.gmra.mxu0 %v15930_v34  ;;  %v2675_v33 = vld [vmem:[#allocation12 + $0x828] sm:$0xff]  ;;  %v2695_v34 = vld [vmem:[#allocation12 + $0x838] sm:$0xff]  ;;  %v19691_v25 = vld [vmem:[%s23037_s0 + $0x488] sm:$0xff] }
  0xb7   :  { %13358 = vmatprep.mubr.bf16.mxu1 %v15953_v38  ;;  %13551 = vmatprep.mubr.bf16.mxu0 %v15955_v39  ;;  %v2665_v38 = vld [vmem:[#allocation12 + $0x820] sm:$0xff]  ;;  %v2685_v39 = vld [vmem:[#allocation12 + $0x830] sm:$0xff]  ;;  %v18738_v47 = vpack.c.bf16 %v2695_v34, %v2675_v33  ;;  %v2475_v33 = vld [vmem:[#allocation12 + $0x788] sm:$0xff]  ;;  %v18763_v34 = vpack.c.bf16 %v3205_v24, %v3185_v23 }
  0xb8   :  { %13697 = vmatpush1.bf16.msra.mxu1 %v18713_v42  ;;  %13889 = vmatprep.subr.bf16.mxu0 %v18746_v43  ;;  %v2635_v42 = vld [vmem:[#allocation12 + $0x808] sm:$0xff]  ;;  %v2655_v43 = vld [vmem:[#allocation12 + $0x818] sm:$0xff]  ;;  %v19696_v26 = vld [vmem:[%s23037_s0 + $0x4e8] sm:$0xff] }
  0xb9   :  { %13698 = vmatprep.subr.bf16.mxu1 %v18712_v46  ;;  %13890 = vmatpush1.bf16.msra.mxu0 %v18745_v52  ;;  %v18705_v46 = vpack.c.bf16 %v2045_v29, %v2025_v28  ;;  %v2005_v52 = vld [vmem:[#allocation12 + $0x610] sm:$0xff]  ;;  %v18736_v56 = vpack.c.bf16 %v2655_v43, %v2635_v42  ;;  %v19706_v28 = vld [vmem:[%s23037_s0 + $0x4f0] sm:$0xff]  ;;  %v16049_v42 = vcombine.high %v19691_v25, %v19696_v26  ;;  %v2375_v23 = vld [vmem:[#allocation12 + $0x738] sm:$0xff] }
  0xba   :  { %13891 = vmatprep.subr.bf16.mxu0 %v18744_v54  ;;  %v18737_v54 = vpack.c.bf16 %v2685_v39, %v2665_v38  ;;  %v18703_v63 = vpack.c.bf16 %v2005_v52, %v1985_v51  ;;  %v2495_v39 = vld [vmem:[#allocation12 + $0x798] sm:$0xff]  ;;  %v16048_v7 = vcombine.low %v19691_v25, %v19696_v26  ;;  %v3025_v25 = vld [vmem:[#allocation12 + $0x940] sm:$0xff]  ;;  %v3045_v26 = vld [vmem:[#allocation12 + $0x950] sm:$0xff] }
  0xbb   :  { %v18728_v52 = vpack.c.bf16 %v2495_v39, %v2475_v33  ;;  %v2365_v33 = vld [vmem:[#allocation12 + $0x730] sm:$0xff] }
  0xbc   :  { %13699 = vmatpush1.bf16.msra.mxu1 %v18711_v61  ;;  %v19673_v61 = vld [vmem:[%s23037_s0 + $0x3d0] sm:$0xff] }
  0xbd   :  { %13700 = vmatprep.subr.bf16.mxu1 %v18710_v0  ;;  %13892 = vmatpush1.bf16.msra.mxu0 %v18743_v4  ;;  %v2585_v0 = vld [vmem:[#allocation12 + $0x7e0] sm:$0xff]  ;;  %v18734_v4 = vpack.c.bf16 %v2615_v55, %v2595_v53  ;;  %v16027_v11 = vcombine.high %v19673_v61, %v19678_v62  ;;  %v16026_v38 = vcombine.low %v19673_v61, %v19678_v62  ;;  %v2435_v55 = vld [vmem:[#allocation12 + $0x768] sm:$0xff] }
  0xbe   :  { %13359 = vmatmul.mubr.bf16.gmra.mxu1 %v15952_v49  ;;  %13552 = vmatmul.mubr.bf16.gmra.mxu0 %v15954_v50  ;;  %v3235_v49 = vld [vmem:[#allocation12 + $0x9e8] sm:$0xff]  ;;  %v3255_v50 = vld [vmem:[#allocation12 + $0x9f8] sm:$0xff]  ;;  %v2465_v53 = vld [vmem:[#allocation12 + $0x780] sm:$0xff] }
  0xbf   :  { %13368 = vmatprep.mubr.bf16.mxu1 %v15977_v8  ;;  %13561 = vmatprep.mubr.bf16.mxu0 %v15979_v9  ;;  %v3225_v8 = vld [vmem:[#allocation12 + $0x9e0] sm:$0xff]  ;;  %v3245_v9 = vld [vmem:[#allocation12 + $0x9f0] sm:$0xff]  ;;  %v18766_v15 = vpack.c.bf16 %v3255_v50, %v3235_v49  ;;  %v2395_v49 = vld [vmem:[#allocation12 + $0x748] sm:$0xff]  ;;  %v18759_v50 = vpack.c.bf16 %v3125_v60, %v3105_v59 }
  0xc0   :  { %13701 = vmatpush1.bf16.msra.mxu1 %v18709_v12  ;;  %13893 = vmatprep.subr.bf16.mxu0 %v18742_v13  ;;  %v3195_v12 = vld [vmem:[#allocation12 + $0x9c8] sm:$0xff]  ;;  %v3215_v13 = vld [vmem:[#allocation12 + $0x9d8] sm:$0xff]  ;;  %v19719_v61 = vld [vmem:[%s23037_s0 + $0x548] sm:$0xff] }
  0xc1   :  { %13702 = vmatprep.subr.bf16.mxu1 %v18708_v14  ;;  %13894 = vmatpush1.bf16.msra.mxu0 %v18741_v18  ;;  %v18733_v14 = vpack.c.bf16 %v2605_v3, %v2585_v0  ;;  %v2565_v18 = vld [vmem:[#allocation12 + $0x7d0] sm:$0xff]  ;;  %v18764_v22 = vpack.c.bf16 %v3215_v13, %v3195_v12  ;;  %v19724_v62 = vld [vmem:[%s23037_s0 + $0x5a8] sm:$0xff]  ;;  %v19734_v0 = vld [vmem:[%s23037_s0 + $0x5b0] sm:$0xff] }
  0xc2   :  { %13895 = vmatprep.subr.bf16.mxu0 %v18740_v20  ;;  %v18765_v20 = vpack.c.bf16 %v3245_v9, %v3225_v8  ;;  %v18731_v29 = vpack.c.bf16 %v2565_v18, %v2545_v17  ;;  %v2415_v9 = vld [vmem:[#allocation12 + $0x758] sm:$0xff]  ;;  %v16073_v12 = vcombine.high %v19719_v61, %v19724_v62  ;;  %v16072_v39 = vcombine.low %v19719_v61, %v19724_v62  ;;  %v2965_v60 = vld [vmem:[#allocation12 + $0x910] sm:$0xff]  ;;  %v3555_v61 = vld [vmem:[#allocation12 + $0xae8] sm:$0xff] }
  0xc3   :  { %v18724_v18 = vpack.c.bf16 %v2415_v9, %v2395_v49  ;;  %v3575_v62 = vld [vmem:[#allocation12 + $0xaf8] sm:$0xff] }
  0xc4   :  { %13703 = vmatpush1.bf16.msra.mxu1 %v18707_v27  ;;  %v19701_v27 = vld [vmem:[%s23037_s0 + $0x490] sm:$0xff]  ;;  %v18782_v49 = vpack.c.bf16 %v3575_v62, %v3555_v61  ;;  %v4215_v9 = vld [vmem:[#allocation12 + $0xcf8] sm:$0xff] }
  0xc5   :  { %13704 = vmatprep.subr.bf16.mxu1 %v18706_v30  ;;  %13896 = vmatpush1.bf16.msra.mxu0 %v18739_v32  ;;  %v2505_v30 = vld [vmem:[#allocation12 + $0x7a0] sm:$0xff]  ;;  %v18730_v32 = vpack.c.bf16 %v2535_v21, %v2515_v19  ;;  %v16051_v43 = vcombine.high %v19701_v27, %v19706_v28  ;;  %v16050_v8 = vcombine.low %v19701_v27, %v19706_v28  ;;  %v2355_v21 = vld [vmem:[#allocation12 + $0x728] sm:$0xff] }
  0xc6   :  { %13369 = vmatmul.mubr.bf16.gmra.mxu1 %v15976_v35  ;;  %13562 = vmatmul.mubr.bf16.gmra.mxu0 %v15978_v36  ;;  %v3155_v35 = vld [vmem:[#allocation12 + $0x9a8] sm:$0xff]  ;;  %v3175_v36 = vld [vmem:[#allocation12 + $0x9b8] sm:$0xff]  ;;  %v2385_v19 = vld [vmem:[#allocation12 + $0x740] sm:$0xff] }
  0xc7   :  { %13378 = vmatprep.mubr.bf16.mxu1 %v16001_v40  ;;  %13571 = vmatprep.mubr.bf16.mxu0 %v16003_v41  ;;  %v3145_v40 = vld [vmem:[#allocation12 + $0x9a0] sm:$0xff]  ;;  %v3165_v41 = vld [vmem:[#allocation12 + $0x9b0] sm:$0xff]  ;;  %v18762_v51 = vpack.c.bf16 %v3175_v36, %v3155_v35  ;;  %v18755_v35 = vpack.c.bf16 %v3045_v26, %v3025_v25  ;;  %v2315_v36 = vld [vmem:[#allocation12 + $0x708] sm:$0xff] }
  0xc8   :  { %13705 = vmatpush1.bf16.msra.mxu1 %v18705_v46  ;;  %13897 = vmatprep.subr.bf16.mxu0 %v18738_v47  ;;  %v3115_v46 = vld [vmem:[#allocation12 + $0x988] sm:$0xff]  ;;  %v3135_v47 = vld [vmem:[#allocation12 + $0x998] sm:$0xff]  ;;  %v19747_v27 = vld [vmem:[%s23037_s0 + $0x608] sm:$0xff] }
  0xc9   :  { %13706 = vmatprep.subr.bf16.mxu1 %v18704_v48  ;;  %13898 = vmatpush1.bf16.msra.mxu0 %v18737_v54  ;;  %v18729_v48 = vpack.c.bf16 %v2525_v31, %v2505_v30  ;;  %v2485_v54 = vld [vmem:[#allocation12 + $0x790] sm:$0xff]  ;;  %v18760_v58 = vpack.c.bf16 %v3135_v47, %v3115_v46  ;;  %v19752_v28 = vld [vmem:[%s23037_s0 + $0x668] sm:$0xff]  ;;  %v19762_v30 = vld [vmem:[%s23037_s0 + $0x670] sm:$0xff] }
  0xca   :  { %13899 = vmatprep.subr.bf16.mxu0 %v18736_v56  ;;  %v18761_v56 = vpack.c.bf16 %v3165_v41, %v3145_v40  ;;  %v18727_v3 = vpack.c.bf16 %v2485_v54, %v2465_v53  ;;  %v2335_v41 = vld [vmem:[#allocation12 + $0x718] sm:$0xff]  ;;  %v16097_v46 = vcombine.high %v19747_v27, %v19752_v28 }
  0xcb   :  { %v18720_v54 = vpack.c.bf16 %v2335_v41, %v2315_v36  ;;  %v8818_v36 = vld [vmem:[%s23037_s0 + $0xa28] sm:$0xff] }
  0xcc   :  { %13707 = vmatpush1.bf16.msra.mxu1 %v18703_v63  ;;  %v19729_v63 = vld [vmem:[%s23037_s0 + $0x550] sm:$0xff] }
  0xcd   :  { %13708 = vmatprep.subr.bf16.mxu1 %v18734_v4  ;;  %13900 = vmatpush1.bf16.msra.mxu0 %v18735_v45  ;;  %v2425_v4 = vld [vmem:[#allocation12 + $0x760] sm:$0xff]  ;;  %v18726_v45 = vpack.c.bf16 %v2455_v57, %v2435_v55  ;;  %v16075_v13 = vcombine.high %v19729_v63, %v19734_v0  ;;  %v16074_v40 = vcombine.low %v19729_v63, %v19734_v0 }
  0xce   :  { %13379 = vmatmul.mubr.bf16.gmra.mxu1 %v16000_v5  ;;  %13572 = vmatmul.mubr.bf16.gmra.mxu0 %v16002_v6  ;;  %v3075_v5 = vld [vmem:[#allocation12 + $0x968] sm:$0xff]  ;;  %v3095_v6 = vld [vmem:[#allocation12 + $0x978] sm:$0xff]  ;;  %v2305_v55 = vld [vmem:[#allocation12 + $0x700] sm:$0xff] }
  0xcf   :  { %13388 = vmatprep.mubr.bf16.mxu1 %v16025_v10  ;;  %13581 = vmatprep.mubr.bf16.mxu0 %v16027_v11  ;;  %v3065_v10 = vld [vmem:[#allocation12 + $0x960] sm:$0xff]  ;;  %v3085_v11 = vld [vmem:[#allocation12 + $0x970] sm:$0xff]  ;;  %v18758_v17 = vpack.c.bf16 %v3095_v6, %v3075_v5 }
  0xd0   :  { %13709 = vmatpush2.bf16.msra.mxu1 %v18733_v14  ;;  %13901 = vmatprep.subr.bf16.mxu0 %v18766_v15  ;;  %v3035_v14 = vld [vmem:[#allocation12 + $0x948] sm:$0xff]  ;;  %v3055_v15 = vld [vmem:[#allocation12 + $0x958] sm:$0xff]  ;;  %v8710_v63 = vld [vmem:[%s23037_s0 + $0x6c8] sm:$0xff] }
  0xd1   :  { %13710 = vmatprep.subr.bf16.mxu1 %v18732_v16  ;;  %13902 = vmatpush2.bf16.msra.mxu0 %v18765_v20  ;;  %v18725_v16 = vpack.c.bf16 %v2445_v44, %v2425_v4  ;;  %v2405_v20 = vld [vmem:[#allocation12 + $0x750] sm:$0xff]  ;;  %v18756_v24 = vpack.c.bf16 %v3055_v15, %v3035_v14  ;;  %v8722_v0 = vld [vmem:[%s23037_s0 + $0x728] sm:$0xff]  ;;  %v8723_v4 = vld [vmem:[%s23037_s0 + $0x730] sm:$0xff] }
  0xd2   :  { %13903 = vmatprep.subr.bf16.mxu0 %v18764_v22  ;;  %v18757_v22 = vpack.c.bf16 %v3085_v11, %v3065_v10  ;;  %v18723_v31 = vpack.c.bf16 %v2405_v20, %v2385_v19  ;;  %v16121_v6 = vcombine.high %v8710_v63, %v8722_v0  ;;  %v8734_v11 = vld [vmem:[%s23037_s0 + $0x788] sm:$0xff]  ;;  %v8747_v14 = vld [vmem:[%s23037_s0 + $0x7f0] sm:$0xff]  ;;  %v16120_v15 = vcombine.low %v8710_v63, %v8722_v0  ;;  %v8496_v63 = vld [vmem:[%s23037_s0 + $0x18] sm:$0xff] }
  0xd3   :  { %v8758_v19 = vld [vmem:[%s23037_s0 + $0x848] sm:$0xff]  ;;  %v23045_v0 = vlaneseq }
  0xd4   :  { %13711 = vmatpush2.bf16.msra.mxu1 %v18731_v29  ;;  %v19757_v29 = vld [vmem:[%s23037_s0 + $0x610] sm:$0xff]  ;;  %v8770_v20 = vld [vmem:[%s23037_s0 + $0x8a8] sm:$0xff] }
  0xd5   :  { %13712 = vmatprep.subr.bf16.mxu1 %v18730_v32  ;;  %13904 = vmatpush2.bf16.msra.mxu0 %v18763_v34  ;;  %v2345_v32 = vld [vmem:[#allocation12 + $0x720] sm:$0xff]  ;;  %v18722_v34 = vpack.c.bf16 %v2375_v23, %v2355_v21  ;;  %v16099_v47 = vcombine.high %v19757_v29, %v19762_v30  ;;  %v16098_v5 = vcombine.low %v19757_v29, %v19762_v30  ;;  %v8759_v21 = vld [vmem:[%s23037_s0 + $0x850] sm:$0xff] }
  0xd6   :  { %13389 = vmatmul.mubr.bf16.gmra.mxu1 %v16024_v37  ;;  %13582 = vmatmul.mubr.bf16.gmra.mxu0 %v16026_v38  ;;  %v2995_v37 = vld [vmem:[#allocation12 + $0x928] sm:$0xff]  ;;  %v3015_v38 = vld [vmem:[#allocation12 + $0x938] sm:$0xff]  ;;  %v16169_v25 = vcombine.high %v8758_v19, %v8770_v20 }
  0xd7   :  { %13398 = vmatprep.mubr.bf16.mxu1 %v16049_v42  ;;  %13591 = vmatprep.mubr.bf16.mxu0 %v16051_v43  ;;  %v2985_v42 = vld [vmem:[#allocation12 + $0x920] sm:$0xff]  ;;  %v3005_v43 = vld [vmem:[#allocation12 + $0x930] sm:$0xff]  ;;  %v18754_v53 = vpack.c.bf16 %v3015_v38, %v2995_v37  ;;  %v8783_v29 = vld [vmem:[%s23037_s0 + $0x910] sm:$0xff] }
  0xd8   :  { %13713 = vmatpush2.bf16.msra.mxu1 %v18729_v48  ;;  %13905 = vmatprep.subr.bf16.mxu0 %v18762_v51  ;;  %v2955_v48 = vld [vmem:[#allocation12 + $0x908] sm:$0xff]  ;;  %v2975_v51 = vld [vmem:[#allocation12 + $0x918] sm:$0xff]  ;;  %v18753_v57 = vpack.c.bf16 %v3005_v43, %v2985_v42  ;;  %v8830_v43 = vld [vmem:[%s23037_s0 + $0xa88] sm:$0xff] }
  0xd9   :  { %13714 = vmatprep.subr.bf16.mxu1 %v18728_v52  ;;  %13906 = vmatpush2.bf16.msra.mxu0 %v18761_v56  ;;  %v18721_v52 = vpack.c.bf16 %v2365_v33, %v2345_v32  ;;  %v2325_v56 = vld [vmem:[#allocation12 + $0x710] sm:$0xff]  ;;  %v18752_v59 = vpack.c.bf16 %v2975_v51, %v2955_v48  ;;  %v8795_v30 = vld [vmem:[%s23037_s0 + $0x970] sm:$0xff] }
  0xda   :  { %13907 = vmatprep.subr.bf16.mxu0 %v18760_v58  ;;  %v2945_v58 = vld [vmem:[#allocation12 + $0x900] sm:$0xff]  ;;  %v18719_v44 = vpack.c.bf16 %v2325_v56, %v2305_v55  ;;  %v8807_v37 = vld [vmem:[%s23037_s0 + $0x9d0] sm:$0xff] }
  0xdb   :  { %v8819_v38 = vld [vmem:[%s23037_s0 + $0xa30] sm:$0xff]  ;;  %v8854_v55 = vld [vmem:[%s23037_s0 + $0xb48] sm:$0xff] }
  0xdc   :  { %13715 = vmatpush2.bf16.msra.mxu1 %v18727_v3  ;;  %v8711_v3 = vld [vmem:[%s23037_s0 + $0x6d0] sm:$0xff]  ;;  %v16219_v42 = vcombine.high %v8807_v37, %v8819_v38  ;;  %v8866_v56 = vld [vmem:[%s23037_s0 + $0xba8] sm:$0xff] }
  0xdd   :  { %13716 = vmatprep.subr.bf16.mxu1 %v18726_v45  ;;  %13908 = vmatpush2.bf16.msra.mxu0 %v18759_v50  ;;  %v18751_v45 = vpack.c.bf16 %v2965_v60, %v2945_v58  ;;  %v16096_v50 = vcombine.low %v19747_v27, %v19752_v28  ;;  %v8782_v27 = vld [vmem:[%s23037_s0 + $0x908] sm:$0xff]  ;;  %v8843_v48 = vld [vmem:[%s23037_s0 + $0xaf0] sm:$0xff]  ;;  %v16265_v61 = vcombine.high %v8854_v55, %v8866_v56 }
  0xde   :  { %13399 = vmatmul.mubr.bf16.gmra.mxu1 %v16048_v7  ;;  %13592 = vmatmul.mubr.bf16.gmra.mxu0 %v16050_v8  ;;  %v16123_v7 = vcombine.high %v8711_v3, %v8723_v4  ;;  %v4195_v8 = vld [vmem:[#allocation12 + $0xce8] sm:$0xff]  ;;  %v8794_v28 = vld [vmem:[%s23037_s0 + $0x968] sm:$0xff] }
  0xdf   :  { %13408 = vmatprep.mubr.bf16.mxu1 %v16073_v12  ;;  %13601 = vmatprep.mubr.bf16.mxu0 %v16075_v13  ;;  %v18814_v10 = vpack.c.bf16 %v4215_v9, %v4195_v8  ;;  %v8746_v12 = vld [vmem:[%s23037_s0 + $0x7e8] sm:$0xff]  ;;  %v8735_v13 = vld [vmem:[%s23037_s0 + $0x790] sm:$0xff]  ;;  %v16193_v33 = vcombine.high %v8782_v27, %v8794_v28 }
  0xe0   :  { %13717 = vmatpush2.bf16.msra.mxu1 %v18725_v16  ;;  %13909 = vmatprep.subr.bf16.mxu0 %v18758_v17  ;;  %v16122_v16 = vcombine.low %v8711_v3, %v8723_v4  ;;  %v16145_v17 = vcombine.high %v8734_v11, %v8746_v12  ;;  %v16144_v23 = vcombine.low %v8734_v11, %v8746_v12  ;;  %v8867_v58 = vld [vmem:[%s23037_s0 + $0xbb0] sm:$0xff]  ;;  %v8508_v3 = vld [vmem:[%s23037_s0 + $0x78] sm:$0xff]  ;;  %v8497_v4 = vld [vmem:[%s23037_s0 + $0x20] sm:$0xff] }
  0xe1   :  { %13718 = vmatprep.subr.bf16.mxu1 %v18724_v18  ;;  %13910 = vmatpush2.bf16.msra.mxu0 %v18757_v22  ;;  %v16147_v18 = vcombine.high %v8735_v13, %v8747_v14  ;;  %v8771_v22 = vld [vmem:[%s23037_s0 + $0x8b0] sm:$0xff]  ;;  %v3545_v9 = vld [vmem:[#allocation12 + $0xae0] sm:$0xff]  ;;  %v19879_v11 = vld [vmem:[%s23037_s0 + $0xd8] sm:$0xff] }
  0xe2   :  { %13911 = vmatprep.subr.bf16.mxu0 %v18756_v24  ;;  %v16146_v24 = vcombine.low %v8735_v13, %v8747_v14  ;;  %v16171_v26 = vcombine.high %v8759_v21, %v8771_v22  ;;  %v16170_v32 = vcombine.low %v8759_v21, %v8771_v22  ;;  %v19884_v12 = vld [vmem:[%s23037_s0 + $0x138] sm:$0xff]  ;;  %v3515_v13 = vld [vmem:[#allocation12 + $0xac8] sm:$0xff] }
  0xe3   :  { %v4205_v21 = vld [vmem:[#allocation12 + $0xcf0] sm:$0xff] }
  0xe4   :  { %13719 = vmatpush2.bf16.msra.mxu1 %v18723_v31  ;;  %v16168_v31 = vcombine.low %v8758_v19, %v8770_v20  ;;  %v4185_v20 = vld [vmem:[#allocation12 + $0xce0] sm:$0xff] }
  0xe5   :  { %13720 = vmatprep.subr.bf16.mxu1 %v18722_v34  ;;  %13912 = vmatpush2.bf16.msra.mxu0 %v18755_v35  ;;  %v16195_v34 = vcombine.high %v8783_v29, %v8795_v30  ;;  %v8806_v35 = vld [vmem:[%s23037_s0 + $0x9c8] sm:$0xff] }
  0xe6   :  { %13409 = vmatmul.mubr.bf16.gmra.mxu1 %v16072_v39  ;;  %13602 = vmatmul.mubr.bf16.gmra.mxu0 %v16074_v40  ;;  %v16192_v39 = vcombine.low %v8782_v27, %v8794_v28  ;;  %v16194_v40 = vcombine.low %v8783_v29, %v8795_v30  ;;  %v16217_v41 = vcombine.high %v8806_v35, %v8818_v36  ;;  %v3505_v29 = vld [vmem:[#allocation12 + $0xac0] sm:$0xff]  ;;  %v3525_v30 = vld [vmem:[#allocation12 + $0xad0] sm:$0xff] }
  0xe7   :  { %13418 = vmatprep.mubr.bf16.mxu1 %v16097_v46  ;;  %13611 = vmatprep.mubr.bf16.mxu0 %v16099_v47  ;;  %v8842_v46 = vld [vmem:[%s23037_s0 + $0xae8] sm:$0xff]  ;;  %v8831_v47 = vld [vmem:[%s23037_s0 + $0xa90] sm:$0xff]  ;;  %v16216_v51 = vcombine.low %v8806_v35, %v8818_v36 }
  0xe8   :  { %13721 = vmatpush2.bf16.msra.mxu1 %v18721_v52  ;;  %13913 = vmatprep.subr.bf16.mxu0 %v18754_v53  ;;  %v16218_v52 = vcombine.low %v8807_v37, %v8819_v38  ;;  %v16241_v53 = vcombine.high %v8830_v43, %v8842_v46  ;;  %v16242_v60 = vcombine.low %v8831_v47, %v8843_v48  ;;  %v4145_v38 = vld [vmem:[#allocation12 + $0xcc0] sm:$0xff] }
  0xe9   :  { %13722 = vmatprep.subr.bf16.mxu1 %v18720_v54  ;;  %13914 = vmatpush2.bf16.msra.mxu0 %v18753_v57  ;;  %v16243_v54 = vcombine.high %v8831_v47, %v8843_v48  ;;  %v8855_v57 = vld [vmem:[%s23037_s0 + $0xb50] sm:$0xff] }
  0xea   :  { %13915 = vmatprep.subr.bf16.mxu0 %v18752_v59  ;;  %v16240_v59 = vcombine.low %v8830_v43, %v8842_v46  ;;  %v16267_v62 = vcombine.high %v8855_v57, %v8867_v58  ;;  %v19918_v43 = vld [vmem:[%s23037_s0 + $0x1f8] sm:$0xff]  ;;  %v19923_v46 = vld [vmem:[%s23037_s0 + $0x1a0] sm:$0xff] }
  0xec   :  { %13723 = vmatpush2.bf16.msra.mxu1 %v18719_v44  ;;  %v8509_v44 = vld [vmem:[%s23037_s0 + $0x80] sm:$0xff] }
  0xed   :  { %13916 = vmatpush2.bf16.msra.mxu0 %v18751_v45  ;;  %14078 = vmatprep.subr.bf16.mxu1 %v18782_v49  ;;  %v16264_v45 = vcombine.low %v8854_v55, %v8866_v56  ;;  %v16266_v49 = vcombine.low %v8855_v57, %v8867_v58  ;;  %v15910_v19 = vcombine.low %v8497_v4, %v8509_v44  ;;  %v3435_v56 = vld [vmem:[#allocation12 + $0xa88] sm:$0xff] }
  0xee   :  { %13419 = vmatmul.mubr.bf16.gmra.mxu1 %v16096_v50  ;;  %13612 = vmatmul.mubr.bf16.gmra.mxu0 %v16098_v5  ;;  %v15909_v50 = vcombine.high %v8496_v63, %v8508_v3  ;;  %v19873_v5 = vshrl.u32 %v23045_v0, 7  ;;  %v4115_v58 = vld [vmem:[#allocation12 + $0xca8] sm:$0xff] }
  0xef   :  { %13428 = vmatprep.mubr.bf16.mxu1 %v16121_v6  ;;  %13621 = vmatprep.mubr.bf16.mxu0 %v16123_v7  ;;  %v15911_v6 = vcombine.high %v8497_v4, %v8509_v44  ;;  %v9261_v7 = vld [vmem:[#allocation15] sm:$0x3]  ;;  %v4125_v44 = vld [vmem:[#allocation12 + $0xcb0] sm:$0xff]  ;;  %v3795_v0 = vld [vmem:[#allocation12 + $0xba8] sm:$0xff] }
  0xf0   :  { %14271 = vmatprep.subr.bf16.mxu0 %v18814_v10  ;;  %23052 = vst [vmem:[#allocation26_spill] sm:$0xff] %v19873_v5  ;;  %v9265_v8 = vsub.s32 0, %v19873_v5  ;;  %v3565_v10 = vld [vmem:[#allocation12 + $0xaf0] sm:$0xff]  ;;  %v9269_v14 = vsub.s32 1, %v19873_v5  ;;  %v4105_v4 = vld [vmem:[#allocation12 + $0xca0] sm:$0xff] }
  0xf2   :  { %v19897_v22 = vrot.slane %v9261_v7, %v9265_v8 }
  0xf6   :  { %13429 = vmatmul.mubr.bf16.gmra.mxu1 %v16120_v15  ;;  %13622 = vmatmul.mubr.bf16.gmra.mxu0 %v16122_v16  ;;  %v3535_v15 = vld [vmem:[#allocation12 + $0xad8] sm:$0xff] }
  0xf7   :  { %13438 = vmatprep.mubr.bf16.mxu1 %v16145_v17  ;;  %13631 = vmatprep.mubr.bf16.mxu0 %v16147_v18  ;;  %v19890_v16 = vld [vmem:[%s23037_s0 + $0xe0] sm:$0xff]  ;;  %v15908_v18 = vcombine.low %v8496_v63, %v8508_v3  ;;  %v18780_v27 = vpack.c.bf16 %v3535_v15, %v3515_v13  ;;  %v3445_v15 = vld [vmem:[#allocation12 + $0xa90] sm:$0xff] }
  0xf8   :  { %v19895_v17 = vld [vmem:[%s23037_s0 + $0x140] sm:$0xff] }
  0xf9   :  { %v15935_v28 = vcombine.high %v19890_v16, %v19895_v17  ;;  %v15934_v63 = vcombine.low %v19890_v16, %v19895_v17  ;;  %v3455_v3 = vld [vmem:[#allocation12 + $0xa98] sm:$0xff]  ;;  %v3395_v16 = vld [vmem:[#allocation12 + $0xa68] sm:$0xff]  ;;  %v18809_v17 = vpack.c.bf16 %v4125_v44, %v4105_v4 }
  0xfa   :  { %v18776_v13 = vpack.c.bf16 %v3455_v3, %v3435_v56  ;;  %v3995_v4 = vld [vmem:[#allocation12 + $0xc48] sm:$0xff]  ;;  %v4015_v44 = vld [vmem:[#allocation12 + $0xc58] sm:$0xff] }
  0xfe   :  { %13439 = vmatmul.mubr.bf16.gmra.mxu1 %v16144_v23  ;;  %13632 = vmatmul.mubr.bf16.gmra.mxu0 %v16146_v24  ;;  %v18781_v23 = vpack.c.bf16 %v3565_v10, %v3545_v9  ;;  %v15933_v24 = vcombine.high %v19879_v11, %v19884_v12 }
  0xff   :  { %13448 = vmatprep.mubr.bf16.mxu1 %v16169_v25  ;;  %13641 = vmatprep.mubr.bf16.mxu0 %v16171_v26  ;;  %v4155_v25 = vld [vmem:[#allocation12 + $0xcc8] sm:$0xff]  ;;  %v4175_v26 = vld [vmem:[#allocation12 + $0xcd8] sm:$0xff] }
 0x100   :  { %v18812_v37 = vpack.c.bf16 %v4175_v26, %v4155_v25  ;;  %v19961_v26 = vld [vmem:[%s23037_s0 + $0x258] sm:$0xff] }
 0x106   :  { %13449 = vmatmul.mubr.bf16.gmra.mxu1 %v16168_v31  ;;  %13642 = vmatmul.mubr.bf16.gmra.mxu0 %v16170_v32  ;;  %v19903_v31 = vrot.slane %v9261_v7, %v9269_v14  ;;  %v3475_v32 = vld [vmem:[#allocation12 + $0xaa8] sm:$0xff]  ;;  %v4095_v7 = vld [vmem:[#allocation12 + $0xc98] sm:$0xff]  ;;  %v3425_v14 = vld [vmem:[#allocation12 + $0xa80] sm:$0xff] }
 0x107   :  { %13458 = vmatprep.mubr.bf16.mxu1 %v16193_v33  ;;  %13651 = vmatprep.mubr.bf16.mxu0 %v16195_v34  ;;  %v3495_v33 = vld [vmem:[#allocation12 + $0xab8] sm:$0xff]  ;;  %v18813_v34 = vpack.c.bf16 %v4205_v21, %v4185_v20 }
 0x108   :  { %v3415_v20 = vld [vmem:[#allocation12 + $0xa78] sm:$0xff] }
 0x10e   :  { %13459 = vmatmul.mubr.bf16.gmra.mxu1 %v16192_v39  ;;  %13652 = vmatmul.mubr.bf16.gmra.mxu0 %v16194_v40  ;;  %v4165_v39 = vld [vmem:[#allocation12 + $0xcd0] sm:$0xff] }
 0x10f   :  { %13468 = vmatprep.mubr.bf16.mxu1 %v16217_v41  ;;  %13661 = vmatprep.mubr.bf16.mxu0 %v16219_v42  ;;  %v18779_v41 = vpack.c.bf16 %v3525_v30, %v3505_v29  ;;  %v19913_v42 = vld [vmem:[%s23037_s0 + $0x198] sm:$0xff]  ;;  %v18811_v57 = vpack.c.bf16 %v4165_v39, %v4145_v38  ;;  %v18774_v38 = vpack.c.bf16 %v3415_v20, %v3395_v16  ;;  %v3355_v39 = vld [vmem:[#allocation12 + $0xa48] sm:$0xff]  ;;  %v3985_v16 = vld [vmem:[#allocation12 + $0xc40] sm:$0xff] }
 0x110   :  { %v15956_v56 = vcombine.low %v19913_v42, %v19918_v43  ;;  %v20009_v20 = vld [vmem:[%s23037_s0 + $0x318] sm:$0xff] }
 0x116   :  { %13469 = vmatmul.mubr.bf16.gmra.mxu1 %v16216_v51  ;;  %13662 = vmatmul.mubr.bf16.gmra.mxu0 %v16218_v52  ;;  %v18778_v51 = vpack.c.bf16 %v3495_v33, %v3475_v32  ;;  %v19930_v52 = vld [vmem:[%s23037_s0 + $0x200] sm:$0xff]  ;;  %v18775_v33 = vpack.c.bf16 %v3445_v15, %v3425_v14  ;;  %v18804_v15 = vpack.c.bf16 %v4015_v44, %v3995_v4  ;;  %v3965_v4 = vld [vmem:[#allocation12 + $0xc30] sm:$0xff] }
 0x117   :  { %13478 = vmatprep.mubr.bf16.mxu1 %v16241_v53  ;;  %13671 = vmatprep.mubr.bf16.mxu0 %v16243_v54  ;;  %v3465_v53 = vld [vmem:[#allocation12 + $0xaa0] sm:$0xff]  ;;  %v3485_v54 = vld [vmem:[#allocation12 + $0xab0] sm:$0xff]  ;;  %v19978_v32 = vld [vmem:[%s23037_s0 + $0x2c0] sm:$0xff] }
 0x118   :  { %v18777_v10 = vpack.c.bf16 %v3485_v54, %v3465_v53  ;;  %v3335_v14 = vld [vmem:[#allocation12 + $0xa38] sm:$0xff] }
 0x11e   :  { %13479 = vmatmul.mubr.bf16.gmra.mxu1 %v16240_v59  ;;  %13672 = vmatmul.mubr.bf16.gmra.mxu0 %v16242_v60  ;;  %v4135_v59 = vld [vmem:[#allocation12 + $0xcb8] sm:$0xff] }
 0x11f   :  { %13488 = vmatprep.mubr.bf16.mxu1 %v16265_v61  ;;  %13681 = vmatprep.mubr.bf16.mxu0 %v16267_v62  ;;  %v15932_v62 = vcombine.low %v19879_v11, %v19884_v12  ;;  %v18810_v11 = vpack.c.bf16 %v4135_v59, %v4115_v58  ;;  %v3375_v58 = vld [vmem:[#allocation12 + $0xa58] sm:$0xff]  ;;  %v4025_v59 = vld [vmem:[#allocation12 + $0xc60] sm:$0xff] }
 0x126   :  { %13489 = vmatmul.mubr.bf16.gmra.mxu1 %v16264_v45  ;;  %13682 = vmatmul.mubr.bf16.gmra.mxu0 %v16266_v49  ;;  %v15957_v49 = vcombine.high %v19913_v42, %v19918_v43 }
 0x127   :  { %13724 = vmatprep.mubr.bf16.mxu1 %v15909_v50  ;;  %13917 = vmatprep.mubr.bf16.mxu0 %v15911_v6  ;;  %v15959_v50 = vcombine.high %v19923_v46, %v19930_v52  ;;  %v4075_v6 = vld [vmem:[#allocation12 + $0xc88] sm:$0xff] }
 0x128   :  { %v18808_v21 = vpack.c.bf16 %v4095_v7, %v4075_v6  ;;  %v3345_v6 = vld [vmem:[#allocation12 + $0xa40] sm:$0xff]  ;;  %v3365_v7 = vld [vmem:[#allocation12 + $0xa50] sm:$0xff] }
 0x12e   :  { %v13227_v35 = vpop.f32.mrf.mxu1  ;;  %13725 = vmatmul.mubr.bf16.vlgmr.msra.gmra.mxu1 %v15908_v18  ;;  %v19905_v36 = vpop.f32.mrf.mxu0  ;;  %13918 = vmatmul.mubr.bf16.vlgmr.msra.gmra.mxu0 %v15910_v19 }
 0x12f   :  { %v19908_v40 = vadd.f32 %v13227_v35, %v19897_v22  ;;  %14079 = vmatpush1.bf16.msra.mxu1 %v18781_v23  ;;  %13734 = vmatprep.mubr.bf16.mxu1 %v15933_v24  ;;  %v4065_v23 = vld [vmem:[#allocation12 + $0xc80] sm:$0xff]  ;;  %v4085_v24 = vld [vmem:[#allocation12 + $0xc90] sm:$0xff] }
 0x130   :  { %v13229_v47 = vpop.f32.mrf.mxu1  ;;  %v19925_v48 = vpop.f32.mrf.mxu0  ;;  %14080 = vmatprep.subr.bf16.mxu1 %v18780_v27  ;;  %13927 = vmatprep.mubr.bf16.mxu0 %v15935_v28  ;;  %v19966_v27 = vld [vmem:[%s23037_s0 + $0x2b8] sm:$0xff]  ;;  %v19971_v28 = vld [vmem:[%s23037_s0 + $0x260] sm:$0xff] }
 0x131   :  { %23053 = vst [vmem:[#allocation27_spill] sm:$0xff] %v19908_v40  ;;  %v19933_v55 = vadd.f32 %v13229_v47, %v19903_v31  ;;  %14272 = vmatpush1.bf16.msra.mxu0 %v18813_v34  ;;  %v3385_v34 = vld [vmem:[#allocation12 + $0xa60] sm:$0xff]  ;;  %v3405_v35 = vld [vmem:[#allocation12 + $0xa70] sm:$0xff]  ;;  %v4035_v47 = vld [vmem:[#allocation12 + $0xc68] sm:$0xff]  ;;  %v15983_v3 = vcombine.high %v19971_v28, %v19978_v32 }
 0x132   :  { %v13231_v60 = vpop.f32.mrf.mxu1  ;;  %v19935_v61 = vpop.f32.mrf.mxu0  ;;  %14273 = vmatprep.subr.bf16.mxu0 %v18812_v37  ;;  %v18773_v43 = vpack.c.bf16 %v3405_v35, %v3385_v34  ;;  %v18771_v34 = vpack.c.bf16 %v3365_v7, %v3345_v6  ;;  %v3305_v35 = vld [vmem:[#allocation12 + $0xa20] sm:$0xff]  ;;  %v4245_v40 = vld [vmem:[#allocation12 + $0xd10] sm:$0xff] }
 0x133   :  { %23054 = vst [vmem:[#allocation28_spill] sm:$0xff] %v19933_v55  ;;  %v19942_v45 = vadd.f32 %v13231_v60, %v19897_v22  ;;  %14081 = vmatpush1.bf16.msra.mxu1 %v18779_v41  ;;  %v18807_v41 = vpack.c.bf16 %v4085_v24, %v4065_v23  ;;  %v4045_v60 = vld [vmem:[#allocation12 + $0xc70] sm:$0xff]  ;;  %v20019_v23 = vld [vmem:[%s23037_s0 + $0x320] sm:$0xff] }
 0x134   :  { %v13233_v8 = vpop.f32.mrf.mxu1  ;;  %v19948_v9 = vpop.f32.mrf.mxu0  ;;  %14082 = vmatprep.subr.bf16.mxu1 %v18778_v51  ;;  %v4055_v51 = vld [vmem:[#allocation12 + $0xc78] sm:$0xff] }
 0x135   :  { %23055 = vst [vmem:[#allocation29_spill] sm:$0xff] %v19942_v45  ;;  %v19951_v12 = vadd.f32 %v13233_v8, %v19903_v31  ;;  %14274 = vmatpush1.bf16.msra.mxu0 %v18811_v57  ;;  %v15958_v57 = vcombine.low %v19923_v46, %v19930_v52  ;;  %v18806_v46 = vpack.c.bf16 %v4055_v51, %v4035_v47  ;;  %v3315_v8 = vld [vmem:[#allocation12 + $0xa28] sm:$0xff] }
 0x136   :  { %v13237_v18 = vpop.f32.mrf.mxu1  ;;  %13735 = vmatmul.mubr.bf16.gmra.mxu1 %v15932_v62  ;;  %v19953_v19 = vpop.f32.mrf.mxu0  ;;  %13928 = vmatmul.mubr.bf16.gmra.mxu0 %v15934_v63  ;;  %v15981_v63 = vcombine.high %v19961_v26, %v19966_v27  ;;  %v3275_v47 = vld [vmem:[#allocation12 + $0xa08] sm:$0xff] }
 0x137   :  { %23056 = vst [vmem:[#allocation30_spill] sm:$0xff] %v19951_v12  ;;  %v19956_v25 = vadd.f32 %v13237_v18, %v19897_v22  ;;  %13744 = vmatprep.mubr.bf16.mxu1 %v15957_v49  ;;  %13937 = vmatprep.mubr.bf16.mxu0 %v15959_v50  ;;  %v18772_v50 = vpack.c.bf16 %v3375_v58, %v3355_v39 }
 0x138   :  { %v13239_v29 = vpop.f32.mrf.mxu1  ;;  %v19973_v30 = vpop.f32.mrf.mxu0  ;;  %14083 = vmatpush1.bf16.msra.mxu1 %v18777_v10  ;;  %14275 = vmatprep.subr.bf16.mxu0 %v18810_v11  ;;  %v18805_v10 = vpack.c.bf16 %v4045_v60, %v4025_v59  ;;  %v15980_v59 = vcombine.low %v19961_v26, %v19966_v27  ;;  %v15982_v60 = vcombine.low %v19971_v28, %v19978_v32 }
 0x139   :  { %23057 = vst [vmem:[#allocation31_spill] sm:$0xff] %v19956_v25  ;;  %v19981_v37 = vadd.f32 %v13239_v29, %v19903_v31  ;;  %14084 = vmatprep.subr.bf16.mxu1 %v18776_v13  ;;  %14276 = vmatpush1.bf16.msra.mxu0 %v18809_v17  ;;  %v4005_v17 = vld [vmem:[#allocation12 + $0xc50] sm:$0xff] }
 0x13a   :  { %v13241_v53 = vpop.f32.mrf.mxu1  ;;  %v19983_v54 = vpop.f32.mrf.mxu0  ;;  %14277 = vmatprep.subr.bf16.mxu0 %v18808_v21  ;;  %v20014_v21 = vld [vmem:[%s23037_s0 + $0x378] sm:$0xff]  ;;  %v18803_v51 = vpack.c.bf16 %v4005_v17, %v3985_v16  ;;  %v3895_v17 = vld [vmem:[#allocation12 + $0xbf8] sm:$0xff] }
 0x13b   :  { %23058 = vst [vmem:[#allocation32_spill] sm:$0xff] %v19981_v37  ;;  %v19990_v62 = vadd.f32 %v13241_v53, %v19897_v22  ;;  %v3955_v53 = vld [vmem:[#allocation12 + $0xc28] sm:$0xff]  ;;  %v3655_v37 = vld [vmem:[#allocation12 + $0xb38] sm:$0xff] }
 0x13c   :  { %v13243_v49 = vpop.f32.mrf.mxu1  ;;  %v19996_v42 = vpop.f32.mrf.mxu0  ;;  %14085 = vmatpush1.bf16.msra.mxu1 %v18775_v33  ;;  %v20026_v33 = vld [vmem:[%s23037_s0 + $0x380] sm:$0xff] }
 0x13d   :  { %23059 = vst [vmem:[#allocation33_spill] sm:$0xff] %v19990_v62  ;;  %v19999_v52 = vadd.f32 %v13243_v49, %v19903_v31  ;;  %14086 = vmatprep.subr.bf16.mxu1 %v18774_v38  ;;  %14278 = vmatpush1.bf16.msra.mxu0 %v18807_v41  ;;  %v3325_v38 = vld [vmem:[#allocation12 + $0xa30] sm:$0xff]  ;;  %v18770_v41 = vpack.c.bf16 %v3335_v14, %v3315_v8  ;;  %v3265_v8 = vld [vmem:[#allocation12 + $0xa00] sm:$0xff] }
 0x13e   :  { %v13247_v11 = vpop.f32.mrf.mxu1  ;;  %13745 = vmatmul.mubr.bf16.gmra.mxu1 %v15956_v56  ;;  %v20001_v13 = vpop.f32.mrf.mxu0  ;;  %13938 = vmatmul.mubr.bf16.gmra.mxu0 %v15958_v57  ;;  %v3975_v56 = vld [vmem:[#allocation12 + $0xc38] sm:$0xff]  ;;  %v16005_v49 = vcombine.high %v20009_v20, %v20014_v21  ;;  %v18769_v27 = vpack.c.bf16 %v3325_v38, %v3305_v35  ;;  %v3925_v35 = vld [vmem:[#allocation12 + $0xc10] sm:$0xff] }
 0x13f   :  { %23060 = vst [vmem:[#allocation34_spill] sm:$0xff] %v19999_v52  ;;  %v20004_v18 = vadd.f32 %v13247_v11, %v19897_v22  ;;  %13754 = vmatprep.mubr.bf16.mxu1 %v15981_v63  ;;  %13947 = vmatprep.mubr.bf16.mxu0 %v15983_v3  ;;  %v3295_v63 = vld [vmem:[#allocation12 + $0xa18] sm:$0xff]  ;;  %v3945_v3 = vld [vmem:[#allocation12 + $0xc20] sm:$0xff]  ;;  %v18802_v28 = vpack.c.bf16 %v3975_v56, %v3955_v53  ;;  %v3875_v11 = vld [vmem:[#allocation12 + $0xbe8] sm:$0xff] }
 0x140   :  { %v13249_v24 = vpop.f32.mrf.mxu1  ;;  %v20021_v29 = vpop.f32.mrf.mxu0  ;;  %14087 = vmatpush1.bf16.msra.mxu1 %v18773_v43  ;;  %14279 = vmatprep.subr.bf16.mxu0 %v18806_v46  ;;  %v16007_v43 = vcombine.high %v20019_v23, %v20026_v33  ;;  %v3915_v46 = vld [vmem:[#allocation12 + $0xc08] sm:$0xff]  ;;  %v18768_v7 = vpack.c.bf16 %v3295_v63, %v3275_v47  ;;  %v18801_v14 = vpack.c.bf16 %v3965_v4, %v3945_v3  ;;  %v20062_v47 = vld [vmem:[%s23037_s0 + $0x438] sm:$0xff] }
 0x141   :  { %23061 = vst [vmem:[#allocation35_spill] sm:$0xff] %v20004_v18  ;;  %v20029_v39 = vadd.f32 %v13249_v24, %v19903_v31  ;;  %14088 = vmatprep.subr.bf16.mxu1 %v18772_v50  ;;  %14280 = vmatpush1.bf16.msra.mxu0 %v18805_v10  ;;  %v3935_v50 = vld [vmem:[#allocation12 + $0xc18] sm:$0xff]  ;;  %v3285_v10 = vld [vmem:[#allocation12 + $0xa10] sm:$0xff]  ;;  %v18798_v4 = vpack.c.bf16 %v3895_v17, %v3875_v11  ;;  %v4475_v17 = vld [vmem:[#allocation12 + $0xdc8] sm:$0xff] }
 0x142   :  { %v13251_v57 = vpop.f32.mrf.mxu1  ;;  %v20031_v58 = vpop.f32.mrf.mxu0  ;;  %14281 = vmatprep.subr.bf16.mxu0 %v18804_v15  ;;  %v18800_v24 = vpack.c.bf16 %v3935_v50, %v3915_v46  ;;  %v3885_v63 = vld [vmem:[#allocation12 + $0xbf0] sm:$0xff]  ;;  %v4515_v46 = vld [vmem:[#allocation12 + $0xde8] sm:$0xff]  ;;  %v4535_v50 = vld [vmem:[#allocation12 + $0xdf8] sm:$0xff] }
 0x143   :  { %23062 = vst [vmem:[#allocation36_spill] sm:$0xff] %v20029_v39  ;;  %v20038_v44 = vadd.f32 %v13251_v57, %v19897_v22  ;;  %v20074_v57 = vld [vmem:[%s23037_s0 + $0x440] sm:$0xff] }
 0x144   :  { %v13253_v6 = vpop.f32.mrf.mxu1  ;;  %v20044_v26 = vpop.f32.mrf.mxu0  ;;  %14089 = vmatpush1.bf16.msra.mxu1 %v18771_v34  ;;  %v3905_v34 = vld [vmem:[#allocation12 + $0xc00] sm:$0xff]  ;;  %v3735_v39 = vld [vmem:[#allocation12 + $0xb78] sm:$0xff] }
 0x145   :  { %23063 = vst [vmem:[#allocation37_spill] sm:$0xff] %v20038_v44  ;;  %v20047_v32 = vadd.f32 %v13253_v6, %v19903_v31  ;;  %14090 = vmatprep.subr.bf16.mxu1 %v18770_v41  ;;  %14282 = vmatpush1.bf16.msra.mxu0 %v18803_v51  ;;  %v20057_v41 = vld [vmem:[%s23037_s0 + $0x3d8] sm:$0xff]  ;;  %v20067_v51 = vld [vmem:[%s23037_s0 + $0x3e0] sm:$0xff] }
 0x146   :  { %v13257_v15 = vpop.f32.mrf.mxu1  ;;  %13755 = vmatmul.mubr.bf16.gmra.mxu1 %v15980_v59  ;;  %v20049_v16 = vpop.f32.mrf.mxu0  ;;  %13948 = vmatmul.mubr.bf16.gmra.mxu0 %v15982_v60  ;;  %v18767_v59 = vpack.c.bf16 %v3285_v10, %v3265_v8  ;;  %v3865_v60 = vld [vmem:[#allocation12 + $0xbe0] sm:$0xff]  ;;  %v16006_v8 = vcombine.low %v20019_v23, %v20026_v33  ;;  %v16029_v11 = vcombine.high %v20057_v41, %v20062_v47 }
 0x147   :  { %23064 = vst [vmem:[#allocation38_spill] sm:$0xff] %v20047_v32  ;;  %v20052_v38 = vadd.f32 %v13257_v15, %v19897_v22  ;;  %13764 = vmatprep.mubr.bf16.mxu1 %v16005_v49  ;;  %13957 = vmatprep.mubr.bf16.mxu0 %v16007_v43  ;;  %v3835_v49 = vld [vmem:[#allocation12 + $0xbc8] sm:$0xff]  ;;  %v18799_v43 = vpack.c.bf16 %v3925_v35, %v3905_v34  ;;  %v4505_v10 = vld [vmem:[#allocation12 + $0xde0] sm:$0xff]  ;;  %v4495_v34 = vld [vmem:[#allocation12 + $0xdd8] sm:$0xff] }
 0x148   :  { %v13259_v53 = vpop.f32.mrf.mxu1  ;;  %v20069_v56 = vpop.f32.mrf.mxu0  ;;  %14091 = vmatpush1.bf16.msra.mxu1 %v18769_v27  ;;  %14283 = vmatprep.subr.bf16.mxu0 %v18802_v28  ;;  %v16004_v27 = vcombine.low %v20009_v20, %v20014_v21  ;;  %v3855_v28 = vld [vmem:[#allocation12 + $0xbd8] sm:$0xff]  ;;  %v18797_v21 = vpack.c.bf16 %v3885_v63, %v3865_v60  ;;  %v18830_v23 = vpack.c.bf16 %v4535_v50, %v4515_v46  ;;  %v4485_v60 = vld [vmem:[#allocation12 + $0xdd0] sm:$0xff] }
 0x149   :  { %23065 = vst [vmem:[#allocation39_spill] sm:$0xff] %v20052_v38  ;;  %v20077_v3 = vadd.f32 %v13259_v53, %v19903_v31  ;;  %14092 = vmatprep.subr.bf16.mxu1 %v18768_v7  ;;  %14284 = vmatpush1.bf16.msra.mxu0 %v18801_v14  ;;  %v4525_v53 = vld [vmem:[#allocation12 + $0xdf0] sm:$0xff]  ;;  %v16031_v14 = vcombine.high %v20067_v51, %v20074_v57  ;;  %v20122_v50 = vld [vmem:[%s23037_s0 + $0x500] sm:$0xff] }
 0x14a   :  { %v13261_v6 = vpop.f32.mrf.mxu1  ;;  %v20079_v15 = vpop.f32.mrf.mxu0  ;;  %14285 = vmatprep.subr.bf16.mxu0 %v18800_v24  ;;  %v18796_v24 = vpack.c.bf16 %v3855_v28, %v3835_v49  ;;  %v18829_v5 = vpack.c.bf16 %v4525_v53, %v4505_v10  ;;  %v18828_v38 = vpack.c.bf16 %v4495_v34, %v4475_v17  ;;  %v20110_v49 = vld [vmem:[%s23037_s0 + $0x4f8] sm:$0xff]  ;;  %v4435_v17 = vld [vmem:[#allocation12 + $0xda8] sm:$0xff]  ;;  %v4455_v34 = vld [vmem:[#allocation12 + $0xdb8] sm:$0xff] }
 0x14b   :  { %23066 = vst [vmem:[#allocation40_spill] sm:$0xff] %v20077_v3  ;;  %v20086_v7 = vadd.f32 %v13261_v6, %v19897_v22  ;;  %v3825_v6 = vld [vmem:[#allocation12 + $0xbc0] sm:$0xff]  ;;  %v3815_v3 = vld [vmem:[#allocation12 + $0xbb8] sm:$0xff]  ;;  %v3805_v28 = vld [vmem:[#allocation12 + $0xbb0] sm:$0xff] }
 0x14c   :  { %v13263_v35 = vpop.f32.mrf.mxu1  ;;  %v20092_v20 = vpop.f32.mrf.mxu0  ;;  %14093 = vmatpush1.bf16.msra.mxu1 %v18767_v59  ;;  %v4465_v59 = vld [vmem:[#allocation12 + $0xdc0] sm:$0xff]  ;;  %v18794_v53 = vpack.c.bf16 %v3815_v3, %v3795_v0 }
 0x14d   :  { %23067 = vst [vmem:[#allocation41_spill] sm:$0xff] %v20086_v7  ;;  %v20095_v33 = vadd.f32 %v13263_v35, %v19903_v31  ;;  %14094 = vmatprep.subr.bf16.mxu1 %v18798_v4  ;;  %14286 = vmatpush1.bf16.msra.mxu0 %v18799_v43  ;;  %v20105_v4 = vld [vmem:[%s23037_s0 + $0x498] sm:$0xff]  ;;  %v20115_v43 = vld [vmem:[%s23037_s0 + $0x4a0] sm:$0xff] }
 0x14e   :  { %v13267_v2 = vpop.f32.mrf.mxu1  ;;  %13765 = vmatmul.mubr.bf16.gmra.mxu1 %v16004_v27  ;;  %v20097_v7 = vpop.f32.mrf.mxu0  ;;  %13958 = vmatmul.mubr.bf16.gmra.mxu0 %v16006_v8  ;;  %v18795_v27 = vpack.c.bf16 %v3845_v1, %v3825_v6  ;;  %v3785_v8 = vld [vmem:[#allocation12 + $0xba0] sm:$0xff]  ;;  %v16030_v1 = vcombine.low %v20067_v51, %v20074_v57  ;;  %v16055_v3 = vcombine.high %v20115_v43, %v20122_v50 }
 0x14f   :  { %23068 = vst [vmem:[#allocation42_spill] sm:$0xff] %v20095_v33  ;;  %v20100_v63 = vadd.f32 %v13267_v2, %v19897_v22  ;;  %13774 = vmatprep.mubr.bf16.mxu1 %v16029_v11  ;;  %13967 = vmatprep.mubr.bf16.mxu0 %v16031_v14  ;;  %v3755_v11 = vld [vmem:[#allocation12 + $0xb88] sm:$0xff]  ;;  %v18827_v14 = vpack.c.bf16 %v4485_v60, %v4465_v59  ;;  %v4425_v6 = vld [vmem:[#allocation12 + $0xda0] sm:$0xff]  ;;  %v4415_v59 = vld [vmem:[#allocation12 + $0xd98] sm:$0xff] }
 0x150   :  { %v13269_v46 = vpop.f32.mrf.mxu1  ;;  %v20117_v2 = vpop.f32.mrf.mxu0  ;;  %14095 = vmatpush2.bf16.msra.mxu1 %v18797_v21  ;;  %14287 = vmatprep.subr.bf16.mxu0 %v18830_v23  ;;  %v16028_v21 = vcombine.low %v20057_v41, %v20062_v47  ;;  %v3775_v23 = vld [vmem:[#allocation12 + $0xb98] sm:$0xff]  ;;  %v18793_v47 = vpack.c.bf16 %v3805_v28, %v3785_v8  ;;  %v18826_v51 = vpack.c.bf16 %v4455_v34, %v4435_v17  ;;  %v4405_v8 = vld [vmem:[#allocation12 + $0xd90] sm:$0xff] }
 0x151   :  { %23069 = vst [vmem:[#allocation43_spill] sm:$0xff] %v20100_v63  ;;  %v20125_v10 = vadd.f32 %v13269_v46, %v19903_v31  ;;  %14096 = vmatprep.subr.bf16.mxu1 %v18796_v24  ;;  %14288 = vmatpush2.bf16.msra.mxu0 %v18829_v5  ;;  %v4445_v46 = vld [vmem:[#allocation12 + $0xdb0] sm:$0xff]  ;;  %v16053_v5 = vcombine.high %v20105_v4, %v20110_v49  ;;  %v4395_v24 = vld [vmem:[#allocation12 + $0xd88] sm:$0xff]  ;;  %v20170_v34 = vld [vmem:[%s23037_s0 + $0x5c0] sm:$0xff] }
 0x152   :  { %v13271_v35 = vpop.f32.mrf.mxu1  ;;  %v20127_v63 = vpop.f32.mrf.mxu0  ;;  %14289 = vmatprep.subr.bf16.mxu0 %v18828_v38  ;;  %v18792_v57 = vpack.c.bf16 %v3775_v23, %v3755_v11  ;;  %v18825_v33 = vpack.c.bf16 %v4445_v46, %v4425_v6  ;;  %v18824_v18 = vpack.c.bf16 %v4415_v59, %v4395_v24  ;;  %v20158_v11 = vld [vmem:[%s23037_s0 + $0x5b8] sm:$0xff]  ;;  %v4355_v24 = vld [vmem:[#allocation12 + $0xd68] sm:$0xff]  ;;  %v4375_v59 = vld [vmem:[#allocation12 + $0xd78] sm:$0xff] }
 0x153   :  { %23070 = vst [vmem:[#allocation44_spill] sm:$0xff] %v20125_v10  ;;  %v20134_v0 = vadd.f32 %v13271_v35, %v19897_v22  ;;  %v3745_v35 = vld [vmem:[#allocation12 + $0xb80] sm:$0xff]  ;;  %v3715_v10 = vld [vmem:[#allocation12 + $0xb68] sm:$0xff]  ;;  %v3725_v23 = vld [vmem:[#allocation12 + $0xb70] sm:$0xff] }
 0x154   :  { %v13273_v60 = vpop.f32.mrf.mxu1  ;;  %v20140_v41 = vpop.f32.mrf.mxu0  ;;  %14097 = vmatpush2.bf16.msra.mxu1 %v18795_v27  ;;  %v4385_v27 = vld [vmem:[#allocation12 + $0xd80] sm:$0xff]  ;;  %v18790_v46 = vpack.c.bf16 %v3735_v39, %v3715_v10 }
 0x155   :  { %23071 = vst [vmem:[#allocation45_spill] sm:$0xff] %v20134_v0  ;;  %v20143_v38 = vadd.f32 %v13273_v60, %v19903_v31  ;;  %14098 = vmatprep.subr.bf16.mxu1 %v18794_v53  ;;  %v3765_v0 = vld [vmem:[#allocation12 + $0xb90] sm:$0xff]  ;;  %14290 = vmatpush2.bf16.msra.mxu0 %v18827_v14  ;;  %v20163_v14 = vld [vmem:[%s23037_s0 + $0x560] sm:$0xff] }
 0x156   :  { %v13277_v32 = vpop.f32.mrf.mxu1  ;;  %13775 = vmatmul.mubr.bf16.gmra.mxu1 %v16028_v21  ;;  %v20145_v44 = vpop.f32.mrf.mxu0  ;;  %13968 = vmatmul.mubr.bf16.gmra.mxu0 %v16030_v1  ;;  %v20153_v53 = vld [vmem:[%s23037_s0 + $0x558] sm:$0xff]  ;;  %v18791_v21 = vpack.c.bf16 %v3765_v0, %v3745_v35  ;;  %v3705_v1 = vld [vmem:[#allocation12 + $0xb60] sm:$0xff]  ;;  %v16054_v0 = vcombine.low %v20115_v43, %v20122_v50  ;;  %v16079_v10 = vcombine.high %v20163_v14, %v20170_v34 }
 0x157   :  { %23072 = vst [vmem:[#allocation46_spill] sm:$0xff] %v20143_v38  ;;  %v20148_v28 = vadd.f32 %v13277_v32, %v19897_v22  ;;  %13784 = vmatprep.mubr.bf16.mxu1 %v16053_v5  ;;  %13977 = vmatprep.mubr.bf16.mxu0 %v16055_v3  ;;  %v3675_v5 = vld [vmem:[#allocation12 + $0xb48] sm:$0xff]  ;;  %v18823_v3 = vpack.c.bf16 %v4405_v8, %v4385_v27  ;;  %v4345_v35 = vld [vmem:[#allocation12 + $0xd60] sm:$0xff]  ;;  %v4335_v27 = vld [vmem:[#allocation12 + $0xd58] sm:$0xff] }
 0x158   :  { %v13279_v17 = vpop.f32.mrf.mxu1  ;;  %v20165_v32 = vpop.f32.mrf.mxu0  ;;  %14099 = vmatpush2.bf16.msra.mxu1 %v18793_v47  ;;  %14291 = vmatprep.subr.bf16.mxu0 %v18826_v51  ;;  %v16052_v47 = vcombine.low %v20105_v4, %v20110_v49  ;;  %v3695_v51 = vld [vmem:[#allocation12 + $0xb58] sm:$0xff]  ;;  %v18789_v49 = vpack.c.bf16 %v3725_v23, %v3705_v1  ;;  %v18822_v43 = vpack.c.bf16 %v4375_v59, %v4355_v24  ;;  %v4325_v1 = vld [vmem:[#allocation12 + $0xd50] sm:$0xff] }
 0x159   :  { %23073 = vst [vmem:[#allocation47_spill] sm:$0xff] %v20148_v28  ;;  %v20173_v6 = vadd.f32 %v13279_v17, %v19903_v31  ;;  %14100 = vmatprep.subr.bf16.mxu1 %v18792_v57  ;;  %14292 = vmatpush2.bf16.msra.mxu0 %v18825_v33  ;;  %v4365_v17 = vld [vmem:[#allocation12 + $0xd70] sm:$0xff]  ;;  %v16077_v33 = vcombine.high %v20153_v53, %v20158_v11  ;;  %v4315_v57 = vld [vmem:[#allocation12 + $0xd48] sm:$0xff]  ;;  %v20218_v59 = vld [vmem:[%s23037_s0 + $0x680] sm:$0xff] }
 0x15a   :  { %v13281_v60 = vpop.f32.mrf.mxu1  ;;  %v20175_v28 = vpop.f32.mrf.mxu0  ;;  %14293 = vmatprep.subr.bf16.mxu0 %v18824_v18  ;;  %v18788_v50 = vpack.c.bf16 %v3695_v51, %v3675_v5  ;;  %v18821_v38 = vpack.c.bf16 %v4365_v17, %v4345_v35  ;;  %v18820_v25 = vpack.c.bf16 %v4335_v27, %v4315_v57  ;;  %v20206_v5 = vld [vmem:[%s23037_s0 + $0x678] sm:$0xff]  ;;  %v4295_v57 = vld [vmem:[#allocation12 + $0xd38] sm:$0xff]  ;;  %v4265_v27 = vld [vmem:[#allocation12 + $0xd20] sm:$0xff] }
 0x15b   :  { %23074 = vst [vmem:[#allocation48_spill] sm:$0xff] %v20173_v6  ;;  %v20182_v39 = vadd.f32 %v13281_v60, %v19897_v22  ;;  %v3665_v60 = vld [vmem:[#allocation12 + $0xb40] sm:$0xff]  ;;  %v3635_v6 = vld [vmem:[#allocation12 + $0xb28] sm:$0xff]  ;;  %v3645_v51 = vld [vmem:[#allocation12 + $0xb30] sm:$0xff] }
 0x15c   :  { %v13283_v8 = vpop.f32.mrf.mxu1  ;;  %v20188_v4 = vpop.f32.mrf.mxu0  ;;  %14101 = vmatpush2.bf16.msra.mxu1 %v18791_v21  ;;  %v4305_v21 = vld [vmem:[#allocation12 + $0xd40] sm:$0xff]  ;;  %v18786_v17 = vpack.c.bf16 %v3655_v37, %v3635_v6 }
 0x15d   :  { %23075 = vst [vmem:[#allocation49_spill] sm:$0xff] %v20182_v39  ;;  %v20191_v18 = vadd.f32 %v13283_v8, %v19903_v31  ;;  %14102 = vmatprep.subr.bf16.mxu1 %v18790_v46  ;;  %v3685_v39 = vld [vmem:[#allocation12 + $0xb50] sm:$0xff]  ;;  %14294 = vmatpush2.bf16.msra.mxu0 %v18823_v3  ;;  %v20211_v3 = vld [vmem:[%s23037_s0 + $0x620] sm:$0xff] }
 0x15e   :  { %v13287_v52 = vpop.f32.mrf.mxu1  ;;  %13785 = vmatmul.mubr.bf16.gmra.mxu1 %v16052_v47  ;;  %v20193_v62 = vpop.f32.mrf.mxu0  ;;  %13978 = vmatmul.mubr.bf16.gmra.mxu0 %v16054_v0  ;;  %v20201_v46 = vld [vmem:[%s23037_s0 + $0x618] sm:$0xff]  ;;  %v18787_v47 = vpack.c.bf16 %v3685_v39, %v3665_v60  ;;  %v3625_v0 = vld [vmem:[#allocation12 + $0xb20] sm:$0xff]  ;;  %v16078_v39 = vcombine.low %v20163_v14, %v20170_v34  ;;  %v3615_v60 = vld [vmem:[#allocation12 + $0xb18] sm:$0xff]  ;;  %v16103_v6 = vcombine.high %v20211_v3, %v20218_v59 }
 0x15f   :  { %23076 = vst [vmem:[#allocation50_spill] sm:$0xff] %v20191_v18  ;;  %v20196_v23 = vadd.f32 %v13287_v52, %v19897_v22  ;;  %13794 = vmatprep.mubr.bf16.mxu1 %v16077_v33  ;;  %13987 = vmatprep.mubr.bf16.mxu0 %v16079_v10  ;;  %v18819_v33 = vpack.c.bf16 %v4325_v1, %v4305_v21  ;;  %v4275_v10 = vld [vmem:[#allocation12 + $0xd28] sm:$0xff]  ;;  %v4255_v21 = vld [vmem:[#allocation12 + $0xd18] sm:$0xff]  ;;  %v4225_v18 = vld [vmem:[#allocation12 + $0xd00] sm:$0xff] }
 0x160   :  { %v13289_v24 = vpop.f32.mrf.mxu1  ;;  %v20213_v52 = vpop.f32.mrf.mxu0  ;;  %14103 = vmatpush2.bf16.msra.mxu1 %v18789_v49  ;;  %14295 = vmatprep.subr.bf16.mxu0 %v18822_v43  ;;  %v16076_v49 = vcombine.low %v20153_v53, %v20158_v11  ;;  %v3595_v43 = vld [vmem:[#allocation12 + $0xb08] sm:$0xff]  ;;  %v18785_v11 = vpack.c.bf16 %v3645_v51, %v3625_v0  ;;  %v4855_v0 = vld [vmem:[#allocation12 + $0xef8] sm:$0xff] }
 0x161   :  { %23077 = vst [vmem:[#allocation51_spill] sm:$0xff] %v20196_v23  ;;  %v20221_v35 = vadd.f32 %v13289_v24, %v19903_v31  ;;  %14104 = vmatprep.subr.bf16.mxu1 %v18788_v50  ;;  %14296 = vmatpush2.bf16.msra.mxu0 %v18821_v38  ;;  %v4285_v24 = vld [vmem:[#allocation12 + $0xd30] sm:$0xff]  ;;  %v16101_v38 = vcombine.high %v20201_v46, %v20206_v5  ;;  %v4235_v50 = vld [vmem:[#allocation12 + $0xd08] sm:$0xff] }
 0x162   :  { %v13291_v8 = vpop.f32.mrf.mxu1  ;;  %v20223_v23 = vpop.f32.mrf.mxu0  ;;  %14297 = vmatprep.subr.bf16.mxu0 %v18820_v25  ;;  %v18818_v25 = vpack.c.bf16 %v4295_v57, %v4275_v10  ;;  %v18784_v34 = vpack.c.bf16 %v3615_v60, %v3595_v43  ;;  %v18816_v55 = vpack.c.bf16 %v4255_v21, %v4235_v50  ;;  %v20256_v57 = vld [vmem:[%s23037_s0 + $0x738] sm:$0xff]  ;;  %v18815_v43 = vpack.c.bf16 %v4245_v40, %v4225_v18 }
 0x163   :  { %23078 = vst [vmem:[#allocation52_spill] sm:$0xff] %v20221_v35  ;;  %v20230_v37 = vadd.f32 %v13291_v8, %v19897_v22  ;;  %v3585_v8 = vld [vmem:[#allocation12 + $0xb00] sm:$0xff]  ;;  %v18817_v35 = vpack.c.bf16 %v4285_v24, %v4265_v27  ;;  %v20266_v27 = vld [vmem:[%s23037_s0 + $0x740] sm:$0xff]  ;;  %v16102_v50 = vcombine.low %v20211_v3, %v20218_v59 }
 0x164   :  { %v13293_v1 = vpop.f32.mrf.mxu1  ;;  %v20236_v53 = vpop.f32.mrf.mxu0  ;;  %14105 = vmatpush2.bf16.msra.mxu1 %v18787_v47  ;;  %v4835_v47 = vld [vmem:[#allocation12 + $0xee8] sm:$0xff] }
 0x165   :  { %23079 = vst [vmem:[#allocation53_spill] sm:$0xff] %v20230_v37  ;;  %v20239_v14 = vadd.f32 %v13293_v1, %v19903_v31  ;;  %14106 = vmatprep.subr.bf16.mxu1 %v18786_v17  ;;  %14298 = vmatpush2.bf16.msra.mxu0 %v18819_v33  ;;  %v3605_v37 = vld [vmem:[#allocation12 + $0xb10] sm:$0xff]  ;;  %v18846_v60 = vpack.c.bf16 %v4855_v0, %v4835_v47 }
 0x166   :  { %v13297_v12 = vpop.f32.mrf.mxu1  ;;  %13795 = vmatmul.mubr.bf16.gmra.mxu1 %v16076_v49  ;;  %v20241_v45 = vpop.f32.mrf.mxu0  ;;  %13988 = vmatmul.mubr.bf16.gmra.mxu0 %v16078_v39  ;;  %v20249_v17 = vld [vmem:[%s23037_s0 + $0x6d8] sm:$0xff]  ;;  %v18783_v49 = vpack.c.bf16 %v3605_v37, %v3585_v8  ;;  %v13148_v37 = vadd.f32 %v19905_v36, %v19897_v22  ;;  %v5475_v36 = vld [vmem:[#allocation12 + $0x10e8] sm:$0xff] }
 0x167   :  { %v20244_v51 = vadd.f32 %v13297_v12, %v19897_v22  ;;  %13804 = vmatprep.mubr.bf16.mxu1 %v16101_v38  ;;  %13997 = vmatprep.mubr.bf16.mxu0 %v16103_v6  ;;  %v20261_v12 = vld [vmem:[%s23037_s0 + $0x6e0] sm:$0xff]  ;;  %v16100_v6 = vcombine.low %v20201_v46, %v20206_v5  ;;  %v16125_v40 = vcombine.high %v20249_v17, %v20256_v57  ;;  %v8748_v8 = vld [vmem:[%s23037_s0 + $0x7f8] sm:$0xff] }
 0x168   :  { %v13299_v33 = vpop.f32.mrf.mxu1  ;;  %v20251_v10 = vpop.f32.mrf.mxu0  ;;  %14107 = vmatpush2.bf16.msra.mxu1 %v18785_v11  ;;  %14299 = vmatprep.subr.bf16.mxu0 %v18818_v25  ;;  %v16127_v18 = vcombine.high %v20261_v12, %v20266_v27  ;;  %v13150_v46 = vadd.f32 %v19925_v48, %v19903_v31  ;;  %v5495_v5 = vld [vmem:[#allocation12 + $0x10f8] sm:$0xff]  ;;  %v13152_v25 = vadd.f32 %v19935_v61, %v19897_v22  ;;  %v8736_v48 = vld [vmem:[%s23037_s0 + $0x798] sm:$0xff] }
 0x169   :  { %v20269_v39 = vadd.f32 %v13299_v33, %v19903_v31  ;;  %14108 = vmatprep.subr.bf16.mxu1 %v18784_v34  ;;  %14300 = vmatpush2.bf16.msra.mxu0 %v18817_v35  ;;  %v18878_v11 = vpack.c.bf16 %v5495_v5, %v5475_v36  ;;  %v8737_v33 = vld [vmem:[%s23037_s0 + $0x7a0] sm:$0xff] }
 0x16a   :  { %v13301_v24 = vpop.f32.mrf.mxu1  ;;  %v20271_v38 = vpop.f32.mrf.mxu0  ;;  %14301 = vmatprep.subr.bf16.mxu0 %v18816_v55  ;;  %v8749_v61 = vld [vmem:[%s23037_s0 + $0x800] sm:$0xff] }
 0x16b   :  { %v20280_v21 = vadd.f32 %v13301_v24, %v19897_v22  ;;  %v16151_v5 = vcombine.high %v8737_v33, %v8749_v61 }
 0x16c   :  { %v13303_v35 = vpop.f32.mrf.mxu1  ;;  %v20286_v1 = vpop.f32.mrf.mxu0  ;;  %14109 = vmatpush2.bf16.msra.mxu1 %v18783_v49  ;;  %v13154_v49 = vadd.f32 %v19948_v9, %v19903_v31 }
 0x16d   :  { %v20291_v55 = vadd.f32 %v13303_v35, %v19903_v31  ;;  %14302 = vmatpush2.bf16.msra.mxu0 %v18815_v43  ;;  %14464 = vmatprep.subr.bf16.mxu1 %v18846_v60 }
 0x16e   :  { %v13340_v3 = vpop.f32.mrf.mxu1  ;;  %13805 = vmatmul.mubr.bf16.gmra.mxu1 %v16100_v6  ;;  %v13533_v59 = vpop.f32.mrf.mxu0  ;;  %13998 = vmatmul.mubr.bf16.gmra.mxu0 %v16102_v50  ;;  %v16124_v50 = vcombine.low %v20249_v17, %v20256_v57 }
 0x16f   :  { %v13341_v34 = vadd.f32 %v13340_v3, %v13148_v37  ;;  %13814 = vmatprep.mubr.bf16.mxu1 %v16125_v40  ;;  %14007 = vmatprep.mubr.bf16.mxu0 %v16127_v18  ;;  %v16126_v37 = vcombine.low %v20261_v12, %v20266_v27  ;;  %v16149_v40 = vcombine.high %v8736_v48, %v8748_v8 }
 0x170   :  { %v13342_v47 = vpop.f32.mrf.mxu1  ;;  %v13535_v0 = vpop.f32.mrf.mxu0  ;;  %14657 = vmatprep.subr.bf16.mxu0 %v18878_v11  ;;  %v13158_v18 = vadd.f32 %v19953_v19, %v19897_v22  ;;  %v13160_v3 = vadd.f32 %v19973_v30, %v19903_v31  ;;  %v13162_v12 = vadd.f32 %v19983_v54, %v19897_v22  ;;  %v8772_v30 = vld [vmem:[%s23037_s0 + $0x8b8] sm:$0xff]  ;;  %v8773_v54 = vld [vmem:[%s23037_s0 + $0x8c0] sm:$0xff] }
 0x171   :  { %v13343_v43 = vadd.f32 %v13342_v47, %v13150_v46  ;;  %v20309_v60 = vadd.f32 %v13533_v59, %v13341_v34 }
 0x172   :  { %v13344_v24 = vpop.f32.mrf.mxu1  ;;  %v13537_v6 = vpop.f32.mrf.mxu0 }
 0x173   :  { %v13345_v35 = vadd.f32 %v13344_v24, %v13152_v25  ;;  %v20317_v36 = vadd.f32 %v13535_v0, %v13343_v43  ;;  %v8760_v25 = vld [vmem:[%s23037_s0 + $0x858] sm:$0xff]  ;;  %v8761_v0 = vld [vmem:[%s23037_s0 + $0x860] sm:$0xff] }
 0x174   :  { %v13346_v9 = vpop.f32.mrf.mxu1  ;;  %v13539_v46 = vpop.f32.mrf.mxu0 }
 0x175   :  { %v13347_v59 = vadd.f32 %v13346_v9, %v13154_v49  ;;  %v20321_v11 = vadd.f32 %v13537_v6, %v13345_v35  ;;  %v13164_v49 = vadd.f32 %v19996_v42, %v19903_v31  ;;  %v13168_v35 = vadd.f32 %v20001_v13, %v19897_v22 }
 0x176   :  { %v13350_v17 = vpop.f32.mrf.mxu1  ;;  %13815 = vmatmul.mubr.bf16.gmra.mxu1 %v16124_v50  ;;  %v13543_v57 = vpop.f32.mrf.mxu0  ;;  %14008 = vmatmul.mubr.bf16.gmra.mxu0 %v16126_v37  ;;  %v16148_v37 = vcombine.low %v8736_v48, %v8748_v8  ;;  %v13170_v42 = vadd.f32 %v20021_v29, %v19903_v31  ;;  %v13172_v8 = vadd.f32 %v20031_v58, %v19897_v22  ;;  %v8796_v29 = vld [vmem:[%s23037_s0 + $0x978] sm:$0xff]  ;;  %v8797_v58 = vld [vmem:[%s23037_s0 + $0x980] sm:$0xff] }
 0x177   :  { %v13351_v19 = vadd.f32 %v13350_v17, %v13158_v18  ;;  %v20325_v27 = vadd.f32 %v13539_v46, %v13347_v59  ;;  %13824 = vmatprep.mubr.bf16.mxu1 %v16149_v40  ;;  %14017 = vmatprep.mubr.bf16.mxu0 %v16151_v5  ;;  %v16150_v40 = vcombine.low %v8737_v33, %v8749_v61  ;;  %v8784_v61 = vld [vmem:[%s23037_s0 + $0x918] sm:$0xff] }
 0x178   :  { %v13352_v34 = vpop.f32.mrf.mxu1  ;;  %v13545_v47 = vpop.f32.mrf.mxu0  ;;  %v16173_v18 = vcombine.high %v8760_v25, %v8772_v30  ;;  %v16175_v46 = vcombine.high %v8761_v0, %v8773_v54 }
 0x179   :  { %v13353_v43 = vadd.f32 %v13352_v34, %v13160_v3  ;;  %v20341_v24 = vadd.f32 %v13543_v57, %v13351_v19 }
 0x17a   :  { %v13354_v6 = vpop.f32.mrf.mxu1  ;;  %v13547_v50 = vpop.f32.mrf.mxu0 }
 0x17b   :  { %v13355_v5 = vadd.f32 %v13354_v6, %v13162_v12  ;;  %v20345_v9 = vadd.f32 %v13545_v47, %v13353_v43  ;;  %v8785_v47 = vld [vmem:[%s23037_s0 + $0x920] sm:$0xff] }
 0x17c   :  { %v13356_v59 = vpop.f32.mrf.mxu1  ;;  %v13549_v17 = vpop.f32.mrf.mxu0 }
 0x17d   :  { %v13357_v3 = vadd.f32 %v13356_v59, %v13164_v49  ;;  %v20349_v57 = vadd.f32 %v13547_v50, %v13355_v5  ;;  %v13174_v49 = vadd.f32 %v20044_v26, %v19903_v31  ;;  %v13178_v5 = vadd.f32 %v20049_v16, %v19897_v22 }
 0x17e   :  { %v13360_v19 = vpop.f32.mrf.mxu1  ;;  %13825 = vmatmul.mubr.bf16.gmra.mxu1 %v16148_v37  ;;  %v13553_v48 = vpop.f32.mrf.mxu0  ;;  %14018 = vmatmul.mubr.bf16.gmra.mxu0 %v16150_v40  ;;  %v16172_v40 = vcombine.low %v8760_v25, %v8772_v30  ;;  %v13180_v26 = vadd.f32 %v20069_v56, %v19903_v31  ;;  %v13182_v30 = vadd.f32 %v20079_v15, %v19897_v22  ;;  %v8820_v56 = vld [vmem:[%s23037_s0 + $0xa38] sm:$0xff]  ;;  %v8821_v15 = vld [vmem:[%s23037_s0 + $0xa40] sm:$0xff] }
 0x17f   :  { %v13361_v13 = vadd.f32 %v13360_v19, %v13168_v35  ;;  %v20353_v33 = vadd.f32 %v13549_v17, %v13357_v3  ;;  %13834 = vmatprep.mubr.bf16.mxu1 %v16173_v18  ;;  %14027 = vmatprep.mubr.bf16.mxu0 %v16175_v46  ;;  %v16174_v18 = vcombine.low %v8761_v0, %v8773_v54  ;;  %v8808_v54 = vld [vmem:[%s23037_s0 + $0x9d8] sm:$0xff] }
 0x180   :  { %v13362_v12 = vpop.f32.mrf.mxu1  ;;  %v13555_v34 = vpop.f32.mrf.mxu0  ;;  %v16197_v35 = vcombine.high %v8784_v61, %v8796_v29  ;;  %v16199_v17 = vcombine.high %v8785_v47, %v8797_v58 }
 0x181   :  { %v13363_v43 = vadd.f32 %v13362_v12, %v13170_v42  ;;  %v20369_v6 = vadd.f32 %v13553_v48, %v13361_v13 }
 0x182   :  { %v13364_v50 = vpop.f32.mrf.mxu1  ;;  %v13557_v37 = vpop.f32.mrf.mxu0 }
 0x183   :  { %v13365_v46 = vadd.f32 %v13364_v50, %v13172_v8  ;;  %v20373_v59 = vadd.f32 %v13555_v34, %v13363_v43  ;;  %v8809_v34 = vld [vmem:[%s23037_s0 + $0x9e0] sm:$0xff] }
 0x184   :  { %v13366_v3 = vpop.f32.mrf.mxu1  ;;  %v13559_v19 = vpop.f32.mrf.mxu0 }
 0x185   :  { %v13367_v42 = vadd.f32 %v13366_v3, %v13174_v49  ;;  %v20377_v48 = vadd.f32 %v13557_v37, %v13365_v46  ;;  %v13184_v49 = vadd.f32 %v20092_v20, %v19903_v31  ;;  %v13188_v46 = vadd.f32 %v20097_v7, %v19897_v22 }
 0x186   :  { %v13370_v13 = vpop.f32.mrf.mxu1  ;;  %13835 = vmatmul.mubr.bf16.gmra.mxu1 %v16172_v40  ;;  %v13563_v25 = vpop.f32.mrf.mxu0  ;;  %14028 = vmatmul.mubr.bf16.gmra.mxu0 %v16174_v18  ;;  %v16196_v18 = vcombine.low %v8784_v61, %v8796_v29  ;;  %v13190_v20 = vadd.f32 %v20117_v2, %v19903_v31  ;;  %v13192_v29 = vadd.f32 %v20127_v63, %v19897_v22  ;;  %v8844_v2 = vld [vmem:[%s23037_s0 + $0xaf8] sm:$0xff]  ;;  %v8845_v63 = vld [vmem:[%s23037_s0 + $0xb00] sm:$0xff] }
 0x187   :  { %v13371_v16 = vadd.f32 %v13370_v13, %v13178_v5  ;;  %v20381_v0 = vadd.f32 %v13559_v19, %v13367_v42  ;;  %13844 = vmatprep.mubr.bf16.mxu1 %v16197_v35  ;;  %14037 = vmatprep.mubr.bf16.mxu0 %v16199_v17  ;;  %v16198_v35 = vcombine.low %v8785_v47, %v8797_v58  ;;  %v8832_v58 = vld [vmem:[%s23037_s0 + $0xa98] sm:$0xff] }
 0x188   :  { %v13372_v8 = vpop.f32.mrf.mxu1  ;;  %v13565_v12 = vpop.f32.mrf.mxu0  ;;  %v16221_v5 = vcombine.high %v8808_v54, %v8820_v56  ;;  %v16223_v19 = vcombine.high %v8809_v34, %v8821_v15 }
 0x189   :  { %v13373_v43 = vadd.f32 %v13372_v8, %v13180_v26  ;;  %v20397_v50 = vadd.f32 %v13563_v25, %v13371_v16 }
 0x18a   :  { %v13374_v37 = vpop.f32.mrf.mxu1  ;;  %v13567_v40 = vpop.f32.mrf.mxu0 }
 0x18b   :  { %v13375_v17 = vadd.f32 %v13374_v37, %v13182_v30  ;;  %v20401_v3 = vadd.f32 %v13565_v12, %v13373_v43  ;;  %v8833_v12 = vld [vmem:[%s23037_s0 + $0xaa0] sm:$0xff] }
 0x18c   :  { %v13376_v42 = vpop.f32.mrf.mxu1  ;;  %v13569_v13 = vpop.f32.mrf.mxu0 }
 0x18d   :  { %v13377_v26 = vadd.f32 %v13376_v42, %v13184_v49  ;;  %v20405_v25 = vadd.f32 %v13567_v40, %v13375_v17  ;;  %v13194_v49 = vadd.f32 %v20140_v41, %v19903_v31  ;;  %v13198_v17 = vadd.f32 %v20145_v44, %v19897_v22 }
 0x18e   :  { %v13380_v16 = vpop.f32.mrf.mxu1  ;;  %13845 = vmatmul.mubr.bf16.gmra.mxu1 %v16196_v18  ;;  %v13573_v61 = vpop.f32.mrf.mxu0  ;;  %14038 = vmatmul.mubr.bf16.gmra.mxu0 %v16198_v35  ;;  %v16220_v35 = vcombine.low %v8808_v54, %v8820_v56  ;;  %v13200_v41 = vadd.f32 %v20165_v32, %v19903_v31  ;;  %v13202_v56 = vadd.f32 %v20175_v28, %v19897_v22  ;;  %v8868_v32 = vld [vmem:[%s23037_s0 + $0xbb8] sm:$0xff]  ;;  %v8869_v28 = vld [vmem:[%s23037_s0 + $0xbc0] sm:$0xff] }
 0x18f   :  { %v13381_v7 = vadd.f32 %v13380_v16, %v13188_v46  ;;  %v20409_v47 = vadd.f32 %v13569_v13, %v13377_v26  ;;  %13854 = vmatprep.mubr.bf16.mxu1 %v16221_v5  ;;  %14047 = vmatprep.mubr.bf16.mxu0 %v16223_v19  ;;  %v16222_v5 = vcombine.low %v8809_v34, %v8821_v15  ;;  %v8856_v15 = vld [vmem:[%s23037_s0 + $0xb58] sm:$0xff] }
 0x190   :  { %v13382_v30 = vpop.f32.mrf.mxu1  ;;  %v13575_v8 = vpop.f32.mrf.mxu0  ;;  %v16245_v46 = vcombine.high %v8832_v58, %v8844_v2  ;;  %v16247_v13 = vcombine.high %v8833_v12, %v8845_v63 }
 0x191   :  { %v13383_v43 = vadd.f32 %v13382_v30, %v13190_v20  ;;  %v20425_v37 = vadd.f32 %v13573_v61, %v13381_v7 }
 0x192   :  { %v13384_v40 = vpop.f32.mrf.mxu1  ;;  %v13577_v18 = vpop.f32.mrf.mxu0 }
 0x193   :  { %v13385_v19 = vadd.f32 %v13384_v40, %v13192_v29  ;;  %v20429_v42 = vadd.f32 %v13575_v8, %v13383_v43  ;;  %v8857_v8 = vld [vmem:[%s23037_s0 + $0xb60] sm:$0xff] }
 0x194   :  { %v13386_v26 = vpop.f32.mrf.mxu1  ;;  %v13579_v16 = vpop.f32.mrf.mxu0 }
 0x195   :  { %v13387_v20 = vadd.f32 %v13386_v26, %v13194_v49  ;;  %v20433_v61 = vadd.f32 %v13577_v18, %v13385_v19  ;;  %v13204_v49 = vadd.f32 %v20188_v4, %v19903_v31  ;;  %v13208_v19 = vadd.f32 %v20193_v62, %v19897_v22 }
 0x196   :  { %v13390_v7 = vpop.f32.mrf.mxu1  ;;  %13855 = vmatmul.mubr.bf16.gmra.mxu1 %v16220_v35  ;;  %v13583_v54 = vpop.f32.mrf.mxu0  ;;  %14048 = vmatmul.mubr.bf16.gmra.mxu0 %v16222_v5  ;;  %v16244_v5 = vcombine.low %v8832_v58, %v8844_v2  ;;  %v13210_v4 = vadd.f32 %v20213_v52, %v19903_v31  ;;  %v13212_v2 = vadd.f32 %v20223_v23, %v19897_v22  ;;  %v20475_v52 = vld [vmem:[%s23037_s0 + $0x88] sm:$0xff]  ;;  %v20480_v23 = vld [vmem:[%s23037_s0 + $0x30] sm:$0xff] }
 0x197   :  { %v13391_v44 = vadd.f32 %v13390_v7, %v13198_v17  ;;  %v20437_v34 = vadd.f32 %v13579_v16, %v13387_v20  ;;  %13864 = vmatprep.mubr.bf16.mxu1 %v16245_v46  ;;  %14057 = vmatprep.mubr.bf16.mxu0 %v16247_v13  ;;  %v16246_v46 = vcombine.low %v8833_v12, %v8845_v63  ;;  %v20470_v63 = vld [vmem:[%s23037_s0 + $0x28] sm:$0xff] }
 0x198   :  { %v13392_v29 = vpop.f32.mrf.mxu1  ;;  %v13585_v30 = vpop.f32.mrf.mxu0  ;;  %v16269_v17 = vcombine.high %v8856_v15, %v8868_v32  ;;  %v16271_v16 = vcombine.high %v8857_v8, %v8869_v28 }
 0x199   :  { %v13393_v43 = vadd.f32 %v13392_v29, %v13200_v41  ;;  %v20453_v40 = vadd.f32 %v13583_v54, %v13391_v44 }
 0x19a   :  { %v13394_v18 = vpop.f32.mrf.mxu1  ;;  %v13587_v35 = vpop.f32.mrf.mxu0 }
 0x19b   :  { %v13395_v13 = vadd.f32 %v13394_v18, %v13202_v56  ;;  %v20457_v26 = vadd.f32 %v13585_v30, %v13393_v43  ;;  %v20485_v30 = vld [vmem:[%s23037_s0 + $0x90] sm:$0xff] }
 0x19c   :  { %v13396_v20 = vpop.f32.mrf.mxu1  ;;  %v13589_v7 = vpop.f32.mrf.mxu0 }
 0x19d   :  { %23080 = vst [vmem:[#allocation54_spill] sm:$0xff] %v20457_v26  ;;  %v13397_v41 = vadd.f32 %v13396_v20, %v13204_v49  ;;  %v20461_v54 = vadd.f32 %v13587_v35, %v13395_v13  ;;  %v13214_v49 = vadd.f32 %v20236_v53, %v19903_v31  ;;  %v13218_v13 = vadd.f32 %v20241_v45, %v19897_v22 }
 0x19e   :  { %v13400_v44 = vpop.f32.mrf.mxu1  ;;  %13865 = vmatmul.mubr.bf16.gmra.mxu1 %v16244_v5  ;;  %v13593_v58 = vpop.f32.mrf.mxu0  ;;  %14058 = vmatmul.mubr.bf16.gmra.mxu0 %v16246_v46  ;;  %v16268_v46 = vcombine.low %v8856_v15, %v8868_v32  ;;  %v13222_v45 = vadd.f32 %v20271_v38, %v19897_v22  ;;  %v20520_v22 = vld [vmem:[%s23037_s0 + $0xf0] sm:$0xff]  ;;  %v13224_v38 = vadd.f32 %v20286_v1, %v19903_v31 }
 0x19f   :  { %23081 = vst [vmem:[#allocation55_spill] sm:$0xff] %v20461_v54  ;;  %v13401_v62 = vadd.f32 %v13400_v44, %v13208_v19  ;;  %v20465_v12 = vadd.f32 %v13589_v7, %v13397_v41  ;;  %13874 = vmatprep.mubr.bf16.mxu1 %v16269_v17  ;;  %14067 = vmatprep.mubr.bf16.mxu0 %v16271_v16 }
 0x1a0   :  { %v13402_v56 = vpop.f32.mrf.mxu1  ;;  %v13595_v29 = vpop.f32.mrf.mxu0  ;;  %v16270_v17 = vcombine.low %v8857_v8, %v8869_v28  ;;  %v15913_v19 = vcombine.high %v20470_v63, %v20475_v52  ;;  %v15915_v7 = vcombine.high %v20480_v23, %v20485_v30  ;;  %v13220_v41 = vadd.f32 %v20251_v10, %v19903_v31  ;;  %v20510_v10 = vld [vmem:[%s23037_s0 + $0xe8] sm:$0xff]  ;;  %v5485_v31 = vld [vmem:[#allocation12 + $0x10f0] sm:$0xff] }
 0x1a1   :  { %23082 = vst [vmem:[#allocation56_spill] sm:$0xff] %v20465_v12  ;;  %v13403_v43 = vadd.f32 %v13402_v56, %v13210_v4  ;;  %v20489_v18 = vadd.f32 %v13593_v58, %v13401_v62  ;;  %v4845_v62 = vld [vmem:[#allocation12 + $0xef0] sm:$0xff] }
 0x1a2   :  { %v13404_v35 = vpop.f32.mrf.mxu1  ;;  %v13597_v5 = vpop.f32.mrf.mxu0 }
 0x1a3   :  { %23083 = vst [vmem:[#allocation57_spill] sm:$0xff] %v20489_v18  ;;  %v13405_v16 = vadd.f32 %v13404_v35, %v13212_v2  ;;  %v20495_v20 = vadd.f32 %v13595_v29, %v13403_v43  ;;  %v4825_v2 = vld [vmem:[#allocation12 + $0xee0] sm:$0xff] }
 0x1a4   :  { %v13406_v53 = vpop.f32.mrf.mxu1  ;;  %v13599_v4 = vpop.f32.mrf.mxu0 }
 0x1a5   :  { %23084 = vst [vmem:[#allocation58_spill] sm:$0xff] %v20495_v20  ;;  %v13407_v44 = vadd.f32 %v13406_v53, %v13214_v49  ;;  %v20501_v15 = vadd.f32 %v13597_v5, %v13405_v16  ;;  %v20515_v49 = vld [vmem:[%s23037_s0 + $0x148] sm:$0xff]  ;;  %v4795_v5 = vld [vmem:[#allocation12 + $0xec8] sm:$0xff]  ;;  %v15912_v16 = vcombine.low %v20470_v63, %v20475_v52 }
 0x1a6   :  { %v13410_v32 = vpop.f32.mrf.mxu1  ;;  %13875 = vmatmul.mubr.bf16.gmra.mxu1 %v16268_v46  ;;  %v13603_v8 = vpop.f32.mrf.mxu0  ;;  %14068 = vmatmul.mubr.bf16.gmra.mxu0 %v16270_v17  ;;  %v4815_v46 = vld [vmem:[#allocation12 + $0xed8] sm:$0xff]  ;;  %v20529_v17 = vld [vmem:[%s23037_s0 + $0x150] sm:$0xff]  ;;  %v5465_v53 = vld [vmem:[#allocation12 + $0x10e0] sm:$0xff] }
 0x1a7   :  { %23085 = vst [vmem:[#allocation59_spill] sm:$0xff] %v20501_v15  ;;  %v13411_v28 = vadd.f32 %v13410_v32, %v13218_v13  ;;  %v20505_v58 = vadd.f32 %v13599_v4, %v13407_v44  ;;  %14110 = vmatprep.mubr.bf16.mxu1 %v15913_v19  ;;  %14303 = vmatprep.mubr.bf16.mxu0 %v15915_v7  ;;  %v5435_v32 = vld [vmem:[#allocation12 + $0x10c8] sm:$0xff]  ;;  %v4785_v52 = vld [vmem:[#allocation12 + $0xec0] sm:$0xff]  ;;  %v5445_v15 = vld [vmem:[#allocation12 + $0x10d0] sm:$0xff] }
 0x1a8   :  { %v13412_v56 = vpop.f32.mrf.mxu1  ;;  %v13605_v29 = vpop.f32.mrf.mxu0  ;;  %v15914_v7 = vcombine.low %v20480_v23, %v20485_v30  ;;  %v15937_v44 = vcombine.high %v20510_v10, %v20515_v49  ;;  %v15939_v63 = vcombine.high %v20520_v22, %v20529_v17  ;;  %v23090_v20 = vld [vmem:[#allocation27_spill] sm:$0xff] }
 0x1a9   :  { %23086 = vst [vmem:[#allocation60_spill] sm:$0xff] %v20505_v58  ;;  %v13413_v43 = vadd.f32 %v13412_v56, %v13220_v41  ;;  %v20524_v35 = vadd.f32 %v13603_v8, %v13411_v28  ;;  %v18845_v41 = vpack.c.bf16 %v4845_v62, %v4825_v2  ;;  %v5455_v8 = vld [vmem:[#allocation12 + $0x10d8] sm:$0xff]  ;;  %v4805_v58 = vld [vmem:[#allocation12 + $0xed0] sm:$0xff] }
 0x1aa   :  { %v13414_v19 = vpop.f32.mrf.mxu1  ;;  %v13607_v13 = vpop.f32.mrf.mxu0  ;;  %v18843_v18 = vpack.c.bf16 %v4805_v58, %v4785_v52  ;;  %v5415_v52 = vld [vmem:[#allocation12 + $0x10b8] sm:$0xff] }
 0x1ab   :  { %23087 = vst [vmem:[#allocation61_spill] sm:$0xff] %v20524_v35  ;;  %v13415_v1 = vadd.f32 %v13414_v19, %v13222_v45  ;;  %v20535_v4 = vadd.f32 %v13605_v29, %v13413_v43  ;;  %v18844_v35 = vpack.c.bf16 %v4815_v46, %v4795_v5  ;;  %v4755_v45 = vld [vmem:[#allocation12 + $0xea8] sm:$0xff]  ;;  %v4775_v29 = vld [vmem:[#allocation12 + $0xeb8] sm:$0xff]  ;;  %v18877_v43 = vpack.c.bf16 %v5485_v31, %v5465_v53  ;;  %v4745_v31 = vld [vmem:[#allocation12 + $0xea0] sm:$0xff] }
 0x1ac   :  { %v13416_v28 = vpop.f32.mrf.mxu1  ;;  %v13609_v56 = vpop.f32.mrf.mxu0  ;;  %v18876_v19 = vpack.c.bf16 %v5455_v8, %v5435_v32  ;;  %v18842_v58 = vpack.c.bf16 %v4775_v29, %v4755_v45  ;;  %v20564_v53 = vld [vmem:[%s23037_s0 + $0x210] sm:$0xff]  ;;  %v15938_v45 = vcombine.low %v20520_v22, %v20529_v17  ;;  %v4735_v29 = vld [vmem:[#allocation12 + $0xe98] sm:$0xff]  ;;  %v4705_v17 = vld [vmem:[#allocation12 + $0xe80] sm:$0xff] }
 0x1ad   :  { %23088 = vst [vmem:[#allocation62_spill] sm:$0xff] %v20535_v4  ;;  %v13417_v23 = vadd.f32 %v13416_v28, %v13224_v38  ;;  %v20541_v30 = vadd.f32 %v13607_v13, %v13415_v1  ;;  %v5425_v4 = vld [vmem:[#allocation12 + $0x10c0] sm:$0xff]  ;;  %v4765_v1 = vld [vmem:[#allocation12 + $0xeb0] sm:$0xff]  ;;  %v4715_v8 = vld [vmem:[#allocation12 + $0xe88] sm:$0xff] }
 0x1ae   :  { %v13420_v2 = vpop.f32.mrf.mxu1  ;;  %14111 = vmatmul.mubr.bf16.vlgmr.msra.gmra.mxu1 %v15912_v16  ;;  %v13613_v62 = vpop.f32.mrf.mxu0  ;;  %14304 = vmatmul.mubr.bf16.vlgmr.msra.gmra.mxu0 %v15914_v7  ;;  %v20549_v38 = vld [vmem:[%s23037_s0 + $0x1a8] sm:$0xff]  ;;  %v20559_v16 = vld [vmem:[%s23037_s0 + $0x1b0] sm:$0xff]  ;;  %v18875_v28 = vpack.c.bf16 %v5445_v15, %v5425_v4  ;;  %v18841_v22 = vpack.c.bf16 %v4765_v1, %v4745_v31 }
 0x1af   :  { %23089 = vst [vmem:[#allocation63_spill] sm:$0xff] %v20541_v30  ;;  %v13421_v5 = vadd.f32 %v13420_v2, %v23090_v20  ;;  %v20544_v46 = vadd.f32 %v13609_v56, %v13417_v23  ;;  %14465 = vmatpush1.bf16.msra.mxu1 %v18845_v41  ;;  %14120 = vmatprep.mubr.bf16.mxu1 %v15937_v44  ;;  %v20554_v13 = vld [vmem:[%s23037_s0 + $0x208] sm:$0xff]  ;;  %v23092_v41 = vld [vmem:[#allocation28_spill] sm:$0xff]  ;;  %v5395_v56 = vld [vmem:[#allocation12 + $0x10a8] sm:$0xff] }
 0x1b0   :  { %v13422_v20 = vpop.f32.mrf.mxu1  ;;  %v13615_v7 = vpop.f32.mrf.mxu0  ;;  %14466 = vmatprep.subr.bf16.mxu1 %v18844_v35  ;;  %14313 = vmatprep.mubr.bf16.mxu0 %v15939_v63  ;;  %v15936_v63 = vcombine.low %v20510_v10, %v20515_v49  ;;  %v5385_v2 = vld [vmem:[#allocation12 + $0x10a0] sm:$0xff]  ;;  %v15961_v15 = vcombine.high %v20549_v38, %v20554_v13  ;;  %v15963_v4 = vcombine.high %v20559_v16, %v20564_v53  ;;  %v5375_v10 = vld [vmem:[#allocation12 + $0x1098] sm:$0xff] }
 0x1b1   :  { %23091 = vst [vmem:[#allocation27_spill] sm:$0xff] %v20544_v46  ;;  %v13423_v44 = vadd.f32 %v13422_v20, %v23092_v41  ;;  %v20567_v32 = vadd.f32 %v13613_v62, %v13421_v5  ;;  %14658 = vmatpush1.bf16.msra.mxu0 %v18877_v43  ;;  %v5405_v46 = vld [vmem:[#allocation12 + $0x10b0] sm:$0xff]  ;;  %v23094_v20 = vld [vmem:[#allocation29_spill] sm:$0xff]  ;;  %v5355_v43 = vld [vmem:[#allocation12 + $0x1088] sm:$0xff] }
 0x1b2   :  { %v13424_v23 = vpop.f32.mrf.mxu1  ;;  %v13617_v35 = vpop.f32.mrf.mxu0  ;;  %14659 = vmatprep.subr.bf16.mxu0 %v18876_v19  ;;  %v18874_v19 = vpack.c.bf16 %v5415_v52, %v5395_v56  ;;  %v18872_v31 = vpack.c.bf16 %v5375_v10, %v5355_v43  ;;  %v5345_v1 = vld [vmem:[#allocation12 + $0x1080] sm:$0xff]  ;;  %v23098_v56 = vld [vmem:[#allocation31_spill] sm:$0xff]  ;;  %v4655_v10 = vld [vmem:[#allocation12 + $0xe58] sm:$0xff] }
 0x1b3   :  { %23093 = vst [vmem:[#allocation28_spill] sm:$0xff] %v20567_v32  ;;  %v13425_v62 = vadd.f32 %v13424_v23, %v23094_v20  ;;  %v20574_v5 = vadd.f32 %v13615_v7, %v13423_v44  ;;  %14467 = vmatpush1.bf16.msra.mxu1 %v18843_v18  ;;  %v23096_v32 = vld [vmem:[#allocation30_spill] sm:$0xff]  ;;  %v18840_v7 = vpack.c.bf16 %v4735_v29, %v4715_v8  ;;  %v4725_v18 = vld [vmem:[#allocation12 + $0xe90] sm:$0xff]  ;;  %v4695_v20 = vld [vmem:[#allocation12 + $0xe78] sm:$0xff] }
 0x1b4   :  { %v13426_v49 = vpop.f32.mrf.mxu1  ;;  %v13619_v41 = vpop.f32.mrf.mxu0  ;;  %14468 = vmatprep.subr.bf16.mxu1 %v18842_v58  ;;  %v4675_v44 = vld [vmem:[#allocation12 + $0xe68] sm:$0xff]  ;;  %v20586_v58 = vld [vmem:[%s23037_s0 + $0x268] sm:$0xff] }
 0x1b5   :  { %23095 = vst [vmem:[#allocation29_spill] sm:$0xff] %v20574_v5  ;;  %v13427_v30 = vadd.f32 %v13426_v49, %v23096_v32  ;;  %v20581_v23 = vadd.f32 %v13617_v35, %v13425_v62  ;;  %14660 = vmatpush1.bf16.msra.mxu0 %v18875_v28  ;;  %v18873_v5 = vpack.c.bf16 %v5405_v46, %v5385_v2  ;;  %v5365_v32 = vld [vmem:[#allocation12 + $0x1090] sm:$0xff]  ;;  %v20594_v46 = vld [vmem:[%s23037_s0 + $0x2c8] sm:$0xff]  ;;  %v20599_v28 = vld [vmem:[%s23037_s0 + $0x270] sm:$0xff] }
 0x1b6   :  { %v13430_v12 = vpop.f32.mrf.mxu1  ;;  %14121 = vmatmul.mubr.bf16.gmra.mxu1 %v15936_v63  ;;  %v13623_v54 = vpop.f32.mrf.mxu0  ;;  %14314 = vmatmul.mubr.bf16.gmra.mxu0 %v15938_v45  ;;  %v20604_v35 = vld [vmem:[%s23037_s0 + $0x2d0] sm:$0xff]  ;;  %v18839_v63 = vpack.c.bf16 %v4725_v18, %v4705_v17  ;;  %v18838_v45 = vpack.c.bf16 %v4695_v20, %v4675_v44  ;;  %v4665_v29 = vld [vmem:[#allocation12 + $0xe60] sm:$0xff]  ;;  %v4685_v2 = vld [vmem:[#allocation12 + $0xe70] sm:$0xff]  ;;  %v18871_v49 = vpack.c.bf16 %v5365_v32, %v5345_v1 }
 0x1b7   :  { %23097 = vst [vmem:[#allocation30_spill] sm:$0xff] %v20581_v23  ;;  %v13431_v52 = vadd.f32 %v13430_v12, %v23098_v56  ;;  %v20589_v8 = vadd.f32 %v13619_v41, %v13427_v30  ;;  %14130 = vmatprep.mubr.bf16.mxu1 %v15961_v15  ;;  %14323 = vmatprep.mubr.bf16.mxu0 %v15963_v4  ;;  %v20606_v62 = vld [vmem:[#allocation12 + $0xe48] sm:$0xff]  ;;  %v23100_v15 = vld [vmem:[#allocation32_spill] sm:$0xff]  ;;  %v23102_v44 = vld [vmem:[#allocation33_spill] sm:$0xff] }
 0x1b8   :  { %v13432_v12 = vpop.f32.mrf.mxu1  ;;  %v13625_v30 = vpop.f32.mrf.mxu0  ;;  %14469 = vmatpush1.bf16.msra.mxu1 %v18841_v22  ;;  %14661 = vmatprep.subr.bf16.mxu0 %v18874_v19  ;;  %v5315_v41 = vld [vmem:[#allocation12 + $0x1068] sm:$0xff]  ;;  %v5335_v56 = vld [vmem:[#allocation12 + $0x1078] sm:$0xff]  ;;  %v15960_v22 = vcombine.low %v20549_v38, %v20554_v13  ;;  %v15962_v17 = vcombine.low %v20559_v16, %v20564_v53  ;;  %v5305_v19 = vld [vmem:[#allocation12 + $0x1060] sm:$0xff]  ;;  %v18837_v13 = vpack.c.bf16 %v4685_v2, %v4665_v29 }
 0x1b9   :  { %23099 = vst [vmem:[#allocation31_spill] sm:$0xff] %v20589_v8  ;;  %v13433_v4 = vadd.f32 %v13432_v12, %v23100_v15  ;;  %v20609_v43 = vadd.f32 %v13623_v54, %v13431_v52  ;;  %14470 = vmatprep.subr.bf16.mxu1 %v18840_v7  ;;  %14662 = vmatpush1.bf16.msra.mxu0 %v18873_v5  ;;  %v5325_v18 = vld [vmem:[#allocation12 + $0x1070] sm:$0xff]  ;;  %v5275_v1 = vld [vmem:[#allocation12 + $0x1048] sm:$0xff]  ;;  %v5295_v32 = vld [vmem:[#allocation12 + $0x1058] sm:$0xff] }
 0x1ba   :  { %v13434_v8 = vpop.f32.mrf.mxu1  ;;  %v13627_v23 = vpop.f32.mrf.mxu0  ;;  %14663 = vmatprep.subr.bf16.mxu0 %v18872_v31  ;;  %v15985_v5 = vcombine.high %v20586_v58, %v20594_v46  ;;  %v15987_v7 = vcombine.high %v20599_v28, %v20604_v35  ;;  %v18836_v16 = vpack.c.bf16 %v4655_v10, %v20606_v62  ;;  %v4625_v53 = vld [vmem:[#allocation12 + $0xe40] sm:$0xff]  ;;  %v18870_v31 = vpack.c.bf16 %v5335_v56, %v5315_v41  ;;  %v4645_v15 = vld [vmem:[#allocation12 + $0xe50] sm:$0xff]  ;;  %v20642_v41 = vld [vmem:[%s23037_s0 + $0x330] sm:$0xff] }
 0x1bb   :  { %23101 = vst [vmem:[#allocation32_spill] sm:$0xff] %v20609_v43  ;;  %v13435_v54 = vadd.f32 %v13434_v8, %v23102_v44  ;;  %v20616_v20 = vadd.f32 %v13625_v30, %v13433_v4  ;;  %v23104_v12 = vld [vmem:[#allocation34_spill] sm:$0xff]  ;;  %v4615_v44 = vld [vmem:[#allocation12 + $0xe38] sm:$0xff]  ;;  %v18868_v29 = vpack.c.bf16 %v5295_v32, %v5275_v1  ;;  %v5285_v62 = vld [vmem:[#allocation12 + $0x1050] sm:$0xff] }
 0x1bc   :  { %v13436_v52 = vpop.f32.mrf.mxu1  ;;  %v13629_v38 = vpop.f32.mrf.mxu0  ;;  %14471 = vmatpush1.bf16.msra.mxu1 %v18839_v63  ;;  %v4595_v4 = vld [vmem:[#allocation12 + $0xe28] sm:$0xff]  ;;  %v20629_v63 = vld [vmem:[%s23037_s0 + $0x328] sm:$0xff] }
 0x1bd   :  { %23103 = vst [vmem:[#allocation33_spill] sm:$0xff] %v20616_v20  ;;  %v13437_v8 = vadd.f32 %v13436_v52, %v23104_v12  ;;  %v20624_v30 = vadd.f32 %v13627_v23, %v13435_v54  ;;  %14472 = vmatprep.subr.bf16.mxu1 %v18838_v45  ;;  %14664 = vmatpush1.bf16.msra.mxu0 %v18871_v49  ;;  %v5265_v2 = vld [vmem:[#allocation12 + $0x1040] sm:$0xff]  ;;  %v23106_v23 = vld [vmem:[#allocation35_spill] sm:$0xff]  ;;  %v4575_v52 = vld [vmem:[#allocation12 + $0xe18] sm:$0xff] }
 0x1be   :  { %v18869_v20 = vpack.c.bf16 %v5325_v18, %v5305_v19  ;;  %v13440_v43 = vpop.f32.mrf.mxu1  ;;  %14131 = vmatmul.mubr.bf16.gmra.mxu1 %v15960_v22  ;;  %v13633_v26 = vpop.f32.mrf.mxu0  ;;  %14324 = vmatmul.mubr.bf16.gmra.mxu0 %v15962_v17  ;;  %v20637_v49 = vld [vmem:[%s23037_s0 + $0x388] sm:$0xff]  ;;  %v20647_v56 = vld [vmem:[%s23037_s0 + $0x390] sm:$0xff]  ;;  %v18835_v17 = vpack.c.bf16 %v4645_v15, %v4625_v53  ;;  %v18834_v19 = vpack.c.bf16 %v4615_v44, %v4595_v4  ;;  %v4605_v54 = vld [vmem:[#allocation12 + $0xe30] sm:$0xff] }
 0x1bf   :  { %23105 = vst [vmem:[#allocation34_spill] sm:$0xff] %v20624_v30  ;;  %v13441_v10 = vadd.f32 %v13440_v43, %v23106_v23  ;;  %v20632_v45 = vadd.f32 %v13629_v38, %v13437_v8  ;;  %14140 = vmatprep.mubr.bf16.mxu1 %v15985_v5  ;;  %14333 = vmatprep.mubr.bf16.mxu0 %v15987_v7  ;;  %v4585_v18 = vld [vmem:[#allocation12 + $0xe20] sm:$0xff]  ;;  %v20649_v5 = vld [vmem:[#allocation12 + $0xe08] sm:$0xff]  ;;  %v23108_v7 = vld [vmem:[#allocation36_spill] sm:$0xff] }
 0x1c0   :  { %v13442_v43 = vpop.f32.mrf.mxu1  ;;  %v13635_v22 = vpop.f32.mrf.mxu0  ;;  %14473 = vmatpush1.bf16.msra.mxu1 %v18837_v13  ;;  %14665 = vmatprep.subr.bf16.mxu0 %v18870_v31  ;;  %v18867_v38 = vpack.c.bf16 %v5285_v62, %v5265_v2  ;;  %v5235_v12 = vld [vmem:[#allocation12 + $0x1028] sm:$0xff]  ;;  %v5255_v8 = vld [vmem:[#allocation12 + $0x1038] sm:$0xff]  ;;  %v15984_v13 = vcombine.low %v20586_v58, %v20594_v46  ;;  %v15986_v53 = vcombine.low %v20599_v28, %v20604_v35  ;;  %v5225_v31 = vld [vmem:[#allocation12 + $0x1020] sm:$0xff] }
 0x1c1   :  { %23107 = vst [vmem:[#allocation35_spill] sm:$0xff] %v20632_v45  ;;  %v13443_v1 = vadd.f32 %v13442_v43, %v23108_v7  ;;  %v20652_v32 = vadd.f32 %v13633_v26, %v13441_v10  ;;  %14474 = vmatprep.subr.bf16.mxu1 %v18836_v16  ;;  %14666 = vmatpush1.bf16.msra.mxu0 %v18869_v20  ;;  %v5245_v15 = vld [vmem:[#allocation12 + $0x1030] sm:$0xff]  ;;  %v23110_v4 = vld [vmem:[#allocation37_spill] sm:$0xff]  ;;  %v5195_v2 = vld [vmem:[#allocation12 + $0x1008] sm:$0xff] }
 0x1c2   :  { %v13444_v23 = vpop.f32.mrf.mxu1  ;;  %v13637_v45 = vpop.f32.mrf.mxu0  ;;  %14667 = vmatprep.subr.bf16.mxu0 %v18868_v29  ;;  %v16009_v20 = vcombine.high %v20629_v63, %v20637_v49  ;;  %v16011_v16 = vcombine.high %v20642_v41, %v20647_v56  ;;  %v5215_v62 = vld [vmem:[#allocation12 + $0x1018] sm:$0xff]  ;;  %v18833_v46 = vpack.c.bf16 %v4605_v54, %v4585_v18  ;;  %v18832_v28 = vpack.c.bf16 %v4575_v52, %v20649_v5  ;;  %v4545_v35 = vld [vmem:[#allocation12 + $0xe00] sm:$0xff]  ;;  %v5205_v5 = vld [vmem:[#allocation12 + $0x1010] sm:$0xff] }
 0x1c3   :  { %23109 = vst [vmem:[#allocation36_spill] sm:$0xff] %v20652_v32  ;;  %v13445_v26 = vadd.f32 %v13444_v23, %v23110_v4  ;;  %v20659_v44 = vadd.f32 %v13635_v22, %v13443_v1  ;;  %v18866_v29 = vpack.c.bf16 %v5255_v8, %v5235_v12  ;;  %v23112_v43 = vld [vmem:[#allocation38_spill] sm:$0xff]  ;;  %v4565_v1 = vld [vmem:[#allocation12 + $0xe10] sm:$0xff]  ;;  %v5175_v4 = vld [vmem:[#allocation12 + $0xff8] sm:$0xff]  ;;  %v18864_v18 = vpack.c.bf16 %v5215_v62, %v5195_v2 }
 0x1c4   :  { %v13446_v10 = vpop.f32.mrf.mxu1  ;;  %v13639_v58 = vpop.f32.mrf.mxu0  ;;  %14475 = vmatpush1.bf16.msra.mxu1 %v18835_v17  ;;  %v5155_v23 = vld [vmem:[#allocation12 + $0xfe8] sm:$0xff]  ;;  %v20672_v17 = vld [vmem:[%s23037_s0 + $0x3e8] sm:$0xff] }
 0x1c5   :  { %23111 = vst [vmem:[#allocation37_spill] sm:$0xff] %v20659_v44  ;;  %v13447_v7 = vadd.f32 %v13446_v10, %v23112_v43  ;;  %v20667_v22 = vadd.f32 %v13637_v45, %v13445_v26  ;;  %14476 = vmatprep.subr.bf16.mxu1 %v18834_v19  ;;  %14668 = vmatpush1.bf16.msra.mxu0 %v18867_v38  ;;  %v5185_v54 = vld [vmem:[#allocation12 + $0x1000] sm:$0xff]  ;;  %v23114_v45 = vld [vmem:[#allocation39_spill] sm:$0xff]  ;;  %v5135_v10 = vld [vmem:[#allocation12 + $0xfd8] sm:$0xff] }
 0x1c6   :  { %v18865_v44 = vpack.c.bf16 %v5245_v15, %v5225_v31  ;;  %v13450_v32 = vpop.f32.mrf.mxu1  ;;  %14141 = vmatmul.mubr.bf16.gmra.mxu1 %v15984_v13  ;;  %v13643_v30 = vpop.f32.mrf.mxu0  ;;  %14334 = vmatmul.mubr.bf16.gmra.mxu0 %v15986_v53  ;;  %v20680_v38 = vld [vmem:[%s23037_s0 + $0x448] sm:$0xff]  ;;  %v20685_v12 = vld [vmem:[%s23037_s0 + $0x3f0] sm:$0xff]  ;;  %v18831_v53 = vpack.c.bf16 %v4565_v1, %v4545_v35  ;;  %v18862_v31 = vpack.c.bf16 %v5175_v4, %v5155_v23  ;;  %v5165_v26 = vld [vmem:[#allocation12 + $0xff0] sm:$0xff] }
 0x1c7   :  { %23113 = vst [vmem:[#allocation38_spill] sm:$0xff] %v20667_v22  ;;  %v13451_v52 = vadd.f32 %v13450_v32, %v23114_v45  ;;  %v20675_v19 = vadd.f32 %v13639_v58, %v13447_v7  ;;  %14150 = vmatprep.mubr.bf16.mxu1 %v16009_v20  ;;  %14343 = vmatprep.mubr.bf16.mxu0 %v16011_v16  ;;  %v20690_v8 = vld [vmem:[%s23037_s0 + $0x450] sm:$0xff]  ;;  %v5145_v15 = vld [vmem:[#allocation12 + $0xfe0] sm:$0xff]  ;;  %v23116_v16 = vld [vmem:[#allocation40_spill] sm:$0xff] }
 0x1c8   :  { %v13452_v32 = vpop.f32.mrf.mxu1  ;;  %v13645_v13 = vpop.f32.mrf.mxu0  ;;  %14477 = vmatpush1.bf16.msra.mxu1 %v18833_v46  ;;  %v20692_v20 = vld [vmem:[#allocation12 + $0xfc8] sm:$0xff]  ;;  %14669 = vmatprep.subr.bf16.mxu0 %v18866_v29  ;;  %v18863_v58 = vpack.c.bf16 %v5205_v5, %v5185_v54  ;;  %v5815_v7 = vld [vmem:[#allocation12 + $0x11f8] sm:$0xff]  ;;  %v16008_v46 = vcombine.low %v20629_v63, %v20637_v49  ;;  %v16010_v35 = vcombine.low %v20642_v41, %v20647_v56  ;;  %v5785_v29 = vld [vmem:[#allocation12 + $0x11e0] sm:$0xff] }
 0x1c9   :  { %23115 = vst [vmem:[#allocation39_spill] sm:$0xff] %v20675_v19  ;;  %v13453_v2 = vadd.f32 %v13452_v32, %v23116_v16  ;;  %v20695_v62 = vadd.f32 %v13643_v30, %v13451_v52  ;;  %14478 = vmatprep.subr.bf16.mxu1 %v18832_v28  ;;  %14670 = vmatpush1.bf16.msra.mxu0 %v18865_v44  ;;  %v5795_v43 = vld [vmem:[#allocation12 + $0x11e8] sm:$0xff]  ;;  %v5805_v1 = vld [vmem:[#allocation12 + $0x11f0] sm:$0xff]  ;;  %v23118_v23 = vld [vmem:[#allocation41_spill] sm:$0xff] }
 0x1ca   :  { %v13454_v45 = vpop.f32.mrf.mxu1  ;;  %v13647_v19 = vpop.f32.mrf.mxu0  ;;  %14671 = vmatprep.subr.bf16.mxu0 %v18864_v18  ;;  %v16033_v44 = vcombine.high %v20672_v17, %v20680_v38  ;;  %v16035_v28 = vcombine.high %v20685_v12, %v20690_v8  ;;  %v5755_v54 = vld [vmem:[#allocation12 + $0x11c8] sm:$0xff]  ;;  %v5775_v5 = vld [vmem:[#allocation12 + $0x11d8] sm:$0xff]  ;;  %v18861_v49 = vpack.c.bf16 %v5165_v26, %v5145_v15  ;;  %v18860_v41 = vpack.c.bf16 %v5135_v10, %v20692_v20  ;;  %v5105_v56 = vld [vmem:[#allocation12 + $0xfc0] sm:$0xff] }
 0x1cb   :  { %23117 = vst [vmem:[#allocation40_spill] sm:$0xff] %v20695_v62  ;;  %v13455_v30 = vadd.f32 %v13454_v45, %v23118_v23  ;;  %v20702_v4 = vadd.f32 %v13645_v13, %v13453_v2  ;;  %v18894_v18 = vpack.c.bf16 %v5815_v7, %v5795_v43  ;;  %v23120_v32 = vld [vmem:[#allocation42_spill] sm:$0xff]  ;;  %v5125_v2 = vld [vmem:[#allocation12 + $0xfd0] sm:$0xff]  ;;  %v5095_v23 = vld [vmem:[#allocation12 + $0xfb8] sm:$0xff]  ;;  %v18892_v15 = vpack.c.bf16 %v5775_v5, %v5755_v54 }
 0x1cc   :  { %v13456_v52 = vpop.f32.mrf.mxu1  ;;  %v13649_v63 = vpop.f32.mrf.mxu0  ;;  %14479 = vmatpush1.bf16.msra.mxu1 %v18831_v53  ;;  %v5075_v45 = vld [vmem:[#allocation12 + $0xfa8] sm:$0xff]  ;;  %v20715_v53 = vld [vmem:[%s23037_s0 + $0x4a8] sm:$0xff]  ;;  %v5765_v20 = vld [vmem:[#allocation12 + $0x11d0] sm:$0xff] }
 0x1cd   :  { %23119 = vst [vmem:[#allocation41_spill] sm:$0xff] %v20702_v4  ;;  %v13457_v16 = vadd.f32 %v13456_v52, %v23120_v32  ;;  %v20710_v13 = vadd.f32 %v13647_v19, %v13455_v30  ;;  %14480 = vmatprep.subr.bf16.mxu1 %v18862_v31  ;;  %14672 = vmatpush1.bf16.msra.mxu0 %v18863_v58  ;;  %v5745_v26 = vld [vmem:[#allocation12 + $0x11c0] sm:$0xff]  ;;  %v23122_v19 = vld [vmem:[#allocation43_spill] sm:$0xff]  ;;  %v5055_v52 = vld [vmem:[#allocation12 + $0xf98] sm:$0xff] }
 0x1ce   :  { %v18893_v4 = vpack.c.bf16 %v5805_v1, %v5785_v29  ;;  %v13460_v62 = vpop.f32.mrf.mxu1  ;;  %14151 = vmatmul.mubr.bf16.gmra.mxu1 %v16008_v46  ;;  %v13653_v22 = vpop.f32.mrf.mxu0  ;;  %14344 = vmatmul.mubr.bf16.gmra.mxu0 %v16010_v35  ;;  %v20723_v58 = vld [vmem:[%s23037_s0 + $0x508] sm:$0xff]  ;;  %v20728_v43 = vld [vmem:[%s23037_s0 + $0x4b0] sm:$0xff]  ;;  %v18859_v35 = vpack.c.bf16 %v5125_v2, %v5105_v56  ;;  %v18858_v29 = vpack.c.bf16 %v5095_v23, %v5075_v45  ;;  %v5085_v30 = vld [vmem:[#allocation12 + $0xfb0] sm:$0xff] }
 0x1cf   :  { %23121 = vst [vmem:[#allocation42_spill] sm:$0xff] %v20710_v13  ;;  %v13461_v10 = vadd.f32 %v13460_v62, %v23122_v19  ;;  %v20718_v31 = vadd.f32 %v13649_v63, %v13457_v16  ;;  %14160 = vmatprep.mubr.bf16.mxu1 %v16033_v44  ;;  %14353 = vmatprep.mubr.bf16.mxu0 %v16035_v28  ;;  %v20733_v7 = vld [vmem:[%s23037_s0 + $0x510] sm:$0xff]  ;;  %v5065_v1 = vld [vmem:[#allocation12 + $0xfa0] sm:$0xff]  ;;  %v23124_v28 = vld [vmem:[#allocation44_spill] sm:$0xff] }
 0x1d0   :  { %v13462_v62 = vpop.f32.mrf.mxu1  ;;  %v13655_v46 = vpop.f32.mrf.mxu0  ;;  %14481 = vmatpush2.bf16.msra.mxu1 %v18861_v49  ;;  %v20735_v44 = vld [vmem:[#allocation12 + $0xf88] sm:$0xff]  ;;  %14673 = vmatprep.subr.bf16.mxu0 %v18894_v18  ;;  %v18891_v63 = vpack.c.bf16 %v5765_v20, %v5745_v26  ;;  %v5735_v16 = vld [vmem:[#allocation12 + $0x11b8] sm:$0xff]  ;;  %v16032_v49 = vcombine.low %v20672_v17, %v20680_v38  ;;  %v16034_v56 = vcombine.low %v20685_v12, %v20690_v8  ;;  %v5705_v18 = vld [vmem:[#allocation12 + $0x11a0] sm:$0xff] }
 0x1d1   :  { %23123 = vst [vmem:[#allocation43_spill] sm:$0xff] %v20718_v31  ;;  %v13463_v54 = vadd.f32 %v13462_v62, %v23124_v28  ;;  %v20738_v5 = vadd.f32 %v13653_v22, %v13461_v10  ;;  %14482 = vmatprep.subr.bf16.mxu1 %v18860_v41  ;;  %14674 = vmatpush2.bf16.msra.mxu0 %v18893_v4  ;;  %v5715_v32 = vld [vmem:[#allocation12 + $0x11a8] sm:$0xff]  ;;  %v5725_v2 = vld [vmem:[#allocation12 + $0x11b0] sm:$0xff]  ;;  %v23126_v45 = vld [vmem:[#allocation45_spill] sm:$0xff] }
 0x1d2   :  { %v13464_v19 = vpop.f32.mrf.mxu1  ;;  %v13657_v31 = vpop.f32.mrf.mxu0  ;;  %14675 = vmatprep.subr.bf16.mxu0 %v18892_v15  ;;  %v16057_v4 = vcombine.high %v20715_v53, %v20723_v58  ;;  %v16059_v41 = vcombine.high %v20728_v43, %v20733_v7  ;;  %v5675_v26 = vld [vmem:[#allocation12 + $0x1188] sm:$0xff]  ;;  %v5695_v20 = vld [vmem:[#allocation12 + $0x1198] sm:$0xff]  ;;  %v18857_v38 = vpack.c.bf16 %v5085_v30, %v5065_v1  ;;  %v18856_v12 = vpack.c.bf16 %v5055_v52, %v20735_v44  ;;  %v5025_v8 = vld [vmem:[#allocation12 + $0xf80] sm:$0xff] }
 0x1d3   :  { %23125 = vst [vmem:[#allocation44_spill] sm:$0xff] %v20738_v5  ;;  %v13465_v22 = vadd.f32 %v13464_v19, %v23126_v45  ;;  %v20745_v23 = vadd.f32 %v13655_v46, %v13463_v54  ;;  %v18890_v15 = vpack.c.bf16 %v5735_v16, %v5715_v32  ;;  %v23128_v62 = vld [vmem:[#allocation46_spill] sm:$0xff]  ;;  %v5045_v54 = vld [vmem:[#allocation12 + $0xf90] sm:$0xff]  ;;  %v5015_v45 = vld [vmem:[#allocation12 + $0xf78] sm:$0xff]  ;;  %v18888_v1 = vpack.c.bf16 %v5695_v20, %v5675_v26 }
 0x1d4   :  { %v13466_v10 = vpop.f32.mrf.mxu1  ;;  %v13659_v17 = vpop.f32.mrf.mxu0  ;;  %14483 = vmatpush2.bf16.msra.mxu1 %v18859_v35  ;;  %v4995_v19 = vld [vmem:[#allocation12 + $0xf68] sm:$0xff]  ;;  %v20758_v35 = vld [vmem:[%s23037_s0 + $0x568] sm:$0xff]  ;;  %v5685_v44 = vld [vmem:[#allocation12 + $0x1190] sm:$0xff] }
 0x1d5   :  { %23127 = vst [vmem:[#allocation45_spill] sm:$0xff] %v20745_v23  ;;  %v13467_v28 = vadd.f32 %v13466_v10, %v23128_v62  ;;  %v20753_v46 = vadd.f32 %v13657_v31, %v13465_v22  ;;  %14484 = vmatprep.subr.bf16.mxu1 %v18858_v29  ;;  %14676 = vmatpush2.bf16.msra.mxu0 %v18891_v63  ;;  %v5665_v30 = vld [vmem:[#allocation12 + $0x1180] sm:$0xff]  ;;  %v23130_v31 = vld [vmem:[#allocation47_spill] sm:$0xff]  ;;  %v4975_v10 = vld [vmem:[#allocation12 + $0xf58] sm:$0xff] }
 0x1d6   :  { %v18889_v23 = vpack.c.bf16 %v5725_v2, %v5705_v18  ;;  %v13470_v5 = vpop.f32.mrf.mxu1  ;;  %14161 = vmatmul.mubr.bf16.gmra.mxu1 %v16032_v49  ;;  %v13663_v13 = vpop.f32.mrf.mxu0  ;;  %14354 = vmatmul.mubr.bf16.gmra.mxu0 %v16034_v56  ;;  %v20766_v63 = vld [vmem:[%s23037_s0 + $0x5c8] sm:$0xff]  ;;  %v20771_v32 = vld [vmem:[%s23037_s0 + $0x570] sm:$0xff]  ;;  %v18855_v56 = vpack.c.bf16 %v5045_v54, %v5025_v8  ;;  %v18854_v18 = vpack.c.bf16 %v5015_v45, %v4995_v19  ;;  %v5005_v22 = vld [vmem:[#allocation12 + $0xf70] sm:$0xff] }
 0x1d7   :  { %23129 = vst [vmem:[#allocation46_spill] sm:$0xff] %v20753_v46  ;;  %v13471_v52 = vadd.f32 %v13470_v5, %v23130_v31  ;;  %v20761_v29 = vadd.f32 %v13659_v17, %v13467_v28  ;;  %14170 = vmatprep.mubr.bf16.mxu1 %v16057_v4  ;;  %14363 = vmatprep.mubr.bf16.mxu0 %v16059_v41  ;;  %v20776_v16 = vld [vmem:[%s23037_s0 + $0x5d0] sm:$0xff]  ;;  %v4985_v2 = vld [vmem:[#allocation12 + $0xf60] sm:$0xff]  ;;  %v23132_v41 = vld [vmem:[#allocation48_spill] sm:$0xff] }
 0x1d8   :  { %v13472_v5 = vpop.f32.mrf.mxu1  ;;  %v13665_v49 = vpop.f32.mrf.mxu0  ;;  %14485 = vmatpush2.bf16.msra.mxu1 %v18857_v38  ;;  %v20778_v4 = vld [vmem:[#allocation12 + $0xf48] sm:$0xff]  ;;  %14677 = vmatprep.subr.bf16.mxu0 %v18890_v15  ;;  %v18887_v17 = vpack.c.bf16 %v5685_v44, %v5665_v30  ;;  %v5655_v28 = vld [vmem:[#allocation12 + $0x1178] sm:$0xff]  ;;  %v16056_v38 = vcombine.low %v20715_v53, %v20723_v58  ;;  %v16058_v8 = vcombine.low %v20728_v43, %v20733_v7  ;;  %v5625_v15 = vld [vmem:[#allocation12 + $0x1160] sm:$0xff] }
 0x1d9   :  { %23131 = vst [vmem:[#allocation47_spill] sm:$0xff] %v20761_v29  ;;  %v13473_v26 = vadd.f32 %v13472_v5, %v23132_v41  ;;  %v20781_v20 = vadd.f32 %v13663_v13, %v13471_v52  ;;  %14486 = vmatprep.subr.bf16.mxu1 %v18856_v12  ;;  %14678 = vmatpush2.bf16.msra.mxu0 %v18889_v23  ;;  %v5635_v62 = vld [vmem:[#allocation12 + $0x1168] sm:$0xff]  ;;  %v5645_v54 = vld [vmem:[#allocation12 + $0x1170] sm:$0xff]  ;;  %v23134_v19 = vld [vmem:[#allocation49_spill] sm:$0xff] }
 0x1da   :  { %v13474_v31 = vpop.f32.mrf.mxu1  ;;  %v13667_v29 = vpop.f32.mrf.mxu0  ;;  %14679 = vmatprep.subr.bf16.mxu0 %v18888_v1  ;;  %v16081_v23 = vcombine.high %v20758_v35, %v20766_v63  ;;  %v16083_v12 = vcombine.high %v20771_v32, %v20776_v16  ;;  %v5595_v30 = vld [vmem:[#allocation12 + $0x1148] sm:$0xff]  ;;  %v5615_v44 = vld [vmem:[#allocation12 + $0x1158] sm:$0xff]  ;;  %v18853_v58 = vpack.c.bf16 %v5005_v22, %v4985_v2  ;;  %v18852_v43 = vpack.c.bf16 %v4975_v10, %v20778_v4  ;;  %v4945_v7 = vld [vmem:[#allocation12 + $0xf40] sm:$0xff] }
 0x1db   :  { %23133 = vst [vmem:[#allocation48_spill] sm:$0xff] %v20781_v20  ;;  %v13475_v13 = vadd.f32 %v13474_v31, %v23134_v19  ;;  %v20788_v45 = vadd.f32 %v13665_v49, %v13473_v26  ;;  %v18886_v1 = vpack.c.bf16 %v5655_v28, %v5635_v62  ;;  %v23136_v5 = vld [vmem:[#allocation50_spill] sm:$0xff]  ;;  %v4965_v26 = vld [vmem:[#allocation12 + $0xf50] sm:$0xff]  ;;  %v4935_v19 = vld [vmem:[#allocation12 + $0xf38] sm:$0xff]  ;;  %v18884_v2 = vpack.c.bf16 %v5615_v44, %v5595_v30 }
 0x1dc   :  { %v13476_v52 = vpop.f32.mrf.mxu1  ;;  %v13669_v53 = vpop.f32.mrf.mxu0  ;;  %14487 = vmatpush2.bf16.msra.mxu1 %v18855_v56  ;;  %v4915_v31 = vld [vmem:[#allocation12 + $0xf28] sm:$0xff]  ;;  %v20801_v56 = vld [vmem:[%s23037_s0 + $0x628] sm:$0xff]  ;;  %v5605_v4 = vld [vmem:[#allocation12 + $0x1150] sm:$0xff] }
 0x1dd   :  { %23135 = vst [vmem:[#allocation49_spill] sm:$0xff] %v20788_v45  ;;  %v13477_v41 = vadd.f32 %v13476_v52, %v23136_v5  ;;  %v20796_v49 = vadd.f32 %v13667_v29, %v13475_v13  ;;  %14488 = vmatprep.subr.bf16.mxu1 %v18854_v18  ;;  %14680 = vmatpush2.bf16.msra.mxu0 %v18887_v17  ;;  %v5585_v22 = vld [vmem:[#allocation12 + $0x1140] sm:$0xff]  ;;  %v23138_v29 = vld [vmem:[#allocation51_spill] sm:$0xff] }
 0x1de   :  { %v18885_v45 = vpack.c.bf16 %v5645_v54, %v5625_v15  ;;  %v13480_v20 = vpop.f32.mrf.mxu1  ;;  %14171 = vmatmul.mubr.bf16.gmra.mxu1 %v16056_v38  ;;  %v13673_v46 = vpop.f32.mrf.mxu0  ;;  %14364 = vmatmul.mubr.bf16.gmra.mxu0 %v16058_v8  ;;  %v20809_v17 = vld [vmem:[%s23037_s0 + $0x688] sm:$0xff]  ;;  %v20814_v62 = vld [vmem:[%s23037_s0 + $0x630] sm:$0xff]  ;;  %v18851_v8 = vpack.c.bf16 %v4965_v26, %v4945_v7  ;;  %v18850_v15 = vpack.c.bf16 %v4935_v19, %v4915_v31  ;;  %v4925_v13 = vld [vmem:[#allocation12 + $0xf30] sm:$0xff] }
 0x1df   :  { %23137 = vst [vmem:[#allocation50_spill] sm:$0xff] %v20796_v49  ;;  %v13481_v10 = vadd.f32 %v13480_v20, %v23138_v29  ;;  %v20804_v18 = vadd.f32 %v13669_v53, %v13477_v41  ;;  %14180 = vmatprep.mubr.bf16.mxu1 %v16081_v23  ;;  %14373 = vmatprep.mubr.bf16.mxu0 %v16083_v12  ;;  %v20819_v28 = vld [vmem:[%s23037_s0 + $0x690] sm:$0xff]  ;;  %v4905_v54 = vld [vmem:[#allocation12 + $0xf20] sm:$0xff]  ;;  %v23140_v12 = vld [vmem:[#allocation52_spill] sm:$0xff] }
 0x1e0   :  { %v13482_v20 = vpop.f32.mrf.mxu1  ;;  %v13675_v38 = vpop.f32.mrf.mxu0  ;;  %14489 = vmatpush2.bf16.msra.mxu1 %v18853_v58  ;;  %14681 = vmatprep.subr.bf16.mxu0 %v18886_v1  ;;  %v5555_v23 = vld [vmem:[#allocation12 + $0x1128] sm:$0xff]  ;;  %v18883_v52 = vpack.c.bf16 %v5605_v4, %v5585_v22  ;;  %v5575_v53 = vld [vmem:[#allocation12 + $0x1138] sm:$0xff]  ;;  %v5545_v5 = vld [vmem:[#allocation12 + $0x1120] sm:$0xff]  ;;  %v16080_v58 = vcombine.low %v20758_v35, %v20766_v63  ;;  %v16082_v7 = vcombine.low %v20771_v32, %v20776_v16 }
 0x1e1   :  { %23139 = vst [vmem:[#allocation51_spill] sm:$0xff] %v20804_v18  ;;  %v13483_v30 = vadd.f32 %v13482_v20, %v23140_v12  ;;  %v20822_v44 = vadd.f32 %v13673_v46, %v13481_v10  ;;  %14490 = vmatprep.subr.bf16.mxu1 %v18852_v43  ;;  %14682 = vmatpush2.bf16.msra.mxu0 %v18885_v45  ;;  %v5565_v41 = vld [vmem:[#allocation12 + $0x1130] sm:$0xff]  ;;  %v4875_v1 = vld [vmem:[#allocation12 + $0xf08] sm:$0xff]  ;;  %v4895_v26 = vld [vmem:[#allocation12 + $0xf18] sm:$0xff] }
 0x1e2   :  { %v13484_v29 = vpop.f32.mrf.mxu1  ;;  %v13677_v18 = vpop.f32.mrf.mxu0  ;;  %14683 = vmatprep.subr.bf16.mxu0 %v18884_v2  ;;  %v23142_v31 = vld [vmem:[#allocation53_spill] sm:$0xff]  ;;  %v16105_v45 = vcombine.high %v20801_v56, %v20809_v17  ;;  %v16107_v43 = vcombine.high %v20814_v62, %v20819_v28  ;;  %v5515_v22 = vld [vmem:[#allocation12 + $0x1108] sm:$0xff]  ;;  %v18849_v63 = vpack.c.bf16 %v4925_v13, %v4905_v54  ;;  %v18882_v16 = vpack.c.bf16 %v5575_v53, %v5555_v23 }
 0x1e3   :  { %23141 = vst [vmem:[#allocation52_spill] sm:$0xff] %v20822_v44  ;;  %v13485_v46 = vadd.f32 %v13484_v29, %v23142_v31  ;;  %v20829_v19 = vadd.f32 %v13675_v38, %v13483_v30  ;;  %v5535_v4 = vld [vmem:[#allocation12 + $0x1118] sm:$0xff]  ;;  %v4865_v32 = vld [vmem:[#allocation12 + $0xf00] sm:$0xff]  ;;  %v18881_v2 = vpack.c.bf16 %v5565_v41, %v5545_v5  ;;  %v18848_v38 = vpack.c.bf16 %v4895_v26, %v4875_v1  ;;  %v4885_v30 = vld [vmem:[#allocation12 + $0xf10] sm:$0xff] }
 0x1e4   :  { %v13486_v10 = vpop.f32.mrf.mxu1  ;;  %v13679_v35 = vpop.f32.mrf.mxu0  ;;  %14491 = vmatpush2.bf16.msra.mxu1 %v18851_v8  ;;  %v5505_v29 = vld [vmem:[#allocation12 + $0x1100] sm:$0xff]  ;;  %v5525_v31 = vld [vmem:[#allocation12 + $0x1110] sm:$0xff]  ;;  %v18880_v49 = vpack.c.bf16 %v5535_v4, %v5515_v22  ;;  %v6115_v8 = vld [vmem:[#allocation12 + $0x12e8] sm:$0xff]  ;;  %v18847_v5 = vpack.c.bf16 %v4885_v30, %v4865_v32 }
 0x1e5   :  { %23143 = vst [vmem:[#allocation53_spill] sm:$0xff] %v20829_v19  ;;  %v13487_v20 = vadd.f32 %v13486_v10, %v20239_v14  ;;  %v20836_v12 = vadd.f32 %v13677_v18, %v13485_v46  ;;  %14492 = vmatprep.subr.bf16.mxu1 %v18850_v15  ;;  %14684 = vmatpush2.bf16.msra.mxu0 %v18883_v52  ;;  %v6135_v54 = vld [vmem:[#allocation12 + $0x12f8] sm:$0xff]  ;;  %v20844_v14 = vld [vmem:[%s23037_s0 + $0x6e8] sm:$0xff]  ;;  %v8715_v53 = vld [vmem:[%s23037_s0 + $0x6f0] sm:$0xff] }
 0x1e6   :  { %v13490_v19 = vpop.f32.mrf.mxu1  ;;  %14181 = vmatmul.mubr.bf16.gmra.mxu1 %v16080_v58  ;;  %v13683_v44 = vpop.f32.mrf.mxu0  ;;  %14374 = vmatmul.mubr.bf16.gmra.mxu0 %v16082_v7  ;;  %v8726_v52 = vld [vmem:[%s23037_s0 + $0x748] sm:$0xff]  ;;  %v18879_v41 = vpack.c.bf16 %v5525_v31, %v5505_v29  ;;  %v18910_v1 = vpack.c.bf16 %v6135_v54, %v6115_v8 }
 0x1e7   :  { %v13491_v13 = vadd.f32 %v13490_v19, %v20244_v51  ;;  %v20839_v23 = vadd.f32 %v13679_v35, %v13487_v20  ;;  %14190 = vmatprep.mubr.bf16.mxu1 %v16105_v45  ;;  %14383 = vmatprep.mubr.bf16.mxu0 %v16107_v43  ;;  %v8727_v51 = vld [vmem:[%s23037_s0 + $0x750] sm:$0xff]  ;;  %v16104_v19 = vcombine.low %v20801_v56, %v20809_v17  ;;  %v6775_v17 = vld [vmem:[#allocation12 + $0x14f8] sm:$0xff]  ;;  %v8750_v20 = vld [vmem:[%s23037_s0 + $0x808] sm:$0xff] }
 0x1e8   :  { %v13492_v18 = vpop.f32.mrf.mxu1  ;;  %v13685_v15 = vpop.f32.mrf.mxu0  ;;  %14493 = vmatpush2.bf16.msra.mxu1 %v18849_v63  ;;  %14685 = vmatprep.subr.bf16.mxu0 %v18882_v16  ;;  %v16106_v45 = vcombine.low %v20814_v62, %v20819_v28  ;;  %v6755_v56 = vld [vmem:[#allocation12 + $0x14e8] sm:$0xff]  ;;  %v16128_v54 = vcombine.low %v20844_v14, %v8726_v52 }
 0x1e9   :  { %v13493_v58 = vadd.f32 %v13492_v18, %v20269_v39  ;;  %v20856_v7 = vadd.f32 %v13683_v44, %v13491_v13  ;;  %14494 = vmatprep.subr.bf16.mxu1 %v18848_v38  ;;  %14686 = vmatpush2.bf16.msra.mxu0 %v18881_v2  ;;  %v16129_v39 = vcombine.high %v20844_v14, %v8726_v52  ;;  %v8739_v38 = vld [vmem:[%s23037_s0 + $0x7b0] sm:$0xff] }
 0x1ea   :  { %v13494_v26 = vpop.f32.mrf.mxu1  ;;  %v13687_v46 = vpop.f32.mrf.mxu0  ;;  %14687 = vmatprep.subr.bf16.mxu0 %v18880_v49  ;;  %v16131_v44 = vcombine.high %v8715_v53, %v8727_v51  ;;  %v16130_v13 = vcombine.low %v8715_v53, %v8727_v51  ;;  %v8763_v51 = vld [vmem:[%s23037_s0 + $0x870] sm:$0xff] }
 0x1eb   :  { %v13495_v43 = vadd.f32 %v13494_v26, %v20280_v21  ;;  %v20863_v22 = vadd.f32 %v13685_v15, %v13493_v58  ;;  %v18942_v21 = vpack.c.bf16 %v6775_v17, %v6755_v56 }
 0x1ec   :  { %v13496_v4 = vpop.f32.mrf.mxu1  ;;  %v13689_v10 = vpop.f32.mrf.mxu0  ;;  %14495 = vmatpush2.bf16.msra.mxu1 %v18847_v5 }
 0x1ed   :  { %v13497_v35 = vadd.f32 %v13496_v4, %v20291_v55  ;;  %v20867_v63 = vadd.f32 %v13687_v46, %v13495_v43  ;;  %14688 = vmatpush2.bf16.msra.mxu0 %v18879_v41  ;;  %14850 = vmatprep.subr.bf16.mxu1 %v18910_v1  ;;  %v8738_v55 = vld [vmem:[%s23037_s0 + $0x7a8] sm:$0xff] }
 0x1ee   :  { %v13726_v62 = vpop.f32.mrf.mxu1  ;;  %14191 = vmatmul.mubr.bf16.gmra.mxu1 %v16104_v19  ;;  %v13919_v49 = vpop.f32.mrf.mxu0  ;;  %14384 = vmatmul.mubr.bf16.gmra.mxu0 %v16106_v45  ;;  %v16153_v5 = vcombine.high %v8738_v55, %v8750_v20 }
 0x1ef   :  { %v20869_v28 = vadd.f32 %v13689_v10, %v13497_v35  ;;  %v13727_v32 = vadd.f32 %v13726_v62, %v20309_v60  ;;  %14200 = vmatprep.mubr.bf16.mxu1 %v16129_v39  ;;  %14393 = vmatprep.mubr.bf16.mxu0 %v16131_v44  ;;  %v8751_v60 = vld [vmem:[%s23037_s0 + $0x810] sm:$0xff]  ;;  %v16152_v10 = vcombine.low %v8738_v55, %v8750_v20 }
 0x1f0   :  { %v13728_v16 = vpop.f32.mrf.mxu1  ;;  %v13921_v2 = vpop.f32.mrf.mxu0  ;;  %15043 = vmatprep.subr.bf16.mxu0 %v18942_v21  ;;  %v16155_v41 = vcombine.high %v8739_v38, %v8751_v60  ;;  %v16154_v35 = vcombine.low %v8739_v38, %v8751_v60  ;;  %v8787_v60 = vld [vmem:[%s23037_s0 + $0x930] sm:$0xff] }
 0x1f1   :  { %v13729_v30 = vadd.f32 %v13728_v16, %v20317_v36  ;;  %v20885_v29 = vadd.f32 %v13919_v49, %v13727_v32 }
 0x1f2   :  { %v13730_v31 = vpop.f32.mrf.mxu1  ;;  %v13923_v8 = vpop.f32.mrf.mxu0 }
 0x1f3   :  { %v13731_v18 = vadd.f32 %v13730_v31, %v20321_v11  ;;  %v20889_v15 = vadd.f32 %v13921_v2, %v13729_v30  ;;  %v8762_v11 = vld [vmem:[%s23037_s0 + $0x868] sm:$0xff] }
 0x1f4   :  { %v13732_v58 = vpop.f32.mrf.mxu1  ;;  %v13925_v1 = vpop.f32.mrf.mxu0 }
 0x1f5   :  { %v13733_v26 = vadd.f32 %v13732_v58, %v20325_v27  ;;  %v20892_v46 = vadd.f32 %v13923_v8, %v13731_v18  ;;  %v8774_v27 = vld [vmem:[%s23037_s0 + $0x8c8] sm:$0xff] }
 0x1f6   :  { %v13736_v36 = vpop.f32.mrf.mxu1  ;;  %14201 = vmatmul.mubr.bf16.gmra.mxu1 %v16128_v54  ;;  %v13929_v19 = vpop.f32.mrf.mxu0  ;;  %14394 = vmatmul.mubr.bf16.gmra.mxu0 %v16130_v13  ;;  %v16177_v62 = vcombine.high %v8762_v11, %v8774_v27 }
 0x1f7   :  { %v13737_v45 = vadd.f32 %v13736_v36, %v20341_v24  ;;  %v20895_v14 = vadd.f32 %v13925_v1, %v13733_v26  ;;  %14210 = vmatprep.mubr.bf16.mxu1 %v16153_v5  ;;  %14403 = vmatprep.mubr.bf16.mxu0 %v16155_v41  ;;  %v8775_v24 = vld [vmem:[%s23037_s0 + $0x8d0] sm:$0xff]  ;;  %v16176_v5 = vcombine.low %v8762_v11, %v8774_v27 }
 0x1f8   :  { %v13738_v52 = vpop.f32.mrf.mxu1  ;;  %v13931_v53 = vpop.f32.mrf.mxu0  ;;  %v16179_v49 = vcombine.high %v8763_v51, %v8775_v24  ;;  %v16178_v41 = vcombine.low %v8763_v51, %v8775_v24  ;;  %v8811_v24 = vld [vmem:[%s23037_s0 + $0x9f0] sm:$0xff] }
 0x1f9   :  { %v13739_v43 = vadd.f32 %v13738_v52, %v20345_v9  ;;  %v20910_v39 = vadd.f32 %v13929_v19, %v13737_v45 }
 0x1fa   :  { %v13740_v44 = vpop.f32.mrf.mxu1  ;;  %v13933_v4 = vpop.f32.mrf.mxu0 }
 0x1fb   :  { %v13741_v56 = vadd.f32 %v13740_v44, %v20349_v57  ;;  %v20913_v17 = vadd.f32 %v13931_v53, %v13739_v43  ;;  %v8786_v57 = vld [vmem:[%s23037_s0 + $0x928] sm:$0xff] }
 0x1fc   :  { %v13742_v21 = vpop.f32.mrf.mxu1  ;;  %v13935_v32 = vpop.f32.mrf.mxu0 }
 0x1fd   :  { %v13743_v16 = vadd.f32 %v13742_v21, %v20353_v33  ;;  %v20916_v2 = vadd.f32 %v13933_v4, %v13741_v56  ;;  %v8798_v33 = vld [vmem:[%s23037_s0 + $0x988] sm:$0xff] }
 0x1fe   :  { %v13746_v30 = vpop.f32.mrf.mxu1  ;;  %14211 = vmatmul.mubr.bf16.gmra.mxu1 %v16152_v10  ;;  %v13939_v9 = vpop.f32.mrf.mxu0  ;;  %14404 = vmatmul.mubr.bf16.gmra.mxu0 %v16154_v35  ;;  %v16201_v26 = vcombine.high %v8786_v57, %v8798_v33 }
 0x1ff   :  { %v13747_v31 = vadd.f32 %v13746_v30, %v20369_v6  ;;  %v20919_v55 = vadd.f32 %v13935_v32, %v13743_v16  ;;  %14220 = vmatprep.mubr.bf16.mxu1 %v16177_v62  ;;  %14413 = vmatprep.mubr.bf16.mxu0 %v16179_v49  ;;  %v8799_v6 = vld [vmem:[%s23037_s0 + $0x990] sm:$0xff]  ;;  %v16200_v62 = vcombine.low %v8786_v57, %v8798_v33 }
 0x200   :  { %v13748_v20 = vpop.f32.mrf.mxu1  ;;  %v13941_v38 = vpop.f32.mrf.mxu0  ;;  %v16203_v36 = vcombine.high %v8787_v60, %v8799_v6  ;;  %v16202_v49 = vcombine.low %v8787_v60, %v8799_v6  ;;  %v8835_v6 = vld [vmem:[%s23037_s0 + $0xab0] sm:$0xff] }
 0x201   :  { %v13749_v8 = vadd.f32 %v13748_v20, %v20373_v59  ;;  %v20934_v54 = vadd.f32 %v13939_v9, %v13747_v31 }
 0x202   :  { %v13750_v13 = vpop.f32.mrf.mxu1  ;;  %v13943_v18 = vpop.f32.mrf.mxu0 }
 0x203   :  { %v13751_v58 = vadd.f32 %v13750_v13, %v20377_v48  ;;  %v20937_v1 = vadd.f32 %v13941_v38, %v13749_v8  ;;  %v8810_v48 = vld [vmem:[%s23037_s0 + $0x9e8] sm:$0xff] }
 0x204   :  { %v13752_v19 = vpop.f32.mrf.mxu1  ;;  %v13945_v45 = vpop.f32.mrf.mxu0 }
 0x205   :  { %v13753_v52 = vadd.f32 %v13752_v19, %v20381_v0  ;;  %v20940_v53 = vadd.f32 %v13943_v18, %v13751_v58  ;;  %v8822_v0 = vld [vmem:[%s23037_s0 + $0xa48] sm:$0xff] }
 0x206   :  { %v13756_v43 = vpop.f32.mrf.mxu1  ;;  %14221 = vmatmul.mubr.bf16.gmra.mxu1 %v16176_v5  ;;  %v13949_v59 = vpop.f32.mrf.mxu0  ;;  %14414 = vmatmul.mubr.bf16.gmra.mxu0 %v16178_v41  ;;  %v16225_v16 = vcombine.high %v8810_v48, %v8822_v0 }
 0x207   :  { %v13757_v44 = vadd.f32 %v13756_v43, %v20397_v50  ;;  %v20943_v11 = vadd.f32 %v13945_v45, %v13753_v52  ;;  %14230 = vmatprep.mubr.bf16.mxu1 %v16201_v26  ;;  %14423 = vmatprep.mubr.bf16.mxu0 %v16203_v36  ;;  %v8823_v50 = vld [vmem:[%s23037_s0 + $0xa50] sm:$0xff]  ;;  %v16224_v26 = vcombine.low %v8810_v48, %v8822_v0 }
 0x208   :  { %v13758_v27 = vpop.f32.mrf.mxu1  ;;  %v13951_v51 = vpop.f32.mrf.mxu0  ;;  %v16227_v30 = vcombine.high %v8811_v24, %v8823_v50  ;;  %v16226_v36 = vcombine.low %v8811_v24, %v8823_v50  ;;  %v8859_v50 = vld [vmem:[%s23037_s0 + $0xb70] sm:$0xff] }
 0x209   :  { %v13759_v4 = vadd.f32 %v13758_v27, %v20401_v3  ;;  %v20958_v10 = vadd.f32 %v13949_v59, %v13757_v44 }
 0x20a   :  { %v13760_v35 = vpop.f32.mrf.mxu1  ;;  %v13953_v56 = vpop.f32.mrf.mxu0 }
 0x20b   :  { %v13761_v21 = vadd.f32 %v13760_v35, %v20405_v25  ;;  %v20961_v32 = vadd.f32 %v13951_v51, %v13759_v4  ;;  %v8834_v25 = vld [vmem:[%s23037_s0 + $0xaa8] sm:$0xff] }
 0x20c   :  { %v13762_v9 = vpop.f32.mrf.mxu1  ;;  %v13955_v31 = vpop.f32.mrf.mxu0 }
 0x20d   :  { %v13763_v20 = vadd.f32 %v13762_v9, %v20409_v47  ;;  %v20964_v38 = vadd.f32 %v13953_v56, %v13761_v21  ;;  %v8846_v47 = vld [vmem:[%s23037_s0 + $0xb08] sm:$0xff] }
 0x20e   :  { %v13766_v8 = vpop.f32.mrf.mxu1  ;;  %14231 = vmatmul.mubr.bf16.gmra.mxu1 %v16200_v62  ;;  %v13959_v3 = vpop.f32.mrf.mxu0  ;;  %14424 = vmatmul.mubr.bf16.gmra.mxu0 %v16202_v49  ;;  %v16249_v52 = vcombine.high %v8834_v25, %v8846_v47  ;;  %v23144_v56 = vld [vmem:[#allocation54_spill] sm:$0xff] }
 0x20f   :  { %v13767_v13 = vadd.f32 %v13766_v8, %v20425_v37  ;;  %v20967_v57 = vadd.f32 %v13955_v31, %v13763_v20  ;;  %14240 = vmatprep.mubr.bf16.mxu1 %v16225_v16  ;;  %14433 = vmatprep.mubr.bf16.mxu0 %v16227_v30  ;;  %v8847_v37 = vld [vmem:[%s23037_s0 + $0xb10] sm:$0xff]  ;;  %v16248_v30 = vcombine.low %v8834_v25, %v8846_v47  ;;  %v21020_v47 = vld [vmem:[%s23037_s0 + $0x38] sm:$0xff] }
 0x210   :  { %v13768_v33 = vpop.f32.mrf.mxu1  ;;  %v13961_v60 = vpop.f32.mrf.mxu0  ;;  %v16251_v43 = vcombine.high %v8835_v6, %v8847_v37  ;;  %v16250_v9 = vcombine.low %v8835_v6, %v8847_v37  ;;  %v23146_v31 = vld [vmem:[#allocation55_spill] sm:$0xff] }
 0x211   :  { %v13769_v18 = vadd.f32 %v13768_v33, %v20429_v42  ;;  %v20982_v5 = vadd.f32 %v13959_v3, %v13767_v13 }
 0x212   :  { %v13770_v41 = vpop.f32.mrf.mxu1  ;;  %v13963_v58 = vpop.f32.mrf.mxu0 }
 0x213   :  { %v13771_v19 = vadd.f32 %v13770_v41, %v20433_v61  ;;  %v20985_v45 = vadd.f32 %v13961_v60, %v13769_v18  ;;  %v8858_v61 = vld [vmem:[%s23037_s0 + $0xb68] sm:$0xff]  ;;  %v23148_v18 = vld [vmem:[#allocation56_spill] sm:$0xff] }
 0x214   :  { %v13772_v59 = vpop.f32.mrf.mxu1  ;;  %v13965_v44 = vpop.f32.mrf.mxu0 }
 0x215   :  { %v13773_v27 = vadd.f32 %v13772_v59, %v20437_v34  ;;  %v20988_v51 = vadd.f32 %v13963_v58, %v13771_v19  ;;  %v8870_v34 = vld [vmem:[%s23037_s0 + $0xbc8] sm:$0xff]  ;;  %v8501_v59 = vld [vmem:[%s23037_s0 + $0x40] sm:$0xff] }
 0x216   :  { %v13776_v4 = vpop.f32.mrf.mxu1  ;;  %14241 = vmatmul.mubr.bf16.gmra.mxu1 %v16224_v26  ;;  %v13969_v42 = vpop.f32.mrf.mxu0  ;;  %14434 = vmatmul.mubr.bf16.gmra.mxu0 %v16226_v36  ;;  %v16273_v3 = vcombine.high %v8858_v61, %v8870_v34  ;;  %v23150_v19 = vld [vmem:[#allocation57_spill] sm:$0xff] }
 0x217   :  { %v13777_v35 = vadd.f32 %v13776_v4, %v20453_v40  ;;  %v20991_v48 = vadd.f32 %v13965_v44, %v13773_v27  ;;  %14250 = vmatprep.mubr.bf16.mxu1 %v16249_v52  ;;  %14443 = vmatprep.mubr.bf16.mxu0 %v16251_v43  ;;  %v8871_v40 = vld [vmem:[%s23037_s0 + $0xbd0] sm:$0xff]  ;;  %v8512_v43 = vld [vmem:[%s23037_s0 + $0x98] sm:$0xff]  ;;  %v8513_v44 = vld [vmem:[%s23037_s0 + $0xa0] sm:$0xff] }
 0x218   :  { %v13778_v0 = vpop.f32.mrf.mxu1  ;;  %v13971_v24 = vpop.f32.mrf.mxu0  ;;  %v16275_v13 = vcombine.high %v8859_v50, %v8871_v40  ;;  %v23152_v27 = vld [vmem:[#allocation58_spill] sm:$0xff] }
 0x219   :  { %v13779_v62 = vadd.f32 %v13778_v0, %v23144_v56  ;;  %v21006_v49 = vadd.f32 %v13969_v42, %v13777_v35  ;;  %v16274_v56 = vcombine.low %v8859_v50, %v8871_v40  ;;  %v6105_v50 = vld [vmem:[#allocation12 + $0x12e0] sm:$0xff]  ;;  %v6125_v40 = vld [vmem:[#allocation12 + $0x12f0] sm:$0xff] }
 0x21a   :  { %v13780_v21 = vpop.f32.mrf.mxu1  ;;  %v13973_v16 = vpop.f32.mrf.mxu0 }
 0x21b   :  { %23145 = vst [vmem:[#allocation54_spill] sm:$0xff] %v21006_v49  ;;  %v13781_v20 = vadd.f32 %v13780_v21, %v23146_v31  ;;  %v21009_v8 = vadd.f32 %v13971_v24, %v13779_v62  ;;  %v16272_v24 = vcombine.low %v8858_v61, %v8870_v34  ;;  %v23154_v62 = vld [vmem:[#allocation59_spill] sm:$0xff] }
 0x21c   :  { %v13782_v33 = vpop.f32.mrf.mxu1  ;;  %v13975_v60 = vpop.f32.mrf.mxu0 }
 0x21d   :  { %23147 = vst [vmem:[#allocation55_spill] sm:$0xff] %v21009_v8  ;;  %v13783_v41 = vadd.f32 %v13782_v33, %v23148_v18  ;;  %v21012_v58 = vadd.f32 %v13973_v16, %v13781_v20 }
 0x21e   :  { %v13786_v26 = vpop.f32.mrf.mxu1  ;;  %14251 = vmatmul.mubr.bf16.gmra.mxu1 %v16248_v30  ;;  %v13979_v36 = vpop.f32.mrf.mxu0  ;;  %14444 = vmatmul.mubr.bf16.gmra.mxu0 %v16250_v9  ;;  %v15917_v30 = vcombine.high %v21020_v47, %v8512_v43  ;;  %v15919_v9 = vcombine.high %v8501_v59, %v8513_v44 }
 0x21f   :  { %23149 = vst [vmem:[#allocation56_spill] sm:$0xff] %v21012_v58  ;;  %v13787_v52 = vadd.f32 %v13786_v26, %v23150_v19  ;;  %v21015_v25 = vadd.f32 %v13975_v60, %v13783_v41  ;;  %14260 = vmatprep.mubr.bf16.mxu1 %v16273_v3  ;;  %14453 = vmatprep.mubr.bf16.mxu0 %v16275_v13  ;;  %v23156_v3 = vld [vmem:[#allocation60_spill] sm:$0xff]  ;;  %v23158_v41 = vld [vmem:[#allocation61_spill] sm:$0xff] }
 0x220   :  { %v13788_v6 = vpop.f32.mrf.mxu1  ;;  %v13981_v37 = vpop.f32.mrf.mxu0  ;;  %v21047_v19 = vld [vmem:[%s23037_s0 + $0xf8] sm:$0xff] }
 0x221   :  { %23151 = vst [vmem:[#allocation57_spill] sm:$0xff] %v21015_v25  ;;  %v13789_v4 = vadd.f32 %v13788_v6, %v23152_v27  ;;  %v21032_v42 = vadd.f32 %v13979_v36, %v13787_v52  ;;  %v21052_v52 = vld [vmem:[%s23037_s0 + $0x158] sm:$0xff]  ;;  %v21057_v6 = vld [vmem:[%s23037_s0 + $0x100] sm:$0xff] }
 0x222   :  { %v13790_v35 = vpop.f32.mrf.mxu1  ;;  %v13983_v0 = vpop.f32.mrf.mxu0 }
 0x223   :  { %23153 = vst [vmem:[#allocation58_spill] sm:$0xff] %v21032_v42  ;;  %v13791_v21 = vadd.f32 %v13790_v35, %v23154_v62  ;;  %v21035_v16 = vadd.f32 %v13981_v37, %v13789_v4  ;;  %v23160_v37 = vld [vmem:[#allocation62_spill] sm:$0xff] }
 0x224   :  { %v13792_v31 = vpop.f32.mrf.mxu1  ;;  %v13985_v20 = vpop.f32.mrf.mxu0  ;;  %v6075_v35 = vld [vmem:[#allocation12 + $0x12c8] sm:$0xff] }
 0x225   :  { %23155 = vst [vmem:[#allocation59_spill] sm:$0xff] %v21035_v16  ;;  %v13793_v13 = vadd.f32 %v13792_v31, %v23156_v3  ;;  %v21039_v33 = vadd.f32 %v13983_v0, %v13791_v21  ;;  %v6095_v0 = vld [vmem:[#allocation12 + $0x12d8] sm:$0xff]  ;;  %v15916_v21 = vcombine.low %v21020_v47, %v8512_v43  ;;  %v6765_v31 = vld [vmem:[#allocation12 + $0x14f0] sm:$0xff]  ;;  %v6065_v47 = vld [vmem:[#allocation12 + $0x12c0] sm:$0xff] }
 0x226   :  { %v13796_v60 = vpop.f32.mrf.mxu1  ;;  %14261 = vmatmul.mubr.bf16.gmra.mxu1 %v16272_v24  ;;  %v13989_v18 = vpop.f32.mrf.mxu0  ;;  %14454 = vmatmul.mubr.bf16.gmra.mxu0 %v16274_v56  ;;  %v21065_v24 = vld [vmem:[%s23037_s0 + $0x160] sm:$0xff]  ;;  %v6085_v43 = vld [vmem:[#allocation12 + $0x12d0] sm:$0xff] }
 0x227   :  { %23157 = vst [vmem:[#allocation60_spill] sm:$0xff] %v21039_v33  ;;  %v13797_v61 = vadd.f32 %v13796_v60, %v23158_v41  ;;  %v21042_v34 = vadd.f32 %v13985_v20, %v13793_v13  ;;  %14496 = vmatprep.mubr.bf16.mxu1 %v15917_v30  ;;  %14689 = vmatprep.mubr.bf16.mxu0 %v15919_v9  ;;  %v6745_v9 = vld [vmem:[#allocation12 + $0x14e0] sm:$0xff]  ;;  %v23162_v20 = vld [vmem:[#allocation63_spill] sm:$0xff] }
 0x228   :  { %v13798_v26 = vpop.f32.mrf.mxu1  ;;  %v13991_v36 = vpop.f32.mrf.mxu0  ;;  %v15918_v30 = vcombine.low %v8501_v59, %v8513_v44  ;;  %v18909_v60 = vpack.c.bf16 %v6125_v40, %v6105_v50  ;;  %v6715_v41 = vld [vmem:[#allocation12 + $0x14c8] sm:$0xff]  ;;  %v18941_v50 = vpack.c.bf16 %v6765_v31, %v6745_v9  ;;  %v6725_v16 = vld [vmem:[#allocation12 + $0x14d0] sm:$0xff]  ;;  %v18907_v25 = vpack.c.bf16 %v6085_v43, %v6065_v47 }
 0x229   :  { %23159 = vst [vmem:[#allocation61_spill] sm:$0xff] %v21042_v34  ;;  %v13799_v27 = vadd.f32 %v13798_v26, %v23160_v37  ;;  %v21060_v4 = vadd.f32 %v13989_v18, %v13797_v61  ;;  %v15941_v18 = vcombine.high %v21047_v19, %v21052_v52  ;;  %v6735_v61 = vld [vmem:[#allocation12 + $0x14d8] sm:$0xff]  ;;  %v15943_v34 = vcombine.high %v21057_v6, %v21065_v24  ;;  %v23164_v59 = vld [vmem:[#allocation27_spill] sm:$0xff] }
 0x22a   :  { %v13800_v56 = vpop.f32.mrf.mxu1  ;;  %v13993_v62 = vpop.f32.mrf.mxu0  ;;  %v5995_v47 = vld [vmem:[#allocation12 + $0x1288] sm:$0xff] }
 0x22b   :  { %23161 = vst [vmem:[#allocation62_spill] sm:$0xff] %v21060_v4  ;;  %v13801_v3 = vadd.f32 %v13800_v56, %v23162_v20  ;;  %v21069_v13 = vadd.f32 %v13991_v36, %v13799_v27  ;;  %v18908_v4 = vpack.c.bf16 %v6095_v0, %v6075_v35  ;;  %v6035_v36 = vld [vmem:[#allocation12 + $0x12a8] sm:$0xff]  ;;  %v6055_v27 = vld [vmem:[#allocation12 + $0x12b8] sm:$0xff]  ;;  %v18940_v20 = vpack.c.bf16 %v6735_v61, %v6715_v41  ;;  %v6045_v41 = vld [vmem:[#allocation12 + $0x12b0] sm:$0xff] }
 0x22c   :  { %v13802_v26 = vpop.f32.mrf.mxu1  ;;  %v13995_v37 = vpop.f32.mrf.mxu0  ;;  %v23166_v35 = vld [vmem:[#allocation28_spill] sm:$0xff]  ;;  %v23168_v61 = vld [vmem:[#allocation29_spill] sm:$0xff] }
 0x22d   :  { %23163 = vst [vmem:[#allocation63_spill] sm:$0xff] %v21069_v13  ;;  %v13803_v44 = vadd.f32 %v13802_v26, %v23164_v59  ;;  %v21076_v33 = vadd.f32 %v13993_v62, %v13801_v3  ;;  %v6705_v13 = vld [vmem:[#allocation12 + $0x14c0] sm:$0xff]  ;;  %v21084_v62 = vld [vmem:[%s23037_s0 + $0x1b8] sm:$0xff]  ;;  %v18906_v3 = vpack.c.bf16 %v6055_v27, %v6035_v36  ;;  %v6675_v59 = vld [vmem:[#allocation12 + $0x14a8] sm:$0xff]  ;;  %v15942_v36 = vcombine.low %v21057_v6, %v21065_v24 }
 0x22e   :  { %v13806_v40 = vpop.f32.mrf.mxu1  ;;  %14497 = vmatmul.mubr.bf16.vlgmr.msra.gmra.mxu1 %v15916_v21  ;;  %v13999_v56 = vpop.f32.mrf.mxu0  ;;  %14690 = vmatmul.mubr.bf16.vlgmr.msra.gmra.mxu0 %v15918_v30  ;;  %v21089_v21 = vld [vmem:[%s23037_s0 + $0x218] sm:$0xff]  ;;  %v21094_v30 = vld [vmem:[%s23037_s0 + $0x1c0] sm:$0xff]  ;;  %v18939_v43 = vpack.c.bf16 %v6725_v16, %v6705_v13  ;;  %v5985_v24 = vld [vmem:[#allocation12 + $0x1280] sm:$0xff] }
 0x22f   :  { %23165 = vst [vmem:[#allocation27_spill] sm:$0xff] %v21076_v33  ;;  %v13807_v0 = vadd.f32 %v13806_v40, %v23166_v35  ;;  %v21079_v42 = vadd.f32 %v13995_v37, %v13803_v44  ;;  %14851 = vmatpush1.bf16.msra.mxu1 %v18909_v60  ;;  %14506 = vmatprep.mubr.bf16.mxu1 %v15941_v18  ;;  %v21099_v60 = vld [vmem:[%s23037_s0 + $0x220] sm:$0xff]  ;;  %v6025_v18 = vld [vmem:[#allocation12 + $0x12a0] sm:$0xff] }
 0x230   :  { %v13808_v9 = vpop.f32.mrf.mxu1  ;;  %v14001_v31 = vpop.f32.mrf.mxu0  ;;  %14852 = vmatprep.subr.bf16.mxu1 %v18908_v4  ;;  %14699 = vmatprep.mubr.bf16.mxu0 %v15943_v34  ;;  %v6695_v44 = vld [vmem:[#allocation12 + $0x14b8] sm:$0xff]  ;;  %v15940_v34 = vcombine.low %v21047_v19, %v21052_v52  ;;  %v6665_v35 = vld [vmem:[#allocation12 + $0x14a0] sm:$0xff]  ;;  %v15965_v16 = vcombine.high %v21084_v62, %v21089_v21  ;;  %v15967_v13 = vcombine.high %v21094_v30, %v21099_v60 }
 0x231   :  { %23167 = vst [vmem:[#allocation28_spill] sm:$0xff] %v21079_v42  ;;  %v13809_v26 = vadd.f32 %v13808_v9, %v23168_v61  ;;  %v21102_v37 = vadd.f32 %v13999_v56, %v13807_v0  ;;  %15044 = vmatpush1.bf16.msra.mxu0 %v18941_v50  ;;  %v6015_v27 = vld [vmem:[#allocation12 + $0x1298] sm:$0xff]  ;;  %v6685_v42 = vld [vmem:[#allocation12 + $0x14b0] sm:$0xff]  ;;  %v23170_v9 = vld [vmem:[#allocation30_spill] sm:$0xff]  ;;  %v18905_v6 = vpack.c.bf16 %v6045_v41, %v6025_v18 }
 0x232   :  { %v13810_v40 = vpop.f32.mrf.mxu1  ;;  %v14003_v4 = vpop.f32.mrf.mxu0  ;;  %15045 = vmatprep.subr.bf16.mxu0 %v18940_v20  ;;  %v6635_v50 = vld [vmem:[#allocation12 + $0x1488] sm:$0xff]  ;;  %v6655_v19 = vld [vmem:[#allocation12 + $0x1498] sm:$0xff]  ;;  %v18938_v20 = vpack.c.bf16 %v6695_v44, %v6675_v59  ;;  %v6625_v41 = vld [vmem:[#allocation12 + $0x1480] sm:$0xff] }
 0x233   :  { %23169 = vst [vmem:[#allocation29_spill] sm:$0xff] %v21102_v37  ;;  %v13811_v56 = vadd.f32 %v13810_v40, %v23170_v9  ;;  %v21109_v0 = vadd.f32 %v14001_v31, %v13809_v26  ;;  %14853 = vmatpush1.bf16.msra.mxu1 %v18907_v25  ;;  %v23172_v37 = vld [vmem:[#allocation31_spill] sm:$0xff]  ;;  %v18904_v31 = vpack.c.bf16 %v6015_v27, %v5995_v47  ;;  %v5975_v9 = vld [vmem:[#allocation12 + $0x1278] sm:$0xff]  ;;  %v5945_v27 = vld [vmem:[#allocation12 + $0x1260] sm:$0xff] }
 0x234   :  { %v13812_v52 = vpop.f32.mrf.mxu1  ;;  %v14005_v61 = vpop.f32.mrf.mxu0  ;;  %14854 = vmatprep.subr.bf16.mxu1 %v18906_v3  ;;  %v6005_v25 = vld [vmem:[#allocation12 + $0x1290] sm:$0xff]  ;;  %v5955_v26 = vld [vmem:[#allocation12 + $0x1268] sm:$0xff]  ;;  %v18936_v18 = vpack.c.bf16 %v6655_v19, %v6635_v50  ;;  %v5935_v19 = vld [vmem:[#allocation12 + $0x1258] sm:$0xff] }
 0x235   :  { %23171 = vst [vmem:[#allocation30_spill] sm:$0xff] %v21109_v0  ;;  %v13813_v33 = vadd.f32 %v13812_v52, %v23172_v37  ;;  %v21116_v40 = vadd.f32 %v14003_v4, %v13811_v56  ;;  %15046 = vmatpush1.bf16.msra.mxu0 %v18939_v43  ;;  %v18937_v0 = vpack.c.bf16 %v6685_v42, %v6665_v35  ;;  %v21121_v3 = vld [vmem:[%s23037_s0 + $0x278] sm:$0xff]  ;;  %v21134_v43 = vld [vmem:[%s23037_s0 + $0x280] sm:$0xff]  ;;  %v21141_v56 = vld [vmem:[#allocation12 + $0x1248] sm:$0xff] }
 0x236   :  { %v13816_v58 = vpop.f32.mrf.mxu1  ;;  %14507 = vmatmul.mubr.bf16.gmra.mxu1 %v15940_v34  ;;  %v14009_v8 = vpop.f32.mrf.mxu0  ;;  %14700 = vmatmul.mubr.bf16.gmra.mxu0 %v15942_v36  ;;  %v6645_v37 = vld [vmem:[#allocation12 + $0x1490] sm:$0xff]  ;;  %v21139_v4 = vld [vmem:[%s23037_s0 + $0x2e0] sm:$0xff]  ;;  %v18903_v34 = vpack.c.bf16 %v6005_v25, %v5985_v24  ;;  %v18902_v36 = vpack.c.bf16 %v5975_v9, %v5955_v26  ;;  %v15966_v24 = vcombine.low %v21094_v30, %v21099_v60  ;;  %v23178_v26 = vld [vmem:[#allocation34_spill] sm:$0xff] }
 0x237   :  { %23173 = vst [vmem:[#allocation31_spill] sm:$0xff] %v21116_v40  ;;  %v23174_v59 = vld [vmem:[#allocation32_spill] sm:$0xff]  ;;  %v21124_v47 = vadd.f32 %v14005_v61, %v13813_v33  ;;  %14516 = vmatprep.mubr.bf16.mxu1 %v15965_v16  ;;  %14709 = vmatprep.mubr.bf16.mxu0 %v15967_v13  ;;  %v23176_v16 = vld [vmem:[#allocation33_spill] sm:$0xff]  ;;  %v18935_v52 = vpack.c.bf16 %v6645_v37, %v6625_v41  ;;  %v6595_v61 = vld [vmem:[#allocation12 + $0x1468] sm:$0xff] }
 0x238   :  { %v13817_v44 = vadd.f32 %v13816_v58, %v23174_v59  ;;  %v21129_v42 = vld [vmem:[%s23037_s0 + $0x2d8] sm:$0xff]  ;;  %v13818_v58 = vpop.f32.mrf.mxu1  ;;  %v14011_v33 = vpop.f32.mrf.mxu0  ;;  %14855 = vmatpush1.bf16.msra.mxu1 %v18905_v6  ;;  %15047 = vmatprep.subr.bf16.mxu0 %v18938_v20  ;;  %v6615_v59 = vld [vmem:[#allocation12 + $0x1478] sm:$0xff]  ;;  %v15964_v6 = vcombine.low %v21084_v62, %v21089_v21  ;;  %v6585_v20 = vld [vmem:[#allocation12 + $0x1460] sm:$0xff]  ;;  %v18900_v30 = vpack.c.bf16 %v5935_v19, %v21141_v56 }
 0x239   :  { %23175 = vst [vmem:[#allocation32_spill] sm:$0xff] %v21124_v47  ;;  %v5965_v35 = vld [vmem:[#allocation12 + $0x1270] sm:$0xff]  ;;  %v13819_v13 = vadd.f32 %v13818_v58, %v23176_v16  ;;  %14856 = vmatprep.subr.bf16.mxu1 %v18904_v31  ;;  %15048 = vmatpush1.bf16.msra.mxu0 %v18937_v0  ;;  %v15989_v0 = vcombine.high %v21121_v3, %v21129_v42  ;;  %v6555_v41 = vld [vmem:[#allocation12 + $0x1448] sm:$0xff]  ;;  %v6575_v37 = vld [vmem:[#allocation12 + $0x1458] sm:$0xff] }
 0x23a   :  { %v21144_v50 = vadd.f32 %v14009_v8, %v13817_v44  ;;  %v13820_v47 = vpop.f32.mrf.mxu1  ;;  %v14013_v40 = vpop.f32.mrf.mxu0  ;;  %15049 = vmatprep.subr.bf16.mxu0 %v18936_v18  ;;  %v6605_v25 = vld [vmem:[#allocation12 + $0x1470] sm:$0xff]  ;;  %v15991_v31 = vcombine.high %v21134_v43, %v21139_v4  ;;  %v18901_v21 = vpack.c.bf16 %v5965_v35, %v5945_v27  ;;  %v5905_v60 = vld [vmem:[#allocation12 + $0x1240] sm:$0xff]  ;;  %v18934_v18 = vpack.c.bf16 %v6615_v59, %v6595_v61  ;;  %v21177_v61 = vld [vmem:[%s23037_s0 + $0x340] sm:$0xff] }
 0x23b   :  { %v13821_v8 = vadd.f32 %v13820_v47, %v23178_v26  ;;  %v21151_v9 = vadd.f32 %v14011_v33, %v13819_v13  ;;  %v23180_v58 = vld [vmem:[#allocation35_spill] sm:$0xff]  ;;  %v5895_v26 = vld [vmem:[#allocation12 + $0x1238] sm:$0xff]  ;;  %v18932_v27 = vpack.c.bf16 %v6575_v37, %v6555_v41  ;;  %v6545_v35 = vld [vmem:[#allocation12 + $0x1440] sm:$0xff] }
 0x23c   :  { %23177 = vst [vmem:[#allocation33_spill] sm:$0xff] %v21144_v50  ;;  %v13822_v44 = vpop.f32.mrf.mxu1  ;;  %v14015_v62 = vpop.f32.mrf.mxu0  ;;  %14857 = vmatpush1.bf16.msra.mxu1 %v18903_v34  ;;  %v5925_v16 = vld [vmem:[#allocation12 + $0x1250] sm:$0xff]  ;;  %v5875_v13 = vld [vmem:[#allocation12 + $0x1228] sm:$0xff]  ;;  %v21182_v59 = vld [vmem:[%s23037_s0 + $0x3a0] sm:$0xff] }
 0x23d   :  { %23179 = vst [vmem:[#allocation34_spill] sm:$0xff] %v21151_v9  ;;  %v13823_v47 = vadd.f32 %v13822_v44, %v23180_v58  ;;  %v21159_v33 = vadd.f32 %v14013_v40, %v13821_v8  ;;  %14858 = vmatprep.subr.bf16.mxu1 %v18902_v36  ;;  %15050 = vmatpush1.bf16.msra.mxu0 %v18935_v52  ;;  %v21164_v34 = vld [vmem:[%s23037_s0 + $0x338] sm:$0xff]  ;;  %v5855_v44 = vld [vmem:[#allocation12 + $0x1218] sm:$0xff]  ;;  %v6515_v58 = vld [vmem:[#allocation12 + $0x1428] sm:$0xff] }
 0x23e   :  { %v18933_v9 = vpack.c.bf16 %v6605_v25, %v6585_v20  ;;  %v13826_v50 = vpop.f32.mrf.mxu1  ;;  %14517 = vmatmul.mubr.bf16.gmra.mxu1 %v15964_v6  ;;  %v14019_v49 = vpop.f32.mrf.mxu0  ;;  %14710 = vmatmul.mubr.bf16.gmra.mxu0 %v15966_v24  ;;  %v6565_v56 = vld [vmem:[#allocation12 + $0x1450] sm:$0xff]  ;;  %v18899_v24 = vpack.c.bf16 %v5925_v16, %v5905_v60  ;;  %v18898_v20 = vpack.c.bf16 %v5895_v26, %v5875_v13  ;;  %v5865_v25 = vld [vmem:[#allocation12 + $0x1220] sm:$0xff] }
 0x23f   :  { %23181 = vst [vmem:[#allocation35_spill] sm:$0xff] %v21159_v33  ;;  %v23182_v40 = vld [vmem:[#allocation36_spill] sm:$0xff]  ;;  %v21167_v36 = vadd.f32 %v14015_v62, %v13823_v47  ;;  %14526 = vmatprep.mubr.bf16.mxu1 %v15989_v0  ;;  %14719 = vmatprep.mubr.bf16.mxu0 %v15991_v31  ;;  %v21184_v0 = vld [vmem:[#allocation12 + $0x1208] sm:$0xff]  ;;  %v23184_v31 = vld [vmem:[#allocation37_spill] sm:$0xff]  ;;  %v18931_v62 = vpack.c.bf16 %v6565_v56, %v6545_v35 }
 0x240   :  { %v13827_v19 = vadd.f32 %v13826_v50, %v23182_v40  ;;  %v21172_v52 = vld [vmem:[%s23037_s0 + $0x398] sm:$0xff]  ;;  %v13828_v50 = vpop.f32.mrf.mxu1  ;;  %v14021_v6 = vpop.f32.mrf.mxu0  ;;  %14859 = vmatpush1.bf16.msra.mxu1 %v18901_v21  ;;  %15051 = vmatprep.subr.bf16.mxu0 %v18934_v18  ;;  %v6535_v47 = vld [vmem:[#allocation12 + $0x1438] sm:$0xff]  ;;  %v15988_v21 = vcombine.low %v21121_v3, %v21129_v42  ;;  %v15990_v60 = vcombine.low %v21134_v43, %v21139_v4  ;;  %v6505_v18 = vld [vmem:[#allocation12 + $0x1420] sm:$0xff] }
 0x241   :  { %23183 = vst [vmem:[#allocation36_spill] sm:$0xff] %v21167_v36  ;;  %v5885_v8 = vld [vmem:[#allocation12 + $0x1230] sm:$0xff]  ;;  %v13829_v41 = vadd.f32 %v13828_v50, %v23184_v31  ;;  %14860 = vmatprep.subr.bf16.mxu1 %v18900_v30  ;;  %15052 = vmatpush1.bf16.msra.mxu0 %v18933_v9  ;;  %v23186_v13 = vld [vmem:[#allocation38_spill] sm:$0xff]  ;;  %v16013_v9 = vcombine.high %v21164_v34, %v21172_v52  ;;  %v6495_v56 = vld [vmem:[#allocation12 + $0x1418] sm:$0xff] }
 0x242   :  { %v21187_v37 = vadd.f32 %v14019_v49, %v13827_v19  ;;  %v13830_v40 = vpop.f32.mrf.mxu1  ;;  %v14023_v36 = vpop.f32.mrf.mxu0  ;;  %15053 = vmatprep.subr.bf16.mxu0 %v18932_v27  ;;  %v6525_v16 = vld [vmem:[#allocation12 + $0x1430] sm:$0xff]  ;;  %v16015_v30 = vcombine.high %v21177_v61, %v21182_v59  ;;  %v6475_v35 = vld [vmem:[#allocation12 + $0x1408] sm:$0xff]  ;;  %v18897_v42 = vpack.c.bf16 %v5885_v8, %v5865_v25  ;;  %v18896_v43 = vpack.c.bf16 %v5855_v44, %v21184_v0  ;;  %v5825_v4 = vld [vmem:[#allocation12 + $0x1200] sm:$0xff] }
 0x243   :  { %v13831_v49 = vadd.f32 %v13830_v40, %v23186_v13  ;;  %v21194_v26 = vadd.f32 %v14021_v6, %v13829_v41  ;;  %v18930_v27 = vpack.c.bf16 %v6535_v47, %v6515_v58  ;;  %v23188_v50 = vld [vmem:[#allocation39_spill] sm:$0xff]  ;;  %v6455_v13 = vld [vmem:[#allocation12 + $0x13f8] sm:$0xff]  ;;  %v18928_v25 = vpack.c.bf16 %v6495_v56, %v6475_v35  ;;  %v6465_v8 = vld [vmem:[#allocation12 + $0x1400] sm:$0xff] }
 0x244   :  { %23185 = vst [vmem:[#allocation37_spill] sm:$0xff] %v21187_v37  ;;  %v13832_v19 = vpop.f32.mrf.mxu1  ;;  %v14025_v3 = vpop.f32.mrf.mxu0  ;;  %14861 = vmatpush1.bf16.msra.mxu1 %v18899_v24  ;;  %v5845_v41 = vld [vmem:[#allocation12 + $0x1210] sm:$0xff]  ;;  %v6435_v40 = vld [vmem:[#allocation12 + $0x13e8] sm:$0xff]  ;;  %v21220_v58 = vld [vmem:[%s23037_s0 + $0x400] sm:$0xff] }
 0x245   :  { %23187 = vst [vmem:[#allocation38_spill] sm:$0xff] %v21194_v26  ;;  %v13833_v31 = vadd.f32 %v13832_v19, %v23188_v50  ;;  %v21202_v6 = vadd.f32 %v14023_v36, %v13831_v49  ;;  %14862 = vmatprep.subr.bf16.mxu1 %v18898_v20  ;;  %15054 = vmatpush1.bf16.msra.mxu0 %v18931_v62  ;;  %v21207_v24 = vld [vmem:[%s23037_s0 + $0x3f8] sm:$0xff]  ;;  %v21225_v47 = vld [vmem:[%s23037_s0 + $0x460] sm:$0xff]  ;;  %v7075_v50 = vld [vmem:[#allocation12 + $0x15e8] sm:$0xff] }
 0x246   :  { %v18929_v26 = vpack.c.bf16 %v6525_v16, %v6505_v18  ;;  %v13836_v37 = vpop.f32.mrf.mxu1  ;;  %14527 = vmatmul.mubr.bf16.gmra.mxu1 %v15988_v21  ;;  %v14029_v33 = vpop.f32.mrf.mxu0  ;;  %14720 = vmatmul.mubr.bf16.gmra.mxu0 %v15990_v60  ;;  %v6485_v0 = vld [vmem:[#allocation12 + $0x1410] sm:$0xff]  ;;  %v18895_v60 = vpack.c.bf16 %v5845_v41, %v5825_v4  ;;  %v18926_v18 = vpack.c.bf16 %v6455_v13, %v6435_v40  ;;  %v6425_v16 = vld [vmem:[#allocation12 + $0x13e0] sm:$0xff]  ;;  %v6415_v19 = vld [vmem:[#allocation12 + $0x13d8] sm:$0xff] }
 0x247   :  { %23189 = vst [vmem:[#allocation39_spill] sm:$0xff] %v21202_v6  ;;  %v23190_v36 = vld [vmem:[#allocation40_spill] sm:$0xff]  ;;  %v21210_v20 = vadd.f32 %v14025_v3, %v13833_v31  ;;  %14536 = vmatprep.mubr.bf16.mxu1 %v16013_v9  ;;  %14729 = vmatprep.mubr.bf16.mxu0 %v16015_v30  ;;  %v21227_v9 = vld [vmem:[#allocation12 + $0x13c8] sm:$0xff]  ;;  %v23192_v30 = vld [vmem:[#allocation41_spill] sm:$0xff]  ;;  %v18927_v3 = vpack.c.bf16 %v6485_v0, %v6465_v8 }
 0x248   :  { %v13837_v44 = vadd.f32 %v13836_v37, %v23190_v36  ;;  %v21215_v62 = vld [vmem:[%s23037_s0 + $0x458] sm:$0xff]  ;;  %v13838_v37 = vpop.f32.mrf.mxu1  ;;  %v14031_v21 = vpop.f32.mrf.mxu0  ;;  %14863 = vmatpush1.bf16.msra.mxu1 %v18897_v42  ;;  %15055 = vmatprep.subr.bf16.mxu0 %v18930_v27  ;;  %v7095_v31 = vld [vmem:[#allocation12 + $0x15f8] sm:$0xff]  ;;  %v16012_v42 = vcombine.low %v21164_v34, %v21172_v52  ;;  %v16014_v4 = vcombine.low %v21177_v61, %v21182_v59  ;;  %v7065_v27 = vld [vmem:[#allocation12 + $0x15e0] sm:$0xff] }
 0x249   :  { %23191 = vst [vmem:[#allocation40_spill] sm:$0xff] %v21210_v20  ;;  %v6445_v49 = vld [vmem:[#allocation12 + $0x13f0] sm:$0xff]  ;;  %v13839_v35 = vadd.f32 %v13838_v37, %v23192_v30  ;;  %14864 = vmatprep.subr.bf16.mxu1 %v18896_v43  ;;  %15056 = vmatpush1.bf16.msra.mxu0 %v18929_v26  ;;  %v23194_v40 = vld [vmem:[#allocation42_spill] sm:$0xff]  ;;  %v16037_v26 = vcombine.high %v21207_v24, %v21215_v62  ;;  %v7055_v0 = vld [vmem:[#allocation12 + $0x15d8] sm:$0xff] }
 0x24a   :  { %v21230_v56 = vadd.f32 %v14029_v33, %v13837_v44  ;;  %v13840_v36 = vpop.f32.mrf.mxu1  ;;  %v14033_v20 = vpop.f32.mrf.mxu0  ;;  %15057 = vmatprep.subr.bf16.mxu0 %v18928_v25  ;;  %v7085_v41 = vld [vmem:[#allocation12 + $0x15f0] sm:$0xff]  ;;  %v16039_v43 = vcombine.high %v21220_v58, %v21225_v47  ;;  %v7035_v8 = vld [vmem:[#allocation12 + $0x15c8] sm:$0xff]  ;;  %v18925_v52 = vpack.c.bf16 %v6445_v49, %v6425_v16  ;;  %v18924_v61 = vpack.c.bf16 %v6415_v19, %v21227_v9  ;;  %v6385_v59 = vld [vmem:[#allocation12 + $0x13c0] sm:$0xff] }
 0x24b   :  { %v13841_v33 = vadd.f32 %v13840_v36, %v23194_v40  ;;  %v21237_v13 = vadd.f32 %v14031_v21, %v13839_v35  ;;  %v18958_v25 = vpack.c.bf16 %v7095_v31, %v7075_v50  ;;  %v23196_v37 = vld [vmem:[#allocation43_spill] sm:$0xff]  ;;  %v6375_v40 = vld [vmem:[#allocation12 + $0x13b8] sm:$0xff]  ;;  %v18956_v16 = vpack.c.bf16 %v7055_v0, %v7035_v8  ;;  %v7025_v49 = vld [vmem:[#allocation12 + $0x15c0] sm:$0xff] }
 0x24c   :  { %23193 = vst [vmem:[#allocation41_spill] sm:$0xff] %v21230_v56  ;;  %v13842_v44 = vpop.f32.mrf.mxu1  ;;  %v14035_v34 = vpop.f32.mrf.mxu0  ;;  %14865 = vmatpush1.bf16.msra.mxu1 %v18895_v60  ;;  %v6405_v35 = vld [vmem:[#allocation12 + $0x13d0] sm:$0xff]  ;;  %v6355_v36 = vld [vmem:[#allocation12 + $0x13a8] sm:$0xff]  ;;  %v21263_v50 = vld [vmem:[%s23037_s0 + $0x4c0] sm:$0xff] }
 0x24d   :  { %23195 = vst [vmem:[#allocation42_spill] sm:$0xff] %v21237_v13  ;;  %v13843_v30 = vadd.f32 %v13842_v44, %v23196_v37  ;;  %v21245_v21 = vadd.f32 %v14033_v20, %v13841_v33  ;;  %14866 = vmatprep.subr.bf16.mxu1 %v18926_v18  ;;  %15058 = vmatpush1.bf16.msra.mxu0 %v18927_v3  ;;  %v21250_v60 = vld [vmem:[%s23037_s0 + $0x4b8] sm:$0xff]  ;;  %v21268_v31 = vld [vmem:[%s23037_s0 + $0x520] sm:$0xff]  ;;  %v6995_v37 = vld [vmem:[#allocation12 + $0x15a8] sm:$0xff] }
 0x24e   :  { %v18957_v13 = vpack.c.bf16 %v7085_v41, %v7065_v27  ;;  %v13846_v56 = vpop.f32.mrf.mxu1  ;;  %14537 = vmatmul.mubr.bf16.gmra.mxu1 %v16012_v42  ;;  %v14039_v6 = vpop.f32.mrf.mxu0  ;;  %14730 = vmatmul.mubr.bf16.gmra.mxu0 %v16014_v4  ;;  %v7045_v9 = vld [vmem:[#allocation12 + $0x15d0] sm:$0xff]  ;;  %v18923_v4 = vpack.c.bf16 %v6405_v35, %v6385_v59  ;;  %v18922_v27 = vpack.c.bf16 %v6375_v40, %v6355_v36  ;;  %v6345_v41 = vld [vmem:[#allocation12 + $0x13a0] sm:$0xff]  ;;  %v6335_v44 = vld [vmem:[#allocation12 + $0x1398] sm:$0xff] }
 0x24f   :  { %23197 = vst [vmem:[#allocation43_spill] sm:$0xff] %v21245_v21  ;;  %v23198_v20 = vld [vmem:[#allocation44_spill] sm:$0xff]  ;;  %v21253_v18 = vadd.f32 %v14035_v34, %v13843_v30  ;;  %14546 = vmatprep.mubr.bf16.mxu1 %v16037_v26  ;;  %14739 = vmatprep.mubr.bf16.mxu0 %v16039_v43  ;;  %v21270_v26 = vld [vmem:[#allocation12 + $0x1388] sm:$0xff]  ;;  %v23200_v43 = vld [vmem:[#allocation45_spill] sm:$0xff]  ;;  %v18955_v34 = vpack.c.bf16 %v7045_v9, %v7025_v49 }
 0x250   :  { %v13847_v19 = vadd.f32 %v13846_v56, %v23198_v20  ;;  %v21258_v3 = vld [vmem:[%s23037_s0 + $0x518] sm:$0xff]  ;;  %v13848_v56 = vpop.f32.mrf.mxu1  ;;  %v14041_v42 = vpop.f32.mrf.mxu0  ;;  %14867 = vmatpush2.bf16.msra.mxu1 %v18925_v52  ;;  %15059 = vmatprep.subr.bf16.mxu0 %v18958_v25  ;;  %v7015_v30 = vld [vmem:[#allocation12 + $0x15b8] sm:$0xff]  ;;  %v16036_v52 = vcombine.low %v21207_v24, %v21215_v62  ;;  %v16038_v59 = vcombine.low %v21220_v58, %v21225_v47  ;;  %v6985_v25 = vld [vmem:[#allocation12 + $0x15a0] sm:$0xff] }
 0x251   :  { %23199 = vst [vmem:[#allocation44_spill] sm:$0xff] %v21253_v18  ;;  %v6365_v33 = vld [vmem:[#allocation12 + $0x13b0] sm:$0xff]  ;;  %v13849_v8 = vadd.f32 %v13848_v56, %v23200_v43  ;;  %14868 = vmatprep.subr.bf16.mxu1 %v18924_v61  ;;  %15060 = vmatpush2.bf16.msra.mxu0 %v18957_v13  ;;  %v23202_v36 = vld [vmem:[#allocation46_spill] sm:$0xff]  ;;  %v16061_v13 = vcombine.high %v21250_v60, %v21258_v3  ;;  %v6975_v9 = vld [vmem:[#allocation12 + $0x1598] sm:$0xff] }
 0x252   :  { %v21273_v0 = vadd.f32 %v14039_v6, %v13847_v19  ;;  %v13850_v20 = vpop.f32.mrf.mxu1  ;;  %v14043_v18 = vpop.f32.mrf.mxu0  ;;  %15061 = vmatprep.subr.bf16.mxu0 %v18956_v16  ;;  %v7005_v35 = vld [vmem:[#allocation12 + $0x15b0] sm:$0xff]  ;;  %v16063_v61 = vcombine.high %v21263_v50, %v21268_v31  ;;  %v6955_v49 = vld [vmem:[#allocation12 + $0x1588] sm:$0xff]  ;;  %v18921_v62 = vpack.c.bf16 %v6365_v33, %v6345_v41  ;;  %v18920_v58 = vpack.c.bf16 %v6335_v44, %v21270_v26  ;;  %v6305_v47 = vld [vmem:[#allocation12 + $0x1380] sm:$0xff] }
 0x253   :  { %v13851_v6 = vadd.f32 %v13850_v20, %v23202_v36  ;;  %v21280_v40 = vadd.f32 %v14041_v42, %v13849_v8  ;;  %v18954_v16 = vpack.c.bf16 %v7015_v30, %v6995_v37  ;;  %v23204_v56 = vld [vmem:[#allocation47_spill] sm:$0xff]  ;;  %v6295_v36 = vld [vmem:[#allocation12 + $0x1378] sm:$0xff]  ;;  %v18952_v41 = vpack.c.bf16 %v6975_v9, %v6955_v49  ;;  %v6945_v33 = vld [vmem:[#allocation12 + $0x1580] sm:$0xff] }
 0x254   :  { %23201 = vst [vmem:[#allocation45_spill] sm:$0xff] %v21273_v0  ;;  %v13852_v19 = vpop.f32.mrf.mxu1  ;;  %v14045_v24 = vpop.f32.mrf.mxu0  ;;  %14869 = vmatpush2.bf16.msra.mxu1 %v18923_v4  ;;  %v6325_v8 = vld [vmem:[#allocation12 + $0x1390] sm:$0xff]  ;;  %v6275_v20 = vld [vmem:[#allocation12 + $0x1368] sm:$0xff]  ;;  %v21306_v37 = vld [vmem:[%s23037_s0 + $0x580] sm:$0xff] }
 0x255   :  { %23203 = vst [vmem:[#allocation46_spill] sm:$0xff] %v21280_v40  ;;  %v13853_v43 = vadd.f32 %v13852_v19, %v23204_v56  ;;  %v21288_v42 = vadd.f32 %v14043_v18, %v13851_v6  ;;  %14870 = vmatprep.subr.bf16.mxu1 %v18922_v27  ;;  %15062 = vmatpush2.bf16.msra.mxu0 %v18955_v34  ;;  %v21293_v4 = vld [vmem:[%s23037_s0 + $0x578] sm:$0xff]  ;;  %v21311_v30 = vld [vmem:[%s23037_s0 + $0x5e0] sm:$0xff]  ;;  %v6915_v56 = vld [vmem:[#allocation12 + $0x1568] sm:$0xff] }
 0x256   :  { %v18953_v40 = vpack.c.bf16 %v7005_v35, %v6985_v25  ;;  %v13856_v0 = vpop.f32.mrf.mxu1  ;;  %14547 = vmatmul.mubr.bf16.gmra.mxu1 %v16036_v52  ;;  %v14049_v21 = vpop.f32.mrf.mxu0  ;;  %14740 = vmatmul.mubr.bf16.gmra.mxu0 %v16038_v59  ;;  %v6965_v26 = vld [vmem:[#allocation12 + $0x1590] sm:$0xff]  ;;  %v18919_v59 = vpack.c.bf16 %v6325_v8, %v6305_v47  ;;  %v18918_v25 = vpack.c.bf16 %v6295_v36, %v6275_v20  ;;  %v6265_v35 = vld [vmem:[#allocation12 + $0x1360] sm:$0xff]  ;;  %v6255_v19 = vld [vmem:[#allocation12 + $0x1358] sm:$0xff] }
 0x257   :  { %23205 = vst [vmem:[#allocation47_spill] sm:$0xff] %v21288_v42  ;;  %v23206_v18 = vld [vmem:[#allocation48_spill] sm:$0xff]  ;;  %v21296_v27 = vadd.f32 %v14045_v24, %v13853_v43  ;;  %14556 = vmatprep.mubr.bf16.mxu1 %v16061_v13  ;;  %14749 = vmatprep.mubr.bf16.mxu0 %v16063_v61  ;;  %v21313_v13 = vld [vmem:[#allocation12 + $0x1348] sm:$0xff]  ;;  %v23208_v61 = vld [vmem:[#allocation49_spill] sm:$0xff]  ;;  %v18951_v24 = vpack.c.bf16 %v6965_v26, %v6945_v33 }
 0x258   :  { %v13857_v44 = vadd.f32 %v13856_v0, %v23206_v18  ;;  %v21301_v34 = vld [vmem:[%s23037_s0 + $0x5d8] sm:$0xff]  ;;  %v13858_v0 = vpop.f32.mrf.mxu1  ;;  %v14051_v52 = vpop.f32.mrf.mxu0  ;;  %14871 = vmatpush2.bf16.msra.mxu1 %v18921_v62  ;;  %15063 = vmatprep.subr.bf16.mxu0 %v18954_v16  ;;  %v6935_v43 = vld [vmem:[#allocation12 + $0x1578] sm:$0xff]  ;;  %v16060_v62 = vcombine.low %v21250_v60, %v21258_v3  ;;  %v16062_v47 = vcombine.low %v21263_v50, %v21268_v31  ;;  %v6905_v16 = vld [vmem:[#allocation12 + $0x1560] sm:$0xff] }
 0x259   :  { %23207 = vst [vmem:[#allocation48_spill] sm:$0xff] %v21296_v27  ;;  %v6285_v6 = vld [vmem:[#allocation12 + $0x1370] sm:$0xff]  ;;  %v13859_v49 = vadd.f32 %v13858_v0, %v23208_v61  ;;  %14872 = vmatprep.subr.bf16.mxu1 %v18920_v58  ;;  %15064 = vmatpush2.bf16.msra.mxu0 %v18953_v40  ;;  %v23210_v20 = vld [vmem:[#allocation50_spill] sm:$0xff]  ;;  %v16085_v40 = vcombine.high %v21293_v4, %v21301_v34  ;;  %v6895_v26 = vld [vmem:[#allocation12 + $0x1558] sm:$0xff] }
 0x25a   :  { %v21316_v9 = vadd.f32 %v14049_v21, %v13857_v44  ;;  %v13860_v18 = vpop.f32.mrf.mxu1  ;;  %v14053_v27 = vpop.f32.mrf.mxu0  ;;  %15065 = vmatprep.subr.bf16.mxu0 %v18952_v41  ;;  %v6925_v8 = vld [vmem:[#allocation12 + $0x1570] sm:$0xff]  ;;  %v16087_v58 = vcombine.high %v21306_v37, %v21311_v30  ;;  %v6875_v33 = vld [vmem:[#allocation12 + $0x1548] sm:$0xff]  ;;  %v18917_v3 = vpack.c.bf16 %v6285_v6, %v6265_v35  ;;  %v18916_v50 = vpack.c.bf16 %v6255_v19, %v21313_v13  ;;  %v6225_v31 = vld [vmem:[#allocation12 + $0x1340] sm:$0xff] }
 0x25b   :  { %v13861_v21 = vadd.f32 %v13860_v18, %v23210_v20  ;;  %v21323_v36 = vadd.f32 %v14051_v52, %v13859_v49  ;;  %v18950_v41 = vpack.c.bf16 %v6935_v43, %v6915_v56  ;;  %v23212_v0 = vld [vmem:[#allocation51_spill] sm:$0xff]  ;;  %v6215_v20 = vld [vmem:[#allocation12 + $0x1338] sm:$0xff]  ;;  %v18948_v35 = vpack.c.bf16 %v6895_v26, %v6875_v33  ;;  %v6865_v6 = vld [vmem:[#allocation12 + $0x1540] sm:$0xff] }
 0x25c   :  { %23209 = vst [vmem:[#allocation49_spill] sm:$0xff] %v21316_v9  ;;  %v13862_v44 = vpop.f32.mrf.mxu1  ;;  %v14055_v60 = vpop.f32.mrf.mxu0  ;;  %14873 = vmatpush2.bf16.msra.mxu1 %v18919_v59  ;;  %v6245_v49 = vld [vmem:[#allocation12 + $0x1350] sm:$0xff]  ;;  %v6195_v18 = vld [vmem:[#allocation12 + $0x1328] sm:$0xff]  ;;  %v21349_v56 = vld [vmem:[%s23037_s0 + $0x640] sm:$0xff] }
 0x25d   :  { %23211 = vst [vmem:[#allocation50_spill] sm:$0xff] %v21323_v36  ;;  %v13863_v61 = vadd.f32 %v13862_v44, %v23212_v0  ;;  %v21331_v52 = vadd.f32 %v14053_v27, %v13861_v21  ;;  %14874 = vmatprep.subr.bf16.mxu1 %v18918_v25  ;;  %15066 = vmatpush2.bf16.msra.mxu0 %v18951_v24  ;;  %v21336_v59 = vld [vmem:[%s23037_s0 + $0x638] sm:$0xff]  ;;  %v21354_v43 = vld [vmem:[%s23037_s0 + $0x6a0] sm:$0xff]  ;;  %v6825_v0 = vld [vmem:[#allocation12 + $0x1520] sm:$0xff] }
 0x25e   :  { %v18949_v36 = vpack.c.bf16 %v6925_v8, %v6905_v16  ;;  %v13866_v9 = vpop.f32.mrf.mxu1  ;;  %14557 = vmatmul.mubr.bf16.gmra.mxu1 %v16060_v62  ;;  %v14059_v42 = vpop.f32.mrf.mxu0  ;;  %14750 = vmatmul.mubr.bf16.gmra.mxu0 %v16062_v47  ;;  %v6885_v13 = vld [vmem:[#allocation12 + $0x1550] sm:$0xff]  ;;  %v18915_v47 = vpack.c.bf16 %v6245_v49, %v6225_v31  ;;  %v18914_v16 = vpack.c.bf16 %v6215_v20, %v6195_v18  ;;  %v6185_v8 = vld [vmem:[#allocation12 + $0x1320] sm:$0xff]  ;;  %v6175_v49 = vld [vmem:[#allocation12 + $0x1318] sm:$0xff] }
 0x25f   :  { %v23213_v27 = vld [vmem:[#allocation52_spill] sm:$0xff]  ;;  %v21339_v25 = vadd.f32 %v14055_v60, %v13863_v61  ;;  %14566 = vmatprep.mubr.bf16.mxu1 %v16085_v40  ;;  %14759 = vmatprep.mubr.bf16.mxu0 %v16087_v58  ;;  %v6835_v40 = vld [vmem:[#allocation12 + $0x1528] sm:$0xff]  ;;  %v23215_v58 = vld [vmem:[#allocation53_spill] sm:$0xff]  ;;  %v18947_v44 = vpack.c.bf16 %v6885_v13, %v6865_v6  ;;  %v16086_v31 = vcombine.low %v21306_v37, %v21311_v30 }
 0x260   :  { %v13867_v19 = vadd.f32 %v13866_v9, %v23213_v27  ;;  %v21344_v24 = vld [vmem:[%s23037_s0 + $0x698] sm:$0xff]  ;;  %v13868_v9 = vpop.f32.mrf.mxu1  ;;  %v14061_v62 = vpop.f32.mrf.mxu0  ;;  %14875 = vmatpush2.bf16.msra.mxu1 %v18917_v3  ;;  %15067 = vmatprep.subr.bf16.mxu0 %v18950_v41  ;;  %v6855_v60 = vld [vmem:[#allocation12 + $0x1538] sm:$0xff]  ;;  %v16084_v3 = vcombine.low %v21293_v4, %v21301_v34  ;;  %v6155_v41 = vld [vmem:[#allocation12 + $0x1308] sm:$0xff] }
 0x261   :  { %23214 = vst [vmem:[#allocation51_spill] sm:$0xff] %v21339_v25  ;;  %v6205_v21 = vld [vmem:[#allocation12 + $0x1330] sm:$0xff]  ;;  %v13869_v33 = vadd.f32 %v13868_v9, %v23215_v58  ;;  %14876 = vmatprep.subr.bf16.mxu1 %v18916_v50  ;;  %15068 = vmatpush2.bf16.msra.mxu0 %v18949_v36  ;;  %v16109_v36 = vcombine.high %v21336_v59, %v21344_v24  ;;  %v6795_v20 = vld [vmem:[#allocation12 + $0x1508] sm:$0xff]  ;;  %v6815_v6 = vld [vmem:[#allocation12 + $0x1518] sm:$0xff] }
 0x262   :  { %v21357_v26 = vadd.f32 %v14059_v42, %v13867_v19  ;;  %v6845_v61 = vld [vmem:[#allocation12 + $0x1530] sm:$0xff]  ;;  %v13870_v27 = vpop.f32.mrf.mxu1  ;;  %v14063_v25 = vpop.f32.mrf.mxu0  ;;  %15069 = vmatprep.subr.bf16.mxu0 %v18948_v35  ;;  %v16111_v50 = vcombine.high %v21349_v56, %v21354_v43  ;;  %v18913_v34 = vpack.c.bf16 %v6205_v21, %v6185_v8  ;;  %v6145_v37 = vld [vmem:[#allocation12 + $0x1300] sm:$0xff]  ;;  %v18946_v30 = vpack.c.bf16 %v6855_v60, %v6835_v40  ;;  %v7415_v8 = vld [vmem:[#allocation12 + $0x16f8] sm:$0xff] }
 0x263   :  { %v13871_v42 = vadd.f32 %v13870_v27, %v20836_v12  ;;  %v21364_v18 = vadd.f32 %v14061_v62, %v13869_v33  ;;  %v18945_v35 = vpack.c.bf16 %v6845_v61, %v6825_v0  ;;  %v18912_v9 = vpack.c.bf16 %v6175_v49, %v6155_v41  ;;  %v6165_v62 = vld [vmem:[#allocation12 + $0x1310] sm:$0xff]  ;;  %v6785_v58 = vld [vmem:[#allocation12 + $0x1500] sm:$0xff]  ;;  %v8717_v60 = vld [vmem:[%s23037_s0 + $0x700] sm:$0xff] }
 0x264   :  { %23216 = vst [vmem:[#allocation52_spill] sm:$0xff] %v21357_v26  ;;  %v13872_v13 = vpop.f32.mrf.mxu1  ;;  %v14065_v4 = vpop.f32.mrf.mxu0  ;;  %14877 = vmatpush2.bf16.msra.mxu1 %v18915_v47  ;;  %v6805_v33 = vld [vmem:[#allocation12 + $0x1510] sm:$0xff]  ;;  %v18944_v26 = vpack.c.bf16 %v6815_v6, %v6795_v20  ;;  %v7395_v47 = vld [vmem:[#allocation12 + $0x16e8] sm:$0xff]  ;;  %v18911_v0 = vpack.c.bf16 %v6165_v62, %v6145_v37 }
 0x265   :  { %23217 = vst [vmem:[#allocation53_spill] sm:$0xff] %v21364_v18  ;;  %v13873_v19 = vadd.f32 %v13872_v13, %v20839_v23  ;;  %v21371_v12 = vadd.f32 %v14063_v25, %v13871_v42  ;;  %14878 = vmatprep.subr.bf16.mxu1 %v18914_v16  ;;  %15070 = vmatpush2.bf16.msra.mxu0 %v18947_v44  ;;  %v8716_v23 = vld [vmem:[%s23037_s0 + $0x6f8] sm:$0xff] }
 0x266   :  { %v13876_v27 = vpop.f32.mrf.mxu1  ;;  %14567 = vmatmul.mubr.bf16.gmra.mxu1 %v16084_v3  ;;  %v14069_v18 = vpop.f32.mrf.mxu0  ;;  %14760 = vmatmul.mubr.bf16.gmra.mxu0 %v16086_v31  ;;  %v8728_v44 = vld [vmem:[%s23037_s0 + $0x758] sm:$0xff]  ;;  %v18943_v61 = vpack.c.bf16 %v6805_v33, %v6785_v58  ;;  %v18974_v41 = vpack.c.bf16 %v7415_v8, %v7395_v47 }
 0x267   :  { %v13877_v21 = vadd.f32 %v13876_v27, %v20856_v7  ;;  %v21374_v40 = vadd.f32 %v14065_v4, %v13873_v19  ;;  %14576 = vmatprep.mubr.bf16.mxu1 %v16109_v36  ;;  %14769 = vmatprep.mubr.bf16.mxu0 %v16111_v50  ;;  %v8729_v7 = vld [vmem:[%s23037_s0 + $0x760] sm:$0xff]  ;;  %v16108_v36 = vcombine.low %v21336_v59, %v21344_v24 }
 0x268   :  { %v13878_v25 = vpop.f32.mrf.mxu1  ;;  %v14071_v16 = vpop.f32.mrf.mxu0  ;;  %14879 = vmatpush2.bf16.msra.mxu1 %v18913_v34  ;;  %15071 = vmatprep.subr.bf16.mxu0 %v18946_v30  ;;  %v16110_v50 = vcombine.low %v21349_v56, %v21354_v43  ;;  %v16133_v13 = vcombine.high %v8716_v23, %v8728_v44  ;;  %v8740_v43 = vld [vmem:[%s23037_s0 + $0x7b8] sm:$0xff]  ;;  %v16132_v33 = vcombine.low %v8716_v23, %v8728_v44 }
 0x269   :  { %v13879_v3 = vadd.f32 %v13878_v25, %v20863_v22  ;;  %v21389_v31 = vadd.f32 %v14069_v18, %v13877_v21  ;;  %14880 = vmatprep.subr.bf16.mxu1 %v18912_v9  ;;  %15072 = vmatpush2.bf16.msra.mxu0 %v18945_v35  ;;  %v16135_v22 = vcombine.high %v8717_v60, %v8729_v7  ;;  %v8752_v30 = vld [vmem:[%s23037_s0 + $0x818] sm:$0xff]  ;;  %v8741_v35 = vld [vmem:[%s23037_s0 + $0x7c0] sm:$0xff] }
 0x26a   :  { %v13880_v49 = vpop.f32.mrf.mxu1  ;;  %v14073_v42 = vpop.f32.mrf.mxu0  ;;  %15073 = vmatprep.subr.bf16.mxu0 %v18944_v26  ;;  %v16134_v27 = vcombine.low %v8717_v60, %v8729_v7  ;;  %v16157_v21 = vcombine.high %v8740_v43, %v8752_v30  ;;  %v8765_v7 = vld [vmem:[%s23037_s0 + $0x880] sm:$0xff] }
 0x26b   :  { %v13881_v20 = vadd.f32 %v13880_v49, %v20867_v63  ;;  %v21396_v6 = vadd.f32 %v14071_v16, %v13879_v3 }
 0x26c   :  { %v13882_v18 = vpop.f32.mrf.mxu1  ;;  %v14075_v4 = vpop.f32.mrf.mxu0  ;;  %14881 = vmatpush2.bf16.msra.mxu1 %v18911_v0 }
 0x26d   :  { %v13883_v34 = vadd.f32 %v13882_v18, %v20869_v28  ;;  %v21399_v37 = vadd.f32 %v14073_v42, %v13881_v20  ;;  %15074 = vmatpush2.bf16.msra.mxu0 %v18943_v61  ;;  %15236 = vmatprep.subr.bf16.mxu1 %v18974_v41 }
 0x26e   :  { %v14112_v59 = vpop.f32.mrf.mxu1  ;;  %14577 = vmatmul.mubr.bf16.gmra.mxu1 %v16108_v36  ;;  %v14305_v24 = vpop.f32.mrf.mxu0  ;;  %14770 = vmatmul.mubr.bf16.gmra.mxu0 %v16110_v50 }
 0x26f   :  { %v21401_v56 = vadd.f32 %v14075_v4, %v13883_v34  ;;  %v14113_v63 = vadd.f32 %v14112_v59, %v20885_v29  ;;  %14586 = vmatprep.mubr.bf16.mxu1 %v16133_v13  ;;  %14779 = vmatprep.mubr.bf16.mxu0 %v16135_v22  ;;  %v8753_v29 = vld [vmem:[%s23037_s0 + $0x820] sm:$0xff]  ;;  %v16156_v13 = vcombine.low %v8740_v43, %v8752_v30 }
 0x270   :  { %v14114_v26 = vpop.f32.mrf.mxu1  ;;  %v14307_v28 = vpop.f32.mrf.mxu0  ;;  %v16159_v25 = vcombine.high %v8741_v35, %v8753_v29  ;;  %v16158_v22 = vcombine.low %v8741_v35, %v8753_v29  ;;  %v8789_v29 = vld [vmem:[%s23037_s0 + $0x940] sm:$0xff] }
 0x271   :  { %v14115_v19 = vadd.f32 %v14114_v26, %v20889_v15  ;;  %v21417_v9 = vadd.f32 %v14305_v24, %v14113_v63 }
 0x272   :  { %v14116_v62 = vpop.f32.mrf.mxu1  ;;  %v14309_v58 = vpop.f32.mrf.mxu0 }
 0x273   :  { %v14117_v47 = vadd.f32 %v14116_v62, %v20892_v46  ;;  %v21420_v8 = vadd.f32 %v14307_v28, %v14115_v19  ;;  %v8764_v46 = vld [vmem:[%s23037_s0 + $0x878] sm:$0xff] }
 0x274   :  { %v14118_v16 = vpop.f32.mrf.mxu1  ;;  %v14311_v0 = vpop.f32.mrf.mxu0 }
 0x275   :  { %v14119_v61 = vadd.f32 %v14118_v16, %v20895_v14  ;;  %v21423_v3 = vadd.f32 %v14309_v58, %v14117_v47  ;;  %v8776_v14 = vld [vmem:[%s23037_s0 + $0x8d8] sm:$0xff] }
 0x276   :  { %v14122_v41 = vpop.f32.mrf.mxu1  ;;  %14587 = vmatmul.mubr.bf16.gmra.mxu1 %v16132_v33  ;;  %v14315_v15 = vpop.f32.mrf.mxu0  ;;  %14780 = vmatmul.mubr.bf16.gmra.mxu0 %v16134_v27  ;;  %v16181_v34 = vcombine.high %v8764_v46, %v8776_v14 }
 0x277   :  { %v14123_v49 = vadd.f32 %v14122_v41, %v20910_v39  ;;  %v21426_v23 = vadd.f32 %v14311_v0, %v14119_v61  ;;  %14596 = vmatprep.mubr.bf16.mxu1 %v16157_v21  ;;  %14789 = vmatprep.mubr.bf16.mxu0 %v16159_v25  ;;  %v8777_v39 = vld [vmem:[%s23037_s0 + $0x8e0] sm:$0xff]  ;;  %v16180_v21 = vcombine.low %v8764_v46, %v8776_v14 }
 0x278   :  { %v14124_v44 = vpop.f32.mrf.mxu1  ;;  %v14317_v60 = vpop.f32.mrf.mxu0  ;;  %v16183_v59 = vcombine.high %v8765_v7, %v8777_v39  ;;  %v16182_v25 = vcombine.low %v8765_v7, %v8777_v39  ;;  %v8813_v39 = vld [vmem:[%s23037_s0 + $0xa00] sm:$0xff] }
 0x279   :  { %v14125_v42 = vadd.f32 %v14124_v44, %v20913_v17  ;;  %v21441_v36 = vadd.f32 %v14315_v15, %v14123_v49 }
 0x27a   :  { %v14126_v50 = vpop.f32.mrf.mxu1  ;;  %v14319_v20 = vpop.f32.mrf.mxu0 }
 0x27b   :  { %v14127_v18 = vadd.f32 %v14126_v50, %v20916_v2  ;;  %v21444_v4 = vadd.f32 %v14317_v60, %v14125_v42  ;;  %v8788_v2 = vld [vmem:[%s23037_s0 + $0x938] sm:$0xff] }
 0x27c   :  { %v14128_v24 = vpop.f32.mrf.mxu1  ;;  %v14321_v63 = vpop.f32.mrf.mxu0 }
 0x27d   :  { %v14129_v26 = vadd.f32 %v14128_v24, %v20919_v55  ;;  %v21447_v28 = vadd.f32 %v14319_v20, %v14127_v18  ;;  %v8800_v55 = vld [vmem:[%s23037_s0 + $0x998] sm:$0xff] }
 0x27e   :  { %v14132_v19 = vpop.f32.mrf.mxu1  ;;  %14597 = vmatmul.mubr.bf16.gmra.mxu1 %v16156_v13  ;;  %v14325_v17 = vpop.f32.mrf.mxu0  ;;  %14790 = vmatmul.mubr.bf16.gmra.mxu0 %v16158_v22  ;;  %v16205_v61 = vcombine.high %v8788_v2, %v8800_v55 }
 0x27f   :  { %v14133_v62 = vadd.f32 %v14132_v19, %v20934_v54  ;;  %v21450_v43 = vadd.f32 %v14321_v63, %v14129_v26  ;;  %14606 = vmatprep.mubr.bf16.mxu1 %v16181_v34  ;;  %14799 = vmatprep.mubr.bf16.mxu0 %v16183_v59  ;;  %v8801_v54 = vld [vmem:[%s23037_s0 + $0x9a0] sm:$0xff]  ;;  %v16204_v34 = vcombine.low %v8788_v2, %v8800_v55 }
 0x280   :  { %v14134_v30 = vpop.f32.mrf.mxu1  ;;  %v14327_v35 = vpop.f32.mrf.mxu0  ;;  %v16207_v41 = vcombine.high %v8789_v29, %v8801_v54  ;;  %v16206_v59 = vcombine.low %v8789_v29, %v8801_v54  ;;  %v8837_v54 = vld [vmem:[%s23037_s0 + $0xac0] sm:$0xff] }
 0x281   :  { %v14135_v58 = vadd.f32 %v14134_v30, %v20937_v1  ;;  %v21465_v33 = vadd.f32 %v14325_v17, %v14133_v62 }
 0x282   :  { %v14136_v27 = vpop.f32.mrf.mxu1  ;;  %v14329_v47 = vpop.f32.mrf.mxu0 }
 0x283   :  { %v14137_v16 = vadd.f32 %v14136_v27, %v20940_v53  ;;  %v21468_v0 = vadd.f32 %v14327_v35, %v14135_v58  ;;  %v8812_v53 = vld [vmem:[%s23037_s0 + $0x9f8] sm:$0xff] }
 0x284   :  { %v14138_v15 = vpop.f32.mrf.mxu1  ;;  %v14331_v49 = vpop.f32.mrf.mxu0 }
 0x285   :  { %v14139_v44 = vadd.f32 %v14138_v15, %v20943_v11  ;;  %v21471_v60 = vadd.f32 %v14329_v47, %v14137_v16  ;;  %v8824_v11 = vld [vmem:[%s23037_s0 + $0xa58] sm:$0xff] }
 0x286   :  { %v14142_v42 = vpop.f32.mrf.mxu1  ;;  %14607 = vmatmul.mubr.bf16.gmra.mxu1 %v16180_v21  ;;  %v14335_v1 = vpop.f32.mrf.mxu0  ;;  %14800 = vmatmul.mubr.bf16.gmra.mxu0 %v16182_v25  ;;  %v16229_v26 = vcombine.high %v8812_v53, %v8824_v11 }
 0x287   :  { %v14143_v50 = vadd.f32 %v14142_v42, %v20958_v10  ;;  %v21474_v46 = vadd.f32 %v14331_v49, %v14139_v44  ;;  %14616 = vmatprep.mubr.bf16.mxu1 %v16205_v61  ;;  %14809 = vmatprep.mubr.bf16.mxu0 %v16207_v41  ;;  %v8825_v10 = vld [vmem:[%s23037_s0 + $0xa60] sm:$0xff]  ;;  %v16228_v61 = vcombine.low %v8812_v53, %v8824_v11 }
 0x288   :  { %v14144_v14 = vpop.f32.mrf.mxu1  ;;  %v14337_v7 = vpop.f32.mrf.mxu0  ;;  %v16231_v19 = vcombine.high %v8813_v39, %v8825_v10  ;;  %v16230_v41 = vcombine.low %v8813_v39, %v8825_v10  ;;  %v8861_v10 = vld [vmem:[%s23037_s0 + $0xb80] sm:$0xff] }
 0x289   :  { %v14145_v20 = vadd.f32 %v14144_v14, %v20961_v32  ;;  %v21489_v13 = vadd.f32 %v14335_v1, %v14143_v50 }
 0x28a   :  { %v14146_v22 = vpop.f32.mrf.mxu1  ;;  %v14339_v18 = vpop.f32.mrf.mxu0 }
 0x28b   :  { %v14147_v24 = vadd.f32 %v14146_v22, %v20964_v38  ;;  %v21492_v63 = vadd.f32 %v14337_v7, %v14145_v20  ;;  %v8836_v38 = vld [vmem:[%s23037_s0 + $0xab8] sm:$0xff]  ;;  %v23218_v22 = vld [vmem:[#allocation54_spill] sm:$0xff] }
 0x28c   :  { %v14148_v17 = vpop.f32.mrf.mxu1  ;;  %v14341_v62 = vpop.f32.mrf.mxu0 }
 0x28d   :  { %v14149_v30 = vadd.f32 %v14148_v17, %v20967_v57  ;;  %v21495_v35 = vadd.f32 %v14339_v18, %v14147_v24  ;;  %v8848_v57 = vld [vmem:[%s23037_s0 + $0xb18] sm:$0xff] }
 0x28e   :  { %v14152_v58 = vpop.f32.mrf.mxu1  ;;  %14617 = vmatmul.mubr.bf16.gmra.mxu1 %v16204_v34  ;;  %v14345_v32 = vpop.f32.mrf.mxu0  ;;  %14810 = vmatmul.mubr.bf16.gmra.mxu0 %v16206_v59  ;;  %v16253_v44 = vcombine.high %v8836_v38, %v8848_v57  ;;  %v8873_v34 = vld [vmem:[%s23037_s0 + $0xbe0] sm:$0xff]  ;;  %v23219_v59 = vld [vmem:[#allocation55_spill] sm:$0xff] }
 0x28f   :  { %v14153_v27 = vadd.f32 %v14152_v58, %v20982_v5  ;;  %v21498_v2 = vadd.f32 %v14341_v62, %v14149_v30  ;;  %14626 = vmatprep.mubr.bf16.mxu1 %v16229_v26  ;;  %14819 = vmatprep.mubr.bf16.mxu0 %v16231_v19  ;;  %v8849_v5 = vld [vmem:[%s23037_s0 + $0xb20] sm:$0xff]  ;;  %v16252_v62 = vcombine.low %v8836_v38, %v8848_v57  ;;  %v8502_v57 = vld [vmem:[%s23037_s0 + $0x48] sm:$0xff] }
 0x290   :  { %v14154_v55 = vpop.f32.mrf.mxu1  ;;  %v14347_v29 = vpop.f32.mrf.mxu0  ;;  %v16255_v42 = vcombine.high %v8837_v54, %v8849_v5  ;;  %v16254_v30 = vcombine.low %v8837_v54, %v8849_v5  ;;  %v23220_v58 = vld [vmem:[#allocation56_spill] sm:$0xff] }
 0x291   :  { %v14155_v47 = vadd.f32 %v14154_v55, %v20985_v45  ;;  %v21513_v21 = vadd.f32 %v14345_v32, %v14153_v27 }
 0x292   :  { %v14156_v25 = vpop.f32.mrf.mxu1  ;;  %v14349_v16 = vpop.f32.mrf.mxu0 }
 0x293   :  { %v14157_v15 = vadd.f32 %v14156_v25, %v20988_v51  ;;  %v21516_v49 = vadd.f32 %v14347_v29, %v14155_v47  ;;  %v8860_v51 = vld [vmem:[%s23037_s0 + $0xb78] sm:$0xff]  ;;  %v16279_v29 = vcombine.high %v8861_v10, %v8873_v34 }
 0x294   :  { %v14158_v1 = vpop.f32.mrf.mxu1  ;;  %v14351_v50 = vpop.f32.mrf.mxu0 }
 0x295   :  { %v14159_v14 = vadd.f32 %v14158_v1, %v20991_v48  ;;  %v21519_v7 = vadd.f32 %v14349_v16, %v14157_v15  ;;  %v8872_v48 = vld [vmem:[%s23037_s0 + $0xbd8] sm:$0xff]  ;;  %v23221_v16 = vld [vmem:[#allocation57_spill] sm:$0xff] }
 0x296   :  { %v14162_v20 = vpop.f32.mrf.mxu1  ;;  %14627 = vmatmul.mubr.bf16.gmra.mxu1 %v16228_v61  ;;  %v14355_v45 = vpop.f32.mrf.mxu0  ;;  %14820 = vmatmul.mubr.bf16.gmra.mxu0 %v16230_v41  ;;  %v16277_v55 = vcombine.high %v8860_v51, %v8872_v48 }
 0x297   :  { %v14163_v18 = vadd.f32 %v14162_v20, %v23218_v22  ;;  %v21522_v53 = vadd.f32 %v14351_v50, %v14159_v14  ;;  %14636 = vmatprep.mubr.bf16.mxu1 %v16253_v44  ;;  %14829 = vmatprep.mubr.bf16.mxu0 %v16255_v42  ;;  %v23222_v42 = vld [vmem:[#allocation58_spill] sm:$0xff] }
 0x298   :  { %v14164_v11 = vpop.f32.mrf.mxu1  ;;  %v14357_v39 = vpop.f32.mrf.mxu0  ;;  %v8514_v50 = vld [vmem:[%s23037_s0 + $0xa8] sm:$0xff]  ;;  %v8503_v14 = vld [vmem:[%s23037_s0 + $0x50] sm:$0xff] }
 0x299   :  { %v14165_v24 = vadd.f32 %v14164_v11, %v23219_v59  ;;  %v21537_v26 = vadd.f32 %v14355_v45, %v14163_v18  ;;  %v8515_v20 = vld [vmem:[%s23037_s0 + $0xb0] sm:$0xff]  ;;  %v16276_v59 = vcombine.low %v8860_v51, %v8872_v48  ;;  %v7385_v48 = vld [vmem:[#allocation12 + $0x16e0] sm:$0xff] }
 0x29a   :  { %v14166_v19 = vpop.f32.mrf.mxu1  ;;  %v14359_v17 = vpop.f32.mrf.mxu0  ;;  %v23223_v45 = vld [vmem:[#allocation59_spill] sm:$0xff] }
 0x29b   :  { %v14167_v32 = vadd.f32 %v14166_v19, %v23220_v58  ;;  %v21540_v27 = vadd.f32 %v14357_v39, %v14165_v24  ;;  %v16278_v24 = vcombine.low %v8861_v10, %v8873_v34  ;;  %v23224_v19 = vld [vmem:[#allocation60_spill] sm:$0xff]  ;;  %v15923_v58 = vcombine.high %v8503_v14, %v8515_v20 }
 0x29c   :  { %v14168_v47 = vpop.f32.mrf.mxu1  ;;  %v14361_v25 = vpop.f32.mrf.mxu0  ;;  %v7405_v10 = vld [vmem:[#allocation12 + $0x16f0] sm:$0xff] }
 0x29d   :  { %v14169_v61 = vadd.f32 %v14168_v47, %v23221_v16  ;;  %v21543_v41 = vadd.f32 %v14359_v17, %v14167_v32 }
 0x29e   :  { %v14172_v15 = vpop.f32.mrf.mxu1  ;;  %14637 = vmatmul.mubr.bf16.gmra.mxu1 %v16252_v62  ;;  %v14365_v44 = vpop.f32.mrf.mxu0  ;;  %14830 = vmatmul.mubr.bf16.gmra.mxu0 %v16254_v30  ;;  %v15921_v30 = vcombine.high %v8502_v57, %v8514_v50 }
 0x29f   :  { %v14173_v1 = vadd.f32 %v14172_v15, %v23222_v42  ;;  %v21546_v38 = vadd.f32 %v14361_v25, %v14169_v61  ;;  %14646 = vmatprep.mubr.bf16.mxu1 %v16277_v55  ;;  %14839 = vmatprep.mubr.bf16.mxu0 %v16279_v29  ;;  %v23226_v29 = vld [vmem:[#allocation61_spill] sm:$0xff]  ;;  %v23228_v15 = vld [vmem:[#allocation62_spill] sm:$0xff] }
 0x2a0   :  { %v14174_v54 = vpop.f32.mrf.mxu1  ;;  %v14367_v5 = vpop.f32.mrf.mxu0 }
 0x2a1   :  { %v14175_v22 = vadd.f32 %v14174_v54, %v23223_v45  ;;  %v21561_v18 = vadd.f32 %v14365_v44, %v14173_v1  ;;  %v21575_v1 = vld [vmem:[%s23037_s0 + $0x108] sm:$0xff]  ;;  %v23230_v45 = vld [vmem:[#allocation63_spill] sm:$0xff] }
 0x2a2   :  { %v14176_v11 = vpop.f32.mrf.mxu1  ;;  %v14369_v39 = vpop.f32.mrf.mxu0  ;;  %v21580_v54 = vld [vmem:[%s23037_s0 + $0x168] sm:$0xff] }
 0x2a3   :  { %v14177_v17 = vadd.f32 %v14176_v11, %v23224_v19  ;;  %v21564_v62 = vadd.f32 %v14367_v5, %v14175_v22  ;;  %v21585_v5 = vld [vmem:[%s23037_s0 + $0x110] sm:$0xff] }
 0x2a4   :  { %v14178_v32 = vpop.f32.mrf.mxu1  ;;  %v14371_v55 = vpop.f32.mrf.mxu0 }
 0x2a5   :  { %23225 = vst [vmem:[#allocation54_spill] sm:$0xff] %v21564_v62  ;;  %v14179_v47 = vadd.f32 %v14178_v32, %v23226_v29  ;;  %v21567_v25 = vadd.f32 %v14369_v39, %v14177_v17  ;;  %v7355_v39 = vld [vmem:[#allocation12 + $0x16c8] sm:$0xff] }
 0x2a6   :  { %v14182_v16 = vpop.f32.mrf.mxu1  ;;  %14647 = vmatmul.mubr.bf16.gmra.mxu1 %v16276_v59  ;;  %v14375_v61 = vpop.f32.mrf.mxu0  ;;  %14840 = vmatmul.mubr.bf16.gmra.mxu0 %v16278_v24  ;;  %v7375_v59 = vld [vmem:[#allocation12 + $0x16d8] sm:$0xff]  ;;  %v21593_v24 = vld [vmem:[%s23037_s0 + $0x170] sm:$0xff] }
 0x2a7   :  { %23227 = vst [vmem:[#allocation55_spill] sm:$0xff] %v21567_v25  ;;  %v14183_v44 = vadd.f32 %v14182_v16, %v23228_v15  ;;  %v21570_v51 = vadd.f32 %v14371_v55, %v14179_v47  ;;  %14882 = vmatprep.mubr.bf16.mxu1 %v15921_v30  ;;  %15075 = vmatprep.mubr.bf16.mxu0 %v15923_v58  ;;  %v23232_v32 = vld [vmem:[#allocation27_spill] sm:$0xff] }
 0x2a8   :  { %v14184_v34 = vpop.f32.mrf.mxu1  ;;  %v14377_v42 = vpop.f32.mrf.mxu0  ;;  %v15920_v30 = vcombine.low %v8502_v57, %v8514_v50  ;;  %v15922_v58 = vcombine.low %v8503_v14, %v8515_v20  ;;  %v18973_v47 = vpack.c.bf16 %v7405_v10, %v7385_v48  ;;  %v15945_v16 = vcombine.high %v21575_v1, %v21580_v54  ;;  %v7315_v50 = vld [vmem:[#allocation12 + $0x16a8] sm:$0xff]  ;;  %v7335_v14 = vld [vmem:[#allocation12 + $0x16b8] sm:$0xff] }
 0x2a9   :  { %23229 = vst [vmem:[#allocation56_spill] sm:$0xff] %v21570_v51  ;;  %v14185_v22 = vadd.f32 %v14184_v34, %v23230_v45  ;;  %v21588_v11 = vadd.f32 %v14375_v61, %v14183_v44  ;;  %v18972_v44 = vpack.c.bf16 %v7375_v59, %v7355_v39  ;;  %v15947_v34 = vcombine.high %v21585_v5, %v21593_v24  ;;  %v7345_v45 = vld [vmem:[#allocation12 + $0x16c0] sm:$0xff]  ;;  %v23234_v51 = vld [vmem:[#allocation28_spill] sm:$0xff] }
 0x2aa   :  { %v14186_v19 = vpop.f32.mrf.mxu1  ;;  %v14379_v17 = vpop.f32.mrf.mxu0  ;;  %v23236_v10 = vld [vmem:[#allocation29_spill] sm:$0xff] }
 0x2ab   :  { %23231 = vst [vmem:[#allocation57_spill] sm:$0xff] %v21588_v11  ;;  %v14187_v55 = vadd.f32 %v14186_v19, %v23232_v32  ;;  %v21596_v29 = vadd.f32 %v14377_v42, %v14185_v22  ;;  %v7365_v11 = vld [vmem:[#allocation12 + $0x16d0] sm:$0xff]  ;;  %v21611_v59 = vld [vmem:[%s23037_s0 + $0x1c8] sm:$0xff] }
 0x2ac   :  { %v14188_v61 = vpop.f32.mrf.mxu1  ;;  %v14381_v15 = vpop.f32.mrf.mxu0  ;;  %v18971_v39 = vpack.c.bf16 %v7365_v11, %v7345_v45  ;;  %v21626_v11 = vld [vmem:[%s23037_s0 + $0x230] sm:$0xff] }
 0x2ad   :  { %23233 = vst [vmem:[#allocation58_spill] sm:$0xff] %v21596_v29  ;;  %v14189_v25 = vadd.f32 %v14188_v61, %v23234_v51  ;;  %v21603_v57 = vadd.f32 %v14379_v17, %v14187_v55  ;;  %v21616_v17 = vld [vmem:[%s23037_s0 + $0x228] sm:$0xff]  ;;  %v7275_v45 = vld [vmem:[#allocation12 + $0x1688] sm:$0xff] }
 0x2ae   :  { %v14192_v20 = vpop.f32.mrf.mxu1  ;;  %14883 = vmatmul.mubr.bf16.vlgmr.msra.gmra.mxu1 %v15920_v30  ;;  %v14385_v48 = vpop.f32.mrf.mxu0  ;;  %15076 = vmatmul.mubr.bf16.vlgmr.msra.gmra.mxu0 %v15922_v58  ;;  %v18970_v30 = vpack.c.bf16 %v7335_v14, %v7315_v50  ;;  %v23238_v58 = vld [vmem:[#allocation30_spill] sm:$0xff]  ;;  %v7295_v50 = vld [vmem:[#allocation12 + $0x1698] sm:$0xff]  ;;  %v23240_v14 = vld [vmem:[#allocation31_spill] sm:$0xff] }
 0x2af   :  { %23235 = vst [vmem:[#allocation59_spill] sm:$0xff] %v21603_v57  ;;  %v14193_v42 = vadd.f32 %v14192_v20, %v23236_v10  ;;  %v21606_v22 = vadd.f32 %v14381_v15, %v14189_v25  ;;  %15237 = vmatpush1.bf16.msra.mxu1 %v18973_v47  ;;  %14892 = vmatprep.mubr.bf16.mxu1 %v15945_v16  ;;  %v21621_v25 = vld [vmem:[%s23037_s0 + $0x1d0] sm:$0xff]  ;;  %v7305_v47 = vld [vmem:[#allocation12 + $0x16a0] sm:$0xff]  ;;  %v7325_v16 = vld [vmem:[#allocation12 + $0x16b0] sm:$0xff] }
 0x2b0   :  { %v14194_v51 = vpop.f32.mrf.mxu1  ;;  %v14387_v19 = vpop.f32.mrf.mxu0  ;;  %15238 = vmatprep.subr.bf16.mxu1 %v18972_v44  ;;  %15085 = vmatprep.mubr.bf16.mxu0 %v15947_v34  ;;  %v15944_v44 = vcombine.low %v21575_v1, %v21580_v54  ;;  %v15946_v34 = vcombine.low %v21585_v5, %v21593_v24  ;;  %v18969_v1 = vpack.c.bf16 %v7325_v16, %v7305_v47  ;;  %v23242_v54 = vld [vmem:[#allocation32_spill] sm:$0xff] }
 0x2b1   :  { %23237 = vst [vmem:[#allocation60_spill] sm:$0xff] %v21606_v22  ;;  %v14195_v32 = vadd.f32 %v14194_v51, %v23238_v58  ;;  %v21629_v55 = vadd.f32 %v14385_v48, %v14193_v42  ;;  %v15969_v48 = vcombine.high %v21611_v59, %v21616_v17  ;;  %v15971_v42 = vcombine.high %v21621_v25, %v21626_v11  ;;  %v7265_v22 = vld [vmem:[#allocation12 + $0x1680] sm:$0xff] }
 0x2b2   :  { %v14196_v61 = vpop.f32.mrf.mxu1  ;;  %v14389_v15 = vpop.f32.mrf.mxu0  ;;  %v18968_v24 = vpack.c.bf16 %v7295_v50, %v7275_v45  ;;  %v23246_v45 = vld [vmem:[#allocation34_spill] sm:$0xff] }
 0x2b3   :  { %23239 = vst [vmem:[#allocation61_spill] sm:$0xff] %v21629_v55  ;;  %v14197_v20 = vadd.f32 %v14196_v61, %v23240_v14  ;;  %v21636_v10 = vadd.f32 %v14387_v19, %v14195_v32  ;;  %15239 = vmatpush1.bf16.msra.mxu1 %v18971_v39  ;;  %v7285_v61 = vld [vmem:[#allocation12 + $0x1690] sm:$0xff]  ;;  %v7235_v32 = vld [vmem:[#allocation12 + $0x1668] sm:$0xff]  ;;  %v7255_v14 = vld [vmem:[#allocation12 + $0x1678] sm:$0xff] }
 0x2b4   :  { %v14198_v51 = vpop.f32.mrf.mxu1  ;;  %v14391_v58 = vpop.f32.mrf.mxu0  ;;  %15240 = vmatprep.subr.bf16.mxu1 %v18970_v30  ;;  %v21651_v30 = vld [vmem:[%s23037_s0 + $0x288] sm:$0xff] }
 0x2b5   :  { %23241 = vst [vmem:[#allocation62_spill] sm:$0xff] %v21636_v10  ;;  %v14199_v55 = vadd.f32 %v14198_v51, %v23242_v54  ;;  %v21643_v5 = vadd.f32 %v14389_v15, %v14197_v20  ;;  %v23244_v10 = vld [vmem:[#allocation33_spill] sm:$0xff]  ;;  %v15970_v54 = vcombine.low %v21621_v25, %v21626_v11 }
 0x2b6   :  { %v14202_v19 = vpop.f32.mrf.mxu1  ;;  %14893 = vmatmul.mubr.bf16.gmra.mxu1 %v15944_v44  ;;  %v14395_v39 = vpop.f32.mrf.mxu0  ;;  %15086 = vmatmul.mubr.bf16.gmra.mxu0 %v15946_v34  ;;  %v21656_v15 = vld [vmem:[%s23037_s0 + $0x2e8] sm:$0xff]  ;;  %v21666_v44 = vld [vmem:[%s23037_s0 + $0x2f0] sm:$0xff]  ;;  %v18967_v34 = vpack.c.bf16 %v7285_v61, %v7265_v22 }
 0x2b7   :  { %23243 = vst [vmem:[#allocation63_spill] sm:$0xff] %v21643_v5  ;;  %v14203_v57 = vadd.f32 %v14202_v19, %v23244_v10  ;;  %v21646_v29 = vadd.f32 %v14391_v58, %v14199_v55  ;;  %14902 = vmatprep.mubr.bf16.mxu1 %v15969_v48  ;;  %15095 = vmatprep.mubr.bf16.mxu0 %v15971_v42  ;;  %v21661_v55 = vld [vmem:[%s23037_s0 + $0x290] sm:$0xff]  ;;  %v7225_v48 = vld [vmem:[#allocation12 + $0x1660] sm:$0xff]  ;;  %v7245_v42 = vld [vmem:[#allocation12 + $0x1670] sm:$0xff] }
 0x2b8   :  { %v14204_v47 = vpop.f32.mrf.mxu1  ;;  %v14397_v16 = vpop.f32.mrf.mxu0  ;;  %15241 = vmatpush1.bf16.msra.mxu1 %v18969_v1  ;;  %v18966_v10 = vpack.c.bf16 %v7255_v14, %v7235_v32  ;;  %v15968_v1 = vcombine.low %v21611_v59, %v21616_v17  ;;  %v7195_v19 = vld [vmem:[#allocation12 + $0x1648] sm:$0xff]  ;;  %v18965_v14 = vpack.c.bf16 %v7245_v42, %v7225_v48  ;;  %v23250_v59 = vld [vmem:[#allocation36_spill] sm:$0xff]  ;;  %v7185_v11 = vld [vmem:[#allocation12 + $0x1640] sm:$0xff] }
 0x2b9   :  { %23245 = vst [vmem:[#allocation27_spill] sm:$0xff] %v21646_v29  ;;  %v14205_v50 = vadd.f32 %v14204_v47, %v23246_v45  ;;  %v21669_v20 = vadd.f32 %v14395_v39, %v14203_v57  ;;  %15242 = vmatprep.subr.bf16.mxu1 %v18968_v24  ;;  %v7215_v29 = vld [vmem:[#allocation12 + $0x1658] sm:$0xff]  ;;  %v23248_v5 = vld [vmem:[#allocation35_spill] sm:$0xff]  ;;  %v15993_v57 = vcombine.high %v21651_v30, %v21656_v15  ;;  %v21696_v48 = vld [vmem:[%s23037_s0 + $0x3a8] sm:$0xff] }
 0x2ba   :  { %v14206_v51 = vpop.f32.mrf.mxu1  ;;  %v14399_v58 = vpop.f32.mrf.mxu0  ;;  %v15995_v24 = vcombine.high %v21661_v55, %v21666_v44  ;;  %v18964_v25 = vpack.c.bf16 %v7215_v29, %v7195_v19  ;;  %v21701_v42 = vld [vmem:[%s23037_s0 + $0x350] sm:$0xff] }
 0x2bb   :  { %23247 = vst [vmem:[#allocation28_spill] sm:$0xff] %v21669_v20  ;;  %v14207_v22 = vadd.f32 %v14206_v51, %v23248_v5  ;;  %v21676_v61 = vadd.f32 %v14397_v16, %v14205_v50  ;;  %v7205_v5 = vld [vmem:[#allocation12 + $0x1650] sm:$0xff]  ;;  %v7155_v50 = vld [vmem:[#allocation12 + $0x1628] sm:$0xff]  ;;  %v7175_v51 = vld [vmem:[#allocation12 + $0x1638] sm:$0xff] }
 0x2bc   :  { %v14208_v39 = vpop.f32.mrf.mxu1  ;;  %v14401_v32 = vpop.f32.mrf.mxu0  ;;  %15243 = vmatpush1.bf16.msra.mxu1 %v18967_v34  ;;  %v21691_v34 = vld [vmem:[%s23037_s0 + $0x348] sm:$0xff] }
 0x2bd   :  { %23249 = vst [vmem:[#allocation29_spill] sm:$0xff] %v21676_v61  ;;  %v14209_v17 = vadd.f32 %v14208_v39, %v23250_v59  ;;  %v21683_v47 = vadd.f32 %v14399_v58, %v14207_v22  ;;  %15244 = vmatprep.subr.bf16.mxu1 %v18966_v10  ;;  %v23252_v61 = vld [vmem:[#allocation37_spill] sm:$0xff]  ;;  %v21706_v58 = vld [vmem:[%s23037_s0 + $0x3b0] sm:$0xff]  ;;  %v15992_v59 = vcombine.low %v21651_v30, %v21656_v15  ;;  %v23258_v30 = vld [vmem:[#allocation40_spill] sm:$0xff] }
 0x2be   :  { %v14212_v16 = vpop.f32.mrf.mxu1  ;;  %14903 = vmatmul.mubr.bf16.gmra.mxu1 %v15968_v1  ;;  %v14405_v45 = vpop.f32.mrf.mxu0  ;;  %15096 = vmatmul.mubr.bf16.gmra.mxu0 %v15970_v54  ;;  %v18963_v1 = vpack.c.bf16 %v7205_v5, %v7185_v11  ;;  %v23254_v54 = vld [vmem:[#allocation38_spill] sm:$0xff] }
 0x2bf   :  { %23251 = vst [vmem:[#allocation30_spill] sm:$0xff] %v21683_v47  ;;  %v14213_v20 = vadd.f32 %v14212_v16, %v23252_v61  ;;  %v21686_v62 = vadd.f32 %v14401_v32, %v14209_v17  ;;  %14912 = vmatprep.mubr.bf16.mxu1 %v15993_v57  ;;  %15105 = vmatprep.mubr.bf16.mxu0 %v15995_v24  ;;  %v7145_v57 = vld [vmem:[#allocation12 + $0x1620] sm:$0xff]  ;;  %v7165_v24 = vld [vmem:[#allocation12 + $0x1630] sm:$0xff]  ;;  %v7115_v16 = vld [vmem:[#allocation12 + $0x1608] sm:$0xff] }
 0x2c0   :  { %v14214_v29 = vpop.f32.mrf.mxu1  ;;  %v14407_v10 = vpop.f32.mrf.mxu0  ;;  %15245 = vmatpush1.bf16.msra.mxu1 %v18965_v14  ;;  %v18962_v61 = vpack.c.bf16 %v7175_v51, %v7155_v50  ;;  %v15994_v17 = vcombine.low %v21661_v55, %v21666_v44  ;;  %v23256_v14 = vld [vmem:[#allocation39_spill] sm:$0xff]  ;;  %v18961_v51 = vpack.c.bf16 %v7165_v24, %v7145_v57  ;;  %v7105_v44 = vld [vmem:[#allocation12 + $0x1600] sm:$0xff] }
 0x2c1   :  { %23253 = vst [vmem:[#allocation31_spill] sm:$0xff] %v21686_v62  ;;  %v14215_v19 = vadd.f32 %v14214_v29, %v23254_v54  ;;  %v21709_v22 = vadd.f32 %v14405_v45, %v14213_v20  ;;  %15246 = vmatprep.subr.bf16.mxu1 %v18964_v25  ;;  %v7135_v62 = vld [vmem:[#allocation12 + $0x1618] sm:$0xff]  ;;  %v16017_v20 = vcombine.high %v21691_v34, %v21696_v48  ;;  %v7125_v54 = vld [vmem:[#allocation12 + $0x1610] sm:$0xff]  ;;  %v21736_v57 = vld [vmem:[%s23037_s0 + $0x468] sm:$0xff] }
 0x2c2   :  { %v14216_v39 = vpop.f32.mrf.mxu1  ;;  %v14409_v32 = vpop.f32.mrf.mxu0  ;;  %v16019_v25 = vcombine.high %v21701_v42, %v21706_v58  ;;  %v18960_v55 = vpack.c.bf16 %v7135_v62, %v7115_v16  ;;  %v21741_v24 = vld [vmem:[%s23037_s0 + $0x410] sm:$0xff] }
 0x2c3   :  { %23255 = vst [vmem:[#allocation32_spill] sm:$0xff] %v21709_v22  ;;  %v14217_v11 = vadd.f32 %v14216_v39, %v23256_v14  ;;  %v21716_v5 = vadd.f32 %v14407_v10, %v14215_v19  ;;  %v7715_v39 = vld [vmem:[#allocation12 + $0x17e8] sm:$0xff]  ;;  %v7735_v14 = vld [vmem:[#allocation12 + $0x17f8] sm:$0xff] }
 0x2c4   :  { %v14218_v45 = vpop.f32.mrf.mxu1  ;;  %v14411_v50 = vpop.f32.mrf.mxu0  ;;  %15247 = vmatpush1.bf16.msra.mxu1 %v18963_v1  ;;  %v21731_v1 = vld [vmem:[%s23037_s0 + $0x408] sm:$0xff] }
 0x2c5   :  { %23257 = vst [vmem:[#allocation33_spill] sm:$0xff] %v21716_v5  ;;  %v14219_v15 = vadd.f32 %v14218_v45, %v23258_v30  ;;  %v21723_v29 = vadd.f32 %v14409_v32, %v14217_v11  ;;  %15248 = vmatprep.subr.bf16.mxu1 %v18962_v61  ;;  %v23260_v5 = vld [vmem:[#allocation41_spill] sm:$0xff]  ;;  %v21746_v32 = vld [vmem:[%s23037_s0 + $0x470] sm:$0xff]  ;;  %v16016_v30 = vcombine.low %v21691_v34, %v21696_v48  ;;  %v23266_v34 = vld [vmem:[#allocation44_spill] sm:$0xff] }
 0x2c6   :  { %v14222_v10 = vpop.f32.mrf.mxu1  ;;  %14913 = vmatmul.mubr.bf16.gmra.mxu1 %v15992_v59  ;;  %v14415_v19 = vpop.f32.mrf.mxu0  ;;  %15106 = vmatmul.mubr.bf16.gmra.mxu0 %v15994_v17  ;;  %v18959_v59 = vpack.c.bf16 %v7125_v54, %v7105_v44  ;;  %v23262_v17 = vld [vmem:[#allocation42_spill] sm:$0xff] }
 0x2c7   :  { %23259 = vst [vmem:[#allocation34_spill] sm:$0xff] %v21723_v29  ;;  %v14223_v22 = vadd.f32 %v14222_v10, %v23260_v5  ;;  %v21726_v47 = vadd.f32 %v14411_v50, %v14219_v15  ;;  %14922 = vmatprep.mubr.bf16.mxu1 %v16017_v20  ;;  %15115 = vmatprep.mubr.bf16.mxu0 %v16019_v25  ;;  %v7705_v20 = vld [vmem:[#allocation12 + $0x17e0] sm:$0xff]  ;;  %v7725_v25 = vld [vmem:[#allocation12 + $0x17f0] sm:$0xff]  ;;  %v7675_v10 = vld [vmem:[#allocation12 + $0x17c8] sm:$0xff] }
 0x2c8   :  { %v14224_v62 = vpop.f32.mrf.mxu1  ;;  %v14417_v61 = vpop.f32.mrf.mxu0  ;;  %15249 = vmatpush1.bf16.msra.mxu1 %v18961_v51  ;;  %v18990_v5 = vpack.c.bf16 %v7735_v14, %v7715_v39  ;;  %v16018_v15 = vcombine.low %v21701_v42, %v21706_v58  ;;  %v23264_v51 = vld [vmem:[#allocation43_spill] sm:$0xff]  ;;  %v18989_v14 = vpack.c.bf16 %v7725_v25, %v7705_v20  ;;  %v7665_v58 = vld [vmem:[#allocation12 + $0x17c0] sm:$0xff] }
 0x2c9   :  { %23261 = vst [vmem:[#allocation35_spill] sm:$0xff] %v21726_v47  ;;  %v14225_v16 = vadd.f32 %v14224_v62, %v23262_v17  ;;  %v21749_v11 = vadd.f32 %v14415_v19, %v14223_v22  ;;  %15250 = vmatprep.subr.bf16.mxu1 %v18960_v55  ;;  %v7695_v47 = vld [vmem:[#allocation12 + $0x17d8] sm:$0xff]  ;;  %v16041_v22 = vcombine.high %v21731_v1, %v21736_v57  ;;  %v7685_v17 = vld [vmem:[#allocation12 + $0x17d0] sm:$0xff]  ;;  %v21776_v20 = vld [vmem:[%s23037_s0 + $0x528] sm:$0xff] }
 0x2ca   :  { %v14226_v45 = vpop.f32.mrf.mxu1  ;;  %v14419_v50 = vpop.f32.mrf.mxu0  ;;  %v16043_v55 = vcombine.high %v21741_v24, %v21746_v32  ;;  %v18988_v42 = vpack.c.bf16 %v7695_v47, %v7675_v10  ;;  %v21781_v25 = vld [vmem:[%s23037_s0 + $0x4d0] sm:$0xff] }
 0x2cb   :  { %23263 = vst [vmem:[#allocation36_spill] sm:$0xff] %v21749_v11  ;;  %v14227_v44 = vadd.f32 %v14226_v45, %v23264_v51  ;;  %v21756_v54 = vadd.f32 %v14417_v61, %v14225_v16  ;;  %v7635_v45 = vld [vmem:[#allocation12 + $0x17a8] sm:$0xff]  ;;  %v7655_v51 = vld [vmem:[#allocation12 + $0x17b8] sm:$0xff] }
 0x2cc   :  { %v14228_v19 = vpop.f32.mrf.mxu1  ;;  %v14421_v39 = vpop.f32.mrf.mxu0  ;;  %15251 = vmatpush1.bf16.msra.mxu1 %v18959_v59  ;;  %v21771_v59 = vld [vmem:[%s23037_s0 + $0x4c8] sm:$0xff] }
 0x2cd   :  { %23265 = vst [vmem:[#allocation37_spill] sm:$0xff] %v21756_v54  ;;  %v14229_v48 = vadd.f32 %v14228_v19, %v23266_v34  ;;  %v21763_v62 = vadd.f32 %v14419_v50, %v14227_v44  ;;  %15252 = vmatprep.subr.bf16.mxu1 %v18990_v5  ;;  %v23268_v54 = vld [vmem:[#allocation45_spill] sm:$0xff]  ;;  %v21786_v50 = vld [vmem:[%s23037_s0 + $0x530] sm:$0xff]  ;;  %v16040_v34 = vcombine.low %v21731_v1, %v21736_v57  ;;  %v23274_v1 = vld [vmem:[#allocation48_spill] sm:$0xff] }
 0x2ce   :  { %v14232_v61 = vpop.f32.mrf.mxu1  ;;  %14923 = vmatmul.mubr.bf16.gmra.mxu1 %v16016_v30  ;;  %v14425_v16 = vpop.f32.mrf.mxu0  ;;  %15116 = vmatmul.mubr.bf16.gmra.mxu0 %v16018_v15  ;;  %v18987_v30 = vpack.c.bf16 %v7685_v17, %v7665_v58  ;;  %v23270_v15 = vld [vmem:[#allocation46_spill] sm:$0xff] }
 0x2cf   :  { %23267 = vst [vmem:[#allocation38_spill] sm:$0xff] %v21763_v62  ;;  %v14233_v11 = vadd.f32 %v14232_v61, %v23268_v54  ;;  %v21766_v29 = vadd.f32 %v14421_v39, %v14229_v48  ;;  %14932 = vmatprep.mubr.bf16.mxu1 %v16041_v22  ;;  %15125 = vmatprep.mubr.bf16.mxu0 %v16043_v55  ;;  %v7625_v22 = vld [vmem:[#allocation12 + $0x17a0] sm:$0xff]  ;;  %v7645_v55 = vld [vmem:[#allocation12 + $0x17b0] sm:$0xff]  ;;  %v7595_v61 = vld [vmem:[#allocation12 + $0x1788] sm:$0xff] }
 0x2d0   :  { %v14234_v47 = vpop.f32.mrf.mxu1  ;;  %v14427_v5 = vpop.f32.mrf.mxu0  ;;  %15253 = vmatpush2.bf16.msra.mxu1 %v18989_v14  ;;  %v18986_v54 = vpack.c.bf16 %v7655_v51, %v7635_v45  ;;  %v16042_v48 = vcombine.low %v21741_v24, %v21746_v32  ;;  %v23272_v14 = vld [vmem:[#allocation47_spill] sm:$0xff]  ;;  %v18985_v51 = vpack.c.bf16 %v7645_v55, %v7625_v22  ;;  %v7585_v32 = vld [vmem:[#allocation12 + $0x1780] sm:$0xff] }
 0x2d1   :  { %23269 = vst [vmem:[#allocation39_spill] sm:$0xff] %v21766_v29  ;;  %v14235_v10 = vadd.f32 %v14234_v47, %v23270_v15  ;;  %v21789_v44 = vadd.f32 %v14425_v16, %v14233_v11  ;;  %15254 = vmatprep.subr.bf16.mxu1 %v18988_v42  ;;  %v7615_v29 = vld [vmem:[#allocation12 + $0x1798] sm:$0xff]  ;;  %v16065_v11 = vcombine.high %v21771_v59, %v21776_v20  ;;  %v7605_v15 = vld [vmem:[#allocation12 + $0x1790] sm:$0xff]  ;;  %v21816_v22 = vld [vmem:[%s23037_s0 + $0x5e8] sm:$0xff] }
 0x2d2   :  { %v14236_v19 = vpop.f32.mrf.mxu1  ;;  %v14429_v39 = vpop.f32.mrf.mxu0  ;;  %v16067_v42 = vcombine.high %v21781_v25, %v21786_v50  ;;  %v18984_v24 = vpack.c.bf16 %v7615_v29, %v7595_v61  ;;  %v21821_v55 = vld [vmem:[%s23037_s0 + $0x590] sm:$0xff] }
 0x2d3   :  { %23271 = vst [vmem:[#allocation40_spill] sm:$0xff] %v21789_v44  ;;  %v14237_v58 = vadd.f32 %v14236_v19, %v23272_v14  ;;  %v21796_v17 = vadd.f32 %v14427_v5, %v14235_v10  ;;  %v7555_v19 = vld [vmem:[#allocation12 + $0x1768] sm:$0xff]  ;;  %v7575_v14 = vld [vmem:[#allocation12 + $0x1778] sm:$0xff] }
 0x2d4   :  { %v14238_v16 = vpop.f32.mrf.mxu1  ;;  %v14431_v45 = vpop.f32.mrf.mxu0  ;;  %15255 = vmatpush2.bf16.msra.mxu1 %v18987_v30  ;;  %v21811_v30 = vld [vmem:[%s23037_s0 + $0x588] sm:$0xff] }
 0x2d5   :  { %23273 = vst [vmem:[#allocation41_spill] sm:$0xff] %v21796_v17  ;;  %v14239_v57 = vadd.f32 %v14238_v16, %v23274_v1  ;;  %v21803_v47 = vadd.f32 %v14429_v39, %v14237_v58  ;;  %15256 = vmatprep.subr.bf16.mxu1 %v18986_v54  ;;  %v23275_v17 = vld [vmem:[#allocation49_spill] sm:$0xff]  ;;  %v21826_v39 = vld [vmem:[%s23037_s0 + $0x5f0] sm:$0xff]  ;;  %v16064_v1 = vcombine.low %v21771_v59, %v21776_v20 }
 0x2d6   :  { %v14242_v5 = vpop.f32.mrf.mxu1  ;;  %14933 = vmatmul.mubr.bf16.gmra.mxu1 %v16040_v34  ;;  %v14435_v10 = vpop.f32.mrf.mxu0  ;;  %15126 = vmatmul.mubr.bf16.gmra.mxu0 %v16042_v48  ;;  %v18983_v34 = vpack.c.bf16 %v7605_v15, %v7585_v32  ;;  %v23277_v48 = vld [vmem:[#allocation50_spill] sm:$0xff]  ;;  %v23280_v59 = vld [vmem:[#allocation51_spill] sm:$0xff] }
 0x2d7   :  { %v14243_v44 = vadd.f32 %v14242_v5, %v23275_v17  ;;  %v21806_v62 = vadd.f32 %v14431_v45, %v14239_v57  ;;  %14942 = vmatprep.mubr.bf16.mxu1 %v16065_v11  ;;  %15135 = vmatprep.mubr.bf16.mxu0 %v16067_v42  ;;  %v18982_v17 = vpack.c.bf16 %v7575_v14, %v7555_v19  ;;  %v7545_v11 = vld [vmem:[#allocation12 + $0x1760] sm:$0xff]  ;;  %v7565_v42 = vld [vmem:[#allocation12 + $0x1770] sm:$0xff]  ;;  %v7515_v5 = vld [vmem:[#allocation12 + $0x1748] sm:$0xff] }
 0x2d8   :  { %v14244_v29 = vpop.f32.mrf.mxu1  ;;  %v14437_v54 = vpop.f32.mrf.mxu0  ;;  %15257 = vmatpush2.bf16.msra.mxu1 %v18985_v51  ;;  %v16066_v57 = vcombine.low %v21781_v25, %v21786_v50  ;;  %v18981_v19 = vpack.c.bf16 %v7565_v42, %v7545_v11  ;;  %v7505_v50 = vld [vmem:[#allocation12 + $0x1740] sm:$0xff]  ;;  %v21861_v42 = vld [vmem:[%s23037_s0 + $0x650] sm:$0xff] }
 0x2d9   :  { %23276 = vst [vmem:[#allocation42_spill] sm:$0xff] %v21806_v62  ;;  %v14245_v61 = vadd.f32 %v14244_v29, %v23277_v48  ;;  %v21829_v58 = vadd.f32 %v14435_v10, %v14243_v44  ;;  %15258 = vmatprep.subr.bf16.mxu1 %v18984_v24  ;;  %v7535_v62 = vld [vmem:[#allocation12 + $0x1758] sm:$0xff]  ;;  %v16089_v44 = vcombine.high %v21811_v30, %v21816_v22  ;;  %v7475_v48 = vld [vmem:[#allocation12 + $0x1728] sm:$0xff]  ;;  %v21856_v11 = vld [vmem:[%s23037_s0 + $0x6a8] sm:$0xff] }
 0x2da   :  { %v14246_v16 = vpop.f32.mrf.mxu1  ;;  %v14439_v45 = vpop.f32.mrf.mxu0  ;;  %v16091_v24 = vcombine.high %v21821_v55, %v21826_v39  ;;  %v18980_v25 = vpack.c.bf16 %v7535_v62, %v7515_v5 }
 0x2db   :  { %23278 = vst [vmem:[#allocation43_spill] sm:$0xff] %v21829_v58  ;;  %v14247_v51 = vadd.f32 %v14246_v16, %v21331_v52  ;;  %v21836_v32 = vadd.f32 %v14437_v54, %v14245_v61  ;;  %v7525_v52 = vld [vmem:[#allocation12 + $0x1750] sm:$0xff]  ;;  %v7495_v61 = vld [vmem:[#allocation12 + $0x1738] sm:$0xff] }
 0x2dc   :  { %v14248_v15 = vpop.f32.mrf.mxu1  ;;  %v14441_v10 = vpop.f32.mrf.mxu0  ;;  %15259 = vmatpush2.bf16.msra.mxu1 %v18983_v34  ;;  %v23281_v16 = vld [vmem:[#allocation52_spill] sm:$0xff]  ;;  %v21851_v34 = vld [vmem:[%s23037_s0 + $0x648] sm:$0xff] }
 0x2dd   :  { %23279 = vst [vmem:[#allocation44_spill] sm:$0xff] %v21836_v32  ;;  %v14249_v20 = vadd.f32 %v14248_v15, %v23280_v59  ;;  %v21843_v14 = vadd.f32 %v14439_v45, %v14247_v51  ;;  %15260 = vmatprep.subr.bf16.mxu1 %v18982_v17  ;;  %v21866_v45 = vld [vmem:[%s23037_s0 + $0x6b0] sm:$0xff]  ;;  %v7485_v15 = vld [vmem:[#allocation12 + $0x1730] sm:$0xff] }
 0x2de   :  { %v14252_v29 = vpop.f32.mrf.mxu1  ;;  %14943 = vmatmul.mubr.bf16.gmra.mxu1 %v16064_v1  ;;  %v14445_v54 = vpop.f32.mrf.mxu0  ;;  %15136 = vmatmul.mubr.bf16.gmra.mxu0 %v16066_v57  ;;  %v18979_v1 = vpack.c.bf16 %v7525_v52, %v7505_v50  ;;  %v23283_v57 = vld [vmem:[#allocation53_spill] sm:$0xff] }
 0x2df   :  { %v14253_v32 = vadd.f32 %v14252_v29, %v23281_v16  ;;  %v21846_v58 = vadd.f32 %v14441_v10, %v14249_v20  ;;  %14952 = vmatprep.mubr.bf16.mxu1 %v16089_v44  ;;  %15145 = vmatprep.mubr.bf16.mxu0 %v16091_v24  ;;  %v18978_v44 = vpack.c.bf16 %v7495_v61, %v7475_v48  ;;  %v7465_v24 = vld [vmem:[#allocation12 + $0x1720] sm:$0xff]  ;;  %v7435_v16 = vld [vmem:[#allocation12 + $0x1708] sm:$0xff] }
 0x2e0   :  { %v14254_v62 = vpop.f32.mrf.mxu1  ;;  %v14447_v17 = vpop.f32.mrf.mxu0  ;;  %15261 = vmatpush2.bf16.msra.mxu1 %v18981_v19  ;;  %v16088_v20 = vcombine.low %v21811_v30, %v21816_v22  ;;  %v16090_v29 = vcombine.low %v21821_v55, %v21826_v39  ;;  %v18977_v48 = vpack.c.bf16 %v7485_v15, %v7465_v24  ;;  %v7425_v39 = vld [vmem:[#allocation12 + $0x1700] sm:$0xff] }
 0x2e1   :  { %23282 = vst [vmem:[#allocation45_spill] sm:$0xff] %v21846_v58  ;;  %v14255_v5 = vadd.f32 %v14254_v62, %v23283_v57  ;;  %v21869_v51 = vadd.f32 %v14445_v54, %v14253_v32  ;;  %15262 = vmatprep.subr.bf16.mxu1 %v18980_v25  ;;  %v7455_v58 = vld [vmem:[#allocation12 + $0x1718] sm:$0xff]  ;;  %v16113_v32 = vcombine.high %v21851_v34, %v21856_v11 }
 0x2e2   :  { %v14256_v10 = vpop.f32.mrf.mxu1  ;;  %v14449_v59 = vpop.f32.mrf.mxu0  ;;  %v16115_v25 = vcombine.high %v21861_v42, %v21866_v45  ;;  %v18976_v55 = vpack.c.bf16 %v7455_v58, %v7435_v16  ;;  %v8730_v58 = vld [vmem:[%s23037_s0 + $0x768] sm:$0xff]  ;;  %v16114_v16 = vcombine.low %v21861_v42, %v21866_v45 }
 0x2e3   :  { %v14257_v19 = vadd.f32 %v14256_v10, %v21371_v12  ;;  %v21876_v50 = vadd.f32 %v14447_v17, %v14255_v5  ;;  %v7445_v12 = vld [vmem:[#allocation12 + $0x1710] sm:$0xff] }
 0x2e4   :  { %v14258_v52 = vpop.f32.mrf.mxu1  ;;  %v14451_v54 = vpop.f32.mrf.mxu0  ;;  %15263 = vmatpush2.bf16.msra.mxu1 %v18979_v1  ;;  %v18975_v24 = vpack.c.bf16 %v7445_v12, %v7425_v39  ;;  %v8743_v12 = vld [vmem:[%s23037_s0 + $0x7d0] sm:$0xff] }
 0x2e5   :  { %v14259_v30 = vadd.f32 %v14258_v52, %v21374_v40  ;;  %v21883_v22 = vadd.f32 %v14449_v59, %v14257_v19  ;;  %15264 = vmatprep.subr.bf16.mxu1 %v18978_v44  ;;  %v8718_v40 = vld [vmem:[%s23037_s0 + $0x708] sm:$0xff]  ;;  %v8719_v44 = vld [vmem:[%s23037_s0 + $0x710] sm:$0xff] }
 0x2e6   :  { %v14262_v61 = vpop.f32.mrf.mxu1  ;;  %14953 = vmatmul.mubr.bf16.gmra.mxu1 %v16088_v20  ;;  %v14455_v62 = vpop.f32.mrf.mxu0  ;;  %15146 = vmatmul.mubr.bf16.gmra.mxu0 %v16090_v29  ;;  %v16112_v29 = vcombine.low %v21851_v34, %v21856_v11 }
 0x2e7   :  { %v14263_v17 = vadd.f32 %v14262_v61, %v21389_v31  ;;  %v21886_v57 = vadd.f32 %v14451_v54, %v14259_v30  ;;  %14962 = vmatprep.mubr.bf16.mxu1 %v16113_v32  ;;  %15155 = vmatprep.mubr.bf16.mxu0 %v16115_v25  ;;  %v8731_v31 = vld [vmem:[%s23037_s0 + $0x770] sm:$0xff]  ;;  %v16137_v25 = vcombine.high %v8718_v40, %v8730_v58 }
 0x2e8   :  { %v14264_v1 = vpop.f32.mrf.mxu1  ;;  %v14457_v5 = vpop.f32.mrf.mxu0  ;;  %15265 = vmatpush2.bf16.msra.mxu1 %v18977_v48  ;;  %v16139_v52 = vcombine.high %v8719_v44, %v8731_v31 }
 0x2e9   :  { %v14265_v15 = vadd.f32 %v14264_v1, %v21396_v6  ;;  %v21901_v10 = vadd.f32 %v14455_v62, %v14263_v17  ;;  %15266 = vmatprep.subr.bf16.mxu1 %v18976_v55 }
 0x2ea   :  { %v14266_v59 = vpop.f32.mrf.mxu1  ;;  %v14459_v20 = vpop.f32.mrf.mxu0 }
 0x2eb   :  { %v14267_v19 = vadd.f32 %v14266_v59, %v21399_v37  ;;  %v21908_v32 = vadd.f32 %v14457_v5, %v14265_v15  ;;  %v8742_v37 = vld [vmem:[%s23037_s0 + $0x7c8] sm:$0xff]  ;;  %v16136_v5 = vcombine.low %v8718_v40, %v8730_v58 }
 0x2ec   :  { %v14268_v54 = vpop.f32.mrf.mxu1  ;;  %v14461_v48 = vpop.f32.mrf.mxu0  ;;  %15267 = vmatpush2.bf16.msra.mxu1 %v18975_v24  ;;  %v16138_v24 = vcombine.low %v8719_v44, %v8731_v31  ;;  %v21958_v31 = vld [vmem:[%s23037_s0 + $0x8f0] sm:$0xff] }
 0x2ed   :  { %v14269_v6 = vadd.f32 %v14268_v54, %v21401_v56  ;;  %v21911_v30 = vadd.f32 %v14459_v20, %v14267_v19  ;;  %v8754_v56 = vld [vmem:[%s23037_s0 + $0x828] sm:$0xff] }
 0x2ee   :  { %v14498_v55 = vpop.f32.mrf.mxu1  ;;  %14963 = vmatmul.mubr.bf16.gmra.mxu1 %v16112_v29  ;;  %v14691_v39 = vpop.f32.mrf.mxu0  ;;  %15156 = vmatmul.mubr.bf16.gmra.mxu0 %v16114_v16  ;;  %v16161_v20 = vcombine.high %v8742_v37, %v8754_v56 }
 0x2ef   :  { %v21913_v34 = vadd.f32 %v14461_v48, %v14269_v6  ;;  %v14499_v11 = vadd.f32 %v14498_v55, %v21417_v9  ;;  %14972 = vmatprep.mubr.bf16.mxu1 %v16137_v25  ;;  %15165 = vmatprep.mubr.bf16.mxu0 %v16139_v52  ;;  %v8755_v9 = vld [vmem:[%s23037_s0 + $0x830] sm:$0xff] }
 0x2f0   :  { %v14500_v42 = vpop.f32.mrf.mxu1  ;;  %v14693_v45 = vpop.f32.mrf.mxu0  ;;  %v16163_v29 = vcombine.high %v8743_v12, %v8755_v9 }
 0x2f1   :  { %v14501_v61 = vadd.f32 %v14500_v42, %v21420_v8  ;;  %v21929_v62 = vadd.f32 %v14691_v39, %v14499_v11  ;;  %v16160_v42 = vcombine.low %v8742_v37, %v8754_v56  ;;  %v15884_v37 = vld [vmem:[%s23040_s3 + $0x38] sm:$0xff]  }
 0x2f2   :  { %v14502_v17 = vpop.f32.mrf.mxu1  ;;  %v14695_v1 = vpop.f32.mrf.mxu0 }
 0x2f3   :  { %v14503_v15 = vadd.f32 %v14502_v17, %v21423_v3  ;;  %v21932_v59 = vadd.f32 %v14693_v45, %v14501_v61  ;;  %v21943_v3 = vld [vmem:[%s23037_s0 + $0x888] sm:$0xff]  ;;  %v16162_v45 = vcombine.low %v8743_v12, %v8755_v9 }
 0x2f4   :  { %v14504_v16 = vpop.f32.mrf.mxu1  ;;  %v14697_v19 = vpop.f32.mrf.mxu0 }
 0x2f5   :  { %v14505_v25 = vadd.f32 %v14504_v16, %v21426_v23  ;;  %v21935_v52 = vadd.f32 %v14695_v1, %v14503_v15  ;;  %v21948_v23 = vld [vmem:[%s23037_s0 + $0x8e8] sm:$0xff] }
 0x2f6   :  { %v14508_v54 = vpop.f32.mrf.mxu1  ;;  %14973 = vmatmul.mubr.bf16.gmra.mxu1 %v16136_v5  ;;  %v14701_v8 = vpop.f32.mrf.mxu0  ;;  %15166 = vmatmul.mubr.bf16.gmra.mxu0 %v16138_v24  ;;  %v16185_v1 = vcombine.high %v21943_v3, %v21948_v23 }
 0x2f7   :  { %v14509_v48 = vadd.f32 %v14508_v54, %v21441_v36  ;;  %v21938_v40 = vadd.f32 %v14697_v19, %v14505_v25  ;;  %14982 = vmatprep.mubr.bf16.mxu1 %v16161_v20  ;;  %15175 = vmatprep.mubr.bf16.mxu0 %v16163_v29  ;;  %v21953_v36 = vld [vmem:[%s23037_s0 + $0x890] sm:$0xff]  ;;  %v23284_v29 = vlaneseq  ;;  %v8098_v25 = vunpack.c.h.bf16 %v15884_v37 }
 0x2f8   :  { %v14510_v58 = vpop.f32.mrf.mxu1  ;;  %v14703_v44 = vpop.f32.mrf.mxu0  ;;  %v16187_v5 = vcombine.high %v21953_v36, %v21958_v31 }
 0x2f9   :  { %v14511_v6 = vadd.f32 %v14510_v58, %v21444_v4  ;;  %v21961_v55 = vadd.f32 %v14701_v8, %v14509_v48  ;;  %v21974_v16 = vand.u32 127, %v23284_v29  ;;  %v21988_v48 = vld [vmem:[%s23037_s0 + $0x948] sm:$0xff] }
 0x2fa   :  { %v14512_v39 = vpop.f32.mrf.mxu1  ;;  %v14705_v11 = vpop.f32.mrf.mxu0 }
 0x2fb   :  { %v14513_v61 = vadd.f32 %v14512_v39, %v21447_v28  ;;  %v21964_v17 = vadd.f32 %v14703_v44, %v14511_v6  ;;  %23285 = vst [vmem:[#allocation46_spill] sm:$0xff] %v21974_v16  ;;  %v15900_v28 = vld [vmem:[%s23040_s3 + $0x78] sm:$0xff]   ;;  %vm7759_vm0 = vcmp.lt.s32.totalorder %v21974_v16, 10  ;;  %v21994_v6 = vld [vmem:[%s23037_s0 + $0x9a8] sm:$0xff]  ;;  %v22004_v39 = vld [vmem:[%s23037_s0 + $0x9b0] sm:$0xff] }
 0x2fc   :  { %v14514_v24 = vpop.f32.mrf.mxu1  ;;  %v14707_v15 = vpop.f32.mrf.mxu0  ;;  %v8443_v9 = vunpack.c.l.bf16 %v15900_v28  ;;  %v8466_v19 = vunpack.c.h.bf16 %v15900_v28 }
 0x2fd   :  { %v14515_v4 = vadd.f32 %v14514_v24, %v21450_v43  ;;  %v21971_v20 = vadd.f32 %v14705_v11, %v14513_v61  ;;  %v8075_v43 = vunpack.c.l.bf16 %v15884_v37  ;;  %v23286_v11 = vld [vmem:[#allocation25_spill] sm:$0xff] }
 0x2fe   :  { %v14518_v56 = vpop.f32.mrf.mxu1  ;;  %14983 = vmatmul.mubr.bf16.gmra.mxu1 %v16160_v42  ;;  %v14711_v12 = vpop.f32.mrf.mxu0  ;;  %15176 = vmatmul.mubr.bf16.gmra.mxu0 %v16162_v45  ;;  %v8449_v42 = vsel %vm7759_vm0, %v8443_v9, %v23286_v11  ;;  %v8472_v45 = vsel %vm7759_vm0, %v8466_v19, %v23286_v11  ;;  %v16186_v9 = vcombine.low %v21953_v36, %v21958_v31 }
 0x2ff   :  { %v14519_v54 = vadd.f32 %v14518_v56, %v21465_v33  ;;  %v21983_v8 = vadd.f32 %v14707_v15, %v14515_v4  ;;  %14992 = vmatprep.mubr.bf16.mxu1 %v16185_v1  ;;  %15185 = vmatprep.mubr.bf16.mxu0 %v16187_v5  ;;  %v21999_v33 = vld [vmem:[%s23037_s0 + $0x950] sm:$0xff]  ;;  %v8081_v61 = vsel %vm7759_vm0, %v8075_v43, %v23286_v11  ;;  %v23048_v15 = vmov 0.0  }
 0x300   :  { %v14520_v58 = vpop.f32.mrf.mxu1  ;;  %v14713_v44 = vpop.f32.mrf.mxu0  ;;  %v8104_v1 = vsel %vm7759_vm0, %v8098_v25, %v23286_v11  ;;  %v8451_v4 = vpack.c.bf16 %v23048_v15, %v8449_v42  ;;  %v8474_v29 = vpack.c.bf16 %v23048_v15, %v8472_v45  ;;  %v16184_v56 = vcombine.low %v21943_v3, %v21948_v23  ;;  %v22045_v45 = vld [vmem:[%s23037_s0 + $0xa08] sm:$0xff] }
 0x301   :  { %v14521_v5 = vadd.f32 %v14520_v58, %v21468_v0  ;;  %v22019_v24 = vadd.f32 %v14711_v12, %v14519_v54  ;;  %v8083_v19 = vpack.c.bf16 %v23048_v15, %v8081_v61  ;;  %v8106_v43 = vpack.c.bf16 %v23048_v15, %v8104_v1 }
 0x302   :  { %v14522_v28 = vpop.f32.mrf.mxu1  ;;  %v14715_v37 = vpop.f32.mrf.mxu0  ;;  %v16209_v25 = vcombine.high %v21988_v48, %v21994_v6  ;;  %v16211_v54 = vcombine.high %v21999_v33, %v22004_v39  ;;  %8454 = vst [vmem:[#allocation20 + $0x78] sm:$0xf] %v8451_v4  ;;  %8477 = vst [vmem:[#allocation20 + $0x7c] sm:$0xf] %v8474_v29 }
 0x303   :  { %v14523_v0 = vadd.f32 %v14522_v28, %v21471_v60  ;;  %v22030_v12 = vadd.f32 %v14713_v44, %v14521_v5  ;;  %8086 = vst [vmem:[#allocation20 + $0x38] sm:$0xf] %v8083_v19  ;;  %8109 = vst [vmem:[#allocation20 + $0x3c] sm:$0xf] %v8106_v43  ;;  %v22060_v5 = vld [vmem:[%s23037_s0 + $0xa70] sm:$0xff] }
 0x304   :  { %v14524_v3 = vpop.f32.mrf.mxu1  ;;  %v14717_v23 = vpop.f32.mrf.mxu0 }
 0x305   :  { %v14525_v36 = vadd.f32 %v14524_v3, %v21474_v46  ;;  %v22037_v31 = vadd.f32 %v14715_v37, %v14523_v0  ;;  %v22050_v46 = vld [vmem:[%s23037_s0 + $0xa68] sm:$0xff] }
 0x306   :  { %v14528_v58 = vpop.f32.mrf.mxu1  ;;  %14993 = vmatmul.mubr.bf16.gmra.mxu1 %v16184_v56  ;;  %v14721_v60 = vpop.f32.mrf.mxu0  ;;  %15186 = vmatmul.mubr.bf16.gmra.mxu0 %v16186_v9  ;;  %v16208_v56 = vcombine.low %v21988_v48, %v21994_v6  ;;  %v16210_v9 = vcombine.low %v21999_v33, %v22004_v39  ;;  %v15882_v33 = vld [vmem:[%s23040_s3 + $0x30] sm:$0xff]  }
 0x307   :  { %v14529_v44 = vadd.f32 %v14528_v58, %v21489_v13  ;;  %v22040_v42 = vadd.f32 %v14717_v23, %v14525_v36  ;;  %15002 = vmatprep.mubr.bf16.mxu1 %v16209_v25  ;;  %15195 = vmatprep.mubr.bf16.mxu0 %v16211_v54  ;;  %v22055_v13 = vld [vmem:[%s23037_s0 + $0xa10] sm:$0xff]  ;;  %v16233_v25 = vcombine.high %v22045_v45, %v22050_v46 }
 0x308   :  { %v14530_v61 = vpop.f32.mrf.mxu1  ;;  %v14723_v1 = vpop.f32.mrf.mxu0 }
 0x309   :  { %v14531_v4 = vadd.f32 %v14530_v61, %v21492_v63  ;;  %v22063_v29 = vadd.f32 %v14721_v60, %v14529_v44  ;;  %v19144_v19 = vld [vmem:[#allocation20 + $0x78] sm:$0xff]   ;;  %v16235_v63 = vcombine.high %v22055_v13, %v22060_v5  ;;  %v8029_v44 = vunpack.c.l.bf16 %v15882_v33 }
 0x30a   :  { %v14532_v28 = vpop.f32.mrf.mxu1  ;;  %v14725_v37 = vpop.f32.mrf.mxu0  ;;  %v19145_v54 = vld [vmem:[#allocation20 + $0x38] sm:$0xff]   ;;  %18991 = vmatprep.subr.bf16.mxu0 %v19144_v19  ;;  %v8052_v61 = vunpack.c.h.bf16 %v15882_v33 }
 0x30b   :  { %v14533_v43 = vadd.f32 %v14532_v28, %v21495_v35  ;;  %v22070_v0 = vadd.f32 %v14723_v1, %v14531_v4  ;;  %18992 = vmatpush3.bf16.msra.mxu0 %v19145_v54  ;;  %v15898_v35 = vld [vmem:[%s23040_s3 + $0x70] sm:$0xff]   ;;  %v22091_v4 = vld [vmem:[%s23037_s0 + $0xac8] sm:$0xff] }
 0x30c   :  { %v14534_v3 = vpop.f32.mrf.mxu1  ;;  %v14727_v23 = vpop.f32.mrf.mxu0  ;;  %v8397_v58 = vunpack.c.l.bf16 %v15898_v35  ;;  %v8420_v60 = vunpack.c.h.bf16 %v15898_v35 }
 0x30d   :  { %v14535_v48 = vadd.f32 %v14534_v3, %v21498_v2  ;;  %v22077_v6 = vadd.f32 %v14725_v37, %v14533_v43 }
 0x30e   :  { %v14538_v39 = vpop.f32.mrf.mxu1  ;;  %15003 = vmatmul.mubr.bf16.gmra.mxu1 %v16208_v56  ;;  %v14731_v36 = vpop.f32.mrf.mxu0  ;;  %15196 = vmatmul.mubr.bf16.gmra.mxu0 %v16210_v9  ;;  %v22096_v56 = vld [vmem:[%s23037_s0 + $0xb28] sm:$0xff]  ;;  %v22106_v9 = vld [vmem:[%s23037_s0 + $0xb30] sm:$0xff]  ;;  %v8403_v19 = vsel %vm7759_vm0, %v8397_v58, %v23286_v11  ;;  %v8426_v43 = vsel %vm7759_vm0, %v8420_v60, %v23286_v11  ;;  %v16234_v58 = vcombine.low %v22055_v13, %v22060_v5 }
 0x30f   :  { %v14539_v2 = vadd.f32 %v14538_v39, %v21513_v21  ;;  %v22086_v1 = vadd.f32 %v14727_v23, %v14535_v48  ;;  %15012 = vmatprep.mubr.bf16.mxu1 %v16233_v25  ;;  %15205 = vmatprep.mubr.bf16.mxu0 %v16235_v63  ;;  %v22101_v21 = vld [vmem:[%s23037_s0 + $0xad0] sm:$0xff]  ;;  %v8035_v25 = vsel %vm7759_vm0, %v8029_v44, %v23286_v11 }
 0x310   :  { %v14540_v28 = vpop.f32.mrf.mxu1  ;;  %v14733_v37 = vpop.f32.mrf.mxu0  ;;  %v8058_v63 = vsel %vm7759_vm0, %v8052_v61, %v23286_v11  ;;  %v8405_v23 = vpack.c.bf16 %v23048_v15, %v8403_v19  ;;  %v8428_v48 = vpack.c.bf16 %v23048_v15, %v8426_v43  ;;  %v16232_v39 = vcombine.low %v22045_v45, %v22050_v46  ;;  %v22149_v19 = vld [vmem:[%s23037_s0 + $0xb88] sm:$0xff] }
 0x311   :  { %v14541_v54 = vadd.f32 %v14540_v28, %v21516_v49  ;;  %v22121_v3 = vadd.f32 %v14731_v36, %v14539_v2  ;;  %v8037_v60 = vpack.c.bf16 %v23048_v15, %v8035_v25  ;;  %v8060_v44 = vpack.c.bf16 %v23048_v15, %v8058_v63  ;;  %v22159_v63 = vld [vmem:[%s23037_s0 + $0xb90] sm:$0xff] }
 0x312   :  { %v14542_v35 = vpop.f32.mrf.mxu1  ;;  %v14735_v33 = vpop.f32.mrf.mxu0  ;;  %v16257_v61 = vcombine.high %v22091_v4, %v22096_v56  ;;  %v16259_v2 = vcombine.high %v22101_v21, %v22106_v9  ;;  %8408 = vst [vmem:[#allocation20 + $0x70] sm:$0xf] %v8405_v23  ;;  %8431 = vst [vmem:[#allocation20 + $0x74] sm:$0xf] %v8428_v48 }
 0x313   :  { %v14543_v49 = vadd.f32 %v14542_v35, %v21519_v7  ;;  %v22132_v36 = vadd.f32 %v14733_v37, %v14541_v54  ;;  %8040 = vst [vmem:[#allocation20 + $0x30] sm:$0xf] %v8037_v60  ;;  %8063 = vst [vmem:[#allocation20 + $0x34] sm:$0xf] %v8060_v44 }
 0x314   :  { %v14544_v45 = vpop.f32.mrf.mxu1  ;;  %v22138_v46 = vpop.f32.mrf.mxu0 }
 0x315   :  { %v22141_v13 = vadd.f32 %v14544_v45, %v21522_v53  ;;  %v22143_v5 = vadd.f32 %v14735_v33, %v14543_v49  ;;  %v22154_v53 = vld [vmem:[%s23037_s0 + $0xbe8] sm:$0xff]  ;;  %v16256_v33 = vcombine.low %v22091_v4, %v22096_v56 }
 0x316   :  { %v14548_v7 = vpop.f32.mrf.mxu1  ;;  %15013 = vmatmul.mubr.bf16.gmra.mxu1 %v16232_v39  ;;  %v14741_v28 = vpop.f32.mrf.mxu0  ;;  %15206 = vmatmul.mubr.bf16.gmra.mxu0 %v16234_v58  ;;  %v16258_v39 = vcombine.low %v22101_v21, %v22106_v9  ;;  %v16281_v49 = vcombine.high %v22149_v19, %v22154_v53  ;;  %v15880_v21 = vld [vmem:[%s23040_s3 + $0x28] sm:$0xff]  }
 0x317   :  { %v14549_v37 = vadd.f32 %v14548_v7, %v21537_v26  ;;  %15022 = vmatprep.mubr.bf16.mxu1 %v16257_v61  ;;  %15215 = vmatprep.mubr.bf16.mxu0 %v16259_v2  ;;  %v22164_v26 = vld [vmem:[%s23037_s0 + $0xbf0] sm:$0xff] }
 0x318   :  { %v14550_v43 = vpop.f32.mrf.mxu1  ;;  %v14743_v25 = vpop.f32.mrf.mxu0 }
 0x319   :  { %v14551_v54 = vadd.f32 %v14550_v43, %v21540_v27  ;;  %v22167_v23 = vadd.f32 %v14741_v28, %v14549_v37  ;;  %v19146_v58 = vld [vmem:[#allocation20 + $0x70] sm:$0xff]   ;;  %v16283_v27 = vcombine.high %v22159_v63, %v22164_v26  ;;  %v7983_v43 = vunpack.c.l.bf16 %v15880_v21 }
 0x31a   :  { %v14552_v48 = vpop.f32.mrf.mxu1  ;;  %v14745_v35 = vpop.f32.mrf.mxu0  ;;  %v19147_v61 = vld [vmem:[#allocation20 + $0x30] sm:$0xff]   ;;  %18993 = vmatprep.subr.bf16.mxu0 %v19146_v58 }
 0x31b   :  { %v14553_v60 = vadd.f32 %v14552_v48, %v21543_v41  ;;  %v22174_v44 = vadd.f32 %v14743_v25, %v14551_v54  ;;  %18994 = vmatpush3.bf16.msra.mxu0 %v19147_v61  ;;  %v15896_v41 = vld [vmem:[%s23040_s3 + $0x68] sm:$0xff]   ;;  %v7989_v58 = vsel %vm7759_vm0, %v7983_v43, %v23286_v11 }
 0x31c   :  { %v14554_v2 = vpop.f32.mrf.mxu1  ;;  %v22180_v45 = vpop.f32.mrf.mxu0  ;;  %v8351_v28 = vunpack.c.l.bf16 %v15896_v41  ;;  %v8374_v37 = vunpack.c.h.bf16 %v15896_v41  ;;  %v7991_v43 = vpack.c.bf16 %v23048_v15, %v7989_v58 }
 0x31d   :  { %v22183_v4 = vadd.f32 %v14554_v2, %v21546_v38  ;;  %v22185_v56 = vadd.f32 %v14745_v35, %v14553_v60  ;;  %v8006_v38 = vunpack.c.h.bf16 %v15880_v21  ;;  %v8504_v35 = vld [vmem:[%s23037_s0 + $0x58] sm:$0xff] }
 0x31e   :  { %v14558_v9 = vpop.f32.mrf.mxu1  ;;  %15023 = vmatmul.mubr.bf16.gmra.mxu1 %v16256_v33  ;;  %v14751_v7 = vpop.f32.mrf.mxu0  ;;  %15216 = vmatmul.mubr.bf16.gmra.mxu0 %v16258_v39  ;;  %v8516_v33 = vld [vmem:[%s23037_s0 + $0xb8] sm:$0xff]  ;;  %v8357_v39 = vsel %vm7759_vm0, %v8351_v28, %v23286_v11  ;;  %v16280_v28 = vcombine.low %v22149_v19, %v22154_v53  ;;  %7994 = vst [vmem:[#allocation20 + $0x28] sm:$0xf] %v7991_v43 }
 0x31f   :  { %23287 = vst [vmem:[#allocation47_spill] sm:$0xff] %v22185_v56  ;;  %v14559_v25 = vadd.f32 %v14558_v9, %v21561_v18  ;;  %15032 = vmatprep.mubr.bf16.mxu1 %v16281_v49  ;;  %15225 = vmatprep.mubr.bf16.mxu0 %v16283_v27  ;;  %v8380_v18 = vsel %vm7759_vm0, %v8374_v37, %v23286_v11  ;;  %v23288_v49 = vld [vmem:[#allocation54_spill] sm:$0xff]  ;;  %v23290_v56 = vld [vmem:[#allocation55_spill] sm:$0xff]  ;;  %v23293_v19 = vld [vmem:[#allocation56_spill] sm:$0xff] }
 0x320   :  { %v14560_v54 = vpop.f32.mrf.mxu1  ;;  %v14753_v48 = vpop.f32.mrf.mxu0  ;;  %v8012_v60 = vsel %vm7759_vm0, %v8006_v38, %v23286_v11  ;;  %v8359_v2 = vpack.c.bf16 %v23048_v15, %v8357_v39  ;;  %v8382_v41 = vpack.c.bf16 %v23048_v15, %v8380_v18  ;;  %v16282_v37 = vcombine.low %v22159_v63, %v22164_v26 }
 0x321   :  { %v14561_v27 = vadd.f32 %v14560_v54, %v23288_v49  ;;  %v22213_v61 = vadd.f32 %v14751_v7, %v14559_v25  ;;  %v8014_v38 = vpack.c.bf16 %v23048_v15, %v8012_v60  ;;  %v15925_v25 = vcombine.high %v8504_v35, %v8516_v33 }
 0x322   :  { %v14562_v21 = vpop.f32.mrf.mxu1  ;;  %v14755_v9 = vpop.f32.mrf.mxu0  ;;  %8362 = vst [vmem:[#allocation20 + $0x68] sm:$0xf] %v8359_v2  ;;  %8385 = vst [vmem:[#allocation20 + $0x6c] sm:$0xf] %v8382_v41  ;;  %v8540_v2 = vld [vmem:[%s23037_s0 + $0x178] sm:$0xff]  ;;  %v23297_v41 = vld [vmem:[#allocation58_spill] sm:$0xff] }
 0x323   :  { %23289 = vst [vmem:[#allocation48_spill] sm:$0xff] %v22213_v61  ;;  %v14563_v54 = vadd.f32 %v14562_v21, %v23290_v56  ;;  %v22224_v7 = vadd.f32 %v14753_v48, %v14561_v27  ;;  %8017 = vst [vmem:[#allocation20 + $0x2c] sm:$0xf] %v8014_v38  ;;  %v23296_v56 = vld [vmem:[#allocation57_spill] sm:$0xff]  ;;  %v8528_v27 = vld [vmem:[%s23037_s0 + $0x118] sm:$0xff] }
 0x324   :  { %v14564_v39 = vpop.f32.mrf.mxu1  ;;  %v22226_v18 = vpop.f32.mrf.mxu0 }
 0x325   :  { %23291 = vst [vmem:[#allocation49_spill] sm:$0xff] %v22224_v7  ;;  %23292 = vst [vmem:[#allocation50_spill] sm:$0xff] %v22226_v18  ;;  %v22229_v53 = vadd.f32 %v14564_v39, %v23293_v19  ;;  %v22231_v63 = vadd.f32 %v14755_v9, %v14563_v54  ;;  %v23299_v54 = vld [vmem:[#allocation59_spill] sm:$0xff]  ;;  %v15949_v19 = vcombine.high %v8528_v27, %v8540_v2 }
 0x326   :  { %v14568_v26 = vpop.f32.mrf.mxu1  ;;  %15033 = vmatmul.mubr.bf16.gmra.mxu1 %v16280_v28  ;;  %v14761_v58 = vpop.f32.mrf.mxu0  ;;  %15226 = vmatmul.mubr.bf16.gmra.mxu0 %v16282_v37  ;;  %v15924_v37 = vcombine.low %v8504_v35, %v8516_v33  ;;  %v15894_v35 = vld [vmem:[%s23040_s3 + $0x60] sm:$0xff]  }
 0x327   :  { %23294 = vst [vmem:[#allocation51_spill] sm:$0xff] %v22229_v53  ;;  %23295 = vst [vmem:[#allocation52_spill] sm:$0xff] %v22231_v63  ;;  %v14569_v48 = vadd.f32 %v14568_v26, %v23296_v56  ;;  %15268 = vmatprep.mubr.bf16.mxu1 %v15925_v25  ;;  %v23302_v63 = vld [vmem:[#allocation60_spill] sm:$0xff] }
 0x328   :  { %v14570_v60 = vpop.f32.mrf.mxu1  ;;  %v14763_v49 = vpop.f32.mrf.mxu0  ;;  %v15878_v33 = vld [vmem:[%s23040_s3 + $0x20] sm:$0xff]  }
 0x329   :  { %v14571_v21 = vadd.f32 %v14570_v60, %v23297_v41  ;;  %v22241_v9 = vadd.f32 %v14761_v58, %v14569_v48  ;;  %v19148_v38 = vld [vmem:[#allocation20 + $0x68] sm:$0xff]   ;;  %v8328_v41 = vunpack.c.h.bf16 %v15894_v35 }
 0x32a   :  { %v14572_v28 = vpop.f32.mrf.mxu1  ;;  %v14765_v43 = vpop.f32.mrf.mxu0  ;;  %v19149_v26 = vld [vmem:[#allocation20 + $0x28] sm:$0xff]   ;;  %18995 = vmatprep.subr.bf16.mxu0 %v19148_v38 }
 0x32b   :  { %23298 = vst [vmem:[#allocation53_spill] sm:$0xff] %v22241_v9  ;;  %v14573_v25 = vadd.f32 %v14572_v28, %v23299_v54  ;;  %v22244_v39 = vadd.f32 %v14763_v49, %v14571_v21  ;;  %18996 = vmatpush3.bf16.msra.mxu0 %v19149_v26  ;;  %v8305_v49 = vunpack.c.l.bf16 %v15894_v35  ;;  %v7937_v21 = vunpack.c.l.bf16 %v15878_v33  ;;  %v8564_v26 = vld [vmem:[%s23037_s0 + $0x238] sm:$0xff] }
 0x32c   :  { %v14574_v56 = vpop.f32.mrf.mxu1  ;;  %v22246_v15 = vpop.f32.mrf.mxu0  ;;  %v7960_v28 = vunpack.c.h.bf16 %v15878_v33  ;;  %v23306_v33 = vld [vmem:[#allocation62_spill] sm:$0xff]  ;;  %v15948_v9 = vcombine.low %v8528_v27, %v8540_v2 }
 0x32d   :  { %23300 = vst [vmem:[#allocation54_spill] sm:$0xff] %v22244_v39  ;;  %23301 = vst [vmem:[#allocation55_spill] sm:$0xff] %v22246_v15  ;;  %v22249_v18 = vadd.f32 %v14574_v56, %v23302_v63  ;;  %v22251_v60 = vadd.f32 %v14765_v43, %v14573_v25  ;;  %v23305_v63 = vld [vmem:[#allocation61_spill] sm:$0xff]  ;;  %v8552_v25 = vld [vmem:[%s23037_s0 + $0x1d8] sm:$0xff]  ;;  %v8334_v56 = vsel %vm7759_vm0, %v8328_v41, %v23286_v11 }
 0x32e   :  { %v14578_v58 = vpop.f32.mrf.mxu1  ;;  %15269 = vmatmul.mubr.bf16.vlgmr.msra.gmra.mxu1 %v15924_v37  ;;  %v14771_v48 = vpop.f32.mrf.mxu0  ;;  %v8311_v37 = vsel %vm7759_vm0, %v8305_v49, %v23286_v11  ;;  %v7966_v35 = vsel %vm7759_vm0, %v7960_v28, %v23286_v11  ;;  %v15973_v28 = vcombine.high %v8552_v25, %v8564_v26 }
 0x32f   :  { %23303 = vst [vmem:[#allocation56_spill] sm:$0xff] %v22249_v18  ;;  %23304 = vst [vmem:[#allocation57_spill] sm:$0xff] %v22251_v60  ;;  %v14579_v38 = vadd.f32 %v14578_v58, %v23305_v63  ;;  %15278 = vmatprep.mubr.bf16.mxu1 %v15949_v19  ;;  %v7943_v19 = vsel %vm7759_vm0, %v7937_v21, %v23286_v11  ;;  %v23308_v60 = vmov 0.0   ;;  %v23309_v21 = vld [vmem:[#allocation63_spill] sm:$0xff] }
 0x330   :  { %v14580_v43 = vpop.f32.mrf.mxu1  ;;  %v14773_v54 = vpop.f32.mrf.mxu0  ;;  %v8313_v15 = vpack.c.bf16 %v23308_v60, %v8311_v37  ;;  %v8336_v49 = vpack.c.bf16 %v23308_v60, %v8334_v56  ;;  %v7945_v41 = vpack.c.bf16 %v23308_v60, %v7943_v19  ;;  %v7968_v53 = vpack.c.bf16 %v23308_v60, %v7966_v35  ;;  %v23315_v19 = vld [vmem:[#allocation28_spill] sm:$0xff] }
 0x331   :  { %v14581_v58 = vadd.f32 %v14580_v43, %v23306_v33  ;;  %v22279_v63 = vadd.f32 %v14771_v48, %v14579_v38  ;;  %v23312_v43 = vld [vmem:[#allocation27_spill] sm:$0xff]  ;;  %v23316_v33 = vld [vmem:[#allocation29_spill] sm:$0xff] }
 0x332   :  { %v14582_v18 = vpop.f32.mrf.mxu1  ;;  %v14775_v39 = vpop.f32.mrf.mxu0  ;;  %8316 = vst [vmem:[#allocation20 + $0x60] sm:$0xf] %v8313_v15  ;;  %8339 = vst [vmem:[#allocation20 + $0x64] sm:$0xf] %v8336_v49  ;;  %v8576_v15 = vld [vmem:[%s23037_s0 + $0x298] sm:$0xff]  ;;  %v15972_v49 = vcombine.low %v8552_v25, %v8564_v26 }
 0x333   :  { %23307 = vst [vmem:[#allocation58_spill] sm:$0xff] %v22279_v63  ;;  %v14583_v7 = vadd.f32 %v14582_v18, %v23309_v21  ;;  %v22286_v61 = vadd.f32 %v14773_v54, %v14581_v58  ;;  %7948 = vst [vmem:[#allocation20 + $0x20] sm:$0xf] %v7945_v41  ;;  %v23318_v21 = vld [vmem:[#allocation30_spill] sm:$0xff]  ;;  %v15892_v25 = vld [vmem:[%s23040_s3 + $0x58] sm:$0xff]  }
 0x334   :  { %v14584_v48 = vpop.f32.mrf.mxu1  ;;  %v22288_v38 = vpop.f32.mrf.mxu0  ;;  %7971 = vst [vmem:[#allocation20 + $0x24] sm:$0xf] %v7968_v53  ;;  %v8588_v53 = vld [vmem:[%s23037_s0 + $0x2f8] sm:$0xff] }
 0x335   :  { %23310 = vst [vmem:[#allocation59_spill] sm:$0xff] %v22286_v61  ;;  %23311 = vst [vmem:[#allocation60_spill] sm:$0xff] %v22288_v38  ;;  %v22291_v37 = vadd.f32 %v14584_v48, %v23312_v43  ;;  %v22293_v27 = vadd.f32 %v14775_v39, %v14583_v7  ;;  %v15997_v43 = vcombine.high %v8576_v15, %v8588_v53  ;;  %v23321_v38 = vld [vmem:[#allocation31_spill] sm:$0xff] }
 0x336   :  { %v14588_v2 = vpop.f32.mrf.mxu1  ;;  %15279 = vmatmul.mubr.bf16.gmra.mxu1 %v15948_v9  ;;  %v14781_v56 = vpop.f32.mrf.mxu0  ;;  %v15876_v26 = vld [vmem:[%s23040_s3 + $0x18] sm:$0xff]  }
 0x337   :  { %23313 = vst [vmem:[#allocation61_spill] sm:$0xff] %v22291_v37  ;;  %23314 = vst [vmem:[#allocation62_spill] sm:$0xff] %v22293_v27  ;;  %v14589_v18 = vadd.f32 %v14588_v2, %v23315_v19  ;;  %15288 = vmatprep.mubr.bf16.mxu1 %v15973_v28 }
 0x338   :  { %v14590_v54 = vpop.f32.mrf.mxu1  ;;  %v14783_v35 = vpop.f32.mrf.mxu0 }
 0x339   :  { %v14591_v58 = vadd.f32 %v14590_v54, %v23316_v33  ;;  %v22303_v7 = vadd.f32 %v14781_v56, %v14589_v18  ;;  %v19150_v41 = vld [vmem:[#allocation20 + $0x60] sm:$0xff]   ;;  %v8282_v33 = vunpack.c.h.bf16 %v15892_v25 }
 0x33a   :  { %v14592_v39 = vpop.f32.mrf.mxu1  ;;  %v14785_v9 = vpop.f32.mrf.mxu0  ;;  %18997 = vmatprep.subr.bf16.mxu0 %v19150_v41 }
 0x33b   :  { %23317 = vst [vmem:[#allocation63_spill] sm:$0xff] %v22303_v7  ;;  %v14593_v28 = vadd.f32 %v14592_v39, %v23318_v21  ;;  %v22306_v48 = vadd.f32 %v14783_v35, %v14591_v58  ;;  %v19151_v2 = vld [vmem:[#allocation20 + $0x20] sm:$0xff]   ;;  %v8259_v35 = vunpack.c.l.bf16 %v15892_v25  ;;  %v7891_v58 = vunpack.c.l.bf16 %v15876_v26 }
 0x33c   :  { %v14594_v19 = vpop.f32.mrf.mxu1  ;;  %v22308_v27 = vpop.f32.mrf.mxu0  ;;  %18998 = vmatpush3.bf16.msra.mxu0 %v19151_v2  ;;  %v7914_v39 = vunpack.c.h.bf16 %v15876_v26  ;;  %v8612_v2 = vld [vmem:[%s23037_s0 + $0x3b8] sm:$0xff]  ;;  %v23325_v26 = vld [vmem:[#allocation33_spill] sm:$0xff] }
 0x33d   :  { %23319 = vst [vmem:[#allocation27_spill] sm:$0xff] %v22306_v48  ;;  %23320 = vst [vmem:[#allocation28_spill] sm:$0xff] %v22308_v27  ;;  %v22311_v37 = vadd.f32 %v14594_v19, %v23321_v38  ;;  %v22313_v54 = vadd.f32 %v14785_v9, %v14593_v28  ;;  %v23324_v38 = vld [vmem:[#allocation32_spill] sm:$0xff]  ;;  %v8288_v19 = vsel %vm7759_vm0, %v8282_v33, %v23286_v11 }
 0x33e   :  { %v14598_v56 = vpop.f32.mrf.mxu1  ;;  %15289 = vmatmul.mubr.bf16.gmra.mxu1 %v15972_v49  ;;  %v14791_v18 = vpop.f32.mrf.mxu0  ;;  %v8600_v28 = vld [vmem:[%s23037_s0 + $0x358] sm:$0xff]  ;;  %v8265_v49 = vsel %vm7759_vm0, %v8259_v35, %v23286_v11  ;;  %v7920_v25 = vsel %vm7759_vm0, %v7914_v39, %v23286_v11  ;;  %v8290_v35 = vpack.c.bf16 %v23308_v60, %v8288_v19  ;;  %v15996_v48 = vcombine.low %v8576_v15, %v8588_v53 }
 0x33f   :  { %23322 = vst [vmem:[#allocation29_spill] sm:$0xff] %v22311_v37  ;;  %23323 = vst [vmem:[#allocation30_spill] sm:$0xff] %v22313_v54  ;;  %v14599_v41 = vadd.f32 %v14598_v56, %v23324_v38  ;;  %15298 = vmatprep.mubr.bf16.mxu1 %v15997_v43  ;;  %v7897_v43 = vsel %vm7759_vm0, %v7891_v58, %v23286_v11  ;;  %v8267_v54 = vpack.c.bf16 %v23308_v60, %v8265_v49  ;;  %v23326_v58 = vld [vmem:[#allocation34_spill] sm:$0xff] }
 0x340   :  { %v14600_v9 = vpop.f32.mrf.mxu1  ;;  %v14793_v21 = vpop.f32.mrf.mxu0  ;;  %v7899_v33 = vpack.c.bf16 %v23308_v60, %v7897_v43  ;;  %v7922_v7 = vpack.c.bf16 %v23308_v60, %v7920_v25  ;;  %v16021_v39 = vcombine.high %v8600_v28, %v8612_v2  ;;  %8293 = vst [vmem:[#allocation20 + $0x5c] sm:$0xf] %v8290_v35  ;;  %v23332_v43 = vld [vmem:[#allocation36_spill] sm:$0xff]  ;;  %v16020_v35 = vcombine.low %v8600_v28, %v8612_v2  ;;  %v15890_v28 = vld [vmem:[%s23040_s3 + $0x50] sm:$0xff]  }
 0x341   :  { %v14601_v56 = vadd.f32 %v14600_v9, %v23325_v26  ;;  %v22341_v38 = vadd.f32 %v14791_v18, %v14599_v41  ;;  %8270 = vst [vmem:[#allocation20 + $0x58] sm:$0xf] %v8267_v54  ;;  %v23329_v9 = vld [vmem:[#allocation35_spill] sm:$0xff]  ;;  %v23333_v26 = vld [vmem:[#allocation37_spill] sm:$0xff] }
 0x342   :  { %v14602_v27 = vpop.f32.mrf.mxu1  ;;  %v14795_v37 = vpop.f32.mrf.mxu0  ;;  %7902 = vst [vmem:[#allocation20 + $0x18] sm:$0xf] %v7899_v33  ;;  %7925 = vst [vmem:[#allocation20 + $0x1c] sm:$0xf] %v7922_v7  ;;  %v8624_v54 = vld [vmem:[%s23037_s0 + $0x418] sm:$0xff]  ;;  %v15874_v2 = vld [vmem:[%s23040_s3 + $0x10] sm:$0xff]  }
 0x343   :  { %v14603_v61 = vadd.f32 %v14602_v27, %v23326_v58  ;;  %v22348_v63 = vadd.f32 %v14793_v21, %v14601_v56  ;;  %v8636_v7 = vld [vmem:[%s23037_s0 + $0x478] sm:$0xff]  ;;  %v23335_v58 = vld [vmem:[#allocation38_spill] sm:$0xff] }
 0x344   :  { %v14604_v18 = vpop.f32.mrf.mxu1  ;;  %v22350_v41 = vpop.f32.mrf.mxu0 }
 0x345   :  { %23327 = vst [vmem:[#allocation31_spill] sm:$0xff] %v22348_v63  ;;  %23328 = vst [vmem:[#allocation32_spill] sm:$0xff] %v22350_v41  ;;  %v22353_v49 = vadd.f32 %v14604_v18, %v23329_v9  ;;  %v22355_v15 = vadd.f32 %v14795_v37, %v14603_v61  ;;  %v16045_v9 = vcombine.high %v8624_v54, %v8636_v7  ;;  %v23338_v41 = vld [vmem:[#allocation39_spill] sm:$0xff] }
 0x346   :  { %v14608_v53 = vpop.f32.mrf.mxu1  ;;  %15299 = vmatmul.mubr.bf16.gmra.mxu1 %v15996_v48  ;;  %v14801_v19 = vpop.f32.mrf.mxu0 }
 0x347   :  { %23330 = vst [vmem:[#allocation33_spill] sm:$0xff] %v22353_v49  ;;  %23331 = vst [vmem:[#allocation34_spill] sm:$0xff] %v22355_v15  ;;  %v14609_v27 = vadd.f32 %v14608_v53, %v23332_v43  ;;  %15308 = vmatprep.mubr.bf16.mxu1 %v16021_v39 }
 0x348   :  { %v14610_v21 = vpop.f32.mrf.mxu1  ;;  %v14803_v25 = vpop.f32.mrf.mxu0  ;;  %v19152_v33 = vld [vmem:[#allocation20 + $0x58] sm:$0xff]  }
 0x349   :  { %v14611_v56 = vadd.f32 %v14610_v21, %v23333_v26  ;;  %v22365_v61 = vadd.f32 %v14801_v19, %v14609_v27  ;;  %v19153_v53 = vld [vmem:[#allocation20 + $0x18] sm:$0xff]   ;;  %18999 = vmatprep.subr.bf16.mxu0 %v19152_v33  ;;  %v8236_v26 = vunpack.c.h.bf16 %v15890_v28 }
 0x34a   :  { %v14612_v37 = vpop.f32.mrf.mxu1  ;;  %v14805_v48 = vpop.f32.mrf.mxu0  ;;  %19000 = vmatpush3.bf16.msra.mxu0 %v19153_v53  ;;  %v8660_v53 = vld [vmem:[%s23037_s0 + $0x538] sm:$0xff] }
 0x34b   :  { %23334 = vst [vmem:[#allocation35_spill] sm:$0xff] %v22365_v61  ;;  %v14613_v39 = vadd.f32 %v14612_v37, %v23335_v58  ;;  %v22368_v18 = vadd.f32 %v14803_v25, %v14611_v56  ;;  %v8213_v25 = vunpack.c.l.bf16 %v15890_v28  ;;  %v7845_v56 = vunpack.c.l.bf16 %v15874_v2 }
 0x34c   :  { %v14614_v43 = vpop.f32.mrf.mxu1  ;;  %v22370_v15 = vpop.f32.mrf.mxu0  ;;  %v7868_v37 = vunpack.c.h.bf16 %v15874_v2  ;;  %v23342_v2 = vld [vmem:[#allocation41_spill] sm:$0xff] }
 0x34d   :  { %23336 = vst [vmem:[#allocation36_spill] sm:$0xff] %v22368_v18  ;;  %23337 = vst [vmem:[#allocation37_spill] sm:$0xff] %v22370_v15  ;;  %v22373_v49 = vadd.f32 %v14614_v43, %v23338_v41  ;;  %v22375_v21 = vadd.f32 %v14805_v48, %v14613_v39  ;;  %v23341_v41 = vld [vmem:[#allocation40_spill] sm:$0xff]  ;;  %v8242_v43 = vsel %vm7759_vm0, %v8236_v26, %v23286_v11 }
 0x34e   :  { %v14618_v19 = vpop.f32.mrf.mxu1  ;;  %15309 = vmatmul.mubr.bf16.gmra.mxu1 %v16020_v35  ;;  %v14811_v27 = vpop.f32.mrf.mxu0  ;;  %v8648_v39 = vld [vmem:[%s23037_s0 + $0x4d8] sm:$0xff]  ;;  %v8219_v35 = vsel %vm7759_vm0, %v8213_v25, %v23286_v11  ;;  %v7874_v28 = vsel %vm7759_vm0, %v7868_v37, %v23286_v11  ;;  %v8244_v25 = vpack.c.bf16 %v23308_v60, %v8242_v43  ;;  %v16044_v18 = vcombine.low %v8624_v54, %v8636_v7 }
 0x34f   :  { %23339 = vst [vmem:[#allocation38_spill] sm:$0xff] %v22373_v49  ;;  %23340 = vst [vmem:[#allocation39_spill] sm:$0xff] %v22375_v21  ;;  %v14619_v33 = vadd.f32 %v14618_v19, %v23341_v41  ;;  %15318 = vmatprep.mubr.bf16.mxu1 %v16045_v9  ;;  %v7851_v9 = vsel %vm7759_vm0, %v7845_v56, %v23286_v11  ;;  %v8221_v21 = vpack.c.bf16 %v23308_v60, %v8219_v35 }
 0x350   :  { %v14620_v48 = vpop.f32.mrf.mxu1  ;;  %v14813_v58 = vpop.f32.mrf.mxu0  ;;  %v7853_v26 = vpack.c.bf16 %v23308_v60, %v7851_v9  ;;  %v7876_v61 = vpack.c.bf16 %v23308_v60, %v7874_v28  ;;  %v16069_v37 = vcombine.high %v8648_v39, %v8660_v53  ;;  %8247 = vst [vmem:[#allocation20 + $0x54] sm:$0xf] %v8244_v25  ;;  %v23346_v9 = vld [vmem:[#allocation43_spill] sm:$0xff]  ;;  %v23347_v28 = vld [vmem:[#allocation44_spill] sm:$0xff]  ;;  %v16068_v25 = vcombine.low %v8648_v39, %v8660_v53  ;;  %v15888_v39 = vld [vmem:[%s23040_s3 + $0x48] sm:$0xff]  }
 0x351   :  { %v14621_v19 = vadd.f32 %v14620_v48, %v23342_v2  ;;  %v22403_v41 = vadd.f32 %v14811_v27, %v14619_v33  ;;  %8224 = vst [vmem:[#allocation20 + $0x50] sm:$0xf] %v8221_v21  ;;  %v23344_v48 = vld [vmem:[#allocation42_spill] sm:$0xff]  ;;  %v8672_v21 = vld [vmem:[%s23037_s0 + $0x598] sm:$0xff] }
 0x352   :  { %v14622_v15 = vpop.f32.mrf.mxu1  ;;  %v14815_v49 = vpop.f32.mrf.mxu0  ;;  %7856 = vst [vmem:[#allocation20 + $0x10] sm:$0xf] %v7853_v26  ;;  %7879 = vst [vmem:[#allocation20 + $0x14] sm:$0xf] %v7876_v61  ;;  %v8684_v61 = vld [vmem:[%s23037_s0 + $0x5f8] sm:$0xff] }
 0x353   :  { %v14623_v56 = vadd.f32 %v14622_v15, %v21803_v47  ;;  %v22410_v63 = vadd.f32 %v14813_v58, %v14621_v19 }
 0x354   :  { %v14624_v27 = vpop.f32.mrf.mxu1  ;;  %v22412_v33 = vpop.f32.mrf.mxu0 }
 0x355   :  { %23343 = vst [vmem:[#allocation40_spill] sm:$0xff] %v22412_v33  ;;  %v22415_v35 = vadd.f32 %v14624_v27, %v23344_v48  ;;  %v22417_v54 = vadd.f32 %v14815_v49, %v14623_v56  ;;  %v16093_v27 = vcombine.high %v8672_v21, %v8684_v61 }
 0x356   :  { %v14628_v7 = vpop.f32.mrf.mxu1  ;;  %15319 = vmatmul.mubr.bf16.gmra.mxu1 %v16044_v18  ;;  %v14821_v43 = vpop.f32.mrf.mxu0 }
 0x357   :  { %23345 = vst [vmem:[#allocation41_spill] sm:$0xff] %v22417_v54  ;;  %v14629_v47 = vadd.f32 %v14628_v7, %v23346_v9  ;;  %15328 = vmatprep.mubr.bf16.mxu1 %v16069_v37  ;;  %v23350_v54 = vld [vmem:[#allocation45_spill] sm:$0xff] }
 0x358   :  { %v14630_v15 = vpop.f32.mrf.mxu1  ;;  %v14823_v58 = vpop.f32.mrf.mxu0  ;;  %v19154_v26 = vld [vmem:[#allocation20 + $0x50] sm:$0xff]  }
 0x359   :  { %v14631_v2 = vadd.f32 %v14630_v15, %v23347_v28  ;;  %v22427_v49 = vadd.f32 %v14821_v43, %v14629_v47  ;;  %v19155_v48 = vld [vmem:[#allocation20 + $0x10] sm:$0xff]   ;;  %19001 = vmatprep.subr.bf16.mxu0 %v19154_v26  ;;  %v8167_v47 = vunpack.c.l.bf16 %v15888_v39 }
 0x35a   :  { %v14632_v19 = vpop.f32.mrf.mxu1  ;;  %v14825_v18 = vpop.f32.mrf.mxu0  ;;  %19002 = vmatpush3.bf16.msra.mxu0 %v19155_v48  ;;  %v8696_v26 = vld [vmem:[%s23037_s0 + $0x658] sm:$0xff] }
 0x35b   :  { %v14633_v56 = vadd.f32 %v14632_v19, %v21843_v14  ;;  %v22430_v37 = vadd.f32 %v14823_v58, %v14631_v2  ;;  %v15872_v14 = vld [vmem:[%s23040_s3 + $0x8] sm:$0xff]   ;;  %v8190_v58 = vunpack.c.h.bf16 %v15888_v39 }
 0x35c   :  { %v14634_v7 = vpop.f32.mrf.mxu1  ;;  %v22432_v9 = vpop.f32.mrf.mxu0  ;;  %v7799_v28 = vunpack.c.l.bf16 %v15872_v14  ;;  %v7822_v2 = vunpack.c.h.bf16 %v15872_v14 }
 0x35d   :  { %23348 = vst [vmem:[#allocation42_spill] sm:$0xff] %v22430_v37  ;;  %23349 = vst [vmem:[#allocation43_spill] sm:$0xff] %v22432_v9  ;;  %v22435_v33 = vadd.f32 %v14634_v7, %v23350_v54  ;;  %v22437_v15 = vadd.f32 %v14825_v18, %v14633_v56  ;;  %v8708_v56 = vld [vmem:[%s23037_s0 + $0x6b8] sm:$0xff]  ;;  %v8196_v48 = vsel %vm7759_vm0, %v8190_v58, %v23286_v11 }
 0x35e   :  { %v14638_v53 = vpop.f32.mrf.mxu1  ;;  %15329 = vmatmul.mubr.bf16.gmra.mxu1 %v16068_v25  ;;  %v14831_v43 = vpop.f32.mrf.mxu0  ;;  %v8173_v25 = vsel %vm7759_vm0, %v8167_v47, %v23286_v11  ;;  %v16092_v9 = vcombine.low %v8672_v21, %v8684_v61 }
 0x35f   :  { %23351 = vst [vmem:[#allocation44_spill] sm:$0xff] %v22435_v33  ;;  %23352 = vst [vmem:[#allocation45_spill] sm:$0xff] %v22437_v15  ;;  %v14639_v54 = vadd.f32 %v14638_v53, %v21869_v51  ;;  %15338 = vmatprep.mubr.bf16.mxu1 %v16093_v27  ;;  %v7805_v51 = vsel %vm7759_vm0, %v7799_v28, %v23286_v11  ;;  %v7828_v27 = vsel %vm7759_vm0, %v7822_v2, %v23286_v11 }
 0x360   :  { %v14640_v19 = vpop.f32.mrf.mxu1  ;;  %v14833_v18 = vpop.f32.mrf.mxu0  ;;  %v8175_v14 = vpack.c.bf16 %v23308_v60, %v8173_v25  ;;  %v8198_v53 = vpack.c.bf16 %v23308_v60, %v8196_v48  ;;  %v7807_v58 = vpack.c.bf16 %v23308_v60, %v7805_v51  ;;  %v7830_v33 = vpack.c.bf16 %v23308_v60, %v7828_v27  ;;  %v8720_v48 = vld [vmem:[%s23037_s0 + $0x718] sm:$0xff] }
 0x361   :  { %v14641_v7 = vadd.f32 %v14640_v19, %v21876_v50  ;;  %v22465_v39 = vadd.f32 %v14831_v43, %v14639_v54  ;;  %v16117_v2 = vcombine.high %v8696_v26, %v8708_v56  ;;  %v16116_v27 = vcombine.low %v8696_v26, %v8708_v56 }
 0x362   :  { %v14642_v47 = vpop.f32.mrf.mxu1  ;;  %v14835_v15 = vpop.f32.mrf.mxu0  ;;  %8178 = vst [vmem:[#allocation20 + $0x48] sm:$0xf] %v8175_v14  ;;  %8201 = vst [vmem:[#allocation20 + $0x4c] sm:$0xf] %v8198_v53 }
 0x363   :  { %v14643_v28 = vadd.f32 %v14642_v47, %v21883_v22  ;;  %v22472_v37 = vadd.f32 %v14833_v18, %v14641_v7  ;;  %7810 = vst [vmem:[#allocation20 + $0x8] sm:$0xf] %v7807_v58  ;;  %7833 = vst [vmem:[#allocation20 + $0xc] sm:$0xf] %v7830_v33  ;;  %v8732_v33 = vld [vmem:[%s23037_s0 + $0x778] sm:$0xff] }
 0x364   :  { %v14644_v50 = vpop.f32.mrf.mxu1  ;;  %v22474_v43 = vpop.f32.mrf.mxu0 }
 0x365   :  { %v22477_v54 = vadd.f32 %v14644_v50, %v21886_v57  ;;  %v22479_v21 = vadd.f32 %v14835_v15, %v14643_v28  ;;  %v16141_v28 = vcombine.high %v8720_v48, %v8732_v33 }
 0x366   :  { %v14648_v61 = vpop.f32.mrf.mxu1  ;;  %15339 = vmatmul.mubr.bf16.gmra.mxu1 %v16092_v9  ;;  %v14841_v19 = vpop.f32.mrf.mxu0  ;;  %v15886_v9 = vld [vmem:[%s23040_s3 + $0x40] sm:$0xff]  }
 0x367   :  { %v14649_v22 = vadd.f32 %v14648_v61, %v21901_v10  ;;  %15348 = vmatprep.mubr.bf16.mxu1 %v16117_v2  ;;  %v8121_v14 = vunpack.c.l.bf16 %v15886_v9  ;;  %v8144_v53 = vunpack.c.h.bf16 %v15886_v9 }
 0x368   :  { %v14650_v18 = vpop.f32.mrf.mxu1  ;;  %v14843_v25 = vpop.f32.mrf.mxu0 }
 0x369   :  { %v14651_v57 = vadd.f32 %v14650_v18, %v21908_v32  ;;  %v22489_v15 = vadd.f32 %v14841_v19, %v14649_v22  ;;  %v19156_v7 = vld [vmem:[#allocation20 + $0x48] sm:$0xff]   ;;  %v8127_v61 = vsel %vm7759_vm0, %v8121_v14, %v23286_v11  ;;  %v8150_v26 = vsel %vm7759_vm0, %v8144_v53, %v23286_v11 }
 0x36a   :  { %v14652_v10 = vpop.f32.mrf.mxu1  ;;  %v14845_v51 = vpop.f32.mrf.mxu0  ;;  %v19157_v2 = vld [vmem:[#allocation20 + $0x8] sm:$0xff]   ;;  %19003 = vmatprep.subr.bf16.mxu0 %v19156_v7  ;;  %v8129_v22 = vpack.c.bf16 %v23308_v60, %v8127_v61  ;;  %v8152_v18 = vpack.c.bf16 %v23308_v60, %v8150_v26  ;;  %v16140_v61 = vcombine.low %v8720_v48, %v8732_v33 }
 0x36b   :  { %v14653_v47 = vadd.f32 %v14652_v10, %v21911_v30  ;;  %v22495_v58 = vadd.f32 %v14843_v25, %v14651_v57  ;;  %v7753_v30 = vld [vmem:[%s23040_s3] sm:$0xff]   ;;  %19004 = vmatpush3.bf16.msra.mxu0 %v19157_v2  ;;  %v8744_v14 = vld [vmem:[%s23037_s0 + $0x7d8] sm:$0xff] }
 0x36c   :  { %v14654_v50 = vpop.f32.mrf.mxu1  ;;  %v22497_v32 = vpop.f32.mrf.mxu0  ;;  %v7754_v9 = vunpack.c.l.bf16 %v7753_v30  ;;  %v7776_v10 = vunpack.c.h.bf16 %v7753_v30  ;;  %8132 = vst [vmem:[#allocation20 + $0x40] sm:$0xf] %v8129_v22  ;;  %8155 = vst [vmem:[#allocation20 + $0x44] sm:$0xf] %v8152_v18  ;;  %v8768_v48 = vld [vmem:[%s23037_s0 + $0x898] sm:$0xff] }
 0x36d   :  { %v22509_v56 = vadd.f32 %v14654_v50, %v21913_v34  ;;  %v22511_v19 = vadd.f32 %v14845_v51, %v14653_v47  ;;  %v8780_v33 = vld [vmem:[%s23037_s0 + $0x8f8] sm:$0xff] }
 0x36e   :  { %v14884_v25 = vpop.f32.mrf.mxu1  ;;  %15349 = vmatmul.mubr.bf16.gmra.mxu1 %v16116_v27  ;;  %v22515_v57 = vpop.f32.mrf.mxu0  ;;  %v8756_v27 = vld [vmem:[%s23037_s0 + $0x838] sm:$0xff]  ;;  %v7760_v53 = vsel %vm7759_vm0, %v7754_v9, %v23286_v11 }
 0x36f   :  { %v22518_v7 = vadd.f32 %v14884_v25, %v21929_v62  ;;  %15358 = vmatprep.mubr.bf16.mxu1 %v16141_v28  ;;  %v7782_v62 = vsel %vm7759_vm0, %v7776_v10, %v23286_v11  ;;  %v7761_v28 = vpack.c.bf16 %v23308_v60, %v7760_v53  ;;  %v16165_v30 = vcombine.high %v8744_v14, %v8756_v27 }
 0x370   :  { %v14886_v34 = vpop.f32.mrf.mxu1  ;;  %v22520_v51 = vpop.f32.mrf.mxu0  ;;  %v7784_v2 = vpack.c.bf16 %v23308_v60, %v7782_v62  ;;  %v16189_v62 = vcombine.high %v8768_v48, %v8780_v33 }
 0x371   :  { %v22535_v47 = vadd.f32 %v14886_v34, %v21932_v59  ;;  %7764 = vst [vmem:[#allocation20] sm:$0xf] %v7761_v28  ;;  %v16164_v34 = vcombine.low %v8744_v14, %v8756_v27  ;;  %v8804_v27 = vld [vmem:[%s23037_s0 + $0x9b8] sm:$0xff] }
 0x372   :  { %v14888_v50 = vpop.f32.mrf.mxu1  ;;  %7787 = vst [vmem:[#allocation20 + $0x4] sm:$0xf] %v7784_v2  ;;  %v22542_v18 = vpop.f32.mrf.mxu0 }
 0x373   :  { %v22540_v26 = vadd.f32 %v14888_v50, %v21935_v52  ;;  %v19158_v25 = vld [vmem:[#allocation20 + $0x40] sm:$0xff]  }
 0x374   :  { %v14890_v22 = vpop.f32.mrf.mxu1  ;;  %v22550_v60 = vpop.f32.mrf.mxu0  ;;  %19005 = vmatprep.subr.bf16.mxu0 %v19158_v25 }
 0x375   :  { %v22545_v11 = vadd.f32 %v14890_v22, %v21938_v40 }
 0x376   :  { %v14894_v59 = vpop.f32.mrf.mxu1  ;;  %15359 = vmatmul.mubr.bf16.gmra.mxu1 %v16140_v61  ;;  %v22564_v28 = vpop.f32.mrf.mxu0 }
 0x377   :  { %v22548_v9 = vadd.f32 %v14894_v59, %v21961_v55  ;;  %15368 = vmatprep.mubr.bf16.mxu1 %v16165_v30  ;;  %v16188_v59 = vcombine.low %v8768_v48, %v8780_v33  ;;  %v8828_v48 = vld [vmem:[%s23037_s0 + $0xa78] sm:$0xff] }
 0x378   :  { %v14896_v52 = vpop.f32.mrf.mxu1 }
 0x379   :  { %v22559_v40 = vadd.f32 %v14896_v52, %v21964_v17  ;;  %v19159_v55 = vld [vmem:[#allocation20] sm:$0xff]   ;;  %v22572_v17 = vpop.f32.mrf.mxu0 }
 0x37a   :  { %v14898_v10 = vpop.f32.mrf.mxu1  ;;  %19006 = vmatpush3.bf16.msra.mxu0 %v19159_v55 }
 0x37b   :  { %v22562_v53 = vadd.f32 %v14898_v10, %v21971_v20  ;;  %v8792_v20 = vld [vmem:[%s23037_s0 + $0x958] sm:$0xff]  ;;  %v22586_v52 = vpop.f32.mrf.mxu0 }
 0x37c   :  { %v14900_v2 = vpop.f32.mrf.mxu1  ;;  %v16213_v25 = vcombine.high %v8792_v20, %v8804_v27 }
 0x37d   :  { %v22567_v50 = vadd.f32 %v14900_v2, %v21983_v8 }
 0x37e   :  { %v14904_v61 = vpop.f32.mrf.mxu1  ;;  %15369 = vmatmul.mubr.bf16.gmra.mxu1 %v16164_v34 }
 0x37f   :  { %v22570_v30 = vadd.f32 %v14904_v61, %v22019_v24  ;;  %15378 = vmatprep.mubr.bf16.mxu1 %v16189_v62  ;;  %v16212_v61 = vcombine.low %v8792_v20, %v8804_v27  ;;  %v8852_v20 = vld [vmem:[%s23037_s0 + $0xb38] sm:$0xff] }
 0x380   :  { %v14906_v14 = vpop.f32.mrf.mxu1 }
 0x381   :  { %v22581_v8 = vadd.f32 %v14906_v14, %v22030_v12  ;;  %v22594_v12 = vpop.f32.mrf.mxu0 }
 0x382   :  { %v14908_v22 = vpop.f32.mrf.mxu1 }
 0x383   :  { %v22584_v24 = vadd.f32 %v14908_v22, %v22037_v31  ;;  %v8816_v31 = vld [vmem:[%s23037_s0 + $0xa18] sm:$0xff]  ;;  %v22608_v22 = vpop.f32.mrf.mxu0 }
 0x384   :  { %v14910_v10 = vpop.f32.mrf.mxu1  ;;  %v16237_v14 = vcombine.high %v8816_v31, %v8828_v48 }
 0x385   :  { %v22589_v34 = vadd.f32 %v14910_v10, %v22040_v42 }
 0x386   :  { %v14914_v55 = vpop.f32.mrf.mxu1  ;;  %15379 = vmatmul.mubr.bf16.gmra.mxu1 %v16188_v59 }
 0x387   :  { %v22592_v62 = vadd.f32 %v14914_v55, %v22063_v29  ;;  %15388 = vmatprep.mubr.bf16.mxu1 %v16213_v25 }
 0x388   :  { %v14916_v2 = vpop.f32.mrf.mxu1 }
 0x389   :  { %v22603_v42 = vadd.f32 %v14916_v2, %v22070_v0  ;;  %v22616_v0 = vpop.f32.mrf.mxu0 }
 0x38a   :  { %v14918_v33 = vpop.f32.mrf.mxu1 }
 0x38b   :  { %v22606_v29 = vadd.f32 %v14918_v33, %v22077_v6  ;;  %v8840_v6 = vld [vmem:[%s23037_s0 + $0xad8] sm:$0xff]  ;;  %v16236_v33 = vcombine.low %v8816_v31, %v8828_v48 }
 0x38c   :  { %v14920_v59 = vpop.f32.mrf.mxu1 }
 0x38d   :  { %v22611_v25 = vadd.f32 %v14920_v59, %v22086_v1  ;;  %v22632_v59 = vpop.f32.mrf.mxu0 }
 0x38e   :  { %v14924_v10 = vpop.f32.mrf.mxu1  ;;  %15389 = vmatmul.mubr.bf16.gmra.mxu1 %v16212_v61 }
 0x38f   :  { %23353 = vst [vmem:[#allocation64_spill] sm:$0xff] %v22611_v25  ;;  %v22614_v55 = vadd.f32 %v14924_v10, %v22121_v3  ;;  %15398 = vmatprep.mubr.bf16.mxu1 %v16237_v14  ;;  %v14738_v3 = vadd.f32 %v22138_v46, %v22141_v13  ;;  %v16261_v14 = vcombine.high %v8840_v6, %v8852_v20  ;;  %v8864_v46 = vld [vmem:[%s23037_s0 + $0xb98] sm:$0xff] }
 0x390   :  { %v14926_v2 = vpop.f32.mrf.mxu1  ;;  %v8876_v13 = vld [vmem:[%s23037_s0 + $0xbf8] sm:$0xff] }
 0x391   :  { %23354 = vst [vmem:[#allocation65_spill] sm:$0xff] %v22614_v55  ;;  %v22625_v1 = vadd.f32 %v14926_v2, %v22132_v36  ;;  %v22639_v36 = vpop.f32.mrf.mxu0  ;;  %v16260_v2 = vcombine.low %v8840_v6, %v8852_v20  ;;  %v23365_v20 = vld [vmem:[#allocation49_spill] sm:$0xff] }
 0x392   :  { %v14928_v27 = vpop.f32.mrf.mxu1 }
 0x393   :  { %23355 = vst [vmem:[#allocation66_spill] sm:$0xff] %v22625_v1  ;;  %v22630_v61 = vadd.f32 %v14928_v27, %v22143_v5 }
 0x394   :  { %v14930_v10 = vpop.f32.mrf.mxu1 }
 0x395   :  { %23356 = vst [vmem:[#allocation67_spill] sm:$0xff] %v22630_v61  ;;  %v22634_v16 = vadd.f32 %v14930_v10, %v14738_v3  ;;  %v22655_v3 = vpop.f32.mrf.mxu0 }
 0x396   :  { %v14934_v55 = vpop.f32.mrf.mxu1  ;;  %15399 = vmatmul.mubr.bf16.gmra.mxu1 %v16236_v33  ;;  %v16285_v33 = vcombine.high %v8864_v46, %v8876_v13 }
 0x397   :  { %23357 = vst [vmem:[#allocation68_spill] sm:$0xff] %v22634_v16  ;;  %v22637_v25 = vadd.f32 %v14934_v55, %v22167_v23  ;;  %15408 = vmatprep.mubr.bf16.mxu1 %v16261_v14  ;;  %v14748_v23 = vadd.f32 %v22180_v45, %v22183_v4  ;;  %v23360_v55 = vld [vmem:[#allocation47_spill] sm:$0xff]  ;;  %v23363_v16 = vld [vmem:[#allocation48_spill] sm:$0xff] }
 0x398   :  { %v14936_v31 = vpop.f32.mrf.mxu1 }
 0x399   :  { %23358 = vst [vmem:[#allocation69_spill] sm:$0xff] %v22637_v25  ;;  %v22648_v5 = vadd.f32 %v14936_v31, %v22174_v44  ;;  %v22662_v44 = vpop.f32.mrf.mxu0  ;;  %v16284_v31 = vcombine.low %v8864_v46, %v8876_v13  ;;  %v23374_v46 = vld [vmem:[#allocation54_spill] sm:$0xff] }
 0x39a   :  { %v14938_v48 = vpop.f32.mrf.mxu1 }
 0x39b   :  { %23359 = vst [vmem:[#allocation70_spill] sm:$0xff] %v22648_v5  ;;  %v22653_v27 = vadd.f32 %v14938_v48, %v23360_v55  ;;  %v23367_v48 = vld [vmem:[#allocation51_spill] sm:$0xff]  ;;  %v23368_v55 = vld [vmem:[#allocation50_spill] sm:$0xff]  ;;  %v23369_v5 = vld [vmem:[#allocation52_spill] sm:$0xff] }
 0x39c   :  { %v14940_v14 = vpop.f32.mrf.mxu1 }
 0x39d   :  { %23361 = vst [vmem:[#allocation47_spill] sm:$0xff] %v22653_v27  ;;  %v22657_v10 = vadd.f32 %v14940_v14, %v14748_v23  ;;  %v14758_v27 = vadd.f32 %v23368_v55, %v23367_v48  ;;  %v22672_v14 = vpop.f32.mrf.mxu0  ;;  %v23376_v55 = vld [vmem:[#allocation56_spill] sm:$0xff] }
 0x39e   :  { %v14944_v25 = vpop.f32.mrf.mxu1  ;;  %15409 = vmatmul.mubr.bf16.gmra.mxu1 %v16260_v2 }
 0x39f   :  { %23362 = vst [vmem:[#allocation71_spill] sm:$0xff] %v22657_v10  ;;  %v22660_v61 = vadd.f32 %v14944_v25, %v23363_v16  ;;  %15418 = vmatprep.mubr.bf16.mxu1 %v16285_v33  ;;  %v23372_v33 = vld [vmem:[#allocation53_spill] sm:$0xff] }
 0x3a0   :  { %v14946_v6 = vpop.f32.mrf.mxu1 }
 0x3a1   :  { %23364 = vst [vmem:[#allocation48_spill] sm:$0xff] %v22660_v61  ;;  %v22665_v45 = vadd.f32 %v14946_v6, %v23365_v20  ;;  %v22679_v6 = vpop.f32.mrf.mxu0 }
 0x3a2   :  { %v14948_v4 = vpop.f32.mrf.mxu1 }
 0x3a3   :  { %23366 = vst [vmem:[#allocation49_spill] sm:$0xff] %v22665_v45  ;;  %v22670_v23 = vadd.f32 %v14948_v4, %v23369_v5  ;;  %v23377_v5 = vld [vmem:[#allocation55_spill] sm:$0xff] }
 0x3a4   :  { %v14950_v2 = vpop.f32.mrf.mxu1  ;;  %v14768_v4 = vadd.f32 %v23377_v5, %v23376_v55  ;;  %v23386_v55 = vld [vmem:[#allocation61_spill] sm:$0xff]  ;;  %v23387_v5 = vld [vmem:[#allocation60_spill] sm:$0xff] }
 0x3a5   :  { %23370 = vst [vmem:[#allocation51_spill] sm:$0xff] %v22670_v23  ;;  %v22674_v16 = vadd.f32 %v14950_v2, %v14758_v27  ;;  %v23378_v23 = vld [vmem:[#allocation57_spill] sm:$0xff]  ;;  %v22689_v27 = vpop.f32.mrf.mxu0 }
 0x3a6   :  { %v14954_v25 = vpop.f32.mrf.mxu1  ;;  %15419 = vmatmul.mubr.bf16.gmra.mxu1 %v16284_v31 }
 0x3a7   :  { %23371 = vst [vmem:[#allocation50_spill] sm:$0xff] %v22674_v16  ;;  %v22677_v61 = vadd.f32 %v14954_v25, %v23372_v33  ;;  %v23381_v33 = vld [vmem:[#allocation58_spill] sm:$0xff]  ;;  %v22696_v16 = vpop.f32.mrf.mxu0 }
 0x3a8   :  { %v14956_v20 = vpop.f32.mrf.mxu1  ;;  %23383 = vst [vmem:[#allocation57_spill] sm:$0xff] %v22696_v16 }
 0x3a9   :  { %23373 = vst [vmem:[#allocation52_spill] sm:$0xff] %v22677_v61  ;;  %v22682_v13 = vadd.f32 %v14956_v20, %v23374_v46  ;;  %v23384_v46 = vld [vmem:[#allocation59_spill] sm:$0xff]  ;;  %v22706_v1 = vpop.f32.mrf.mxu0 }
 0x3aa   :  { %v14958_v48 = vpop.f32.mrf.mxu1  ;;  %23390 = vst [vmem:[#allocation61_spill] sm:$0xff] %v22706_v1 }
 0x3ab   :  { %23375 = vst [vmem:[#allocation53_spill] sm:$0xff] %v22682_v13  ;;  %v22687_v45 = vadd.f32 %v14958_v48, %v23378_v23  ;;  %v14778_v23 = vadd.f32 %v23387_v5, %v23386_v55  ;;  %v23388_v48 = vld [vmem:[#allocation62_spill] sm:$0xff]  ;;  %v23396_v55 = vld [vmem:[#allocation29_spill] sm:$0xff]  ;;  %v23397_v5 = vld [vmem:[#allocation28_spill] sm:$0xff] }
 0x3ac   :  { %v14960_v2 = vpop.f32.mrf.mxu1 }
 0x3ad   :  { %23379 = vst [vmem:[#allocation54_spill] sm:$0xff] %v22687_v45  ;;  %v22691_v31 = vadd.f32 %v14960_v2, %v14768_v4 }
 0x3ae   :  { %v14964_v25 = vpop.f32.mrf.mxu1 }
 0x3af   :  { %23380 = vst [vmem:[#allocation56_spill] sm:$0xff] %v22691_v31  ;;  %v22694_v61 = vadd.f32 %v14964_v25, %v23381_v33  ;;  %v23392_v33 = vld [vmem:[#allocation63_spill] sm:$0xff]  ;;  %v22713_v31 = vpop.f32.mrf.mxu0 }
 0x3b0   :  { %v14966_v20 = vpop.f32.mrf.mxu1 }
 0x3b1   :  { %23382 = vst [vmem:[#allocation55_spill] sm:$0xff] %v22694_v61  ;;  %v22699_v13 = vadd.f32 %v14966_v20, %v23384_v46  ;;  %v23394_v46 = vld [vmem:[#allocation27_spill] sm:$0xff]  ;;  %v22723_v1 = vpop.f32.mrf.mxu0 }
 0x3b2   :  { %v14968_v10 = vpop.f32.mrf.mxu1  ;;  %23400 = vst [vmem:[#allocation29_spill] sm:$0xff] %v22723_v1 }
 0x3b3   :  { %23385 = vst [vmem:[#allocation58_spill] sm:$0xff] %v22699_v13  ;;  %v22704_v45 = vadd.f32 %v14968_v10, %v23388_v48  ;;  %v14788_v10 = vadd.f32 %v23397_v5, %v23396_v55  ;;  %v23398_v48 = vld [vmem:[#allocation30_spill] sm:$0xff]  ;;  %v23406_v55 = vld [vmem:[#allocation33_spill] sm:$0xff]  ;;  %v23407_v5 = vld [vmem:[#allocation32_spill] sm:$0xff] }
 0x3b4   :  { %v14970_v4 = vpop.f32.mrf.mxu1 }
 0x3b5   :  { %23389 = vst [vmem:[#allocation59_spill] sm:$0xff] %v22704_v45  ;;  %v22708_v2 = vadd.f32 %v14970_v4, %v14778_v23 }
 0x3b6   :  { %v14974_v25 = vpop.f32.mrf.mxu1 }
 0x3b7   :  { %23391 = vst [vmem:[#allocation60_spill] sm:$0xff] %v22708_v2  ;;  %v22711_v61 = vadd.f32 %v14974_v25, %v23392_v33 }
 0x3b8   :  { %v14976_v20 = vpop.f32.mrf.mxu1 }
 0x3b9   :  { %23393 = vst [vmem:[#allocation62_spill] sm:$0xff] %v22711_v61  ;;  %v22716_v13 = vadd.f32 %v14976_v20, %v23394_v46  ;;  %v22730_v61 = vpop.f32.mrf.mxu0  ;;  %v23404_v46 = vld [vmem:[#allocation31_spill] sm:$0xff] }
 0x3ba   :  { %v14978_v16 = vpop.f32.mrf.mxu1  ;;  %23403 = vst [vmem:[#allocation72_spill] sm:$0xff] %v22730_v61 }
 0x3bb   :  { %23395 = vst [vmem:[#allocation63_spill] sm:$0xff] %v22716_v13  ;;  %v22721_v45 = vadd.f32 %v14978_v16, %v23398_v48  ;;  %v14798_v16 = vadd.f32 %v23407_v5, %v23406_v55  ;;  %v23408_v48 = vld [vmem:[#allocation34_spill] sm:$0xff]  ;;  %v22740_v1 = vpop.f32.mrf.mxu0  ;;  %v23417_v5 = vld [vmem:[#allocation37_spill] sm:$0xff] }
 0x3bc   :  { %v14980_v23 = vpop.f32.mrf.mxu1  ;;  %23410 = vst [vmem:[#allocation32_spill] sm:$0xff] %v22740_v1  ;;  %v23416_v55 = vld [vmem:[#allocation38_spill] sm:$0xff] }
 0x3bd   :  { %23399 = vst [vmem:[#allocation27_spill] sm:$0xff] %v22721_v45  ;;  %v22725_v4 = vadd.f32 %v14980_v23, %v14788_v10 }
 0x3be   :  { %v14984_v25 = vpop.f32.mrf.mxu1 }
 0x3bf   :  { %23401 = vst [vmem:[#allocation28_spill] sm:$0xff] %v22725_v4  ;;  %v22728_v33 = vadd.f32 %v14984_v25, %v22341_v38  ;;  %v23412_v25 = vld [vmem:[#allocation35_spill] sm:$0xff]  ;;  %v22747_v4 = vpop.f32.mrf.mxu0 }
 0x3c0   :  { %v14986_v20 = vpop.f32.mrf.mxu1 }
 0x3c1   :  { %23402 = vst [vmem:[#allocation30_spill] sm:$0xff] %v22728_v33  ;;  %v22733_v13 = vadd.f32 %v14986_v20, %v23404_v46  ;;  %v23414_v46 = vld [vmem:[#allocation36_spill] sm:$0xff]  ;;  %v22757_v1 = vpop.f32.mrf.mxu0 }
 0x3c2   :  { %v14988_v2 = vpop.f32.mrf.mxu1 }
 0x3c3   :  { %23405 = vst [vmem:[#allocation31_spill] sm:$0xff] %v22733_v13  ;;  %v22738_v45 = vadd.f32 %v14988_v2, %v23408_v48  ;;  %v14808_v2 = vadd.f32 %v23417_v5, %v23416_v55  ;;  %v23418_v48 = vld [vmem:[#allocation39_spill] sm:$0xff]  ;;  %v23423_v55 = vld [vmem:[#allocation40_spill] sm:$0xff]  ;;  %v23424_v5 = vld [vmem:[#allocation41_spill] sm:$0xff] }
 0x3c4   :  { %v14990_v10 = vpop.f32.mrf.mxu1 }
 0x3c5   :  { %23409 = vst [vmem:[#allocation33_spill] sm:$0xff] %v22738_v45  ;;  %v22742_v23 = vadd.f32 %v14990_v10, %v14798_v16 }
 0x3c6   :  { %v14994_v38 = vpop.f32.mrf.mxu1 }
 0x3c7   :  { %23411 = vst [vmem:[#allocation34_spill] sm:$0xff] %v22742_v23  ;;  %v22745_v33 = vadd.f32 %v14994_v38, %v23412_v25 }
 0x3c8   :  { %v14996_v20 = vpop.f32.mrf.mxu1 }
 0x3c9   :  { %23413 = vst [vmem:[#allocation35_spill] sm:$0xff] %v22745_v33  ;;  %v22750_v13 = vadd.f32 %v14996_v20, %v23414_v46  ;;  %v22764_v33 = vpop.f32.mrf.mxu0 }
 0x3ca   :  { %v14998_v61 = vpop.f32.mrf.mxu1 }
 0x3cb   :  { %23415 = vst [vmem:[#allocation36_spill] sm:$0xff] %v22750_v13  ;;  %v22755_v45 = vadd.f32 %v14998_v61, %v23418_v48  ;;  %v14818_v61 = vadd.f32 %v23423_v55, %v22415_v35  ;;  %v23429_v35 = vld [vmem:[#allocation44_spill] sm:$0xff]  ;;  %v23430_v55 = vld [vmem:[#allocation43_spill] sm:$0xff] }
 0x3cc   :  { %v15000_v16 = vpop.f32.mrf.mxu1 }
 0x3cd   :  { %23419 = vst [vmem:[#allocation38_spill] sm:$0xff] %v22755_v45  ;;  %v22759_v10 = vadd.f32 %v15000_v16, %v14808_v2  ;;  %v22774_v45 = vpop.f32.mrf.mxu0 }
 0x3ce   :  { %v15004_v38 = vpop.f32.mrf.mxu1 }
 0x3cf   :  { %23420 = vst [vmem:[#allocation37_spill] sm:$0xff] %v22759_v10  ;;  %v22762_v25 = vadd.f32 %v15004_v38, %v22403_v41 }
 0x3d0   :  { %v15006_v20 = vpop.f32.mrf.mxu1 }
 0x3d1   :  { %23421 = vst [vmem:[#allocation39_spill] sm:$0xff] %v22762_v25  ;;  %v22767_v46 = vadd.f32 %v15006_v20, %v22410_v63  ;;  %v22781_v25 = vpop.f32.mrf.mxu0  ;;  %v23427_v20 = vld [vmem:[#allocation42_spill] sm:$0xff] }
 0x3d2   :  { %v15008_v13 = vpop.f32.mrf.mxu1 }
 0x3d3   :  { %23422 = vst [vmem:[#allocation73_spill] sm:$0xff] %v22767_v46  ;;  %v22772_v48 = vadd.f32 %v15008_v13, %v23424_v5  ;;  %v14828_v13 = vadd.f32 %v23430_v55, %v23429_v35  ;;  %v23431_v5 = vld [vmem:[#allocation45_spill] sm:$0xff]  ;;  %v22791_v23 = vpop.f32.mrf.mxu0 }
 0x3d4   :  { %v15010_v2 = vpop.f32.mrf.mxu1 }
 0x3d5   :  { %23425 = vst [vmem:[#allocation40_spill] sm:$0xff] %v22772_v48  ;;  %v22776_v16 = vadd.f32 %v15010_v2, %v14818_v61 }
 0x3d6   :  { %v15014_v41 = vpop.f32.mrf.mxu1 }
 0x3d7   :  { %v22779_v38 = vadd.f32 %v15014_v41, %v22427_v49 }
 0x3d8   :  { %v15016_v63 = vpop.f32.mrf.mxu1 }
 0x3d9   :  { %23426 = vst [vmem:[#allocation41_spill] sm:$0xff] %v22779_v38  ;;  %v22784_v46 = vadd.f32 %v15016_v63, %v23427_v20  ;;  %v22798_v38 = vpop.f32.mrf.mxu0 }
 0x3da   :  { %v15018_v10 = vpop.f32.mrf.mxu1 }
 0x3db   :  { %23428 = vst [vmem:[#allocation42_spill] sm:$0xff] %v22784_v46  ;;  %v22789_v48 = vadd.f32 %v15018_v10, %v23431_v5  ;;  %v14838_v10 = vadd.f32 %v22474_v43, %v22477_v54  ;;  %v22808_v55 = vpop.f32.mrf.mxu0  ;;  %v14848_v43 = vadd.f32 %v22497_v32, %v22509_v56  ;;  %v15082_v32 = vadd.f32 %v22542_v18, %v22540_v26 }
 0x3dc   :  { %v15020_v61 = vpop.f32.mrf.mxu1 }
 0x3dd   :  { %v22793_v2 = vadd.f32 %v15020_v61, %v14828_v13 }
 0x3de   :  { %v15024_v49 = vpop.f32.mrf.mxu1 }
 0x3df   :  { %v22796_v41 = vadd.f32 %v15024_v49, %v22465_v39  ;;  %v22815_v49 = vpop.f32.mrf.mxu0 }
 0x3e0   :  { %v15026_v63 = vpop.f32.mrf.mxu1 }
 0x3e1   :  { %v22801_v20 = vadd.f32 %v15026_v63, %v22472_v37 }
 0x3e2   :  { %v15028_v46 = vpop.f32.mrf.mxu1 }
 0x3e3   :  { %23432 = vst [vmem:[#allocation44_spill] sm:$0xff] %v22801_v20  ;;  %v22806_v35 = vadd.f32 %v15028_v46, %v22479_v21  ;;  %v22825_v21 = vpop.f32.mrf.mxu0 }
 0x3e4   :  { %v15030_v13 = vpop.f32.mrf.mxu1 }
 0x3e5   :  { %v22810_v5 = vadd.f32 %v15030_v13, %v14838_v10  ;;  %v15078_v13 = vadd.f32 %v22515_v57, %v22518_v7 }
 0x3e6   :  { %v15034_v39 = vpop.f32.mrf.mxu1 }
 0x3e7   :  { %23433 = vst [vmem:[#allocation43_spill] sm:$0xff] %v22810_v5  ;;  %v22813_v61 = vadd.f32 %v15034_v39, %v22489_v15  ;;  %v22831_v39 = vpop.f32.mrf.mxu0 }
 0x3e8   :  { %v15036_v37 = vpop.f32.mrf.mxu1 }
 0x3e9   :  { %23434 = vst [vmem:[#allocation45_spill] sm:$0xff] %v22813_v61  ;;  %v22818_v63 = vadd.f32 %v15036_v37, %v22495_v58  ;;  %v15080_v37 = vadd.f32 %v22520_v51, %v22535_v47  ;;  %v15088_v51 = vadd.f32 %v22564_v28, %v22548_v9 }
 0x3ea   :  { %v15038_v20 = vpop.f32.mrf.mxu1 }
 0x3eb   :  { %23435 = vst [vmem:[#allocation74_spill] sm:$0xff] %v22818_v63  ;;  %v22823_v54 = vadd.f32 %v15038_v20, %v22511_v19  ;;  %v15084_v20 = vadd.f32 %v22550_v60, %v22545_v11  ;;  %v15090_v11 = vadd.f32 %v22572_v17, %v22559_v40  ;;  %v15092_v60 = vadd.f32 %v22586_v52, %v22562_v53 }
 0x3ec   :  { %v15040_v46 = vpop.f32.mrf.mxu1  ;;  %v15098_v53 = vadd.f32 %v22608_v22, %v22570_v30 }
 0x3ed   :  { %23436 = vst [vmem:[#allocation75_spill] sm:$0xff] %v22823_v54  ;;  %v22827_v10 = vadd.f32 %v15040_v46, %v14848_v43 }
 0x3ee   :  { %v15270_v15 = vpop.f32.mrf.mxu1 }
 0x3ef   :  { %23437 = vst [vmem:[#allocation76_spill] sm:$0xff] %v22827_v10  ;;  %v15271_v56 = vadd.f32 %v15270_v15, %v15078_v13  ;;  %v22839_v10 = vpop.f32.mrf.mxu0 }
 0x3f0   :  { %v15272_v58 = vpop.f32.mrf.mxu1 }
 0x3f1   :  { %v15273_v43 = vadd.f32 %v15272_v58, %v15080_v37  ;;  %v15429_v57 = vmax.f32 %v15271_v56, 0.0  ;;  %v22843_v18 = vpop.f32.mrf.mxu0 }
 0x3f2   :  { %v15274_v19 = vpop.f32.mrf.mxu1 }
 0x3f3   :  { %v15275_v46 = vadd.f32 %v15274_v19, %v15082_v32  ;;  %v15430_v47 = vmax.f32 %v15273_v43, 0.0  ;;  %v22851_v28 = vpop.f32.mrf.mxu0 }
 0x3f4   :  { %v15276_v54 = vpop.f32.mrf.mxu1 }
 0x3f5   :  { %v15431_v7 = vmax.f32 %v15275_v46, 0.0  ;;  %v15277_v63 = vadd.f32 %v15276_v54, %v15084_v20  ;;  %v15094_v54 = vadd.f32 %v22594_v12, %v22567_v50  ;;  %v22855_v43 = vpop.f32.mrf.mxu0  ;;  %v15100_v12 = vadd.f32 %v22616_v0, %v22581_v8 }
 0x3f6   :  { %v15280_v61 = vpop.f32.mrf.mxu1  ;;  %v15102_v46 = vadd.f32 %v22632_v59, %v22584_v24  ;;  %v15108_v24 = vadd.f32 %v22655_v3, %v22592_v62 }
 0x3f7   :  { %v15493_v5 = vpack.c.bf16 %v15431_v7, %v15429_v57  ;;  %v15432_v26 = vmax.f32 %v15277_v63, 0.0  ;;  %v15281_v58 = vadd.f32 %v15280_v61, %v15088_v51  ;;  %v15104_v51 = vadd.f32 %v22639_v36, %v22589_v34  ;;  %v22863_v22 = vpop.f32.mrf.mxu0 }
 0x3f8   :  { %v15282_v15 = vpop.f32.mrf.mxu1  ;;  %v15110_v36 = vadd.f32 %v22662_v44, %v22603_v42  ;;  %v23439_v44 = vld [vmem:[#allocation65_spill] sm:$0xff] }
 0x3f9   :  { %v15494_v13 = vpack.c.bf16 %v15432_v26, %v15430_v47  ;;  %v15283_v32 = vadd.f32 %v15282_v15, %v15090_v11  ;;  %v15433_v56 = vmax.f32 %v15281_v58, 0.0  ;;  %v22867_v58 = vpop.f32.mrf.mxu0 }
 0x3fa   :  { %v15284_v37 = vpop.f32.mrf.mxu1 }
 0x3fb   :  { %v15285_v9 = vadd.f32 %v15284_v37, %v15092_v60  ;;  %15692 = vmatprep.mubr.bf16.mxu0 %v15494_v13  ;;  %v15434_v17 = vmax.f32 %v15283_v32, 0.0  ;;  %v15112_v37 = vadd.f32 %v22672_v14, %v22606_v29  ;;  %v22875_v3 = vpop.f32.mrf.mxu0  ;;  %v15118_v29 = vadd.f32 %v22689_v27, %v23439_v44 }
 0x3fc   :  { %v15286_v63 = vpop.f32.mrf.mxu1  ;;  %15693 = vmatmul.mubr.bf16.vlgmr.msra.gmra.mxu0 %v15493_v5 }
 0x3fd   :  { %v15435_v19 = vmax.f32 %v15285_v9, 0.0  ;;  %v15287_v20 = vadd.f32 %v15286_v63, %v15094_v54  ;;  %v23438_v63 = vld [vmem:[#allocation64_spill] sm:$0xff] }
 0x3fe   :  { %v15290_v40 = vpop.f32.mrf.mxu1 }
 0x3ff   :  { %v15495_v52 = vpack.c.bf16 %v15435_v19, %v15433_v56  ;;  %v15436_v61 = vmax.f32 %v15287_v20, 0.0  ;;  %v15291_v57 = vadd.f32 %v15290_v40, %v15098_v53  ;;  %v15114_v56 = vadd.f32 %v22679_v6, %v23438_v63 }
 0x400   :  { %v15292_v50 = vpop.f32.mrf.mxu1 }
 0x401   :  { %v15496_v5 = vpack.c.bf16 %v15436_v61, %v15434_v17  ;;  %v15293_v47 = vadd.f32 %v15292_v50, %v15100_v12  ;;  %v15437_v15 = vmax.f32 %v15291_v57, 0.0  ;;  %v22879_v50 = vpop.f32.mrf.mxu0  ;;  %v23440_v12 = vld [vmem:[#allocation66_spill] sm:$0xff]  ;;  %v23442_v57 = vld [vmem:[#allocation67_spill] sm:$0xff] }
 0x402   :  { %v15294_v7 = vpop.f32.mrf.mxu1 }
 0x403   :  { %v15295_v30 = vadd.f32 %v15294_v7, %v15102_v46  ;;  %15700 = vmatprep.mubr.bf16.mxu0 %v15496_v5  ;;  %v15438_v0 = vmax.f32 %v15293_v47, 0.0  ;;  %v23441_v46 = vld [vmem:[#allocation57_spill] sm:$0xff] }
 0x404   :  { %v15296_v26 = vpop.f32.mrf.mxu1  ;;  %15701 = vmatmul.mubr.bf16.gmra.mxu0 %v15495_v52  ;;  %v15120_v5 = vadd.f32 %v23441_v46, %v23440_v12  ;;  %v23443_v7 = vld [vmem:[#allocation61_spill] sm:$0xff] }
 0x405   :  { %v15439_v11 = vmax.f32 %v15295_v30, 0.0  ;;  %v15297_v60 = vadd.f32 %v15296_v26, %v15104_v51  ;;  %v15122_v51 = vadd.f32 %v23443_v7, %v23442_v57 }
 0x406   :  { %v15300_v8 = vpop.f32.mrf.mxu1 }
 0x407   :  { %v15497_v59 = vpack.c.bf16 %v15439_v11, %v15437_v15  ;;  %v15440_v13 = vmax.f32 %v15297_v60, 0.0  ;;  %v15301_v32 = vadd.f32 %v15300_v8, %v15108_v24  ;;  %v23444_v15 = vld [vmem:[#allocation68_spill] sm:$0xff]  ;;  %v22887_v8 = vpop.f32.mrf.mxu0 }
 0x408   :  { %v15302_v34 = vpop.f32.mrf.mxu1  ;;  %v15124_v11 = vadd.f32 %v22713_v31, %v23444_v15 }
 0x409   :  { %v15498_v54 = vpack.c.bf16 %v15440_v13, %v15438_v0  ;;  %v15303_v19 = vadd.f32 %v15302_v34, %v15110_v36  ;;  %v15441_v40 = vmax.f32 %v15301_v32, 0.0  ;;  %v23445_v36 = vld [vmem:[#allocation69_spill] sm:$0xff] }
 0x40a   :  { %v15304_v9 = vpop.f32.mrf.mxu1 }
 0x40b   :  { %v15305_v62 = vadd.f32 %v15304_v9, %v15112_v37  ;;  %15708 = vmatprep.mubr.bf16.mxu0 %v15498_v54  ;;  %v15442_v14 = vmax.f32 %v15303_v19, 0.0  ;;  %v23446_v37 = vld [vmem:[#allocation29_spill] sm:$0xff]  ;;  %v23447_v19 = vld [vmem:[#allocation70_spill] sm:$0xff] }
 0x40c   :  { %v15306_v20 = vpop.f32.mrf.mxu1  ;;  %15709 = vmatmul.mubr.bf16.gmra.mxu0 %v15497_v59  ;;  %v15128_v54 = vadd.f32 %v23446_v37, %v23445_v36  ;;  %v23455_v37 = vld [vmem:[#allocation50_spill] sm:$0xff] }
 0x40d   :  { %v15443_v53 = vmax.f32 %v15305_v62, 0.0  ;;  %v15307_v17 = vadd.f32 %v15306_v20, %v15114_v56  ;;  %v22891_v56 = vpop.f32.mrf.mxu0  ;;  %v23448_v62 = vld [vmem:[#allocation72_spill] sm:$0xff] }
 0x40e   :  { %v15310_v42 = vpop.f32.mrf.mxu1  ;;  %v15130_v20 = vadd.f32 %v23448_v62, %v23447_v19 }
 0x40f   :  { %v15499_v52 = vpack.c.bf16 %v15443_v53, %v15441_v40  ;;  %v15444_v61 = vmax.f32 %v15307_v17, 0.0  ;;  %v15311_v30 = vadd.f32 %v15310_v42, %v15118_v29  ;;  %v23449_v40 = vld [vmem:[#allocation47_spill] sm:$0xff]  ;;  %v23450_v53 = vld [vmem:[#allocation32_spill] sm:$0xff]  ;;  %v22899_v12 = vpop.f32.mrf.mxu0 }
 0x410   :  { %v15312_v6 = vpop.f32.mrf.mxu1  ;;  %v15132_v17 = vadd.f32 %v23450_v53, %v23449_v40 }
 0x411   :  { %v15500_v47 = vpack.c.bf16 %v15444_v61, %v15442_v14  ;;  %v15313_v60 = vadd.f32 %v15312_v6, %v15120_v5  ;;  %v15445_v0 = vmax.f32 %v15311_v30, 0.0  ;;  %v23451_v14 = vld [vmem:[#allocation71_spill] sm:$0xff] }
 0x412   :  { %v15314_v26 = vpop.f32.mrf.mxu1 }
 0x413   :  { %v15315_v27 = vadd.f32 %v15314_v26, %v15122_v51  ;;  %15716 = vmatprep.mubr.bf16.mxu0 %v15500_v47  ;;  %v15446_v32 = vmax.f32 %v15313_v60, 0.0  ;;  %v23452_v47 = vld [vmem:[#allocation48_spill] sm:$0xff]  ;;  %v22903_v60 = vpop.f32.mrf.mxu0 }
 0x414   :  { %v15316_v24 = vpop.f32.mrf.mxu1  ;;  %15717 = vmatmul.mubr.bf16.gmra.mxu0 %v15499_v52  ;;  %v15134_v52 = vadd.f32 %v22747_v4, %v23451_v14  ;;  %v15138_v30 = vadd.f32 %v22757_v1, %v23452_v47  ;;  %v23458_v14 = vld [vmem:[#allocation54_spill] sm:$0xff] }
 0x415   :  { %v15447_v59 = vmax.f32 %v15315_v27, 0.0  ;;  %v15317_v13 = vadd.f32 %v15316_v24, %v15124_v11  ;;  %v23453_v27 = vld [vmem:[#allocation49_spill] sm:$0xff] }
 0x416   :  { %v15320_v34 = vpop.f32.mrf.mxu1  ;;  %v15140_v24 = vadd.f32 %v22764_v33, %v23453_v27 }
 0x417   :  { %v15501_v9 = vpack.c.bf16 %v15447_v59, %v15445_v0  ;;  %v15448_v63 = vmax.f32 %v15317_v13, 0.0  ;;  %v15321_v44 = vadd.f32 %v15320_v34, %v15128_v54  ;;  %v23454_v0 = vld [vmem:[#allocation51_spill] sm:$0xff]  ;;  %v15144_v54 = vadd.f32 %v22781_v25, %v23455_v37 }
 0x418   :  { %v15322_v31 = vpop.f32.mrf.mxu1  ;;  %v15142_v59 = vadd.f32 %v22774_v45, %v23454_v0 }
 0x419   :  { %v15502_v42 = vpack.c.bf16 %v15448_v63, %v15446_v32  ;;  %v15323_v61 = vadd.f32 %v15322_v31, %v15130_v20  ;;  %v15449_v5 = vmax.f32 %v15321_v44, 0.0  ;;  %v23456_v20 = vld [vmem:[#allocation52_spill] sm:$0xff]  ;;  %v23457_v44 = vld [vmem:[#allocation53_spill] sm:$0xff] }
 0x41a   :  { %v15324_v29 = vpop.f32.mrf.mxu1  ;;  %v15148_v45 = vadd.f32 %v22791_v23, %v23456_v20 }
 0x41b   :  { %v15325_v6 = vadd.f32 %v15324_v29, %v15132_v17  ;;  %15724 = vmatprep.mubr.bf16.mxu0 %v15502_v42  ;;  %v15450_v26 = vmax.f32 %v15323_v61, 0.0  ;;  %v15150_v29 = vadd.f32 %v22798_v38, %v23457_v44 }
 0x41c   :  { %v15326_v46 = vpop.f32.mrf.mxu1  ;;  %15725 = vmatmul.mubr.bf16.gmra.mxu0 %v15501_v9  ;;  %v22911_v9 = vpop.f32.mrf.mxu0 }
 0x41d   :  { %v15451_v57 = vmax.f32 %v15325_v6, 0.0  ;;  %v15327_v7 = vadd.f32 %v15326_v46, %v15134_v52  ;;  %v15152_v52 = vadd.f32 %v22808_v55, %v23458_v14 }
 0x41e   :  { %v15330_v51 = vpop.f32.mrf.mxu1  ;;  %v22915_v42 = vpop.f32.mrf.mxu0 }
 0x41f   :  { %v15503_v15 = vpack.c.bf16 %v15451_v57, %v15449_v5  ;;  %v15452_v11 = vmax.f32 %v15327_v7, 0.0  ;;  %v15331_v34 = vadd.f32 %v15330_v51, %v15138_v30  ;;  %v23459_v5 = vld [vmem:[#allocation56_spill] sm:$0xff] }
 0x420   :  { %v15332_v4 = vpop.f32.mrf.mxu1  ;;  %v15154_v57 = vadd.f32 %v22815_v49, %v23459_v5  ;;  %v22923_v51 = vpop.f32.mrf.mxu0  ;;  %v23469_v5 = vld [vmem:[#allocation63_spill] sm:$0xff] }
 0x421   :  { %v15504_v13 = vpack.c.bf16 %v15452_v11, %v15450_v26  ;;  %v15333_v32 = vadd.f32 %v15332_v4, %v15140_v24  ;;  %v15453_v31 = vmax.f32 %v15331_v34, 0.0  ;;  %v23460_v11 = vld [vmem:[#allocation55_spill] sm:$0xff] }
 0x422   :  { %v15334_v36 = vpop.f32.mrf.mxu1  ;;  %v15158_v55 = vadd.f32 %v22825_v21, %v23460_v11  ;;  %v22927_v0 = vpop.f32.mrf.mxu0  ;;  %v23462_v34 = vld [vmem:[#allocation59_spill] sm:$0xff] }
 0x423   :  { %v15335_v1 = vadd.f32 %v15334_v36, %v15142_v59  ;;  %15732 = vmatprep.mubr.bf16.mxu0 %v15504_v13  ;;  %v15454_v40 = vmax.f32 %v15333_v32, 0.0  ;;  %v23461_v59 = vld [vmem:[#allocation58_spill] sm:$0xff]  ;;  %v15162_v36 = vadd.f32 %v22839_v10, %v23462_v34 }
 0x424   :  { %v15336_v63 = vpop.f32.mrf.mxu1  ;;  %15733 = vmatmul.mubr.bf16.gmra.mxu0 %v15503_v15  ;;  %v15160_v13 = vadd.f32 %v22831_v39, %v23461_v59  ;;  %v23464_v39 = vld [vmem:[#allocation62_spill] sm:$0xff] }
 0x425   :  { %v15455_v19 = vmax.f32 %v15335_v1, 0.0  ;;  %v15337_v62 = vadd.f32 %v15336_v63, %v15144_v54  ;;  %v23463_v1 = vld [vmem:[#allocation60_spill] sm:$0xff] }
 0x426   :  { %v15340_v33 = vpop.f32.mrf.mxu1  ;;  %v15164_v63 = vadd.f32 %v22843_v18, %v23463_v1 }
 0x427   :  { %v15505_v53 = vpack.c.bf16 %v15455_v19, %v15453_v31  ;;  %v15456_v17 = vmax.f32 %v15337_v62, 0.0  ;;  %v15341_v6 = vadd.f32 %v15340_v33, %v15148_v45  ;;  %v22935_v19 = vpop.f32.mrf.mxu0 }
 0x428   :  { %v15342_v25 = vpop.f32.mrf.mxu1 }
 0x429   :  { %v15506_v61 = vpack.c.bf16 %v15456_v17, %v15454_v40  ;;  %v15343_v7 = vadd.f32 %v15342_v25, %v15150_v29  ;;  %v15457_v30 = vmax.f32 %v15341_v6, 0.0  ;;  %v15168_v40 = vadd.f32 %v22851_v28, %v23464_v39  ;;  %v23465_v17 = vld [vmem:[#allocation26_spill] sm:$0xff]  ;;  %v23477_v28 = vld [vmem:[#allocation36_spill] sm:$0xff] }
 0x42a   :  { %v15344_v46 = vpop.f32.mrf.mxu1  ;;  %vm8482_vm1 = vcmp.lt.s32.totalorder %v23465_v17, 1  ;;  %v23466_v29 = vstv %s23043_s6 }
 0x42b   :  { %v15345_v23 = vadd.f32 %v15344_v46, %v15152_v52  ;;  %15740 = vmatprep.mubr.bf16.mxu0 %v15506_v61  ;;  %v15458_v4 = vmax.f32 %v15343_v7, 0.0  ;;  %v22944_v52 = vpop.f32.mrf.mxu0  ;;  %v23467_v6 = vmov %v23466_v29  ;;  %v23470_v7 = vld [vmem:[#allocation27_spill] sm:$0xff] }
 0x42c   :  { %v15346_v47 = vpop.f32.mrf.mxu1  ;;  %15741 = vmatmul.mubr.bf16.gmra.mxu0 %v15505_v53  ;;  %v8478_v53 = vld [vmem:[#allocation17] sm:$0x1] }
 0x42d   :  { %v15459_v26 = vmax.f32 %v15345_v23, 0.0  ;;  %v15347_v15 = vadd.f32 %v15346_v47, %v15154_v57  ;;  %v8483_v14 = vsel %vm8482_vm1, %v8478_v53, %v23466_v29  ;;  %v15170_v57 = vadd.f32 %v22855_v43, %v23469_v5 }
 0x42e   :  { %v15350_v38 = vpop.f32.mrf.mxu1  ;;  %v8488_v46 = vsel %vm7759_vm0, %v8483_v14, %v23467_v6  ;;  %v15172_v23 = vadd.f32 %v22863_v22, %v23470_v7 }
 0x42f   :  { %v15507_v27 = vpack.c.bf16 %v15459_v26, %v15457_v30  ;;  %v15460_v24 = vmax.f32 %v15347_v15, 0.0  ;;  %v15351_v54 = vadd.f32 %v15350_v38, %v15158_v55  ;;  %8491 = vst [vmem:[#allocation21] sm:$0x1] %v8488_v46  ;;  %v23471_v15 = vld [vmem:[#allocation28_spill] sm:$0xff]  ;;  %v23478_v46 = vld [vmem:[#allocation38_spill] sm:$0xff] }
 0x430   :  { %v15352_v49 = vpop.f32.mrf.mxu1  ;;  %v15174_v38 = vadd.f32 %v22867_v58, %v23471_v15  ;;  %v15192_v5 = vadd.f32 %v22911_v9, %v23478_v46 }
 0x431   :  { %v15508_v37 = vpack.c.bf16 %v15460_v24, %v15458_v4  ;;  %v15353_v31 = vadd.f32 %v15352_v49, %v15160_v13  ;;  %v15461_v33 = vmax.f32 %v15351_v54, 0.0  ;;  %v22958_v4 = vpop.f32.mrf.mxu0  ;;  %v23472_v13 = vld [vmem:[#allocation30_spill] sm:$0xff] }
 0x432   :  { %v15354_v32 = vpop.f32.mrf.mxu1  ;;  %v15178_v22 = vadd.f32 %v22875_v3, %v23472_v13 }
 0x433   :  { %v15355_v21 = vadd.f32 %v15354_v32, %v15162_v36  ;;  %15748 = vmatprep.mubr.bf16.mxu0 %v15508_v37  ;;  %v15462_v25 = vmax.f32 %v15353_v31, 0.0  ;;  %v22962_v54 = vpop.f32.mrf.mxu0  ;;  %v23473_v32 = vld [vmem:[#allocation31_spill] sm:$0xff] }
 0x434   :  { %v15356_v62 = vpop.f32.mrf.mxu1  ;;  %15749 = vmatmul.mubr.bf16.gmra.mxu0 %v15507_v27  ;;  %v15180_v1 = vadd.f32 %v22879_v50, %v23473_v32  ;;  %v23476_v50 = vld [vmem:[#allocation35_spill] sm:$0xff] }
 0x435   :  { %v15463_v20 = vmax.f32 %v15355_v21, 0.0  ;;  %v15357_v45 = vadd.f32 %v15356_v62, %v15164_v63  ;;  %v23474_v63 = vld [vmem:[#allocation33_spill] sm:$0xff] }
 0x436   :  { %v15360_v10 = vpop.f32.mrf.mxu1  ;;  %v15182_v31 = vadd.f32 %v22887_v8, %v23474_v63  ;;  %v15204_v63 = vadd.f32 %v22944_v52, %v22776_v16 }
 0x437   :  { %v15509_v44 = vpack.c.bf16 %v15463_v20, %v15461_v33  ;;  %v15464_v18 = vmax.f32 %v15357_v45, 0.0  ;;  %v15361_v30 = vadd.f32 %v15360_v10, %v15168_v40  ;;  %v23475_v20 = vld [vmem:[#allocation34_spill] sm:$0xff]  ;;  %v15211_v40 = vpop.f32.mrf.mxu0 }
 0x438   :  { %v15362_v61 = vpop.f32.mrf.mxu1  ;;  %v15184_v45 = vadd.f32 %v22891_v56, %v23475_v20  ;;  %v15190_v56 = vadd.f32 %v22903_v60, %v23477_v28  ;;  %v23480_v60 = vld [vmem:[#allocation39_spill] sm:$0xff]  ;;  %v15212_v52 = vadd.f32 %v15211_v40, %v22789_v48 }
 0x439   :  { %v15510_v47 = vpack.c.bf16 %v15464_v18, %v15462_v25  ;;  %v15363_v11 = vadd.f32 %v15362_v61, %v15170_v57  ;;  %v15465_v24 = vmax.f32 %v15361_v30, 0.0  ;;  %v15188_v18 = vadd.f32 %v22899_v12, %v23476_v50  ;;  %v15213_v61 = vpop.f32.mrf.mxu0 }
 0x43a   :  { %v15364_v26 = vpop.f32.mrf.mxu1 }
 0x43b   :  { %v15365_v55 = vadd.f32 %v15364_v26, %v15172_v23  ;;  %15756 = vmatprep.mubr.bf16.mxu0 %v15510_v47  ;;  %v15466_v34 = vmax.f32 %v15363_v11, 0.0  ;;  %v23479_v47 = vld [vmem:[#allocation37_spill] sm:$0xff]  ;;  %v15217_v12 = vpop.f32.mrf.mxu0 }
 0x43c   :  { %v15366_v27 = vpop.f32.mrf.mxu1  ;;  %15757 = vmatmul.mubr.bf16.gmra.mxu0 %v15509_v44  ;;  %v15194_v30 = vadd.f32 %v22915_v42, %v23479_v47 }
 0x43d   :  { %v15467_v49 = vmax.f32 %v15365_v55, 0.0  ;;  %v15367_v43 = vadd.f32 %v15366_v27, %v15174_v38  ;;  %v15219_v13 = vpop.f32.mrf.mxu0 }
 0x43e   :  { %v15370_v59 = vpop.f32.mrf.mxu1 }
 0x43f   :  { %v15511_v36 = vpack.c.bf16 %v15467_v49, %v15465_v24  ;;  %v15468_v37 = vmax.f32 %v15367_v43, 0.0  ;;  %v15371_v62 = vadd.f32 %v15370_v59, %v15178_v22  ;;  %v15198_v49 = vadd.f32 %v22923_v51, %v23480_v60  ;;  %v15221_v51 = vpop.f32.mrf.mxu0 }
 0x440   :  { %v15372_v58 = vpop.f32.mrf.mxu1 }
 0x441   :  { %v15512_v21 = vpack.c.bf16 %v15468_v37, %v15466_v34  ;;  %v15373_v39 = vadd.f32 %v15372_v58, %v15180_v1  ;;  %v15469_v53 = vmax.f32 %v15371_v62, 0.0  ;;  %v23481_v34 = vld [vmem:[#allocation73_spill] sm:$0xff] }
 0x442   :  { %v15374_v33 = vpop.f32.mrf.mxu1  ;;  %v15200_v42 = vadd.f32 %v22927_v0, %v23481_v34  ;;  %v23483_v0 = vld [vmem:[#allocation41_spill] sm:$0xff] }
 0x443   :  { %v15375_v3 = vadd.f32 %v15374_v33, %v15182_v31  ;;  %15764 = vmatprep.mubr.bf16.mxu0 %v15512_v21  ;;  %v15470_v8 = vmax.f32 %v15373_v39, 0.0 }
 0x444   :  { %v15376_v10 = vpop.f32.mrf.mxu1  ;;  %15765 = vmatmul.mubr.bf16.gmra.mxu0 %v15511_v36  ;;  %v23482_v36 = vld [vmem:[#allocation40_spill] sm:$0xff] }
 0x445   :  { %v15471_v17 = vmax.f32 %v15375_v3, 0.0  ;;  %v15377_v25 = vadd.f32 %v15376_v10, %v15184_v45  ;;  %v15202_v37 = vadd.f32 %v22935_v19, %v23482_v36  ;;  %v15208_v3 = vadd.f32 %v22958_v4, %v23483_v0 }
 0x446   :  { %v15380_v44 = vpop.f32.mrf.mxu1 }
 0x447   :  { %v15513_v29 = vpack.c.bf16 %v15471_v17, %v15469_v53  ;;  %v15472_v14 = vmax.f32 %v15377_v25, 0.0  ;;  %v15381_v7 = vadd.f32 %v15380_v44, %v15188_v18  ;;  %v15223_v17 = vpop.f32.mrf.mxu0  ;;  %v23484_v44 = vld [vmem:[#allocation42_spill] sm:$0xff] }
 0x448   :  { %v15382_v6 = vpop.f32.mrf.mxu1  ;;  %v15210_v16 = vadd.f32 %v22962_v54, %v23484_v44  ;;  %v23000_v44 = vld [vmem:[#allocation21] ss:$0 sm:$0xff] }
 0x449   :  { %v15514_v57 = vpack.c.bf16 %v15472_v14, %v15470_v8  ;;  %v15383_v26 = vadd.f32 %v15382_v6, %v15190_v56  ;;  %v15473_v11 = vmax.f32 %v15381_v7, 0.0  ;;  %v15227_v28 = vpop.f32.mrf.mxu0  ;;  %v15218_v7 = vadd.f32 %v15217_v12, %v22796_v41 }
 0x44a   :  { %v15384_v23 = vpop.f32.mrf.mxu1 }
 0x44b   :  { %v15385_v15 = vadd.f32 %v15384_v23, %v15192_v5  ;;  %15772 = vmatprep.mubr.bf16.mxu0 %v15514_v57  ;;  %v15474_v9 = vmax.f32 %v15383_v26, 0.0  ;;  %v15229_v40 = vpop.f32.mrf.mxu0 }
 0x44c   :  { %v15386_v38 = vpop.f32.mrf.mxu1  ;;  %15773 = vmatmul.mubr.bf16.gmra.mxu0 %v15513_v29  ;;  %v15214_v29 = vadd.f32 %v15213_v61, %v22793_v2  ;;  %v15222_v2 = vadd.f32 %v15221_v51, %v22806_v35  ;;  %v23490_v51 = vld [vmem:[#allocation76_spill] sm:$0xff] }
 0x44d   :  { %v15475_v55 = vmax.f32 %v15385_v15, 0.0  ;;  %v15387_v27 = vadd.f32 %v15386_v38, %v15194_v30  ;;  %v23485_v30 = vld [vmem:[#allocation44_spill] sm:$0xff]  ;;  %v15231_v60 = vpop.f32.mrf.mxu0 }
 0x44e   :  { %v15390_v24 = vpop.f32.mrf.mxu1  ;;  %v15220_v26 = vadd.f32 %v15219_v13, %v23485_v30 }
 0x44f   :  { %v15515_v43 = vpack.c.bf16 %v15475_v55, %v15473_v11  ;;  %v15476_v59 = vmax.f32 %v15387_v27, 0.0  ;;  %v15391_v32 = vadd.f32 %v15390_v24, %v15198_v49  ;;  %v23486_v11 = vld [vmem:[#allocation43_spill] sm:$0xff] }
 0x450   :  { %v15392_v22 = vpop.f32.mrf.mxu1  ;;  %v15224_v55 = vadd.f32 %v15223_v17, %v23486_v11 }
 0x451   :  { %v15516_v58 = vpack.c.bf16 %v15476_v59, %v15474_v9  ;;  %v15393_v31 = vadd.f32 %v15392_v22, %v15200_v42  ;;  %v15477_v33 = vmax.f32 %v15391_v32, 0.0  ;;  %v23487_v59 = vld [vmem:[#allocation45_spill] sm:$0xff]  ;;  %v15233_v42 = vpop.f32.mrf.mxu0  ;;  %v23489_v32 = vld [vmem:[#allocation75_spill] sm:$0xff] }
 0x452   :  { %v15394_v1 = vpop.f32.mrf.mxu1  ;;  %v15228_v22 = vadd.f32 %v15227_v28, %v23487_v59 }
 0x453   :  { %v15395_v21 = vadd.f32 %v15394_v1, %v15202_v37  ;;  %15780 = vmatprep.mubr.bf16.mxu0 %v15516_v58  ;;  %v15478_v19 = vmax.f32 %v15393_v31, 0.0  ;;  %v23488_v37 = vld [vmem:[#allocation74_spill] sm:$0xff]  ;;  %v15232_v1 = vadd.f32 %v15231_v60, %v23489_v32 }
 0x454   :  { %v15396_v62 = vpop.f32.mrf.mxu1  ;;  %15781 = vmatmul.mubr.bf16.gmra.mxu0 %v15515_v43  ;;  %v15230_v58 = vadd.f32 %v15229_v40, %v23488_v37 }
 0x455   :  { %v15479_v20 = vmax.f32 %v15395_v21, 0.0  ;;  %v15397_v45 = vadd.f32 %v15396_v62, %v15204_v63  ;;  %v15234_v62 = vadd.f32 %v15233_v42, %v23490_v51 }
 0x456   :  { %v15400_v39 = vpop.f32.mrf.mxu1 }
 0x457   :  { %v15517_v10 = vpack.c.bf16 %v15479_v20, %v15477_v33  ;;  %v15480_v53 = vmax.f32 %v15397_v45, 0.0  ;;  %v15401_v18 = vadd.f32 %v15400_v39, %v15208_v3 }
 0x458   :  { %v15402_v25 = vpop.f32.mrf.mxu1 }
 0x459   :  { %v15518_v50 = vpack.c.bf16 %v15480_v53, %v15478_v19  ;;  %v15403_v14 = vadd.f32 %v15402_v25, %v15210_v16  ;;  %v15481_v56 = vmax.f32 %v15401_v18, 0.0 }
 0x45a   :  { %v15404_v8 = vpop.f32.mrf.mxu1 }
 0x45b   :  { %v15405_v6 = vadd.f32 %v15404_v8, %v15212_v52  ;;  %15788 = vmatprep.mubr.bf16.mxu0 %v15518_v50  ;;  %v15482_v54 = vmax.f32 %v15403_v14, 0.0 }
 0x45c   :  { %v15406_v4 = vpop.f32.mrf.mxu1  ;;  %15789 = vmatmul.mubr.bf16.gmra.mxu0 %v15517_v10 }
 0x45d   :  { %v15483_v46 = vmax.f32 %v15405_v6, 0.0  ;;  %v15407_v5 = vadd.f32 %v15406_v4, %v15214_v29 }
 0x45e   :  { %v15410_v57 = vpop.f32.mrf.mxu1 }
 0x45f   :  { %v15519_v23 = vpack.c.bf16 %v15483_v46, %v15481_v56  ;;  %v15484_v48 = vmax.f32 %v15407_v5, 0.0  ;;  %v15411_v15 = vadd.f32 %v15410_v57, %v15218_v7 }
 0x460   :  { %v15412_v47 = vpop.f32.mrf.mxu1 }
 0x461   :  { %v15520_v61 = vpack.c.bf16 %v15484_v48, %v15482_v54  ;;  %v15413_v27 = vadd.f32 %v15412_v47, %v15220_v26  ;;  %v15485_v41 = vmax.f32 %v15411_v15, 0.0 }
 0x462   :  { %v15414_v38 = vpop.f32.mrf.mxu1 }
 0x463   :  { %v15415_v24 = vadd.f32 %v15414_v38, %v15222_v2  ;;  %15796 = vmatprep.mubr.bf16.mxu0 %v15520_v61  ;;  %v15486_v13 = vmax.f32 %v15413_v27, 0.0 }
 0x464   :  { %v15416_v49 = vpop.f32.mrf.mxu1  ;;  %15797 = vmatmul.mubr.bf16.gmra.mxu0 %v15519_v23 }
 0x465   :  { %v15487_v12 = vmax.f32 %v15415_v24, 0.0  ;;  %v15417_v9 = vadd.f32 %v15416_v49, %v15224_v55 }
 0x466   :  { %v15420_v43 = vpop.f32.mrf.mxu1 }
 0x467   :  { %v15521_v34 = vpack.c.bf16 %v15487_v12, %v15485_v41  ;;  %v15488_v35 = vmax.f32 %v15417_v9, 0.0  ;;  %v15421_v31 = vadd.f32 %v15420_v43, %v15228_v22 }
 0x468   :  { %v15422_v36 = vpop.f32.mrf.mxu1 }
 0x469   :  { %v15522_v63 = vpack.c.bf16 %v15488_v35, %v15486_v13  ;;  %v15423_v33 = vadd.f32 %v15422_v36, %v15230_v58  ;;  %v15489_v39 = vmax.f32 %v15421_v31, 0.0 }
 0x46a   :  { %v15424_v21 = vpop.f32.mrf.mxu1 }
 0x46b   :  { %v15425_v20 = vadd.f32 %v15424_v21, %v15232_v1  ;;  %15804 = vmatprep.mubr.bf16.mxu0 %v15522_v63  ;;  %v15490_v19 = vmax.f32 %v15423_v33, 0.0 }
 0x46c   :  { %v15426_v45 = vpop.f32.mrf.mxu1  ;;  %15805 = vmatmul.mubr.bf16.gmra.mxu0 %v15521_v34 }
 0x46d   :  { %v15491_v0 = vmax.f32 %v15425_v20, 0.0  ;;  %v15427_v3 = vadd.f32 %v15426_v45, %v15234_v62 }
 0x46f   :  { %v15523_v10 = vpack.c.bf16 %v15491_v0, %v15489_v39  ;;  %v15492_v53 = vmax.f32 %v15427_v3, 0.0 }
 0x471   :  { %v15524_v17 = vpack.c.bf16 %v15492_v53, %v15490_v19 }
 0x473   :  { %15812 = vmatprep.mubr.bf16.mxu0 %v15524_v17 }
 0x474   :  { %15813 = vmatmul.mubr.bf16.gmra.mxu0 %v15523_v10 }
 0x4bc   :  { %v19007_v25 = vpop.f32.mrf.mxu0 }
 0x4be   :  { %v19008_v16 = vpop.f32.mrf.mxu0 }
 0x4bf   :  { %v19009_v52 = vadd.f32 %v19008_v16, %v19007_v25 }
 0x4c0   :  { %v19010_v50 = vpop.f32.mrf.mxu0 }
 0x4c1   :  { %v15695_v18 = vadd.f32 %v19009_v52, %v23000_v44 }
 0x4c2   :  { %v19011_v8 = vpop.f32.mrf.mxu0 }
 0x4c3   :  { %15821 = vst [vmem:[#allocation18] sm:$0xff] %v15695_v18  ;;  %v19012_v29 = vadd.f32 %v19011_v8, %v19010_v50 }
 0x4c4   :  { %v19013_v14 = vpop.f32.mrf.mxu0 }
 0x4c5   :  { %v15698_v6 = vadd.f32 %v19012_v29, %v23000_v44 }
 0x4c6   :  { %v19014_v28 = vpop.f32.mrf.mxu0 }
 0x4c7   :  { %15822 = vst [vmem:[#allocation18 + $0x8] sm:$0xff] %v15698_v6  ;;  %v19015_v4 = vadd.f32 %v19014_v28, %v19013_v14 }
 0x4c8   :  { %v19016_v56 = vpop.f32.mrf.mxu0 }
 0x4c9   :  { %v15703_v46 = vadd.f32 %v19015_v4, %v23000_v44 }
 0x4ca   :  { %v19017_v5 = vpop.f32.mrf.mxu0 }
 0x4cb   :  { %15823 = vst [vmem:[#allocation18 + $0x10] sm:$0xff] %v15703_v46  ;;  %v19018_v57 = vadd.f32 %v19017_v5, %v19016_v56 }
 0x4cc   :  { %v19019_v7 = vpop.f32.mrf.mxu0 }
 0x4cd   :  { %v15706_v54 = vadd.f32 %v19018_v57, %v23000_v44 }
 0x4ce   :  { %v19020_v23 = vpop.f32.mrf.mxu0 }
 0x4cf   :  { %15824 = vst [vmem:[#allocation18 + $0x18] sm:$0xff] %v15706_v54  ;;  %v19021_v48 = vadd.f32 %v19020_v23, %v19019_v7 }
 0x4d0   :  { %v19022_v40 = vpop.f32.mrf.mxu0 }
 0x4d1   :  { %v15711_v47 = vadd.f32 %v19021_v48, %v23000_v44 }
 0x4d2   :  { %v19023_v30 = vpop.f32.mrf.mxu0 }
 0x4d3   :  { %15825 = vst [vmem:[#allocation18 + $0x20] sm:$0xff] %v15711_v47  ;;  %v19024_v26 = vadd.f32 %v19023_v30, %v19022_v40 }
 0x4d4   :  { %v19025_v2 = vpop.f32.mrf.mxu0 }
 0x4d5   :  { %v15714_v61 = vadd.f32 %v19024_v26, %v23000_v44 }
 0x4d6   :  { %v19026_v15 = vpop.f32.mrf.mxu0 }
 0x4d7   :  { %15826 = vst [vmem:[#allocation18 + $0x28] sm:$0xff] %v15714_v61  ;;  %v19027_v38 = vadd.f32 %v19026_v15, %v19025_v2 }
 0x4d8   :  { %v19028_v11 = vpop.f32.mrf.mxu0 }
 0x4d9   :  { %v15719_v55 = vadd.f32 %v19027_v38, %v23000_v44 }
 0x4da   :  { %v19029_v27 = vpop.f32.mrf.mxu0 }
 0x4db   :  { %15827 = vst [vmem:[#allocation18 + $0x30] sm:$0xff] %v15719_v55  ;;  %v19030_v24 = vadd.f32 %v19029_v27, %v19028_v11 }
 0x4dc   :  { %v19031_v60 = vpop.f32.mrf.mxu0 }
 0x4dd   :  { %v15722_v49 = vadd.f32 %v19030_v24, %v23000_v44 }
 0x4de   :  { %v19032_v41 = vpop.f32.mrf.mxu0 }
 0x4df   :  { %15828 = vst [vmem:[#allocation18 + $0x38] sm:$0xff] %v15722_v49  ;;  %v19033_v12 = vadd.f32 %v19032_v41, %v19031_v60 }
 0x4e0   :  { %v19034_v9 = vpop.f32.mrf.mxu0 }
 0x4e1   :  { %v15727_v43 = vadd.f32 %v19033_v12, %v23000_v44 }
 0x4e2   :  { %v19035_v59 = vpop.f32.mrf.mxu0 }
 0x4e3   :  { %15829 = vst [vmem:[#allocation18 + $0x40] sm:$0xff] %v15727_v43  ;;  %v19036_v22 = vadd.f32 %v19035_v59, %v19034_v9 }
 0x4e4   :  { %v19037_v13 = vpop.f32.mrf.mxu0 }
 0x4e5   :  { %v15730_v34 = vadd.f32 %v19036_v22, %v23000_v44 }
 0x4e6   :  { %v19038_v35 = vpop.f32.mrf.mxu0 }
 0x4e7   :  { %15830 = vst [vmem:[#allocation18 + $0x48] sm:$0xff] %v15730_v34  ;;  %v19039_v42 = vadd.f32 %v19038_v35, %v19037_v13 }
 0x4e8   :  { %v19040_v36 = vpop.f32.mrf.mxu0 }
 0x4e9   :  { %v15735_v37 = vadd.f32 %v19039_v42, %v23000_v44 }
 0x4ea   :  { %v19041_v58 = vpop.f32.mrf.mxu0 }
 0x4eb   :  { %15831 = vst [vmem:[#allocation18 + $0x50] sm:$0xff] %v15735_v37  ;;  %v19042_v32 = vadd.f32 %v19041_v58, %v19040_v36 }
 0x4ec   :  { %v19043_v1 = vpop.f32.mrf.mxu0 }
 0x4ed   :  { %v15738_v63 = vadd.f32 %v19042_v32, %v23000_v44 }
 0x4ee   :  { %v19044_v31 = vpop.f32.mrf.mxu0 }
 0x4ef   :  { %15832 = vst [vmem:[#allocation18 + $0x58] sm:$0xff] %v15738_v63  ;;  %v19045_v21 = vadd.f32 %v19044_v31, %v19043_v1 }
 0x4f0   :  { %v19046_v51 = vpop.f32.mrf.mxu0 }
 0x4f1   :  { %v15743_v62 = vadd.f32 %v19045_v21, %v23000_v44 }
 0x4f2   :  { %v19047_v33 = vpop.f32.mrf.mxu0 }
 0x4f3   :  { %15833 = vst [vmem:[#allocation18 + $0x60] sm:$0xff] %v15743_v62  ;;  %v19048_v20 = vadd.f32 %v19047_v33, %v19046_v51 }
 0x4f4   :  { %v19049_v45 = vpop.f32.mrf.mxu0 }
 0x4f5   :  { %v15746_v39 = vadd.f32 %v19048_v20, %v23000_v44 }
 0x4f6   :  { %v19050_v0 = vpop.f32.mrf.mxu0 }
 0x4f7   :  { %15834 = vst [vmem:[#allocation18 + $0x68] sm:$0xff] %v15746_v39  ;;  %v19051_v3 = vadd.f32 %v19050_v0, %v19049_v45 }
 0x4f8   :  { %v19052_v19 = vpop.f32.mrf.mxu0 }
 0x4f9   :  { %v15751_v10 = vadd.f32 %v19051_v3, %v23000_v44 }
 0x4fa   :  { %v19053_v53 = vpop.f32.mrf.mxu0 }
 0x4fb   :  { %15835 = vst [vmem:[#allocation18 + $0x70] sm:$0xff] %v15751_v10  ;;  %v19054_v17 = vadd.f32 %v19053_v53, %v19052_v19 }
 0x4fc   :  { %v19055_v25 = vpop.f32.mrf.mxu0 }
 0x4fd   :  { %v15754_v16 = vadd.f32 %v19054_v17, %v23000_v44 }
 0x4fe   :  { %v19056_v52 = vpop.f32.mrf.mxu0 }
 0x4ff   :  { %15836 = vst [vmem:[#allocation18 + $0x78] sm:$0xff] %v15754_v16  ;;  %v19057_v50 = vadd.f32 %v19056_v52, %v19055_v25 }
 0x500   :  { %v19058_v18 = vpop.f32.mrf.mxu0 }
 0x501   :  { %v15759_v8 = vadd.f32 %v19057_v50, %v23000_v44 }
 0x502   :  { %v19059_v29 = vpop.f32.mrf.mxu0 }
 0x503   :  { %15837 = vst [vmem:[#allocation18 + $0x80] sm:$0xff] %v15759_v8  ;;  %v19060_v14 = vadd.f32 %v19059_v29, %v19058_v18 }
 0x504   :  { %v19061_v6 = vpop.f32.mrf.mxu0 }
 0x505   :  { %v15762_v28 = vadd.f32 %v19060_v14, %v23000_v44 }
 0x506   :  { %v19062_v4 = vpop.f32.mrf.mxu0 }
 0x507   :  { %15838 = vst [vmem:[#allocation18 + $0x88] sm:$0xff] %v15762_v28  ;;  %v19063_v56 = vadd.f32 %v19062_v4, %v19061_v6 }
 0x508   :  { %v19064_v46 = vpop.f32.mrf.mxu0 }
 0x509   :  { %v15767_v5 = vadd.f32 %v19063_v56, %v23000_v44 }
 0x50a   :  { %v19065_v57 = vpop.f32.mrf.mxu0 }
 0x50b   :  { %15839 = vst [vmem:[#allocation18 + $0x90] sm:$0xff] %v15767_v5  ;;  %v19066_v7 = vadd.f32 %v19065_v57, %v19064_v46 }
 0x50c   :  { %v19067_v54 = vpop.f32.mrf.mxu0 }
 0x50d   :  { %v15770_v23 = vadd.f32 %v19066_v7, %v23000_v44 }
 0x50e   :  { %v19068_v48 = vpop.f32.mrf.mxu0 }
 0x50f   :  { %15840 = vst [vmem:[#allocation18 + $0x98] sm:$0xff] %v15770_v23  ;;  %v19069_v40 = vadd.f32 %v19068_v48, %v19067_v54 }
 0x510   :  { %v19070_v47 = vpop.f32.mrf.mxu0 }
 0x511   :  { %v15775_v30 = vadd.f32 %v19069_v40, %v23000_v44 }
 0x512   :  { %v19071_v26 = vpop.f32.mrf.mxu0 }
 0x513   :  { %15841 = vst [vmem:[#allocation18 + $0xa0] sm:$0xff] %v15775_v30  ;;  %v19072_v2 = vadd.f32 %v19071_v26, %v19070_v47 }
 0x514   :  { %v19073_v61 = vpop.f32.mrf.mxu0 }
 0x515   :  { %v15778_v15 = vadd.f32 %v19072_v2, %v23000_v44 }
 0x516   :  { %v19074_v38 = vpop.f32.mrf.mxu0 }
 0x517   :  { %15842 = vst [vmem:[#allocation18 + $0xa8] sm:$0xff] %v15778_v15  ;;  %v19075_v11 = vadd.f32 %v19074_v38, %v19073_v61 }
 0x518   :  { %v19076_v55 = vpop.f32.mrf.mxu0 }
 0x519   :  { %v15783_v27 = vadd.f32 %v19075_v11, %v23000_v44 }
 0x51a   :  { %v19077_v24 = vpop.f32.mrf.mxu0 }
 0x51b   :  { %15843 = vst [vmem:[#allocation18 + $0xb0] sm:$0xff] %v15783_v27  ;;  %v19078_v60 = vadd.f32 %v19077_v24, %v19076_v55 }
 0x51c   :  { %v19079_v49 = vpop.f32.mrf.mxu0 }
 0x51d   :  { %v15786_v41 = vadd.f32 %v19078_v60, %v23000_v44 }
 0x51e   :  { %v19080_v12 = vpop.f32.mrf.mxu0 }
 0x51f   :  { %15844 = vst [vmem:[#allocation18 + $0xb8] sm:$0xff] %v15786_v41  ;;  %v19081_v9 = vadd.f32 %v19080_v12, %v19079_v49 }
 0x520   :  { %v19082_v43 = vpop.f32.mrf.mxu0 }
 0x521   :  { %v15791_v59 = vadd.f32 %v19081_v9, %v23000_v44 }
 0x522   :  { %v19083_v22 = vpop.f32.mrf.mxu0 }
 0x523   :  { %15845 = vst [vmem:[#allocation18 + $0xc0] sm:$0xff] %v15791_v59  ;;  %v19084_v13 = vadd.f32 %v19083_v22, %v19082_v43 }
 0x524   :  { %v19085_v34 = vpop.f32.mrf.mxu0 }
 0x525   :  { %v15794_v35 = vadd.f32 %v19084_v13, %v23000_v44 }
 0x526   :  { %v19086_v42 = vpop.f32.mrf.mxu0 }
 0x527   :  { %15846 = vst [vmem:[#allocation18 + $0xc8] sm:$0xff] %v15794_v35  ;;  %v19087_v36 = vadd.f32 %v19086_v42, %v19085_v34 }
 0x528   :  { %v19088_v37 = vpop.f32.mrf.mxu0 }
 0x529   :  { %v15799_v58 = vadd.f32 %v19087_v36, %v23000_v44 }
 0x52a   :  { %v19089_v32 = vpop.f32.mrf.mxu0 }
 0x52b   :  { %15847 = vst [vmem:[#allocation18 + $0xd0] sm:$0xff] %v15799_v58  ;;  %v19090_v1 = vadd.f32 %v19089_v32, %v19088_v37 }
 0x52c   :  { %v19091_v63 = vpop.f32.mrf.mxu0 }
 0x52d   :  { %v15802_v31 = vadd.f32 %v19090_v1, %v23000_v44 }
 0x52e   :  { %v19092_v21 = vpop.f32.mrf.mxu0 }
 0x52f   :  { %15848 = vst [vmem:[#allocation18 + $0xd8] sm:$0xff] %v15802_v31  ;;  %v19093_v51 = vadd.f32 %v19092_v21, %v19091_v63 }
 0x530   :  { %v19094_v62 = vpop.f32.mrf.mxu0 }
 0x531   :  { %v15807_v33 = vadd.f32 %v19093_v51, %v23000_v44 }
 0x532   :  { %v19095_v20 = vpop.f32.mrf.mxu0 }
 0x533   :  { %15849 = vst [vmem:[#allocation18 + $0xe0] sm:$0xff] %v15807_v33  ;;  %v19096_v45 = vadd.f32 %v19095_v20, %v19094_v62 }
 0x534   :  { %v19097_v39 = vpop.f32.mrf.mxu0 }
 0x535   :  { %v15810_v0 = vadd.f32 %v19096_v45, %v23000_v44 }
 0x536   :  { %v19098_v3 = vpop.f32.mrf.mxu0 }
 0x537   :  { %15850 = vst [vmem:[#allocation18 + $0xe8] sm:$0xff] %v15810_v0  ;;  %v19099_v19 = vadd.f32 %v19098_v3, %v19097_v39 }
 0x538   :  { %v19100_v10 = vpop.f32.mrf.mxu0 }
 0x539   :  { %v15815_v53 = vadd.f32 %v19099_v19, %v23000_v44 }
 0x53a   :  { %v19101_v17 = vpop.f32.mrf.mxu0 }
 0x53b   :  { %15851 = vst [vmem:[#allocation18 + $0xf0] sm:$0xff] %v15815_v53  ;;  %v19102_v25 = vadd.f32 %v19101_v17, %v19100_v10 }
 0x53d   :  { %v15818_v16 = vadd.f32 %v19102_v25, %v23000_v44 }
 0x53f   :  { %15852 = vst [vmem:[#allocation18 + $0xf8] sm:$0xff] %v15818_v16 }
 0x540   :  { %15857 = vsyncadd [#allocation14], 3968  ;;  %s19252_s6 = smov [#allocation18]  }
 0x541   :  { %s15858_s14 = sshll.u32 %s19252_s6, 4  ;;  %s15859_s14 = int_to_ptr.vmem [resolvable:$true] %s15858_s14 }
 0x542   :  { %s19220_s3 = scalar_lea.vmem %s15859_s14, 128  ;;  %s19224_s15 = scalar_lea.vmem %s15859_s14, 4096 }
 0x543   :  { %p19221_p1 = scmp.ne.s32.totalorder %s15859_s14, %s19220_s3  ;;  %p19225_p2 = scmp.lt.s32.totalorder %s15859_s14, %s15859_s14 }
 0x544   :  { %p19226_p3 = scmp.lt.s32.totalorder %s19224_s15, %s19220_s3 }
 0x546   :  { %p19227_p4 = por %p19226_p3, %p19225_p2 }
 0x548   :  { %p19228_p5 = pnand %p19227_p4, %p19221_p1 }
 0x54a   :  { %19231 = shalt.err (!%p19228_p5)
}
 0x54b   :  { %s19253_s16 = smov 128   ;;  %s19254_s17 = smov 8  }
 0x54c   :  { %15864 = dma.vmem_to_hbm [thread:$0]  %s15859_s14, 128, %s23044_s7, [#allocation14], %s19253_s16, %s19253_s16, %s19254_s17  }
 0x54d   :  { %19244 = dma.done.wait [#allocation14], 4096  }
 0x54e   :  { %19245 = vsyncadd [#allocation14], 4294963200 }
 0x54f   :  { %15868 = vsyncpa [#allocation13], 1 }
 0x550   :  { %15869 = vsyncpa [#allocation16], 1 }
 0x551   :  { %15870 = vsyncpa [#allocation14], 1 }

</bundles_post_ra>
